<compile_context>
chip_gen: v6e
topology: v6e:2x2x1
jax: 0.10.0
libtpu: 0.0.40
codegen_flags: <defaults>
</compile_context>

<pallas_src>
import numpy as np
import jax
import jax.numpy as jnp
from jax.experimental import pallas as pl
from jax.experimental.pallas import tpu as pltpu


# ----------------------------------------------------------------------------- helpers
def _round_up(x, m):
    return (x + m - 1) // m * m


def _geometry(N, H, W):
    """Bookkeeping for one spatial resolution.

    Activations travel between convs as (C, R_int) slabs: channels on sublanes, the
    flattened zero-padded spatial grid (batch folded in) on lanes, restricted to the
    'interior' window [G, R - G) so every 3x3 tap shift is a static in-bounds lane slice.
    Padding-ring positions inside the window are kept at exactly zero (that IS the conv
    zero-padding).
    """
    Hp, Wp = H + 2, W + 2
    G = Wp + 1                       # max |tap offset| of a 3x3 kernel in flat coords
    R = N * Hp * Wp
    return dict(H=H, W=W, Hp=Hp, Wp=Wp, G=G, R=R, R_int=R - 2 * G)


def _res_after(H, W, stride):
    sh, sw = stride
    return ((H - 1) // sh + 1, (W - 1) // sw + 1)


def _interior_mask(N, geo):
    """(1, R_int) f32: 1 at valid (non-ring) positions of the interior window."""
    H, W, Hp, Wp, G, R = geo["H"], geo["W"], geo["Hp"], geo["Wp"], geo["G"], geo["R"]
    m = np.zeros((R,), np.float32)
    for n in range(N):
        base = n * Hp * Wp
        for a in range(1, H + 1):
            s = base + a * Wp + 1
            m[s:s + W] = 1.0
    return m[G:R - G].reshape(1, -1)


def _downsample_matrix(N, geo_in, geo_out, stride):
    """(R_int_in, R_int_out) 0/1 selection matrix.

    One matmul gathers the strided-conv outputs out of the dense stride-1 result and
    scatters them straight into the coarser padded layout (output ring stays zero).
    """
    sh, sw = stride
    S = np.zeros((geo_in["R_int"], geo_out["R_int"]), np.float32)
    Hp, Wp, Gi = geo_in["Hp"], geo_in["Wp"], geo_in["G"]
    Hpo, Wpo, Go = geo_out["Hp"], geo_out["Wp"], geo_out["G"]
    Ho, Wo = geo_out["H"], geo_out["W"]
    for n in range(N):
        for i in range(Ho):
            for j in range(Wo):
                p_in = n * Hp * Wp + (sh * i + 1) * Wp + (sw * j + 1) - Gi
                p_out = n * Hpo * Wpo + (i + 1) * Wpo + (j + 1) - Go
                S[p_in, p_out] = 1.0
    return S


# ------------------------------------------------------------------ whole-network kernel
def _build_kernel(plan):
    """One kernel for the whole backbone; `plan` is purely static configuration."""
    geos = plan["geos"]

    def conv3x3(x, w_ref, b_ref, patch_ref, geo):
        """Dense 3x3 conv over the interior window; 9 taps folded into one K=9*Cin matmul."""
        cin = x.shape[0]
        wp, r_int = geo["Wp"], geo["R_int"]
        k = 9 * cin
        # Zero-fill once (covers the few edge lanes each tap cannot provide), then write
        # each tap's in-bounds span at its K offset.  All slices are static.
        patch_ref[0:k, 0:r_int] = jnp.zeros((k, r_int), jnp.bfloat16)
        t = 0
        for di in (-1, 0, 1):
            for dj in (-1, 0, 1):
                off = di * wp + dj
                sa = max(0, off)
                sb = r_int + min(0, off)
                da = sa - off
                patch_ref[t * cin:(t + 1) * cin, da:da + (sb - sa)] = x[:, sa:sb]
                t += 1
        patch = patch_ref[0:k, 0:r_int]                               # (9*Cin, P) bf16
        y = jnp.dot(w_ref[...], patch, preferred_element_type=jnp.float32)
        return y + b_ref[...]                                         # (Cout, P) f32

    def conv1x1(x, w_ref, b_ref):
        y = jnp.dot(w_ref[...], x, preferred_element_type=jnp.float32)
        return y + b_ref[...]

    def kernel(*refs):
        it = iter(refs)
        x_ref = next(it)
        mask_refs = [next(it) for _ in range(len(geos))]
        s_refs = [next(it) for _ in range(plan["n_s"])]
        stem_w, stem_b = next(it), next(it)
        blk_refs = []
        for layer in plan["layers"]:
            lrefs = []
            for blk in layer:
                w = [next(it), next(it), next(it), next(it)]          # c1w c1b c2w c2b
                if blk["has_down"]:
                    w += [next(it), next(it)]                          # dw db
                lrefs.append(w)
            blk_refs.append(lrefs)
        out_refs = [next(it) for _ in range(plan["n_out"])]
        patch_ref = next(it)

        def mask_relu(y, gidx, relu):
            if relu:
                y = jnp.maximum(y, 0.0)
            return y * mask_refs[gidx][...]           # re-zero the padding ring

        def downsample(y, sidx, relu):
            if relu:
                y = jnp.maximum(y, 0.0)
            return jnp.dot(y.astype(jnp.bfloat16), s_refs[sidx][...],
                           preferred_element_type=jnp.float32)

        # ------------------------------ stem ------------------------------
        st = plan["stem"]
        y = conv3x3(x_ref[...], stem_w, stem_b, patch_ref, geos[st["gi"]])
        if st["s"] is None:
            y = mask_relu(y, st["go"], relu=True)
        else:
            y = downsample(y, st["s"], relu=True)
        x = y.astype(jnp.bfloat16)
        x_f32 = y

        # ------------------------- residual blocks -------------------------
        feats = []
        for layer, lrefs, emit in zip(plan["layers"], blk_refs, plan["emit_after_layer"]):
            for blk, w in zip(layer, lrefs):
                gi, go = blk["gi"], blk["go"]
                c1w, c1b, c2w, c2b = w[0], w[1], w[2], w[3]
                # conv1 + BN + ReLU (strided convs go through the selection matmul)
                y1 = conv3x3(x, c1w, c1b, patch_ref, geos[gi])
                if blk["s"] is None:
                    y1 = mask_relu(y1, go, relu=True)
                else:
                    y1 = downsample(y1, blk["s"], relu=True)
                out = y1.astype(jnp.bfloat16)
                # shortcut
                if blk["has_down"]:
                    sc = conv1x1(x, w[4], w[5])
                    if blk["s"] is not None:
                        sc = downsample(sc, blk["s"], relu=False)
                else:
                    sc = x.astype(jnp.float32)
                # conv2 + BN + residual add + ReLU + ring mask (fused epilogue)
                y2 = conv3x3(out, c2w, c2b, patch_ref, geos[go]) + sc
                y2 = mask_relu(y2, go, relu=True)
                x = y2.astype(jnp.bfloat16)
                x_f32 = y2
            if emit:
                feats.append(x_f32)
        feats.append(x_f32)                           # reference code always appends last
        for o_ref, f in zip(out_refs, feats):
            o_ref[...] = f

    return kernel


# --------------------------------------------------------------------------- parameters
def _conv_bn_params(key, cin, cout, k):
    """Conv weight with eval-mode BatchNorm folded in: (cout, k*k*cin) bf16 + (cout,1) f32."""
    kw_, kg, kb, km, kv = jax.random.split(key, 5)
    fan_in = cin * k * k
    w = jax.random.normal(kw_, (cout, cin, k, k), jnp.float32) * (2.0 / fan_in) ** 0.5
    gamma = 1.0 + 0.1 * jax.random.normal(kg, (cout,), jnp.float32)
    beta = 0.1 * jax.random.normal(kb, (cout,), jnp.float32)
    mean = 0.1 * jax.random.normal(km, (cout,), jnp.float32)
    var = 1.0 + 0.1 * jnp.abs(jax.random.normal(kv, (cout,), jnp.float32))
    eps = 1e-5
    scale = gamma / jnp.sqrt(var + eps)                 # folded BN (eval mode)
    bias = beta - mean * scale
    # OIHW -> (O, KH, KW, I) -> (O, KH*KW*I): tap-major K, matching the patch-row order.
    wk = jnp.transpose(w, (0, 2, 3, 1)).reshape(cout, k * k * cin)
    wk = (wk * scale[:, None]).astype(jnp.bfloat16)
    return {"w": wk, "b": bias.reshape(cout, 1).astype(jnp.float32)}


# -------------------------------------------------------------------------------- model
class NekoCCOFeatureExtractorF:
    """JAX/Pallas port of neko_cco_Feature_ExtractorF (feature path)."""

    # ResNet-45 uses (3, 4, 6, 6, 3); reduced for the small synthetic demo.
    LAYER_BLOCKS = (1, 1, 1, 1, 1)

    def __init__(self, strides, compress_layer, input_shape, hardness=2, oupch=32,
                 expf=1, key=None):
        del compress_layer, hardness   # sub-module internals unavailable; unused here.
        self.strides = [tuple(s) for s in strides]
        self.input_shape = tuple(input_shape)
        self._inpch = int(input_shape[0])
        self._chs = [int(8 * expf), int(8 * expf), int(16 * expf), int(16 * expf),
                     int(32 * expf), int(oupch)]

        key = jax.random.PRNGKey(0) if key is None else key
        keys = iter(jax.random.split(key, 256))

        stem = _conv_bn_params(next(keys), self._inpch, self._chs[0], 3)
        layers_params, layers_cfg = [], []
        cin = self._chs[0]
        for li in range(5):
            cout = self._chs[li + 1]
            bparams, bcfg = [], []
            for bi in range(self.LAYER_BLOCKS[li]):
                s = self.strides[li + 1] if bi == 0 else (1, 1)
                has_down = (s != (1, 1)) or (cin != cout)
                p = {"conv1": _conv_bn_params(next(keys), cin, cout, 3),
                     "conv2": _conv_bn_params(next(keys), cout, cout, 3)}
                if has_down:
                    p["down"] = _conv_bn_params(next(keys), cin, cout, 1)
                bparams.append(p)
                bcfg.append({"stride": s, "has_down": has_down})   # static structure
                cin = cout
            layers_params.append(bparams)
            layers_cfg.append(bcfg)

        self.params = {"stem": stem, "layers": layers_params}      # traced pytree
        self._cfg = layers_cfg                                      # static structure
        self._jit_forward = jax.jit(self._forward_impl)

    # -------------------------- static per-batch-size plan --------------------------
    def _make_plan(self, N):
        H0, W0 = self.input_shape[1], self.input_shape[2]
        geos, geo_ids = [], {}

        def gid(h, w):
            if (h, w) not in geo_ids:
                geo_ids[(h, w)] = len(geos)
                geos.append(_geometry(N, h, w))
            return geo_ids[(h, w)]

        s_specs, s_ids = [], {}

        def sid(gi, go, stride):
            k = (gi, go, stride)
            if k not in s_ids:
                s_ids[k] = len(s_specs)
                s_specs.append(k)
            return s_ids[k]

        gi0 = gid(H0, W0)
        if self.strides[0] == (1, 1):
            stem = dict(gi=gi0, go=gi0, s=None)
        else:
            go0 = gid(*_res_after(H0, W0, self.strides[0]))
            stem = dict(gi=gi0, go=go0, s=sid(gi0, go0, self.strides[0]))
        cur = stem["go"]
        tracked = cur

        layers, emit_after_layer, out_shapes, out_geos = [], [], [], []
        cur_ch = self._chs[0]
        for li, layer_cfg in enumerate(self._cfg):
            blocks = []
            for bc in layer_cfg:
                stride = bc["stride"]
                gi = cur
                if stride == (1, 1):
                    go, s = gi, None
                else:
                    go = gid(*_res_after(geos[gi]["H"], geos[gi]["W"], stride))
                    s = sid(gi, go, stride)
                blocks.append(dict(gi=gi, go=go, s=s, has_down=bc["has_down"]))
                cur = go
            layers.append(blocks)
            cur_ch = self._chs[li + 1]
            emit = cur != tracked
            emit_after_layer.append(emit)
            if emit:
                tracked = cur
                out_shapes.append((cur_ch, geos[cur]["R_int"]))
                out_geos.append(cur)
        out_shapes.append((cur_ch, geos[cur]["R_int"]))
        out_geos.append(cur)

        masks = [_interior_mask(N, g) for g in geos]
        s_mats = [_downsample_matrix(N, geos[a], geos[b], st) for (a, b, st) in s_specs]

        patch_rows = _round_up(9 * max([self._inpch] + list(self._chs)), 16)
        patch_cols = _round_up(max(g["R_int"] for g in geos), 128)

        return dict(geos=geos, stem=stem, layers=layers,
                    emit_after_layer=emit_after_layer,
                    n_s=len(s_specs), n_out=len(out_shapes),
                    out_shapes=out_shapes, out_geos=out_geos,
                    masks=masks, s_mats=s_mats,
                    patch_rows=patch_rows, patch_cols=patch_cols)

    # --------------------------------- forward pass ---------------------------------
    def _forward_impl(self, params, x_nchw):
        N, C, H, W = x_nchw.shape
        plan = self._make_plan(N)
        geos = plan["geos"]
        g0 = geos[plan["stem"]["gi"]]

        # NCHW -> zero-padded, batch-flattened (Cin, R_int) bf16 slab (done once per call)
        xp = jnp.pad(x_nchw.astype(jnp.bfloat16), ((0, 0), (0, 0), (1, 1), (1, 1)))
        xt = jnp.transpose(xp, (1, 0, 2, 3)).reshape(C, g0["R"])
        x_int = xt[:, g0["G"]:g0["R"] - g0["G"]]

        masks = [jnp.asarray(m) for m in plan["masks"]]
        s_mats = [jnp.asarray(s).astype(jnp.bfloat16) for s in plan["s_mats"]]

        weights = [params["stem"]["w"], params["stem"]["b"]]
        for lp in params["layers"]:
            for bp in lp:
                weights += [bp["conv1"]["w"], bp["conv1"]["b"],
                            bp["conv2"]["w"], bp["conv2"]["b"]]
                if "down" in bp:
                    weights += [bp["down"]["w"], bp["down"]["b"]]

        out_shape = [jax.ShapeDtypeStruct(s, jnp.float32) for s in plan["out_shapes"]]
        feats_flat = pl.pallas_call(
            _build_kernel(plan),
            out_shape=out_shape,
            scratch_shapes=[pltpu.VMEM((plan["patch_rows"], plan["patch_cols"]),
                                       jnp.bfloat16)],
        )(x_int, *masks, *s_mats, *weights)
        if not isinstance(feats_flat, (list, tuple)):
            feats_flat = [feats_flat]

        # (C, R_int) slabs -> NCHW float32 features (tiny, once per output)
        feats = []
        for f, gidx in zip(feats_flat, plan["out_geos"]):
            gg = geos[gidx]
            full = jnp.pad(f, ((0, 0), (gg["G"], gg["G"])))
            full = full.reshape(f.shape[0], N, gg["Hp"], gg["Wp"])[:, :, 1:-1, 1:-1]
            feats.append(jnp.transpose(full, (1, 0, 2, 3)))
        return feats

    def forward(self, x_nchw, debug=False):
        features = self._jit_forward(self.params, x_nchw)
        grid = None  # TODO(synk): rescco lens/grid branch source unavailable (debug-only).
        if debug:
            return features, grid
        return features

    def Iwantshapes(self):
        pseudo = jnp.zeros((1,) + tuple(self.input_shape), jnp.float32)
        feats = self._jit_forward(self.params, pseudo)
        return [tuple(f.shape[1:]) for f in feats]


# --------------------------------------------------------------------------------- main
if __name__ == "__main__":
    key = jax.random.PRNGKey(0)
    k_param, k_in = jax.random.split(key)

    input_shape = (4, 16, 16)                                    # (C, H, W)
    strides = [(1, 1), (2, 2), (1, 1), (2, 2), (1, 1), (1, 1)]   # stem + 5 layers
    model = NekoCCOFeatureExtractorF(strides, compress_layer=False,
                                     input_shape=input_shape, oupch=32, expf=1,
                                     key=k_param)

    x = jax.random.normal(k_in, (2,) + input_shape, jnp.float32)  # NCHW, like PyTorch
    feats = model.forward(x)
    jax.block_until_ready(feats)

    # basic sanity: multi-scale features with the expected shapes, all finite, non-trivial
    assert len(feats) == 3, len(feats)
    assert feats[0].shape == (2, 8, 8, 8), feats[0].shape
    assert feats[1].shape == (2, 16, 4, 4), feats[1].shape
    assert feats[-1].shape == (2, 32, 4, 4), feats[-1].shape
    assert all(bool(jnp.isfinite(f).all()) for f in feats)
    assert all(float(jnp.abs(f).max()) > 0.0 for f in feats)
    print("KERNEL_OK")
</pallas_src>

<mosaic_0001>
module attributes {stable_mosaic.version = 11 : i64} {
  func.func @kernel(%arg0: memref<4x610xbf16, #tpu.memory_space<vmem>>, %arg1: memref<1x610xf32, #tpu.memory_space<vmem>>, %arg2: memref<1x178xf32, #tpu.memory_space<vmem>>, %arg3: memref<1x58xf32, #tpu.memory_space<vmem>>, %arg4: memref<610x178xbf16, #tpu.memory_space<vmem>>, %arg5: memref<178x58xbf16, #tpu.memory_space<vmem>>, %arg6: memref<8x36xbf16, #tpu.memory_space<vmem>>, %arg7: memref<8x1xf32, #tpu.memory_space<vmem>>, %arg8: memref<8x72xbf16, #tpu.memory_space<vmem>>, %arg9: memref<8x1xf32, #tpu.memory_space<vmem>>, %arg10: memref<8x72xbf16, #tpu.memory_space<vmem>>, %arg11: memref<8x1xf32, #tpu.memory_space<vmem>>, %arg12: memref<8x8xbf16, #tpu.memory_space<vmem>>, %arg13: memref<8x1xf32, #tpu.memory_space<vmem>>, %arg14: memref<16x72xbf16, #tpu.memory_space<vmem>>, %arg15: memref<16x1xf32, #tpu.memory_space<vmem>>, %arg16: memref<16x144xbf16, #tpu.memory_space<vmem>>, %arg17: memref<16x1xf32, #tpu.memory_space<vmem>>, %arg18: memref<16x8xbf16, #tpu.memory_space<vmem>>, %arg19: memref<16x1xf32, #tpu.memory_space<vmem>>, %arg20: memref<16x144xbf16, #tpu.memory_space<vmem>>, %arg21: memref<16x1xf32, #tpu.memory_space<vmem>>, %arg22: memref<16x144xbf16, #tpu.memory_space<vmem>>, %arg23: memref<16x1xf32, #tpu.memory_space<vmem>>, %arg24: memref<16x16xbf16, #tpu.memory_space<vmem>>, %arg25: memref<16x1xf32, #tpu.memory_space<vmem>>, %arg26: memref<32x144xbf16, #tpu.memory_space<vmem>>, %arg27: memref<32x1xf32, #tpu.memory_space<vmem>>, %arg28: memref<32x288xbf16, #tpu.memory_space<vmem>>, %arg29: memref<32x1xf32, #tpu.memory_space<vmem>>, %arg30: memref<32x16xbf16, #tpu.memory_space<vmem>>, %arg31: memref<32x1xf32, #tpu.memory_space<vmem>>, %arg32: memref<32x288xbf16, #tpu.memory_space<vmem>>, %arg33: memref<32x1xf32, #tpu.memory_space<vmem>>, %arg34: memref<32x288xbf16, #tpu.memory_space<vmem>>, %arg35: memref<32x1xf32, #tpu.memory_space<vmem>>, %arg36: memref<8x178xf32, #tpu.memory_space<vmem>>, %arg37: memref<16x58xf32, #tpu.memory_space<vmem>>, %arg38: memref<32x58xf32, #tpu.memory_space<vmem>>, %arg39: memref<288x640xbf16, #tpu.memory_space<vmem>>) attributes {dimension_semantics = [], scalar_prefetch = 0 : i64, scratch_operands = 1 : i64, tpu.core_type = #tpu.core_type<tc>} {
    %c0 = arith.constant 0 : index
    %c0_0 = arith.constant 0 : index
    %0 = vector.load %arg0[%c0, %c0_0] : memref<4x610xbf16, #tpu.memory_space<vmem>>, vector<4x610xbf16>
    %cst = arith.constant 0.000000e+00 : bf16
    %1 = vector.broadcast %cst : bf16 to vector<36x610xbf16>
    %c0_1 = arith.constant 0 : index
    %c0_2 = arith.constant 0 : index
    %2 = vector.load %arg39[%c0_1, %c0_2] : memref<288x640xbf16, #tpu.memory_space<vmem>>, vector<36x610xbf16>
    tpu.vector_store %arg39[%c0_1, %c0_2], %1 {strides = array<i32>} : memref<288x640xbf16, #tpu.memory_space<vmem>>, vector<36x610xbf16>,
    %3 = vector.extract_strided_slice %0 {offsets = [0, 0], sizes = [4, 591], strides = [1, 1]} : vector<4x610xbf16> to vector<4x591xbf16>
    %c0_3 = arith.constant 0 : index
    %c19 = arith.constant 19 : index
    %4 = vector.load %arg39[%c0_3, %c19] : memref<288x640xbf16, #tpu.memory_space<vmem>>, vector<4x591xbf16>
    tpu.vector_store %arg39[%c0_3, %c19], %3 {strides = array<i32>} : memref<288x640xbf16, #tpu.memory_space<vmem>>, vector<4x591xbf16>,
    %5 = vector.extract_strided_slice %0 {offsets = [0, 0], sizes = [4, 592], strides = [1, 1]} : vector<4x610xbf16> to vector<4x592xbf16>
    %c4 = arith.constant 4 : index
    %c18 = arith.constant 18 : index
    %6 = vector.load %arg39[%c4, %c18] : memref<288x640xbf16, #tpu.memory_space<vmem>>, vector<4x592xbf16>
    tpu.vector_store %arg39[%c4, %c18], %5 {strides = array<i32>} : memref<288x640xbf16, #tpu.memory_space<vmem>>, vector<4x592xbf16>,
    %7 = vector.extract_strided_slice %0 {offsets = [0, 0], sizes = [4, 593], strides = [1, 1]} : vector<4x610xbf16> to vector<4x593xbf16>
    %c8 = arith.constant 8 : index
    %c17 = arith.constant 17 : index
    %8 = vector.load %arg39[%c8, %c17] : memref<288x640xbf16, #tpu.memory_space<vmem>>, vector<4x593xbf16>
    tpu.vector_store %arg39[%c8, %c17], %7 {strides = array<i32>} : memref<288x640xbf16, #tpu.memory_space<vmem>>, vector<4x593xbf16>,
    %9 = vector.extract_strided_slice %0 {offsets = [0, 0], sizes = [4, 609], strides = [1, 1]} : vector<4x610xbf16> to vector<4x609xbf16>
    %c12 = arith.constant 12 : index
    %c1 = arith.constant 1 : index
    %10 = vector.load %arg39[%c12, %c1] : memref<288x640xbf16, #tpu.memory_space<vmem>>, vector<4x609xbf16>
    tpu.vector_store %arg39[%c12, %c1], %9 {strides = array<i32>} : memref<288x640xbf16, #tpu.memory_space<vmem>>, vector<4x609xbf16>,
    %c16 = arith.constant 16 : index
    %c0_4 = arith.constant 0 : index
    %11 = vector.load %arg39[%c16, %c0_4] : memref<288x640xbf16, #tpu.memory_space<vmem>>, vector<4x610xbf16>
    tpu.vector_store %arg39[%c16, %c0_4], %0 {strides = array<i32>} : memref<288x640xbf16, #tpu.memory_space<vmem>>, vector<4x610xbf16>,
    %12 = vector.extract_strided_slice %0 {offsets = [0, 1], sizes = [4, 609], strides = [1, 1]} : vector<4x610xbf16> to vector<4x609xbf16>
    %c20 = arith.constant 20 : index
    %c0_5 = arith.constant 0 : index
    %13 = vector.load %arg39[%c20, %c0_5] : memref<288x640xbf16, #tpu.memory_space<vmem>>, vector<4x609xbf16>
    tpu.vector_store %arg39[%c20, %c0_5], %12 {strides = array<i32>} : memref<288x640xbf16, #tpu.memory_space<vmem>>, vector<4x609xbf16>,
    %14 = vector.extract_strided_slice %0 {offsets = [0, 17], sizes = [4, 593], strides = [1, 1]} : vector<4x610xbf16> to vector<4x593xbf16>
    %c24 = arith.constant 24 : index
    %c0_6 = arith.constant 0 : index
    %15 = vector.load %arg39[%c24, %c0_6] : memref<288x640xbf16, #tpu.memory_space<vmem>>, vector<4x593xbf16>
    tpu.vector_store %arg39[%c24, %c0_6], %14 {strides = array<i32>} : memref<288x640xbf16, #tpu.memory_space<vmem>>, vector<4x593xbf16>,
    %16 = vector.extract_strided_slice %0 {offsets = [0, 18], sizes = [4, 592], strides = [1, 1]} : vector<4x610xbf16> to vector<4x592xbf16>
    %c28 = arith.constant 28 : index
    %c0_7 = arith.constant 0 : index
    %17 = vector.load %arg39[%c28, %c0_7] : memref<288x640xbf16, #tpu.memory_space<vmem>>, vector<4x592xbf16>
    tpu.vector_store %arg39[%c28, %c0_7], %16 {strides = array<i32>} : memref<288x640xbf16, #tpu.memory_space<vmem>>, vector<4x592xbf16>,
    %18 = vector.extract_strided_slice %0 {offsets = [0, 19], sizes = [4, 591], strides = [1, 1]} : vector<4x610xbf16> to vector<4x591xbf16>
    %c32 = arith.constant 32 : index
    %c0_8 = arith.constant 0 : index
    %19 = vector.load %arg39[%c32, %c0_8] : memref<288x640xbf16, #tpu.memory_space<vmem>>, vector<4x591xbf16>
    tpu.vector_store %arg39[%c32, %c0_8], %18 {strides = array<i32>} : memref<288x640xbf16, #tpu.memory_space<vmem>>, vector<4x591xbf16>,
    %c0_9 = arith.constant 0 : index
    %c0_10 = arith.constant 0 : index
    %20 = vector.load %arg39[%c0_9, %c0_10] : memref<288x640xbf16, #tpu.memory_space<vmem>>, vector<36x610xbf16>
    %c0_11 = arith.constant 0 : index
    %c0_12 = arith.constant 0 : index
    %21 = vector.load %arg6[%c0_11, %c0_12] : memref<8x36xbf16, #tpu.memory_space<vmem>>, vector<8x36xbf16>
    %cst_13 = arith.constant dense<0.000000e+00> : vector<8x610xf32>
    %22 = tpu.matmul %21, %20, %cst_13 {dimension_numbers = #tpu.dot_dimension_numbers<[1], [0], [0], [1], [0, 0, 1, 1], [], []>} : vector<8x36xbf16>, vector<36x610xbf16>, vector<8x610xf32> -> vector<8x610xf32>
    %c0_14 = arith.constant 0 : index
    %c0_15 = arith.constant 0 : index
    %23 = vector.load %arg7[%c0_14, %c0_15] : memref<8x1xf32, #tpu.memory_space<vmem>>, vector<8x1xf32>
    %24 = vector.broadcast %23 : vector<8x1xf32> to vector<8x610xf32>
    %25 = arith.addf %22, %24 : vector<8x610xf32>
    %cst_16 = arith.constant 0.000000e+00 : f32
    %26 = vector.broadcast %cst_16 : f32 to vector<8x610xf32>
    %27 = arith.maximumf %25, %26 : vector<8x610xf32>
    %c0_17 = arith.constant 0 : index
    %c0_18 = arith.constant 0 : index
    %28 = vector.load %arg1[%c0_17, %c0_18] : memref<1x610xf32, #tpu.memory_space<vmem>>, vector<1x610xf32>
    %29 = vector.broadcast %28 : vector<1x610xf32> to vector<8x610xf32>
    %30 = arith.mulf %27, %29 : vector<8x610xf32>
    %31 = arith.truncf %30 : vector<8x610xf32> to vector<8x610xbf16>
    %cst_19 = arith.constant 0.000000e+00 : bf16
    %32 = vector.broadcast %cst_19 : bf16 to vector<72x610xbf16>
    %c0_20 = arith.constant 0 : index
    %c0_21 = arith.constant 0 : index
    %33 = vector.load %arg39[%c0_20, %c0_21] : memref<288x640xbf16, #tpu.memory_space<vmem>>, vector<72x610xbf16>
    tpu.vector_store %arg39[%c0_20, %c0_21], %32 {strides = array<i32>} : memref<288x640xbf16, #tpu.memory_space<vmem>>, vector<72x610xbf16>,
    %34 = vector.extract_strided_slice %31 {offsets = [0, 0], sizes = [8, 591], strides = [1, 1]} : vector<8x610xbf16> to vector<8x591xbf16>
    %c0_22 = arith.constant 0 : index
    %c19_23 = arith.constant 19 : index
    %35 = vector.load %arg39[%c0_22, %c19_23] : memref<288x640xbf16, #tpu.memory_space<vmem>>, vector<8x591xbf16>
    tpu.vector_store %arg39[%c0_22, %c19_23], %34 {strides = array<i32>} : memref<288x640xbf16, #tpu.memory_space<vmem>>, vector<8x591xbf16>,
    %36 = vector.extract_strided_slice %31 {offsets = [0, 0], sizes = [8, 592], strides = [1, 1]} : vector<8x610xbf16> to vector<8x592xbf16>
    %c8_24 = arith.constant 8 : index
    %c18_25 = arith.constant 18 : index
    %37 = vector.load %arg39[%c8_24, %c18_25] : memref<288x640xbf16, #tpu.memory_space<vmem>>, vector<8x592xbf16>
    tpu.vector_store %arg39[%c8_24, %c18_25], %36 {strides = array<i32>} : memref<288x640xbf16, #tpu.memory_space<vmem>>, vector<8x592xbf16>,
    %38 = vector.extract_strided_slice %31 {offsets = [0, 0], sizes = [8, 593], strides = [1, 1]} : vector<8x610xbf16> to vector<8x593xbf16>
    %c16_26 = arith.constant 16 : index
    %c17_27 = arith.constant 17 : index
    %39 = vector.load %arg39[%c16_26, %c17_27] : memref<288x640xbf16, #tpu.memory_space<vmem>>, vector<8x593xbf16>
    tpu.vector_store %arg39[%c16_26, %c17_27], %38 {strides = array<i32>} : memref<288x640xbf16, #tpu.memory_space<vmem>>, vector<8x593xbf16>,
    %40 = vector.extract_strided_slice %31 {offsets = [0, 0], sizes = [8, 609], strides = [1, 1]} : vector<8x610xbf16> to vector<8x609xbf16>
    %c24_28 = arith.constant 24 : index
    %c1_29 = arith.constant 1 : index
    %41 = vector.load %arg39[%c24_28, %c1_29] : memref<288x640xbf16, #tpu.memory_space<vmem>>, vector<8x609xbf16>
    tpu.vector_store %arg39[%c24_28, %c1_29], %40 {strides = array<i32>} : memref<288x640xbf16, #tpu.memory_space<vmem>>, vector<8x609xbf16>,
    %c32_30 = arith.constant 32 : index
    %c0_31 = arith.constant 0 : index
    %42 = vector.load %arg39[%c32_30, %c0_31] : memref<288x640xbf16, #tpu.memory_space<vmem>>, vector<8x610xbf16>
    tpu.vector_store %arg39[%c32_30, %c0_31], %31 {strides = array<i32>} : memref<288x640xbf16, #tpu.memory_space<vmem>>, vector<8x610xbf16>,
    %43 = vector.extract_strided_slice %31 {offsets = [0, 1], sizes = [8, 609], strides = [1, 1]} : vector<8x610xbf16> to vector<8x609xbf16>
    %c40 = arith.constant 40 : index
    %c0_32 = arith.constant 0 : index
    %44 = vector.load %arg39[%c40, %c0_32] : memref<288x640xbf16, #tpu.memory_space<vmem>>, vector<8x609xbf16>
    tpu.vector_store %arg39[%c40, %c0_32], %43 {strides = array<i32>} : memref<288x640xbf16, #tpu.memory_space<vmem>>, vector<8x609xbf16>,
    %45 = vector.extract_strided_slice %31 {offsets = [0, 17], sizes = [8, 593], strides = [1, 1]} : vector<8x610xbf16> to vector<8x593xbf16>
    %c48 = arith.constant 48 : index
    %c0_33 = arith.constant 0 : index
    %46 = vector.load %arg39[%c48, %c0_33] : memref<288x640xbf16, #tpu.memory_space<vmem>>, vector<8x593xbf16>
    tpu.vector_store %arg39[%c48, %c0_33], %45 {strides = array<i32>} : memref<288x640xbf16, #tpu.memory_space<vmem>>, vector<8x593xbf16>,
    %47 = vector.extract_strided_slice %31 {offsets = [0, 18], sizes = [8, 592], strides = [1, 1]} : vector<8x610xbf16> to vector<8x592xbf16>
    %c56 = arith.constant 56 : index
    %c0_34 = arith.constant 0 : index
    %48 = vector.load %arg39[%c56, %c0_34] : memref<288x640xbf16, #tpu.memory_space<vmem>>, vector<8x592xbf16>
    tpu.vector_store %arg39[%c56, %c0_34], %47 {strides = array<i32>} : memref<288x640xbf16, #tpu.memory_space<vmem>>, vector<8x592xbf16>,
    %49 = vector.extract_strided_slice %31 {offsets = [0, 19], sizes = [8, 591], strides = [1, 1]} : vector<8x610xbf16> to vector<8x591xbf16>
    %c64 = arith.constant 64 : index
    %c0_35 = arith.constant 0 : index
    %50 = vector.load %arg39[%c64, %c0_35] : memref<288x640xbf16, #tpu.memory_space<vmem>>, vector<8x591xbf16>
    tpu.vector_store %arg39[%c64, %c0_35], %49 {strides = array<i32>} : memref<288x640xbf16, #tpu.memory_space<vmem>>, vector<8x591xbf16>,
    %c0_36 = arith.constant 0 : index
    %c0_37 = arith.constant 0 : index
    %51 = vector.load %arg39[%c0_36, %c0_37] : memref<288x640xbf16, #tpu.memory_space<vmem>>, vector<72x610xbf16>
    %c0_38 = arith.constant 0 : index
    %c0_39 = arith.constant 0 : index
    %52 = vector.load %arg8[%c0_38, %c0_39] : memref<8x72xbf16, #tpu.memory_space<vmem>>, vector<8x72xbf16>
    %cst_40 = arith.constant dense<0.000000e+00> : vector<8x610xf32>
    %53 = tpu.matmul %52, %51, %cst_40 {dimension_numbers = #tpu.dot_dimension_numbers<[1], [0], [0], [1], [0, 0, 1, 1], [], []>} : vector<8x72xbf16>, vector<72x610xbf16>, vector<8x610xf32> -> vector<8x610xf32>
    %c0_41 = arith.constant 0 : index
    %c0_42 = arith.constant 0 : index
    %54 = vector.load %arg9[%c0_41, %c0_42] : memref<8x1xf32, #tpu.memory_space<vmem>>, vector<8x1xf32>
    %55 = vector.broadcast %54 : vector<8x1xf32> to vector<8x610xf32>
    %56 = arith.addf %53, %55 : vector<8x610xf32>
    %cst_43 = arith.constant 0.000000e+00 : f32
    %57 = vector.broadcast %cst_43 : f32 to vector<8x610xf32>
    %58 = arith.maximumf %56, %57 : vector<8x610xf32>
    %59 = arith.truncf %58 : vector<8x610xf32> to vector<8x610xbf16>
    %c0_44 = arith.constant 0 : index
    %c0_45 = arith.constant 0 : index
    %60 = vector.load %arg4[%c0_44, %c0_45] : memref<610x178xbf16, #tpu.memory_space<vmem>>, vector<610x178xbf16>
    %cst_46 = arith.constant dense<0.000000e+00> : vector<8x178xf32>
    %61 = tpu.matmul %59, %60, %cst_46 {dimension_numbers = #tpu.dot_dimension_numbers<[1], [0], [0], [1], [0, 0, 1, 1], [], []>} : vector<8x610xbf16>, vector<610x178xbf16>, vector<8x178xf32> -> vector<8x178xf32>
    %62 = arith.truncf %61 : vector<8x178xf32> to vector<8x178xbf16>
    %c0_47 = arith.constant 0 : index
    %c0_48 = arith.constant 0 : index
    %63 = vector.load %arg12[%c0_47, %c0_48] : memref<8x8xbf16, #tpu.memory_space<vmem>>, vector<8x8xbf16>
    %cst_49 = arith.constant dense<0.000000e+00> : vector<8x610xf32>
    %64 = tpu.matmul %63, %31, %cst_49 {dimension_numbers = #tpu.dot_dimension_numbers<[1], [0], [0], [1], [0, 0, 1, 1], [], []>} : vector<8x8xbf16>, vector<8x610xbf16>, vector<8x610xf32> -> vector<8x610xf32>
    %c0_50 = arith.constant 0 : index
    %c0_51 = arith.constant 0 : index
    %65 = vector.load %arg13[%c0_50, %c0_51] : memref<8x1xf32, #tpu.memory_space<vmem>>, vector<8x1xf32>
    %66 = vector.broadcast %65 : vector<8x1xf32> to vector<8x610xf32>
    %67 = arith.addf %64, %66 : vector<8x610xf32>
    %68 = arith.truncf %67 : vector<8x610xf32> to vector<8x610xbf16>
    %c0_52 = arith.constant 0 : index
    %c0_53 = arith.constant 0 : index
    %69 = vector.load %arg4[%c0_52, %c0_53] : memref<610x178xbf16, #tpu.memory_space<vmem>>, vector<610x178xbf16>
    %cst_54 = arith.constant dense<0.000000e+00> : vector<8x178xf32>
    %70 = tpu.matmul %68, %69, %cst_54 {dimension_numbers = #tpu.dot_dimension_numbers<[1], [0], [0], [1], [0, 0, 1, 1], [], []>} : vector<8x610xbf16>, vector<610x178xbf16>, vector<8x178xf32> -> vector<8x178xf32>
    %cst_55 = arith.constant 0.000000e+00 : bf16
    %71 = vector.broadcast %cst_55 : bf16 to vector<72x178xbf16>
    %c0_56 = arith.constant 0 : index
    %c0_57 = arith.constant 0 : index
    %72 = vector.load %arg39[%c0_56, %c0_57] : memref<288x640xbf16, #tpu.memory_space<vmem>>, vector<72x178xbf16>
    tpu.vector_store %arg39[%c0_56, %c0_57], %71 {strides = array<i32>} : memref<288x640xbf16, #tpu.memory_space<vmem>>, vector<72x178xbf16>,
    %73 = vector.extract_strided_slice %62 {offsets = [0, 0], sizes = [8, 167], strides = [1, 1]} : vector<8x178xbf16> to vector<8x167xbf16>
    %c0_58 = arith.constant 0 : index
    %c11 = arith.constant 11 : index
    %74 = vector.load %arg39[%c0_58, %c11] : memref<288x640xbf16, #tpu.memory_space<vmem>>, vector<8x167xbf16>
    tpu.vector_store %arg39[%c0_58, %c11], %73 {strides = array<i32>} : memref<288x640xbf16, #tpu.memory_space<vmem>>, vector<8x167xbf16>,
    %75 = vector.extract_strided_slice %62 {offsets = [0, 0], sizes = [8, 168], strides = [1, 1]} : vector<8x178xbf16> to vector<8x168xbf16>
    %c8_59 = arith.constant 8 : index
    %c10 = arith.constant 10 : index
    %76 = vector.load %arg39[%c8_59, %c10] : memref<288x640xbf16, #tpu.memory_space<vmem>>, vector<8x168xbf16>
    tpu.vector_store %arg39[%c8_59, %c10], %75 {strides = array<i32>} : memref<288x640xbf16, #tpu.memory_space<vmem>>, vector<8x168xbf16>,
    %77 = vector.extract_strided_slice %62 {offsets = [0, 0], sizes = [8, 169], strides = [1, 1]} : vector<8x178xbf16> to vector<8x169xbf16>
    %c16_60 = arith.constant 16 : index
    %c9 = arith.constant 9 : index
    %78 = vector.load %arg39[%c16_60, %c9] : memref<288x640xbf16, #tpu.memory_space<vmem>>, vector<8x169xbf16>
    tpu.vector_store %arg39[%c16_60, %c9], %77 {strides = array<i32>} : memref<288x640xbf16, #tpu.memory_space<vmem>>, vector<8x169xbf16>,
    %79 = vector.extract_strided_slice %62 {offsets = [0, 0], sizes = [8, 177], strides = [1, 1]} : vector<8x178xbf16> to vector<8x177xbf16>
    %c24_61 = arith.constant 24 : index
    %c1_62 = arith.constant 1 : index
    %80 = vector.load %arg39[%c24_61, %c1_62] : memref<288x640xbf16, #tpu.memory_space<vmem>>, vector<8x177xbf16>
    tpu.vector_store %arg39[%c24_61, %c1_62], %79 {strides = array<i32>} : memref<288x640xbf16, #tpu.memory_space<vmem>>, vector<8x177xbf16>,
    %c32_63 = arith.constant 32 : index
    %c0_64 = arith.constant 0 : index
    %81 = vector.load %arg39[%c32_63, %c0_64] : memref<288x640xbf16, #tpu.memory_space<vmem>>, vector<8x178xbf16>
    tpu.vector_store %arg39[%c32_63, %c0_64], %62 {strides = array<i32>} : memref<288x640xbf16, #tpu.memory_space<vmem>>, vector<8x178xbf16>,
    %82 = vector.extract_strided_slice %62 {offsets = [0, 1], sizes = [8, 177], strides = [1, 1]} : vector<8x178xbf16> to vector<8x177xbf16>
    %c40_65 = arith.constant 40 : index
    %c0_66 = arith.constant 0 : index
    %83 = vector.load %arg39[%c40_65, %c0_66] : memref<288x640xbf16, #tpu.memory_space<vmem>>, vector<8x177xbf16>
    tpu.vector_store %arg39[%c40_65, %c0_66], %82 {strides = array<i32>} : memref<288x640xbf16, #tpu.memory_space<vmem>>, vector<8x177xbf16>,
    %84 = vector.extract_strided_slice %62 {offsets = [0, 9], sizes = [8, 169], strides = [1, 1]} : vector<8x178xbf16> to vector<8x169xbf16>
    %c48_67 = arith.constant 48 : index
    %c0_68 = arith.constant 0 : index
    %85 = vector.load %arg39[%c48_67, %c0_68] : memref<288x640xbf16, #tpu.memory_space<vmem>>, vector<8x169xbf16>
    tpu.vector_store %arg39[%c48_67, %c0_68], %84 {strides = array<i32>} : memref<288x640xbf16, #tpu.memory_space<vmem>>, vector<8x169xbf16>,
    %86 = vector.extract_strided_slice %62 {offsets = [0, 10], sizes = [8, 168], strides = [1, 1]} : vector<8x178xbf16> to vector<8x168xbf16>
    %c56_69 = arith.constant 56 : index
    %c0_70 = arith.constant 0 : index
    %87 = vector.load %arg39[%c56_69, %c0_70] : memref<288x640xbf16, #tpu.memory_space<vmem>>, vector<8x168xbf16>
    tpu.vector_store %arg39[%c56_69, %c0_70], %86 {strides = array<i32>} : memref<288x640xbf16, #tpu.memory_space<vmem>>, vector<8x168xbf16>,
    %88 = vector.extract_strided_slice %62 {offsets = [0, 11], sizes = [8, 167], strides = [1, 1]} : vector<8x178xbf16> to vector<8x167xbf16>
    %c64_71 = arith.constant 64 : index
    %c0_72 = arith.constant 0 : index
    %89 = vector.load %arg39[%c64_71, %c0_72] : memref<288x640xbf16, #tpu.memory_space<vmem>>, vector<8x167xbf16>
    tpu.vector_store %arg39[%c64_71, %c0_72], %88 {strides = array<i32>} : memref<288x640xbf16, #tpu.memory_space<vmem>>, vector<8x167xbf16>,
    %c0_73 = arith.constant 0 : index
    %c0_74 = arith.constant 0 : index
    %90 = vector.load %arg39[%c0_73, %c0_74] : memref<288x640xbf16, #tpu.memory_space<vmem>>, vector<72x178xbf16>
    %c0_75 = arith.constant 0 : index
    %c0_76 = arith.constant 0 : index
    %91 = vector.load %arg10[%c0_75, %c0_76] : memref<8x72xbf16, #tpu.memory_space<vmem>>, vector<8x72xbf16>
    %cst_77 = arith.constant dense<0.000000e+00> : vector<8x178xf32>
    %92 = tpu.matmul %91, %90, %cst_77 {dimension_numbers = #tpu.dot_dimension_numbers<[1], [0], [0], [1], [0, 0, 1, 1], [], []>} : vector<8x72xbf16>, vector<72x178xbf16>, vector<8x178xf32> -> vector<8x178xf32>
    %c0_78 = arith.constant 0 : index
    %c0_79 = arith.constant 0 : index
    %93 = vector.load %arg11[%c0_78, %c0_79] : memref<8x1xf32, #tpu.memory_space<vmem>>, vector<8x1xf32>
    %94 = vector.broadcast %93 : vector<8x1xf32> to vector<8x178xf32>
    %95 = arith.addf %92, %94 : vector<8x178xf32>
    %96 = arith.addf %95, %70 : vector<8x178xf32>
    %cst_80 = arith.constant 0.000000e+00 : f32
    %97 = vector.broadcast %cst_80 : f32 to vector<8x178xf32>
    %98 = arith.maximumf %96, %97 : vector<8x178xf32>
    %c0_81 = arith.constant 0 : index
    %c0_82 = arith.constant 0 : index
    %99 = vector.load %arg2[%c0_81, %c0_82] : memref<1x178xf32, #tpu.memory_space<vmem>>, vector<1x178xf32>
    %100 = vector.broadcast %99 : vector<1x178xf32> to vector<8x178xf32>
    %101 = arith.mulf %98, %100 : vector<8x178xf32>
    %102 = arith.truncf %101 : vector<8x178xf32> to vector<8x178xbf16>
    %cst_83 = arith.constant 0.000000e+00 : bf16
    %103 = vector.broadcast %cst_83 : bf16 to vector<72x178xbf16>
    %c0_84 = arith.constant 0 : index
    %c0_85 = arith.constant 0 : index
    %104 = vector.load %arg39[%c0_84, %c0_85] : memref<288x640xbf16, #tpu.memory_space<vmem>>, vector<72x178xbf16>
    tpu.vector_store %arg39[%c0_84, %c0_85], %103 {strides = array<i32>} : memref<288x640xbf16, #tpu.memory_space<vmem>>, vector<72x178xbf16>,
    %105 = vector.extract_strided_slice %102 {offsets = [0, 0], sizes = [8, 167], strides = [1, 1]} : vector<8x178xbf16> to vector<8x167xbf16>
    %c0_86 = arith.constant 0 : index
    %c11_87 = arith.constant 11 : index
    %106 = vector.load %arg39[%c0_86, %c11_87] : memref<288x640xbf16, #tpu.memory_space<vmem>>, vector<8x167xbf16>
    tpu.vector_store %arg39[%c0_86, %c11_87], %105 {strides = array<i32>} : memref<288x640xbf16, #tpu.memory_space<vmem>>, vector<8x167xbf16>,
    %107 = vector.extract_strided_slice %102 {offsets = [0, 0], sizes = [8, 168], strides = [1, 1]} : vector<8x178xbf16> to vector<8x168xbf16>
    %c8_88 = arith.constant 8 : index
    %c10_89 = arith.constant 10 : index
    %108 = vector.load %arg39[%c8_88, %c10_89] : memref<288x640xbf16, #tpu.memory_space<vmem>>, vector<8x168xbf16>
    tpu.vector_store %arg39[%c8_88, %c10_89], %107 {strides = array<i32>} : memref<288x640xbf16, #tpu.memory_space<vmem>>, vector<8x168xbf16>,
    %109 = vector.extract_strided_slice %102 {offsets = [0, 0], sizes = [8, 169], strides = [1, 1]} : vector<8x178xbf16> to vector<8x169xbf16>
    %c16_90 = arith.constant 16 : index
    %c9_91 = arith.constant 9 : index
    %110 = vector.load %arg39[%c16_90, %c9_91] : memref<288x640xbf16, #tpu.memory_space<vmem>>, vector<8x169xbf16>
    tpu.vector_store %arg39[%c16_90, %c9_91], %109 {strides = array<i32>} : memref<288x640xbf16, #tpu.memory_space<vmem>>, vector<8x169xbf16>,
    %111 = vector.extract_strided_slice %102 {offsets = [0, 0], sizes = [8, 177], strides = [1, 1]} : vector<8x178xbf16> to vector<8x177xbf16>
    %c24_92 = arith.constant 24 : index
    %c1_93 = arith.constant 1 : index
    %112 = vector.load %arg39[%c24_92, %c1_93] : memref<288x640xbf16, #tpu.memory_space<vmem>>, vector<8x177xbf16>
    tpu.vector_store %arg39[%c24_92, %c1_93], %111 {strides = array<i32>} : memref<288x640xbf16, #tpu.memory_space<vmem>>, vector<8x177xbf16>,
    %c32_94 = arith.constant 32 : index
    %c0_95 = arith.constant 0 : index
    %113 = vector.load %arg39[%c32_94, %c0_95] : memref<288x640xbf16, #tpu.memory_space<vmem>>, vector<8x178xbf16>
    tpu.vector_store %arg39[%c32_94, %c0_95], %102 {strides = array<i32>} : memref<288x640xbf16, #tpu.memory_space<vmem>>, vector<8x178xbf16>,
    %114 = vector.extract_strided_slice %102 {offsets = [0, 1], sizes = [8, 177], strides = [1, 1]} : vector<8x178xbf16> to vector<8x177xbf16>
    %c40_96 = arith.constant 40 : index
    %c0_97 = arith.constant 0 : index
    %115 = vector.load %arg39[%c40_96, %c0_97] : memref<288x640xbf16, #tpu.memory_space<vmem>>, vector<8x177xbf16>
    tpu.vector_store %arg39[%c40_96, %c0_97], %114 {strides = array<i32>} : memref<288x640xbf16, #tpu.memory_space<vmem>>, vector<8x177xbf16>,
    %116 = vector.extract_strided_slice %102 {offsets = [0, 9], sizes = [8, 169], strides = [1, 1]} : vector<8x178xbf16> to vector<8x169xbf16>
    %c48_98 = arith.constant 48 : index
    %c0_99 = arith.constant 0 : index
    %117 = vector.load %arg39[%c48_98, %c0_99] : memref<288x640xbf16, #tpu.memory_space<vmem>>, vector<8x169xbf16>
    tpu.vector_store %arg39[%c48_98, %c0_99], %116 {strides = array<i32>} : memref<288x640xbf16, #tpu.memory_space<vmem>>, vector<8x169xbf16>,
    %118 = vector.extract_strided_slice %102 {offsets = [0, 10], sizes = [8, 168], strides = [1, 1]} : vector<8x178xbf16> to vector<8x168xbf16>
    %c56_100 = arith.constant 56 : index
    %c0_101 = arith.constant 0 : index
    %119 = vector.load %arg39[%c56_100, %c0_101] : memref<288x640xbf16, #tpu.memory_space<vmem>>, vector<8x168xbf16>
    tpu.vector_store %arg39[%c56_100, %c0_101], %118 {strides = array<i32>} : memref<288x640xbf16, #tpu.memory_space<vmem>>, vector<8x168xbf16>,
    %120 = vector.extract_strided_slice %102 {offsets = [0, 11], sizes = [8, 167], strides = [1, 1]} : vector<8x178xbf16> to vector<8x167xbf16>
    %c64_102 = arith.constant 64 : index
    %c0_103 = arith.constant 0 : index
    %121 = vector.load %arg39[%c64_102, %c0_103] : memref<288x640xbf16, #tpu.memory_space<vmem>>, vector<8x167xbf16>
    tpu.vector_store %arg39[%c64_102, %c0_103], %120 {strides = array<i32>} : memref<288x640xbf16, #tpu.memory_space<vmem>>, vector<8x167xbf16>,
    %c0_104 = arith.constant 0 : index
    %c0_105 = arith.constant 0 : index
    %122 = vector.load %arg39[%c0_104, %c0_105] : memref<288x640xbf16, #tpu.memory_space<vmem>>, vector<72x178xbf16>
    %c0_106 = arith.constant 0 : index
    %c0_107 = arith.constant 0 : index
    %123 = vector.load %arg14[%c0_106, %c0_107] : memref<16x72xbf16, #tpu.memory_space<vmem>>, vector<16x72xbf16>
    %cst_108 = arith.constant dense<0.000000e+00> : vector<16x178xf32>
    %124 = tpu.matmul %123, %122, %cst_108 {dimension_numbers = #tpu.dot_dimension_numbers<[1], [0], [0], [1], [0, 0, 1, 1], [], []>} : vector<16x72xbf16>, vector<72x178xbf16>, vector<16x178xf32> -> vector<16x178xf32>
    %c0_109 = arith.constant 0 : index
    %c0_110 = arith.constant 0 : index
    %125 = vector.load %arg15[%c0_109, %c0_110] : memref<16x1xf32, #tpu.memory_space<vmem>>, vector<16x1xf32>
    %126 = vector.broadcast %125 : vector<16x1xf32> to vector<16x178xf32>
    %127 = arith.addf %124, %126 : vector<16x178xf32>
    %cst_111 = arith.constant 0.000000e+00 : f32
    %128 = vector.broadcast %cst_111 : f32 to vector<16x178xf32>
    %129 = arith.maximumf %127, %128 : vector<16x178xf32>
    %c0_112 = arith.constant 0 : index
    %c0_113 = arith.constant 0 : index
    %130 = vector.load %arg2[%c0_112, %c0_113] : memref<1x178xf32, #tpu.memory_space<vmem>>, vector<1x178xf32>
    %131 = vector.broadcast %130 : vector<1x178xf32> to vector<16x178xf32>
    %132 = arith.mulf %129, %131 : vector<16x178xf32>
    %133 = arith.truncf %132 : vector<16x178xf32> to vector<16x178xbf16>
    %c0_114 = arith.constant 0 : index
    %c0_115 = arith.constant 0 : index
    %134 = vector.load %arg18[%c0_114, %c0_115] : memref<16x8xbf16, #tpu.memory_space<vmem>>, vector<16x8xbf16>
    %cst_116 = arith.constant dense<0.000000e+00> : vector<16x178xf32>
    %135 = tpu.matmul %134, %102, %cst_116 {dimension_numbers = #tpu.dot_dimension_numbers<[1], [0], [0], [1], [0, 0, 1, 1], [], []>} : vector<16x8xbf16>, vector<8x178xbf16>, vector<16x178xf32> -> vector<16x178xf32>
    %c0_117 = arith.constant 0 : index
    %c0_118 = arith.constant 0 : index
    %136 = vector.load %arg19[%c0_117, %c0_118] : memref<16x1xf32, #tpu.memory_space<vmem>>, vector<16x1xf32>
    %137 = vector.broadcast %136 : vector<16x1xf32> to vector<16x178xf32>
    %138 = arith.addf %135, %137 : vector<16x178xf32>
    %cst_119 = arith.constant 0.000000e+00 : bf16
    %139 = vector.broadcast %cst_119 : bf16 to vector<144x178xbf16>
    %c0_120 = arith.constant 0 : index
    %c0_121 = arith.constant 0 : index
    %140 = vector.load %arg39[%c0_120, %c0_121] : memref<288x640xbf16, #tpu.memory_space<vmem>>, vector<144x178xbf16>
    tpu.vector_store %arg39[%c0_120, %c0_121], %139 {strides = array<i32>} : memref<288x640xbf16, #tpu.memory_space<vmem>>, vector<144x178xbf16>,
    %141 = vector.extract_strided_slice %133 {offsets = [0, 0], sizes = [16, 167], strides = [1, 1]} : vector<16x178xbf16> to vector<16x167xbf16>
    %c0_122 = arith.constant 0 : index
    %c11_123 = arith.constant 11 : index
    %142 = vector.load %arg39[%c0_122, %c11_123] : memref<288x640xbf16, #tpu.memory_space<vmem>>, vector<16x167xbf16>
    tpu.vector_store %arg39[%c0_122, %c11_123], %141 {strides = array<i32>} : memref<288x640xbf16, #tpu.memory_space<vmem>>, vector<16x167xbf16>,
    %143 = vector.extract_strided_slice %133 {offsets = [0, 0], sizes = [16, 168], strides = [1, 1]} : vector<16x178xbf16> to vector<16x168xbf16>
    %c16_124 = arith.constant 16 : index
    %c10_125 = arith.constant 10 : index
    %144 = vector.load %arg39[%c16_124, %c10_125] : memref<288x640xbf16, #tpu.memory_space<vmem>>, vector<16x168xbf16>
    tpu.vector_store %arg39[%c16_124, %c10_125], %143 {strides = array<i32>} : memref<288x640xbf16, #tpu.memory_space<vmem>>, vector<16x168xbf16>,
    %145 = vector.extract_strided_slice %133 {offsets = [0, 0], sizes = [16, 169], strides = [1, 1]} : vector<16x178xbf16> to vector<16x169xbf16>
    %c32_126 = arith.constant 32 : index
    %c9_127 = arith.constant 9 : index
    %146 = vector.load %arg39[%c32_126, %c9_127] : memref<288x640xbf16, #tpu.memory_space<vmem>>, vector<16x169xbf16>
    tpu.vector_store %arg39[%c32_126, %c9_127], %145 {strides = array<i32>} : memref<288x640xbf16, #tpu.memory_space<vmem>>, vector<16x169xbf16>,
    %147 = vector.extract_strided_slice %133 {offsets = [0, 0], sizes = [16, 177], strides = [1, 1]} : vector<16x178xbf16> to vector<16x177xbf16>
    %c48_128 = arith.constant 48 : index
    %c1_129 = arith.constant 1 : index
    %148 = vector.load %arg39[%c48_128, %c1_129] : memref<288x640xbf16, #tpu.memory_space<vmem>>, vector<16x177xbf16>
    tpu.vector_store %arg39[%c48_128, %c1_129], %147 {strides = array<i32>} : memref<288x640xbf16, #tpu.memory_space<vmem>>, vector<16x177xbf16>,
    %c64_130 = arith.constant 64 : index
    %c0_131 = arith.constant 0 : index
    %149 = vector.load %arg39[%c64_130, %c0_131] : memref<288x640xbf16, #tpu.memory_space<vmem>>, vector<16x178xbf16>
    tpu.vector_store %arg39[%c64_130, %c0_131], %133 {strides = array<i32>} : memref<288x640xbf16, #tpu.memory_space<vmem>>, vector<16x178xbf16>,
    %150 = vector.extract_strided_slice %133 {offsets = [0, 1], sizes = [16, 177], strides = [1, 1]} : vector<16x178xbf16> to vector<16x177xbf16>
    %c80 = arith.constant 80 : index
    %c0_132 = arith.constant 0 : index
    %151 = vector.load %arg39[%c80, %c0_132] : memref<288x640xbf16, #tpu.memory_space<vmem>>, vector<16x177xbf16>
    tpu.vector_store %arg39[%c80, %c0_132], %150 {strides = array<i32>} : memref<288x640xbf16, #tpu.memory_space<vmem>>, vector<16x177xbf16>,
    %152 = vector.extract_strided_slice %133 {offsets = [0, 9], sizes = [16, 169], strides = [1, 1]} : vector<16x178xbf16> to vector<16x169xbf16>
    %c96 = arith.constant 96 : index
    %c0_133 = arith.constant 0 : index
    %153 = vector.load %arg39[%c96, %c0_133] : memref<288x640xbf16, #tpu.memory_space<vmem>>, vector<16x169xbf16>
    tpu.vector_store %arg39[%c96, %c0_133], %152 {strides = array<i32>} : memref<288x640xbf16, #tpu.memory_space<vmem>>, vector<16x169xbf16>,
    %154 = vector.extract_strided_slice %133 {offsets = [0, 10], sizes = [16, 168], strides = [1, 1]} : vector<16x178xbf16> to vector<16x168xbf16>
    %c112 = arith.constant 112 : index
    %c0_134 = arith.constant 0 : index
    %155 = vector.load %arg39[%c112, %c0_134] : memref<288x640xbf16, #tpu.memory_space<vmem>>, vector<16x168xbf16>
    tpu.vector_store %arg39[%c112, %c0_134], %154 {strides = array<i32>} : memref<288x640xbf16, #tpu.memory_space<vmem>>, vector<16x168xbf16>,
    %156 = vector.extract_strided_slice %133 {offsets = [0, 11], sizes = [16, 167], strides = [1, 1]} : vector<16x178xbf16> to vector<16x167xbf16>
    %c128 = arith.constant 128 : index
    %c0_135 = arith.constant 0 : index
    %157 = vector.load %arg39[%c128, %c0_135] : memref<288x640xbf16, #tpu.memory_space<vmem>>, vector<16x167xbf16>
    tpu.vector_store %arg39[%c128, %c0_135], %156 {strides = array<i32>} : memref<288x640xbf16, #tpu.memory_space<vmem>>, vector<16x167xbf16>,
    %c0_136 = arith.constant 0 : index
    %c0_137 = arith.constant 0 : index
    %158 = vector.load %arg39[%c0_136, %c0_137] : memref<288x640xbf16, #tpu.memory_space<vmem>>, vector<144x178xbf16>
    %c0_138 = arith.constant 0 : index
    %c0_139 = arith.constant 0 : index
    %159 = vector.load %arg16[%c0_138, %c0_139] : memref<16x144xbf16, #tpu.memory_space<vmem>>, vector<16x144xbf16>
    %cst_140 = arith.constant dense<0.000000e+00> : vector<16x178xf32>
    %160 = tpu.matmul %159, %158, %cst_140 {dimension_numbers = #tpu.dot_dimension_numbers<[1], [0], [0], [1], [0, 0, 1, 1], [], []>} : vector<16x144xbf16>, vector<144x178xbf16>, vector<16x178xf32> -> vector<16x178xf32>
    %c0_141 = arith.constant 0 : index
    %c0_142 = arith.constant 0 : index
    %161 = vector.load %arg17[%c0_141, %c0_142] : memref<16x1xf32, #tpu.memory_space<vmem>>, vector<16x1xf32>
    %162 = vector.broadcast %161 : vector<16x1xf32> to vector<16x178xf32>
    %163 = arith.addf %160, %162 : vector<16x178xf32>
    %164 = arith.addf %163, %138 : vector<16x178xf32>
    %cst_143 = arith.constant 0.000000e+00 : f32
    %165 = vector.broadcast %cst_143 : f32 to vector<16x178xf32>
    %166 = arith.maximumf %164, %165 : vector<16x178xf32>
    %c0_144 = arith.constant 0 : index
    %c0_145 = arith.constant 0 : index
    %167 = vector.load %arg2[%c0_144, %c0_145] : memref<1x178xf32, #tpu.memory_space<vmem>>, vector<1x178xf32>
    %168 = vector.broadcast %167 : vector<1x178xf32> to vector<16x178xf32>
    %169 = arith.mulf %166, %168 : vector<16x178xf32>
    %170 = arith.truncf %169 : vector<16x178xf32> to vector<16x178xbf16>
    %cst_146 = arith.constant 0.000000e+00 : bf16
    %171 = vector.broadcast %cst_146 : bf16 to vector<144x178xbf16>
    %c0_147 = arith.constant 0 : index
    %c0_148 = arith.constant 0 : index
    %172 = vector.load %arg39[%c0_147, %c0_148] : memref<288x640xbf16, #tpu.memory_space<vmem>>, vector<144x178xbf16>
    tpu.vector_store %arg39[%c0_147, %c0_148], %171 {strides = array<i32>} : memref<288x640xbf16, #tpu.memory_space<vmem>>, vector<144x178xbf16>,
    %173 = vector.extract_strided_slice %170 {offsets = [0, 0], sizes = [16, 167], strides = [1, 1]} : vector<16x178xbf16> to vector<16x167xbf16>
    %c0_149 = arith.constant 0 : index
    %c11_150 = arith.constant 11 : index
    %174 = vector.load %arg39[%c0_149, %c11_150] : memref<288x640xbf16, #tpu.memory_space<vmem>>, vector<16x167xbf16>
    tpu.vector_store %arg39[%c0_149, %c11_150], %173 {strides = array<i32>} : memref<288x640xbf16, #tpu.memory_space<vmem>>, vector<16x167xbf16>,
    %175 = vector.extract_strided_slice %170 {offsets = [0, 0], sizes = [16, 168], strides = [1, 1]} : vector<16x178xbf16> to vector<16x168xbf16>
    %c16_151 = arith.constant 16 : index
    %c10_152 = arith.constant 10 : index
    %176 = vector.load %arg39[%c16_151, %c10_152] : memref<288x640xbf16, #tpu.memory_space<vmem>>, vector<16x168xbf16>
    tpu.vector_store %arg39[%c16_151, %c10_152], %175 {strides = array<i32>} : memref<288x640xbf16, #tpu.memory_space<vmem>>, vector<16x168xbf16>,
    %177 = vector.extract_strided_slice %170 {offsets = [0, 0], sizes = [16, 169], strides = [1, 1]} : vector<16x178xbf16> to vector<16x169xbf16>
    %c32_153 = arith.constant 32 : index
    %c9_154 = arith.constant 9 : index
    %178 = vector.load %arg39[%c32_153, %c9_154] : memref<288x640xbf16, #tpu.memory_space<vmem>>, vector<16x169xbf16>
    tpu.vector_store %arg39[%c32_153, %c9_154], %177 {strides = array<i32>} : memref<288x640xbf16, #tpu.memory_space<vmem>>, vector<16x169xbf16>,
    %179 = vector.extract_strided_slice %170 {offsets = [0, 0], sizes = [16, 177], strides = [1, 1]} : vector<16x178xbf16> to vector<16x177xbf16>
    %c48_155 = arith.constant 48 : index
    %c1_156 = arith.constant 1 : index
    %180 = vector.load %arg39[%c48_155, %c1_156] : memref<288x640xbf16, #tpu.memory_space<vmem>>, vector<16x177xbf16>
    tpu.vector_store %arg39[%c48_155, %c1_156], %179 {strides = array<i32>} : memref<288x640xbf16, #tpu.memory_space<vmem>>, vector<16x177xbf16>,
    %c64_157 = arith.constant 64 : index
    %c0_158 = arith.constant 0 : index
    %181 = vector.load %arg39[%c64_157, %c0_158] : memref<288x640xbf16, #tpu.memory_space<vmem>>, vector<16x178xbf16>
    tpu.vector_store %arg39[%c64_157, %c0_158], %170 {strides = array<i32>} : memref<288x640xbf16, #tpu.memory_space<vmem>>, vector<16x178xbf16>,
    %182 = vector.extract_strided_slice %170 {offsets = [0, 1], sizes = [16, 177], strides = [1, 1]} : vector<16x178xbf16> to vector<16x177xbf16>
    %c80_159 = arith.constant 80 : index
    %c0_160 = arith.constant 0 : index
    %183 = vector.load %arg39[%c80_159, %c0_160] : memref<288x640xbf16, #tpu.memory_space<vmem>>, vector<16x177xbf16>
    tpu.vector_store %arg39[%c80_159, %c0_160], %182 {strides = array<i32>} : memref<288x640xbf16, #tpu.memory_space<vmem>>, vector<16x177xbf16>,
    %184 = vector.extract_strided_slice %170 {offsets = [0, 9], sizes = [16, 169], strides = [1, 1]} : vector<16x178xbf16> to vector<16x169xbf16>
    %c96_161 = arith.constant 96 : index
    %c0_162 = arith.constant 0 : index
    %185 = vector.load %arg39[%c96_161, %c0_162] : memref<288x640xbf16, #tpu.memory_space<vmem>>, vector<16x169xbf16>
    tpu.vector_store %arg39[%c96_161, %c0_162], %184 {strides = array<i32>} : memref<288x640xbf16, #tpu.memory_space<vmem>>, vector<16x169xbf16>,
    %186 = vector.extract_strided_slice %170 {offsets = [0, 10], sizes = [16, 168], strides = [1, 1]} : vector<16x178xbf16> to vector<16x168xbf16>
    %c112_163 = arith.constant 112 : index
    %c0_164 = arith.constant 0 : index
    %187 = vector.load %arg39[%c112_163, %c0_164] : memref<288x640xbf16, #tpu.memory_space<vmem>>, vector<16x168xbf16>
    tpu.vector_store %arg39[%c112_163, %c0_164], %186 {strides = array<i32>} : memref<288x640xbf16, #tpu.memory_space<vmem>>, vector<16x168xbf16>,
    %188 = vector.extract_strided_slice %170 {offsets = [0, 11], sizes = [16, 167], strides = [1, 1]} : vector<16x178xbf16> to vector<16x167xbf16>
    %c128_165 = arith.constant 128 : index
    %c0_166 = arith.constant 0 : index
    %189 = vector.load %arg39[%c128_165, %c0_166] : memref<288x640xbf16, #tpu.memory_space<vmem>>, vector<16x167xbf16>
    tpu.vector_store %arg39[%c128_165, %c0_166], %188 {strides = array<i32>} : memref<288x640xbf16, #tpu.memory_space<vmem>>, vector<16x167xbf16>,
    %c0_167 = arith.constant 0 : index
    %c0_168 = arith.constant 0 : index
    %190 = vector.load %arg39[%c0_167, %c0_168] : memref<288x640xbf16, #tpu.memory_space<vmem>>, vector<144x178xbf16>
    %c0_169 = arith.constant 0 : index
    %c0_170 = arith.constant 0 : index
    %191 = vector.load %arg20[%c0_169, %c0_170] : memref<16x144xbf16, #tpu.memory_space<vmem>>, vector<16x144xbf16>
    %cst_171 = arith.constant dense<0.000000e+00> : vector<16x178xf32>
    %192 = tpu.matmul %191, %190, %cst_171 {dimension_numbers = #tpu.dot_dimension_numbers<[1], [0], [0], [1], [0, 0, 1, 1], [], []>} : vector<16x144xbf16>, vector<144x178xbf16>, vector<16x178xf32> -> vector<16x178xf32>
    %c0_172 = arith.constant 0 : index
    %c0_173 = arith.constant 0 : index
    %193 = vector.load %arg21[%c0_172, %c0_173] : memref<16x1xf32, #tpu.memory_space<vmem>>, vector<16x1xf32>
    %194 = vector.broadcast %193 : vector<16x1xf32> to vector<16x178xf32>
    %195 = arith.addf %192, %194 : vector<16x178xf32>
    %cst_174 = arith.constant 0.000000e+00 : f32
    %196 = vector.broadcast %cst_174 : f32 to vector<16x178xf32>
    %197 = arith.maximumf %195, %196 : vector<16x178xf32>
    %198 = arith.truncf %197 : vector<16x178xf32> to vector<16x178xbf16>
    %c0_175 = arith.constant 0 : index
    %c0_176 = arith.constant 0 : index
    %199 = vector.load %arg5[%c0_175, %c0_176] : memref<178x58xbf16, #tpu.memory_space<vmem>>, vector<178x58xbf16>
    %cst_177 = arith.constant dense<0.000000e+00> : vector<16x58xf32>
    %200 = tpu.matmul %198, %199, %cst_177 {dimension_numbers = #tpu.dot_dimension_numbers<[1], [0], [0], [1], [0, 0, 1, 1], [], []>} : vector<16x178xbf16>, vector<178x58xbf16>, vector<16x58xf32> -> vector<16x58xf32>
    %201 = arith.truncf %200 : vector<16x58xf32> to vector<16x58xbf16>
    %c0_178 = arith.constant 0 : index
    %c0_179 = arith.constant 0 : index
    %202 = vector.load %arg24[%c0_178, %c0_179] : memref<16x16xbf16, #tpu.memory_space<vmem>>, vector<16x16xbf16>
    %cst_180 = arith.constant dense<0.000000e+00> : vector<16x178xf32>
    %203 = tpu.matmul %202, %170, %cst_180 {dimension_numbers = #tpu.dot_dimension_numbers<[1], [0], [0], [1], [0, 0, 1, 1], [], []>} : vector<16x16xbf16>, vector<16x178xbf16>, vector<16x178xf32> -> vector<16x178xf32>
    %c0_181 = arith.constant 0 : index
    %c0_182 = arith.constant 0 : index
    %204 = vector.load %arg25[%c0_181, %c0_182] : memref<16x1xf32, #tpu.memory_space<vmem>>, vector<16x1xf32>
    %205 = vector.broadcast %204 : vector<16x1xf32> to vector<16x178xf32>
    %206 = arith.addf %203, %205 : vector<16x178xf32>
    %207 = arith.truncf %206 : vector<16x178xf32> to vector<16x178xbf16>
    %c0_183 = arith.constant 0 : index
    %c0_184 = arith.constant 0 : index
    %208 = vector.load %arg5[%c0_183, %c0_184] : memref<178x58xbf16, #tpu.memory_space<vmem>>, vector<178x58xbf16>
    %cst_185 = arith.constant dense<0.000000e+00> : vector<16x58xf32>
    %209 = tpu.matmul %207, %208, %cst_185 {dimension_numbers = #tpu.dot_dimension_numbers<[1], [0], [0], [1], [0, 0, 1, 1], [], []>} : vector<16x178xbf16>, vector<178x58xbf16>, vector<16x58xf32> -> vector<16x58xf32>
    %cst_186 = arith.constant 0.000000e+00 : bf16
    %210 = vector.broadcast %cst_186 : bf16 to vector<144x58xbf16>
    %c0_187 = arith.constant 0 : index
    %c0_188 = arith.constant 0 : index
    %211 = vector.load %arg39[%c0_187, %c0_188] : memref<288x640xbf16, #tpu.memory_space<vmem>>, vector<144x58xbf16>
    tpu.vector_store %arg39[%c0_187, %c0_188], %210 {strides = array<i32>} : memref<288x640xbf16, #tpu.memory_space<vmem>>, vector<144x58xbf16>,
    %212 = vector.extract_strided_slice %201 {offsets = [0, 0], sizes = [16, 51], strides = [1, 1]} : vector<16x58xbf16> to vector<16x51xbf16>
    %c0_189 = arith.constant 0 : index
    %c7 = arith.constant 7 : index
    %213 = vector.load %arg39[%c0_189, %c7] : memref<288x640xbf16, #tpu.memory_space<vmem>>, vector<16x51xbf16>
    tpu.vector_store %arg39[%c0_189, %c7], %212 {strides = array<i32>} : memref<288x640xbf16, #tpu.memory_space<vmem>>, vector<16x51xbf16>,
    %214 = vector.extract_strided_slice %201 {offsets = [0, 0], sizes = [16, 52], strides = [1, 1]} : vector<16x58xbf16> to vector<16x52xbf16>
    %c16_190 = arith.constant 16 : index
    %c6 = arith.constant 6 : index
    %215 = vector.load %arg39[%c16_190, %c6] : memref<288x640xbf16, #tpu.memory_space<vmem>>, vector<16x52xbf16>
    tpu.vector_store %arg39[%c16_190, %c6], %214 {strides = array<i32>} : memref<288x640xbf16, #tpu.memory_space<vmem>>, vector<16x52xbf16>,
    %216 = vector.extract_strided_slice %201 {offsets = [0, 0], sizes = [16, 53], strides = [1, 1]} : vector<16x58xbf16> to vector<16x53xbf16>
    %c32_191 = arith.constant 32 : index
    %c5 = arith.constant 5 : index
    %217 = vector.load %arg39[%c32_191, %c5] : memref<288x640xbf16, #tpu.memory_space<vmem>>, vector<16x53xbf16>
    tpu.vector_store %arg39[%c32_191, %c5], %216 {strides = array<i32>} : memref<288x640xbf16, #tpu.memory_space<vmem>>, vector<16x53xbf16>,
    %218 = vector.extract_strided_slice %201 {offsets = [0, 0], sizes = [16, 57], strides = [1, 1]} : vector<16x58xbf16> to vector<16x57xbf16>
    %c48_192 = arith.constant 48 : index
    %c1_193 = arith.constant 1 : index
    %219 = vector.load %arg39[%c48_192, %c1_193] : memref<288x640xbf16, #tpu.memory_space<vmem>>, vector<16x57xbf16>
    tpu.vector_store %arg39[%c48_192, %c1_193], %218 {strides = array<i32>} : memref<288x640xbf16, #tpu.memory_space<vmem>>, vector<16x57xbf16>,
    %c64_194 = arith.constant 64 : index
    %c0_195 = arith.constant 0 : index
    %220 = vector.load %arg39[%c64_194, %c0_195] : memref<288x640xbf16, #tpu.memory_space<vmem>>, vector<16x58xbf16>
    tpu.vector_store %arg39[%c64_194, %c0_195], %201 {strides = array<i32>} : memref<288x640xbf16, #tpu.memory_space<vmem>>, vector<16x58xbf16>,
    %221 = vector.extract_strided_slice %201 {offsets = [0, 1], sizes = [16, 57], strides = [1, 1]} : vector<16x58xbf16> to vector<16x57xbf16>
    %c80_196 = arith.constant 80 : index
    %c0_197 = arith.constant 0 : index
    %222 = vector.load %arg39[%c80_196, %c0_197] : memref<288x640xbf16, #tpu.memory_space<vmem>>, vector<16x57xbf16>
    tpu.vector_store %arg39[%c80_196, %c0_197], %221 {strides = array<i32>} : memref<288x640xbf16, #tpu.memory_space<vmem>>, vector<16x57xbf16>,
    %223 = vector.extract_strided_slice %201 {offsets = [0, 5], sizes = [16, 53], strides = [1, 1]} : vector<16x58xbf16> to vector<16x53xbf16>
    %c96_198 = arith.constant 96 : index
    %c0_199 = arith.constant 0 : index
    %224 = vector.load %arg39[%c96_198, %c0_199] : memref<288x640xbf16, #tpu.memory_space<vmem>>, vector<16x53xbf16>
    tpu.vector_store %arg39[%c96_198, %c0_199], %223 {strides = array<i32>} : memref<288x640xbf16, #tpu.memory_space<vmem>>, vector<16x53xbf16>,
    %225 = vector.extract_strided_slice %201 {offsets = [0, 6], sizes = [16, 52], strides = [1, 1]} : vector<16x58xbf16> to vector<16x52xbf16>
    %c112_200 = arith.constant 112 : index
    %c0_201 = arith.constant 0 : index
    %226 = vector.load %arg39[%c112_200, %c0_201] : memref<288x640xbf16, #tpu.memory_space<vmem>>, vector<16x52xbf16>
    tpu.vector_store %arg39[%c112_200, %c0_201], %225 {strides = array<i32>} : memref<288x640xbf16, #tpu.memory_space<vmem>>, vector<16x52xbf16>,
    %227 = vector.extract_strided_slice %201 {offsets = [0, 7], sizes = [16, 51], strides = [1, 1]} : vector<16x58xbf16> to vector<16x51xbf16>
    %c128_202 = arith.constant 128 : index
    %c0_203 = arith.constant 0 : index
    %228 = vector.load %arg39[%c128_202, %c0_203] : memref<288x640xbf16, #tpu.memory_space<vmem>>, vector<16x51xbf16>
    tpu.vector_store %arg39[%c128_202, %c0_203], %227 {strides = array<i32>} : memref<288x640xbf16, #tpu.memory_space<vmem>>, vector<16x51xbf16>,
    %c0_204 = arith.constant 0 : index
    %c0_205 = arith.constant 0 : index
    %229 = vector.load %arg39[%c0_204, %c0_205] : memref<288x640xbf16, #tpu.memory_space<vmem>>, vector<144x58xbf16>
    %c0_206 = arith.constant 0 : index
    %c0_207 = arith.constant 0 : index
    %230 = vector.load %arg22[%c0_206, %c0_207] : memref<16x144xbf16, #tpu.memory_space<vmem>>, vector<16x144xbf16>
    %cst_208 = arith.constant dense<0.000000e+00> : vector<16x58xf32>
    %231 = tpu.matmul %230, %229, %cst_208 {dimension_numbers = #tpu.dot_dimension_numbers<[1], [0], [0], [1], [0, 0, 1, 1], [], []>} : vector<16x144xbf16>, vector<144x58xbf16>, vector<16x58xf32> -> vector<16x58xf32>
    %c0_209 = arith.constant 0 : index
    %c0_210 = arith.constant 0 : index
    %232 = vector.load %arg23[%c0_209, %c0_210] : memref<16x1xf32, #tpu.memory_space<vmem>>, vector<16x1xf32>
    %233 = vector.broadcast %232 : vector<16x1xf32> to vector<16x58xf32>
    %234 = arith.addf %231, %233 : vector<16x58xf32>
    %235 = arith.addf %234, %209 : vector<16x58xf32>
    %cst_211 = arith.constant 0.000000e+00 : f32
    %236 = vector.broadcast %cst_211 : f32 to vector<16x58xf32>
    %237 = arith.maximumf %235, %236 : vector<16x58xf32>
    %c0_212 = arith.constant 0 : index
    %c0_213 = arith.constant 0 : index
    %238 = vector.load %arg3[%c0_212, %c0_213] : memref<1x58xf32, #tpu.memory_space<vmem>>, vector<1x58xf32>
    %239 = vector.broadcast %238 : vector<1x58xf32> to vector<16x58xf32>
    %240 = arith.mulf %237, %239 : vector<16x58xf32>
    %241 = arith.truncf %240 : vector<16x58xf32> to vector<16x58xbf16>
    %cst_214 = arith.constant 0.000000e+00 : bf16
    %242 = vector.broadcast %cst_214 : bf16 to vector<144x58xbf16>
    %c0_215 = arith.constant 0 : index
    %c0_216 = arith.constant 0 : index
    %243 = vector.load %arg39[%c0_215, %c0_216] : memref<288x640xbf16, #tpu.memory_space<vmem>>, vector<144x58xbf16>
    tpu.vector_store %arg39[%c0_215, %c0_216], %242 {strides = array<i32>} : memref<288x640xbf16, #tpu.memory_space<vmem>>, vector<144x58xbf16>,
    %244 = vector.extract_strided_slice %241 {offsets = [0, 0], sizes = [16, 51], strides = [1, 1]} : vector<16x58xbf16> to vector<16x51xbf16>
    %c0_217 = arith.constant 0 : index
    %c7_218 = arith.constant 7 : index
    %245 = vector.load %arg39[%c0_217, %c7_218] : memref<288x640xbf16, #tpu.memory_space<vmem>>, vector<16x51xbf16>
    tpu.vector_store %arg39[%c0_217, %c7_218], %244 {strides = array<i32>} : memref<288x640xbf16, #tpu.memory_space<vmem>>, vector<16x51xbf16>,
    %246 = vector.extract_strided_slice %241 {offsets = [0, 0], sizes = [16, 52], strides = [1, 1]} : vector<16x58xbf16> to vector<16x52xbf16>
    %c16_219 = arith.constant 16 : index
    %c6_220 = arith.constant 6 : index
    %247 = vector.load %arg39[%c16_219, %c6_220] : memref<288x640xbf16, #tpu.memory_space<vmem>>, vector<16x52xbf16>
    tpu.vector_store %arg39[%c16_219, %c6_220], %246 {strides = array<i32>} : memref<288x640xbf16, #tpu.memory_space<vmem>>, vector<16x52xbf16>,
    %248 = vector.extract_strided_slice %241 {offsets = [0, 0], sizes = [16, 53], strides = [1, 1]} : vector<16x58xbf16> to vector<16x53xbf16>
    %c32_221 = arith.constant 32 : index
    %c5_222 = arith.constant 5 : index
    %249 = vector.load %arg39[%c32_221, %c5_222] : memref<288x640xbf16, #tpu.memory_space<vmem>>, vector<16x53xbf16>
    tpu.vector_store %arg39[%c32_221, %c5_222], %248 {strides = array<i32>} : memref<288x640xbf16, #tpu.memory_space<vmem>>, vector<16x53xbf16>,
    %250 = vector.extract_strided_slice %241 {offsets = [0, 0], sizes = [16, 57], strides = [1, 1]} : vector<16x58xbf16> to vector<16x57xbf16>
    %c48_223 = arith.constant 48 : index
    %c1_224 = arith.constant 1 : index
    %251 = vector.load %arg39[%c48_223, %c1_224] : memref<288x640xbf16, #tpu.memory_space<vmem>>, vector<16x57xbf16>
    tpu.vector_store %arg39[%c48_223, %c1_224], %250 {strides = array<i32>} : memref<288x640xbf16, #tpu.memory_space<vmem>>, vector<16x57xbf16>,
    %c64_225 = arith.constant 64 : index
    %c0_226 = arith.constant 0 : index
    %252 = vector.load %arg39[%c64_225, %c0_226] : memref<288x640xbf16, #tpu.memory_space<vmem>>, vector<16x58xbf16>
    tpu.vector_store %arg39[%c64_225, %c0_226], %241 {strides = array<i32>} : memref<288x640xbf16, #tpu.memory_space<vmem>>, vector<16x58xbf16>,
    %253 = vector.extract_strided_slice %241 {offsets = [0, 1], sizes = [16, 57], strides = [1, 1]} : vector<16x58xbf16> to vector<16x57xbf16>
    %c80_227 = arith.constant 80 : index
    %c0_228 = arith.constant 0 : index
    %254 = vector.load %arg39[%c80_227, %c0_228] : memref<288x640xbf16, #tpu.memory_space<vmem>>, vector<16x57xbf16>
    tpu.vector_store %arg39[%c80_227, %c0_228], %253 {strides = array<i32>} : memref<288x640xbf16, #tpu.memory_space<vmem>>, vector<16x57xbf16>,
    %255 = vector.extract_strided_slice %241 {offsets = [0, 5], sizes = [16, 53], strides = [1, 1]} : vector<16x58xbf16> to vector<16x53xbf16>
    %c96_229 = arith.constant 96 : index
    %c0_230 = arith.constant 0 : index
    %256 = vector.load %arg39[%c96_229, %c0_230] : memref<288x640xbf16, #tpu.memory_space<vmem>>, vector<16x53xbf16>
    tpu.vector_store %arg39[%c96_229, %c0_230], %255 {strides = array<i32>} : memref<288x640xbf16, #tpu.memory_space<vmem>>, vector<16x53xbf16>,
    %257 = vector.extract_strided_slice %241 {offsets = [0, 6], sizes = [16, 52], strides = [1, 1]} : vector<16x58xbf16> to vector<16x52xbf16>
    %c112_231 = arith.constant 112 : index
    %c0_232 = arith.constant 0 : index
    %258 = vector.load %arg39[%c112_231, %c0_232] : memref<288x640xbf16, #tpu.memory_space<vmem>>, vector<16x52xbf16>
    tpu.vector_store %arg39[%c112_231, %c0_232], %257 {strides = array<i32>} : memref<288x640xbf16, #tpu.memory_space<vmem>>, vector<16x52xbf16>,
    %259 = vector.extract_strided_slice %241 {offsets = [0, 7], sizes = [16, 51], strides = [1, 1]} : vector<16x58xbf16> to vector<16x51xbf16>
    %c128_233 = arith.constant 128 : index
    %c0_234 = arith.constant 0 : index
    %260 = vector.load %arg39[%c128_233, %c0_234] : memref<288x640xbf16, #tpu.memory_space<vmem>>, vector<16x51xbf16>
    tpu.vector_store %arg39[%c128_233, %c0_234], %259 {strides = array<i32>} : memref<288x640xbf16, #tpu.memory_space<vmem>>, vector<16x51xbf16>,
    %c0_235 = arith.constant 0 : index
    %c0_236 = arith.constant 0 : index
    %261 = vector.load %arg39[%c0_235, %c0_236] : memref<288x640xbf16, #tpu.memory_space<vmem>>, vector<144x58xbf16>
    %c0_237 = arith.constant 0 : index
    %c0_238 = arith.constant 0 : index
    %262 = vector.load %arg26[%c0_237, %c0_238] : memref<32x144xbf16, #tpu.memory_space<vmem>>, vector<32x144xbf16>
    %cst_239 = arith.constant dense<0.000000e+00> : vector<32x58xf32>
    %263 = tpu.matmul %262, %261, %cst_239 {dimension_numbers = #tpu.dot_dimension_numbers<[1], [0], [0], [1], [0, 0, 1, 1], [], []>} : vector<32x144xbf16>, vector<144x58xbf16>, vector<32x58xf32> -> vector<32x58xf32>
    %c0_240 = arith.constant 0 : index
    %c0_241 = arith.constant 0 : index
    %264 = vector.load %arg27[%c0_240, %c0_241] : memref<32x1xf32, #tpu.memory_space<vmem>>, vector<32x1xf32>
    %265 = vector.broadcast %264 : vector<32x1xf32> to vector<32x58xf32>
    %266 = arith.addf %263, %265 : vector<32x58xf32>
    %cst_242 = arith.constant 0.000000e+00 : f32
    %267 = vector.broadcast %cst_242 : f32 to vector<32x58xf32>
    %268 = arith.maximumf %266, %267 : vector<32x58xf32>
    %c0_243 = arith.constant 0 : index
    %c0_244 = arith.constant 0 : index
    %269 = vector.load %arg3[%c0_243, %c0_244] : memref<1x58xf32, #tpu.memory_space<vmem>>, vector<1x58xf32>
    %270 = vector.broadcast %269 : vector<1x58xf32> to vector<32x58xf32>
    %271 = arith.mulf %268, %270 : vector<32x58xf32>
    %272 = arith.truncf %271 : vector<32x58xf32> to vector<32x58xbf16>
    %c0_245 = arith.constant 0 : index
    %c0_246 = arith.constant 0 : index
    %273 = vector.load %arg30[%c0_245, %c0_246] : memref<32x16xbf16, #tpu.memory_space<vmem>>, vector<32x16xbf16>
    %cst_247 = arith.constant dense<0.000000e+00> : vector<32x58xf32>
    %274 = tpu.matmul %273, %241, %cst_247 {dimension_numbers = #tpu.dot_dimension_numbers<[1], [0], [0], [1], [0, 0, 1, 1], [], []>} : vector<32x16xbf16>, vector<16x58xbf16>, vector<32x58xf32> -> vector<32x58xf32>
    %c0_248 = arith.constant 0 : index
    %c0_249 = arith.constant 0 : index
    %275 = vector.load %arg31[%c0_248, %c0_249] : memref<32x1xf32, #tpu.memory_space<vmem>>, vector<32x1xf32>
    %276 = vector.broadcast %275 : vector<32x1xf32> to vector<32x58xf32>
    %277 = arith.addf %274, %276 : vector<32x58xf32>
    %cst_250 = arith.constant 0.000000e+00 : bf16
    %278 = vector.broadcast %cst_250 : bf16 to vector<288x58xbf16>
    %c0_251 = arith.constant 0 : index
    %c0_252 = arith.constant 0 : index
    %279 = vector.load %arg39[%c0_251, %c0_252] : memref<288x640xbf16, #tpu.memory_space<vmem>>, vector<288x58xbf16>
    tpu.vector_store %arg39[%c0_251, %c0_252], %278 {strides = array<i32>} : memref<288x640xbf16, #tpu.memory_space<vmem>>, vector<288x58xbf16>,
    %280 = vector.extract_strided_slice %272 {offsets = [0, 0], sizes = [32, 51], strides = [1, 1]} : vector<32x58xbf16> to vector<32x51xbf16>
    %c0_253 = arith.constant 0 : index
    %c7_254 = arith.constant 7 : index
    %281 = vector.load %arg39[%c0_253, %c7_254] : memref<288x640xbf16, #tpu.memory_space<vmem>>, vector<32x51xbf16>
    tpu.vector_store %arg39[%c0_253, %c7_254], %280 {strides = array<i32>} : memref<288x640xbf16, #tpu.memory_space<vmem>>, vector<32x51xbf16>,
    %282 = vector.extract_strided_slice %272 {offsets = [0, 0], sizes = [32, 52], strides = [1, 1]} : vector<32x58xbf16> to vector<32x52xbf16>
    %c32_255 = arith.constant 32 : index
    %c6_256 = arith.constant 6 : index
    %283 = vector.load %arg39[%c32_255, %c6_256] : memref<288x640xbf16, #tpu.memory_space<vmem>>, vector<32x52xbf16>
    tpu.vector_store %arg39[%c32_255, %c6_256], %282 {strides = array<i32>} : memref<288x640xbf16, #tpu.memory_space<vmem>>, vector<32x52xbf16>,
    %284 = vector.extract_strided_slice %272 {offsets = [0, 0], sizes = [32, 53], strides = [1, 1]} : vector<32x58xbf16> to vector<32x53xbf16>
    %c64_257 = arith.constant 64 : index
    %c5_258 = arith.constant 5 : index
    %285 = vector.load %arg39[%c64_257, %c5_258] : memref<288x640xbf16, #tpu.memory_space<vmem>>, vector<32x53xbf16>
    tpu.vector_store %arg39[%c64_257, %c5_258], %284 {strides = array<i32>} : memref<288x640xbf16, #tpu.memory_space<vmem>>, vector<32x53xbf16>,
    %286 = vector.extract_strided_slice %272 {offsets = [0, 0], sizes = [32, 57], strides = [1, 1]} : vector<32x58xbf16> to vector<32x57xbf16>
    %c96_259 = arith.constant 96 : index
    %c1_260 = arith.constant 1 : index
    %287 = vector.load %arg39[%c96_259, %c1_260] : memref<288x640xbf16, #tpu.memory_space<vmem>>, vector<32x57xbf16>
    tpu.vector_store %arg39[%c96_259, %c1_260], %286 {strides = array<i32>} : memref<288x640xbf16, #tpu.memory_space<vmem>>, vector<32x57xbf16>,
    %c128_261 = arith.constant 128 : index
    %c0_262 = arith.constant 0 : index
    %288 = vector.load %arg39[%c128_261, %c0_262] : memref<288x640xbf16, #tpu.memory_space<vmem>>, vector<32x58xbf16>
    tpu.vector_store %arg39[%c128_261, %c0_262], %272 {strides = array<i32>} : memref<288x640xbf16, #tpu.memory_space<vmem>>, vector<32x58xbf16>,
    %289 = vector.extract_strided_slice %272 {offsets = [0, 1], sizes = [32, 57], strides = [1, 1]} : vector<32x58xbf16> to vector<32x57xbf16>
    %c160 = arith.constant 160 : index
    %c0_263 = arith.constant 0 : index
    %290 = vector.load %arg39[%c160, %c0_263] : memref<288x640xbf16, #tpu.memory_space<vmem>>, vector<32x57xbf16>
    tpu.vector_store %arg39[%c160, %c0_263], %289 {strides = array<i32>} : memref<288x640xbf16, #tpu.memory_space<vmem>>, vector<32x57xbf16>,
    %291 = vector.extract_strided_slice %272 {offsets = [0, 5], sizes = [32, 53], strides = [1, 1]} : vector<32x58xbf16> to vector<32x53xbf16>
    %c192 = arith.constant 192 : index
    %c0_264 = arith.constant 0 : index
    %292 = vector.load %arg39[%c192, %c0_264] : memref<288x640xbf16, #tpu.memory_space<vmem>>, vector<32x53xbf16>
    tpu.vector_store %arg39[%c192, %c0_264], %291 {strides = array<i32>} : memref<288x640xbf16, #tpu.memory_space<vmem>>, vector<32x53xbf16>,
    %293 = vector.extract_strided_slice %272 {offsets = [0, 6], sizes = [32, 52], strides = [1, 1]} : vector<32x58xbf16> to vector<32x52xbf16>
    %c224 = arith.constant 224 : index
    %c0_265 = arith.constant 0 : index
    %294 = vector.load %arg39[%c224, %c0_265] : memref<288x640xbf16, #tpu.memory_space<vmem>>, vector<32x52xbf16>
    tpu.vector_store %arg39[%c224, %c0_265], %293 {strides = array<i32>} : memref<288x640xbf16, #tpu.memory_space<vmem>>, vector<32x52xbf16>,
    %295 = vector.extract_strided_slice %272 {offsets = [0, 7], sizes = [32, 51], strides = [1, 1]} : vector<32x58xbf16> to vector<32x51xbf16>
    %c256 = arith.constant 256 : index
    %c0_266 = arith.constant 0 : index
    %296 = vector.load %arg39[%c256, %c0_266] : memref<288x640xbf16, #tpu.memory_space<vmem>>, vector<32x51xbf16>
    tpu.vector_store %arg39[%c256, %c0_266], %295 {strides = array<i32>} : memref<288x640xbf16, #tpu.memory_space<vmem>>, vector<32x51xbf16>,
    %c0_267 = arith.constant 0 : index
    %c0_268 = arith.constant 0 : index
    %297 = vector.load %arg39[%c0_267, %c0_268] : memref<288x640xbf16, #tpu.memory_space<vmem>>, vector<288x58xbf16>
    %c0_269 = arith.constant 0 : index
    %c0_270 = arith.constant 0 : index
    %298 = vector.load %arg28[%c0_269, %c0_270] : memref<32x288xbf16, #tpu.memory_space<vmem>>, vector<32x288xbf16>
    %cst_271 = arith.constant dense<0.000000e+00> : vector<32x58xf32>
    %299 = tpu.matmul %298, %297, %cst_271 {dimension_numbers = #tpu.dot_dimension_numbers<[1], [0], [0], [1], [0, 0, 1, 1], [], []>} : vector<32x288xbf16>, vector<288x58xbf16>, vector<32x58xf32> -> vector<32x58xf32>
    %c0_272 = arith.constant 0 : index
    %c0_273 = arith.constant 0 : index
    %300 = vector.load %arg29[%c0_272, %c0_273] : memref<32x1xf32, #tpu.memory_space<vmem>>, vector<32x1xf32>
    %301 = vector.broadcast %300 : vector<32x1xf32> to vector<32x58xf32>
    %302 = arith.addf %299, %301 : vector<32x58xf32>
    %303 = arith.addf %302, %277 : vector<32x58xf32>
    %cst_274 = arith.constant 0.000000e+00 : f32
    %304 = vector.broadcast %cst_274 : f32 to vector<32x58xf32>
    %305 = arith.maximumf %303, %304 : vector<32x58xf32>
    %c0_275 = arith.constant 0 : index
    %c0_276 = arith.constant 0 : index
    %306 = vector.load %arg3[%c0_275, %c0_276] : memref<1x58xf32, #tpu.memory_space<vmem>>, vector<1x58xf32>
    %307 = vector.broadcast %306 : vector<1x58xf32> to vector<32x58xf32>
    %308 = arith.mulf %305, %307 : vector<32x58xf32>
    %309 = arith.truncf %308 : vector<32x58xf32> to vector<32x58xbf16>
    %cst_277 = arith.constant 0.000000e+00 : bf16
    %310 = vector.broadcast %cst_277 : bf16 to vector<288x58xbf16>
    %c0_278 = arith.constant 0 : index
    %c0_279 = arith.constant 0 : index
    %311 = vector.load %arg39[%c0_278, %c0_279] : memref<288x640xbf16, #tpu.memory_space<vmem>>, vector<288x58xbf16>
    tpu.vector_store %arg39[%c0_278, %c0_279], %310 {strides = array<i32>} : memref<288x640xbf16, #tpu.memory_space<vmem>>, vector<288x58xbf16>,
    %312 = vector.extract_strided_slice %309 {offsets = [0, 0], sizes = [32, 51], strides = [1, 1]} : vector<32x58xbf16> to vector<32x51xbf16>
    %c0_280 = arith.constant 0 : index
    %c7_281 = arith.constant 7 : index
    %313 = vector.load %arg39[%c0_280, %c7_281] : memref<288x640xbf16, #tpu.memory_space<vmem>>, vector<32x51xbf16>
    tpu.vector_store %arg39[%c0_280, %c7_281], %312 {strides = array<i32>} : memref<288x640xbf16, #tpu.memory_space<vmem>>, vector<32x51xbf16>,
    %314 = vector.extract_strided_slice %309 {offsets = [0, 0], sizes = [32, 52], strides = [1, 1]} : vector<32x58xbf16> to vector<32x52xbf16>
    %c32_282 = arith.constant 32 : index
    %c6_283 = arith.constant 6 : index
    %315 = vector.load %arg39[%c32_282, %c6_283] : memref<288x640xbf16, #tpu.memory_space<vmem>>, vector<32x52xbf16>
    tpu.vector_store %arg39[%c32_282, %c6_283], %314 {strides = array<i32>} : memref<288x640xbf16, #tpu.memory_space<vmem>>, vector<32x52xbf16>,
    %316 = vector.extract_strided_slice %309 {offsets = [0, 0], sizes = [32, 53], strides = [1, 1]} : vector<32x58xbf16> to vector<32x53xbf16>
    %c64_284 = arith.constant 64 : index
    %c5_285 = arith.constant 5 : index
    %317 = vector.load %arg39[%c64_284, %c5_285] : memref<288x640xbf16, #tpu.memory_space<vmem>>, vector<32x53xbf16>
    tpu.vector_store %arg39[%c64_284, %c5_285], %316 {strides = array<i32>} : memref<288x640xbf16, #tpu.memory_space<vmem>>, vector<32x53xbf16>,
    %318 = vector.extract_strided_slice %309 {offsets = [0, 0], sizes = [32, 57], strides = [1, 1]} : vector<32x58xbf16> to vector<32x57xbf16>
    %c96_286 = arith.constant 96 : index
    %c1_287 = arith.constant 1 : index
    %319 = vector.load %arg39[%c96_286, %c1_287] : memref<288x640xbf16, #tpu.memory_space<vmem>>, vector<32x57xbf16>
    tpu.vector_store %arg39[%c96_286, %c1_287], %318 {strides = array<i32>} : memref<288x640xbf16, #tpu.memory_space<vmem>>, vector<32x57xbf16>,
    %c128_288 = arith.constant 128 : index
    %c0_289 = arith.constant 0 : index
    %320 = vector.load %arg39[%c128_288, %c0_289] : memref<288x640xbf16, #tpu.memory_space<vmem>>, vector<32x58xbf16>
    tpu.vector_store %arg39[%c128_288, %c0_289], %309 {strides = array<i32>} : memref<288x640xbf16, #tpu.memory_space<vmem>>, vector<32x58xbf16>,
    %321 = vector.extract_strided_slice %309 {offsets = [0, 1], sizes = [32, 57], strides = [1, 1]} : vector<32x58xbf16> to vector<32x57xbf16>
    %c160_290 = arith.constant 160 : index
    %c0_291 = arith.constant 0 : index
    %322 = vector.load %arg39[%c160_290, %c0_291] : memref<288x640xbf16, #tpu.memory_space<vmem>>, vector<32x57xbf16>
    tpu.vector_store %arg39[%c160_290, %c0_291], %321 {strides = array<i32>} : memref<288x640xbf16, #tpu.memory_space<vmem>>, vector<32x57xbf16>,
    %323 = vector.extract_strided_slice %309 {offsets = [0, 5], sizes = [32, 53], strides = [1, 1]} : vector<32x58xbf16> to vector<32x53xbf16>
    %c192_292 = arith.constant 192 : index
    %c0_293 = arith.constant 0 : index
    %324 = vector.load %arg39[%c192_292, %c0_293] : memref<288x640xbf16, #tpu.memory_space<vmem>>, vector<32x53xbf16>
    tpu.vector_store %arg39[%c192_292, %c0_293], %323 {strides = array<i32>} : memref<288x640xbf16, #tpu.memory_space<vmem>>, vector<32x53xbf16>,
    %325 = vector.extract_strided_slice %309 {offsets = [0, 6], sizes = [32, 52], strides = [1, 1]} : vector<32x58xbf16> to vector<32x52xbf16>
    %c224_294 = arith.constant 224 : index
    %c0_295 = arith.constant 0 : index
    %326 = vector.load %arg39[%c224_294, %c0_295] : memref<288x640xbf16, #tpu.memory_space<vmem>>, vector<32x52xbf16>
    tpu.vector_store %arg39[%c224_294, %c0_295], %325 {strides = array<i32>} : memref<288x640xbf16, #tpu.memory_space<vmem>>, vector<32x52xbf16>,
    %327 = vector.extract_strided_slice %309 {offsets = [0, 7], sizes = [32, 51], strides = [1, 1]} : vector<32x58xbf16> to vector<32x51xbf16>
    %c256_296 = arith.constant 256 : index
    %c0_297 = arith.constant 0 : index
    %328 = vector.load %arg39[%c256_296, %c0_297] : memref<288x640xbf16, #tpu.memory_space<vmem>>, vector<32x51xbf16>
    tpu.vector_store %arg39[%c256_296, %c0_297], %327 {strides = array<i32>} : memref<288x640xbf16, #tpu.memory_space<vmem>>, vector<32x51xbf16>,
    %c0_298 = arith.constant 0 : index
    %c0_299 = arith.constant 0 : index
    %329 = vector.load %arg39[%c0_298, %c0_299] : memref<288x640xbf16, #tpu.memory_space<vmem>>, vector<288x58xbf16>
    %c0_300 = arith.constant 0 : index
    %c0_301 = arith.constant 0 : index
    %330 = vector.load %arg32[%c0_300, %c0_301] : memref<32x288xbf16, #tpu.memory_space<vmem>>, vector<32x288xbf16>
    %cst_302 = arith.constant dense<0.000000e+00> : vector<32x58xf32>
    %331 = tpu.matmul %330, %329, %cst_302 {dimension_numbers = #tpu.dot_dimension_numbers<[1], [0], [0], [1], [0, 0, 1, 1], [], []>} : vector<32x288xbf16>, vector<288x58xbf16>, vector<32x58xf32> -> vector<32x58xf32>
    %c0_303 = arith.constant 0 : index
    %c0_304 = arith.constant 0 : index
    %332 = vector.load %arg33[%c0_303, %c0_304] : memref<32x1xf32, #tpu.memory_space<vmem>>, vector<32x1xf32>
    %333 = vector.broadcast %332 : vector<32x1xf32> to vector<32x58xf32>
    %334 = arith.addf %331, %333 : vector<32x58xf32>
    %cst_305 = arith.constant 0.000000e+00 : f32
    %335 = vector.broadcast %cst_305 : f32 to vector<32x58xf32>
    %336 = arith.maximumf %334, %335 : vector<32x58xf32>
    %c0_306 = arith.constant 0 : index
    %c0_307 = arith.constant 0 : index
    %337 = vector.load %arg3[%c0_306, %c0_307] : memref<1x58xf32, #tpu.memory_space<vmem>>, vector<1x58xf32>
    %338 = vector.broadcast %337 : vector<1x58xf32> to vector<32x58xf32>
    %339 = arith.mulf %336, %338 : vector<32x58xf32>
    %340 = arith.truncf %339 : vector<32x58xf32> to vector<32x58xbf16>
    %341 = arith.extf %309 : vector<32x58xbf16> to vector<32x58xf32>
    %cst_308 = arith.constant 0.000000e+00 : bf16
    %342 = vector.broadcast %cst_308 : bf16 to vector<288x58xbf16>
    %c0_309 = arith.constant 0 : index
    %c0_310 = arith.constant 0 : index
    %343 = vector.load %arg39[%c0_309, %c0_310] : memref<288x640xbf16, #tpu.memory_space<vmem>>, vector<288x58xbf16>
    tpu.vector_store %arg39[%c0_309, %c0_310], %342 {strides = array<i32>} : memref<288x640xbf16, #tpu.memory_space<vmem>>, vector<288x58xbf16>,
    %344 = vector.extract_strided_slice %340 {offsets = [0, 0], sizes = [32, 51], strides = [1, 1]} : vector<32x58xbf16> to vector<32x51xbf16>
    %c0_311 = arith.constant 0 : index
    %c7_312 = arith.constant 7 : index
    %345 = vector.load %arg39[%c0_311, %c7_312] : memref<288x640xbf16, #tpu.memory_space<vmem>>, vector<32x51xbf16>
    tpu.vector_store %arg39[%c0_311, %c7_312], %344 {strides = array<i32>} : memref<288x640xbf16, #tpu.memory_space<vmem>>, vector<32x51xbf16>,
    %346 = vector.extract_strided_slice %340 {offsets = [0, 0], sizes = [32, 52], strides = [1, 1]} : vector<32x58xbf16> to vector<32x52xbf16>
    %c32_313 = arith.constant 32 : index
    %c6_314 = arith.constant 6 : index
    %347 = vector.load %arg39[%c32_313, %c6_314] : memref<288x640xbf16, #tpu.memory_space<vmem>>, vector<32x52xbf16>
    tpu.vector_store %arg39[%c32_313, %c6_314], %346 {strides = array<i32>} : memref<288x640xbf16, #tpu.memory_space<vmem>>, vector<32x52xbf16>,
    %348 = vector.extract_strided_slice %340 {offsets = [0, 0], sizes = [32, 53], strides = [1, 1]} : vector<32x58xbf16> to vector<32x53xbf16>
    %c64_315 = arith.constant 64 : index
    %c5_316 = arith.constant 5 : index
    %349 = vector.load %arg39[%c64_315, %c5_316] : memref<288x640xbf16, #tpu.memory_space<vmem>>, vector<32x53xbf16>
    tpu.vector_store %arg39[%c64_315, %c5_316], %348 {strides = array<i32>} : memref<288x640xbf16, #tpu.memory_space<vmem>>, vector<32x53xbf16>,
    %350 = vector.extract_strided_slice %340 {offsets = [0, 0], sizes = [32, 57], strides = [1, 1]} : vector<32x58xbf16> to vector<32x57xbf16>
    %c96_317 = arith.constant 96 : index
    %c1_318 = arith.constant 1 : index
    %351 = vector.load %arg39[%c96_317, %c1_318] : memref<288x640xbf16, #tpu.memory_space<vmem>>, vector<32x57xbf16>
    tpu.vector_store %arg39[%c96_317, %c1_318], %350 {strides = array<i32>} : memref<288x640xbf16, #tpu.memory_space<vmem>>, vector<32x57xbf16>,
    %c128_319 = arith.constant 128 : index
    %c0_320 = arith.constant 0 : index
    %352 = vector.load %arg39[%c128_319, %c0_320] : memref<288x640xbf16, #tpu.memory_space<vmem>>, vector<32x58xbf16>
    tpu.vector_store %arg39[%c128_319, %c0_320], %340 {strides = array<i32>} : memref<288x640xbf16, #tpu.memory_space<vmem>>, vector<32x58xbf16>,
    %353 = vector.extract_strided_slice %340 {offsets = [0, 1], sizes = [32, 57], strides = [1, 1]} : vector<32x58xbf16> to vector<32x57xbf16>
    %c160_321 = arith.constant 160 : index
    %c0_322 = arith.constant 0 : index
    %354 = vector.load %arg39[%c160_321, %c0_322] : memref<288x640xbf16, #tpu.memory_space<vmem>>, vector<32x57xbf16>
    tpu.vector_store %arg39[%c160_321, %c0_322], %353 {strides = array<i32>} : memref<288x640xbf16, #tpu.memory_space<vmem>>, vector<32x57xbf16>,
    %355 = vector.extract_strided_slice %340 {offsets = [0, 5], sizes = [32, 53], strides = [1, 1]} : vector<32x58xbf16> to vector<32x53xbf16>
    %c192_323 = arith.constant 192 : index
    %c0_324 = arith.constant 0 : index
    %356 = vector.load %arg39[%c192_323, %c0_324] : memref<288x640xbf16, #tpu.memory_space<vmem>>, vector<32x53xbf16>
    tpu.vector_store %arg39[%c192_323, %c0_324], %355 {strides = array<i32>} : memref<288x640xbf16, #tpu.memory_space<vmem>>, vector<32x53xbf16>,
    %357 = vector.extract_strided_slice %340 {offsets = [0, 6], sizes = [32, 52], strides = [1, 1]} : vector<32x58xbf16> to vector<32x52xbf16>
    %c224_325 = arith.constant 224 : index
    %c0_326 = arith.constant 0 : index
    %358 = vector.load %arg39[%c224_325, %c0_326] : memref<288x640xbf16, #tpu.memory_space<vmem>>, vector<32x52xbf16>
    tpu.vector_store %arg39[%c224_325, %c0_326], %357 {strides = array<i32>} : memref<288x640xbf16, #tpu.memory_space<vmem>>, vector<32x52xbf16>,
    %359 = vector.extract_strided_slice %340 {offsets = [0, 7], sizes = [32, 51], strides = [1, 1]} : vector<32x58xbf16> to vector<32x51xbf16>
    %c256_327 = arith.constant 256 : index
    %c0_328 = arith.constant 0 : index
    %360 = vector.load %arg39[%c256_327, %c0_328] : memref<288x640xbf16, #tpu.memory_space<vmem>>, vector<32x51xbf16>
    tpu.vector_store %arg39[%c256_327, %c0_328], %359 {strides = array<i32>} : memref<288x640xbf16, #tpu.memory_space<vmem>>, vector<32x51xbf16>,
    %c0_329 = arith.constant 0 : index
    %c0_330 = arith.constant 0 : index
    %361 = vector.load %arg39[%c0_329, %c0_330] : memref<288x640xbf16, #tpu.memory_space<vmem>>, vector<288x58xbf16>
    %c0_331 = arith.constant 0 : index
    %c0_332 = arith.constant 0 : index
    %362 = vector.load %arg34[%c0_331, %c0_332] : memref<32x288xbf16, #tpu.memory_space<vmem>>, vector<32x288xbf16>
    %cst_333 = arith.constant dense<0.000000e+00> : vector<32x58xf32>
    %363 = tpu.matmul %362, %361, %cst_333 {dimension_numbers = #tpu.dot_dimension_numbers<[1], [0], [0], [1], [0, 0, 1, 1], [], []>} : vector<32x288xbf16>, vector<288x58xbf16>, vector<32x58xf32> -> vector<32x58xf32>
    %c0_334 = arith.constant 0 : index
    %c0_335 = arith.constant 0 : index
    %364 = vector.load %arg35[%c0_334, %c0_335] : memref<32x1xf32, #tpu.memory_space<vmem>>, vector<32x1xf32>
    %365 = vector.broadcast %364 : vector<32x1xf32> to vector<32x58xf32>
    %366 = arith.addf %363, %365 : vector<32x58xf32>
    %367 = arith.addf %366, %341 : vector<32x58xf32>
    %cst_336 = arith.constant 0.000000e+00 : f32
    %368 = vector.broadcast %cst_336 : f32 to vector<32x58xf32>
    %369 = arith.maximumf %367, %368 : vector<32x58xf32>
    %c0_337 = arith.constant 0 : index
    %c0_338 = arith.constant 0 : index
    %370 = vector.load %arg3[%c0_337, %c0_338] : memref<1x58xf32, #tpu.memory_space<vmem>>, vector<1x58xf32>
    %371 = vector.broadcast %370 : vector<1x58xf32> to vector<32x58xf32>
    %372 = arith.mulf %369, %371 : vector<32x58xf32>
    %c0_339 = arith.constant 0 : index
    %c0_340 = arith.constant 0 : index
    %373 = vector.load %arg36[%c0_339, %c0_340] : memref<8x178xf32, #tpu.memory_space<vmem>>, vector<8x178xf32>
    tpu.vector_store %arg36[%c0_339, %c0_340], %101 {strides = array<i32>} : memref<8x178xf32, #tpu.memory_space<vmem>>, vector<8x178xf32>,
    %c0_341 = arith.constant 0 : index
    %c0_342 = arith.constant 0 : index
    %374 = vector.load %arg37[%c0_341, %c0_342] : memref<16x58xf32, #tpu.memory_space<vmem>>, vector<16x58xf32>
    tpu.vector_store %arg37[%c0_341, %c0_342], %240 {strides = array<i32>} : memref<16x58xf32, #tpu.memory_space<vmem>>, vector<16x58xf32>,
    %c0_343 = arith.constant 0 : index
    %c0_344 = arith.constant 0 : index
    %375 = vector.load %arg38[%c0_343, %c0_344] : memref<32x58xf32, #tpu.memory_space<vmem>>, vector<32x58xf32>
    tpu.vector_store %arg38[%c0_343, %c0_344], %372 {strides = array<i32>} : memref<32x58xf32, #tpu.memory_space<vmem>>, vector<32x58xf32>,
    return
  }
}

</mosaic_0001>

<bundles_post_ra>
// kernel: _forward_impl.1
= control target key start
LH: loop header
LB: loop body
LE: loop exit
PB: predicated region body
PF: predicated region fallthrough
CT: control target
= control target key end

     0   :  { %v181_v0 = vlaneseq  ;;  %vm8817_vm0 = vcmask 797696   ;;  %v6564_v1 = vmov 1983009808   ;;  %v8820_v3 = vmov 0   ;;  %s6566_s6 = smov 109   ;;  %s6567_s7 = smov 127   ;;  %s8812_s0 = inlined_call_operand.smem [shape: u32[39], index: -1, kind: input, shape index: {}] }
   0x1   :  { %s6624_s5 = sld [smem:[%s8812_s0]]   ;;  %v179_v2 = vunpack.c.l.s4 %v6564_v1  ;;  %166 = vst [vmem:[#allocation2 + $0x30] sm:$0xff] %v8820_v3  ;;  %158 = vst [vmem:[#allocation2] sm:$0xff] %v8820_v3  ;;  %vm173_vm1 = vcmask 795648   ;;  %532 = vmatprep.mubr.bf16.mxu0 %v8820_v3  ;;  %573 = vmatprep.mubr.bf16.mxu1 %v8820_v3  ;;  %s6568_s8 = smov 111   ;;  %vm391_vm2 = vcmask 640000   ;;  %vm209_vm3 = vcmask 1043456  }
   0x2   :  { %159 = vst [vmem:[#allocation2 + $0x8] sm:$0xff] %v8820_v3  ;;  %162 = vst [vmem:[#allocation2 + $0x14] sm:$0xff] %v8820_v3  ;;  %v6654_v4 = vshrl.u32 %v181_v0, 7  ;;  %6278 = vset.pattern.permute.xlu0 %v8820_v3  ;;  %6279 = vset.pattern.permute.xlu1 %v8820_v3  ;;  %s6569_s9 = smov 110   ;;  %s6570_s10 = smov 19   ;;  %vm8813_vm4 = vcmask 1039360  }
   0x3   :  { %163 = vst [vmem:[#allocation2 + $0x1c] sm:$0xff] %v8820_v3  ;;  %165 = vst [vmem:[#allocation2 + $0x28] sm:$0xff] %v8820_v3  ;;  %v180_v5 = vunpack.c.0.s8 %v179_v2  ;;  %s6571_s11 = smov 18   ;;  %s6572_s12 = smov 17   ;;  %vm328_vm5 = vcmask 789506   ;;  %vm340_vm6 = vcmask 908288  }
   0x4   :  { %168 = vst [vmem:[#allocation2 + $0x3c] sm:$0xff] %v8820_v3  ;;  %169 = vst [vmem:[#allocation2 + $0x44] sm:$0xff] %v8820_v3  ;;  %s6573_s13 = smov 1   ;;  %s6574_s14 = smov 7   ;;  %vm382_vm7 = vcmask 891904   ;;  %vm349_vm8 = vcmask 656384  }
   0x5   :  { %171 = vst [vmem:[#allocation2 + $0x50] sm:$0x33] %v8820_v3  ;;  %172 = vst [vmem:[#allocation2 + $0x58] sm:$0x33] %v8820_v3  ;;  %v183_v6 = vsub.s32 %v180_v5, %v6654_v4  ;;  %s5634_s17 = sld [smem:[%s8812_s0 + %s6574_s14]]   ;;  %vm370_vm9 = vcmask 650242   ;;  %vm361_vm10 = vcmask 900096  }
   0x6   :  { %161 = vst.msk [vmem:[#allocation2 + $0x10] sm:$0xf] %vm8817_vm0, %v8820_v3  ;;  %164 = vst.msk [vmem:[#allocation2 + $0x24] sm:$0xf] %vm8817_vm0, %v8820_v3  ;;  %vm216_vm11 = vcmask 1041560   ;;  %vm217_vm12 = vcmask 1045508   ;;  %s5628_s24 = sld [smem:[%s8812_s0 + %s6573_s13]]  }
   0x7   :  { %167 = vst.msk [vmem:[#allocation2 + $0x38] sm:$0xf] %vm8817_vm0, %v8820_v3  ;;  %170 = vst.msk [vmem:[#allocation2 + $0x4c] sm:$0xf] %vm8817_vm0, %v8820_v3  ;;  %v157_v7 = vld [vmem:[%s6624_s5 + $0x8] sm:$0x3] }
   0x8   :  { %681 = vst.msk [vmem:[#allocation2 + $0x74] sm:$0xf] %vm8817_vm0, %v8820_v3  ;;  %684 = vst.msk [vmem:[#allocation2 + $0x88] sm:$0xf] %vm8817_vm0, %v8820_v3  ;;  %v156_v8 = vld [vmem:[%s6624_s5] sm:$0xff]  ;;  %v198_v9 = vrot.slane %v157_v7, %v183_v6  ;;  %v230_v14 = vcombine.low %v157_v7, %v157_v7  ;;  %vm207_vm13 = vcmask 154624   ;;  %s7651_s5 = sld [smem:[%s8812_s0 + %s6571_s11]]  }
   0x9   :  { %687 = vst.msk [vmem:[#allocation2 + $0x9c] sm:$0xf] %vm8817_vm0, %v8820_v3  ;;  %690 = vst.msk [vmem:[#allocation2 + $0xb0] sm:$0xf] %vm8817_vm0, %v8820_v3  ;;  %v184_v10 = vrot.slane %v156_v8, %v183_v6  ;;  %v222_v11 = vcombine.low %v156_v8, %v156_v8  ;;  %v177_v12 = vcombine.high %v156_v8, %v156_v8  ;;  %vm484_vm14 = vcmask 1041408   ;;  %s6575_s18 = smov 6  }
   0xa   :  { %174 = vst.msk [vmem:[#allocation2 + $0x60] sm:$0x3] %vm173_vm1, %v8820_v3  ;;  %5666 = vst.sshfl [vmem:[#allocation2 + $0x28] sm:$0xf pattern:$0x76325410] %v156_v8  ;;  %376 = vrot.lane.b32.xlu1 %v198_v9, %s6566_s6  ;;  %v237_v15 = vrot.slane %v230_v14, %v183_v6  ;;  %s5633_s21 = sld [smem:[%s8812_s0 + %s6575_s18]]  }
   0xb   :  { %372 = vrot.lane.b32.xlu0 %v184_v10, %s6566_s6  ;;  %v229_v13 = vrot.slane %v222_v11, %v183_v6  ;;  %308 = vst.msk [vmem:[#allocation2 + $0x38] sm:$0x3] %vm173_vm1, %v198_v9  ;;  %5667 = vst.sshfl [vmem:[#allocation2 + $0x30] sm:$0xf pattern:$0x76325410] %v177_v12  ;;  %v191_v16 = vrot.slane %v177_v12, %v183_v6 }
   0xc   :  { %v409_v17 = vld [vmem:[%s5634_s17] sm:$0xff]  ;;  %vm218_vm15 = vmor %vm217_vm12, %vm216_vm11  ;;  %vm277_vm11 = vcmask 1041544   ;;  %s6578_s25 = smov 9   ;;  %s6579_s29 = smov 4  }
   0xd   :  { %s5636_s28 = sld [smem:[%s8812_s0 + %s6578_s25]]   ;;  %s6580_s3 = smov 8  }
   0xe   :  { %309 = vrot.lane.b32.xlu1 %v229_v13, %s6567_s7  ;;  %s6906_s2 = sld [smem:[%s8812_s0 + %s6579_s29]]   ;;  %s6582_s17 = smov 12  }
   0xf   :  { %311 = vrot.lane.b32.xlu0 %v184_v10, %s6567_s7  ;;  %s6583_s22 = smov 119   ;;  %s6584_s23 = smov 117  }
  0x10   :  { %s6586_s26 = smov 11   ;;  %s6587_s30 = smov 10  }
  0x11   :  { %s5638_s29 = sld [smem:[%s8812_s0 + %s6586_s26]]   ;;  %s6588_s4 = smov 2  }
  0x12   :  { %313 = vrot.lane.b32.xlu1 %v237_v15, %s6567_s7  ;;  %s6590_s19 = smov 15   ;;  %s6604_s1 = smov 37  }
  0x13   :  { %330 = vrot.lane.b32.xlu0 %v184_v10, %s6568_s8  ;;  %s5642_s27 = sld [smem:[%s8812_s0 + %s6590_s19]]   ;;  %s6592_s19 = smov 16  }
  0x16   :  { %332 = vrot.lane.b32.xlu1 %v191_v16, %s6568_s8 }
  0x17   :  { %374 = vrot.lane.b32.xlu0 %v191_v16, %s6566_s6 }
  0x1a   :  { %351 = vrot.lane.b32.xlu1 %v229_v13, %s6569_s9 }
  0x1b   :  { %334 = vrot.lane.b32.xlu0 %v198_v9, %s6568_s8 }
  0x1e   :  { %355 = vrot.lane.b32.xlu1 %v237_v15, %s6569_s9 }
  0x1f   :  { %353 = vrot.lane.b32.xlu0 %v184_v10, %s6569_s9 }
  0x22   :  { %201 = vrot.lane.b32.xlu1 %v191_v16, %s6570_s10 }
  0x23   :  { %199 = vrot.lane.b32.xlu0 %v184_v10, %s6570_s10 }
  0x26   :  { %240 = vrot.lane.b32.xlu1 %v184_v10, %s6571_s11 }
  0x27   :  { %238 = vrot.lane.b32.xlu0 %v229_v13, %s6571_s11 }
  0x2a   :  { %263 = vrot.lane.b32.xlu1 %v191_v16, %s6572_s12 }
  0x2b   :  { %261 = vrot.lane.b32.xlu0 %v184_v10, %s6572_s12 }
  0x2e   :  { %284 = vrot.lane.b32.xlu1 %v184_v10, %s6573_s13 }
  0x2f   :  { %282 = vrot.lane.b32.xlu0 %v229_v13, %s6573_s13 }
  0x32   :  { %242 = vrot.lane.b32.xlu1 %v237_v15, %s6571_s11 }
  0x33   :  { %203 = vrot.lane.b32.xlu0 %v198_v9, %s6570_s10 }
  0x36   :  { %286 = vrot.lane.b32.xlu1 %v237_v15, %s6573_s13 }
  0x37   :  { %265 = vrot.lane.b32.xlu0 %v198_v9, %s6572_s12 }
  0x3b   :  { %412 = vperm.xlu0 %6278, %v409_v17  }
  0x7c   :  { %v377_v18 = vpop.permute.xlu1 %376 }
  0x7d   :  { %v373_v19 = vpop.permute.xlu0 %372  ;;  %392 = vst.msk [vmem:[#allocation2 + $0x60] sm:$0x3] %vm391_vm2, %v377_v18  ;;  %v380_v31 = vrot.slane %v377_v18, 4  ;;  %vm254_vm2 = vcmask 1043602  }
  0x7e   :  { %v378_v35 = vrot.slane %v373_v19, 4 }
  0x80   :  { %v310_v20 = vpop.permute.xlu1 %309 }
  0x81   :  { %v312_v21 = vpop.permute.xlu0 %311  ;;  %v315_v22 = vrot.slane %v310_v20, 4 }
  0x82   :  { %v316_v23 = vrot.slane %v312_v21, 4 }
  0x84   :  { %v318_v24 = vsel %vm209_vm3, %v315_v22, %v316_v23  ;;  %v6693_v25 = vld [vmem:[#allocation2 + $0x60] sm:$0x3]  ;;  %v314_v27 = vpop.permute.xlu1 %313 }
  0x85   :  { %v320_v26 = vsel %vm8813_vm4, %v310_v20, %v318_v24  ;;  %v331_v28 = vpop.permute.xlu0 %330  ;;  %678 = vst.msk [vmem:[#allocation2 + $0x60] sm:$0xf] %vm8817_vm0, %v8820_v3  ;;  %v317_v29 = vrot.slane %v314_v27, 4 }
  0x86   :  { %326 = vst [vmem:[#allocation2 + $0x28] sm:$0xcc] %v320_v26  ;;  %329 = vst.msk [vmem:[#allocation2 + $0x38] sm:$0xc] %vm328_vm5, %v314_v27  ;;  %v336_v36 = vrot.slane %v331_v28, 4  ;;  %vm255_vm5 = vcmask 1047558  }
  0x87   :  { %v321_v30 = vsel %vm209_vm3, %v316_v23, %v317_v29 }
  0x88   :  { %v322_v32 = vsel %vm8813_vm4, %v312_v21, %v321_v30  ;;  %v333_v33 = vpop.permute.xlu1 %332  ;;  %vm298_vm4 = vcmask 1043466  }
  0x89   :  { %v375_v34 = vpop.permute.xlu0 %374  ;;  %327 = vst [vmem:[#allocation2 + $0x30] sm:$0xcc] %v322_v32  ;;  %v337_v37 = vrot.slane %v333_v33, 4 }
  0x8a   :  { %v379_v38 = vrot.slane %v375_v34, 4 }
  0x8b   :  { %v339_v39 = vsel %vm209_vm3, %v336_v36, %v337_v37 }
  0x8c   :  { %v381_v40 = vsel %vm209_vm3, %v378_v35, %v379_v38  ;;  %v384_v41 = vsel %vm209_vm3, %v379_v38, %v380_v31  ;;  %v341_v42 = vsel %vm340_vm6, %v331_v28, %v339_v39  ;;  %v352_v45 = vpop.permute.xlu1 %351 }
  0x8d   :  { %v383_v43 = vsel %vm382_vm7, %v373_v19, %v381_v40  ;;  %v385_v44 = vsel %vm382_vm7, %v375_v34, %v384_v41  ;;  %v335_v46 = vpop.permute.xlu0 %334  ;;  %347 = vst [vmem:[#allocation2 + $0x3c] sm:$0x33] %v341_v42  ;;  %v357_v48 = vrot.slane %v352_v45, 4  ;;  %v399_v19 = vld [vmem:[#allocation2 + $0x28] sm:$0xff] }
  0x8e   :  { %389 = vst [vmem:[#allocation2 + $0x50] sm:$0x33] %v383_v43  ;;  %390 = vst [vmem:[#allocation2 + $0x58] sm:$0x33] %v385_v44  ;;  %v338_v47 = vrot.slane %v335_v46, 4 }
  0x8f   :  { %350 = vst.msk [vmem:[#allocation2 + $0x4c] sm:$0x3] %vm349_vm8, %v335_v46  ;;  %vm246_vm8 = vcmask 146432  }
  0x90   :  { %v342_v49 = vsel %vm209_vm3, %v337_v37, %v338_v47  ;;  %v356_v50 = vpop.permute.xlu1 %355 }
  0x91   :  { %v343_v51 = vsel %vm340_vm6, %v333_v33, %v342_v49  ;;  %v354_v52 = vpop.permute.xlu0 %353  ;;  %v359_v53 = vrot.slane %v356_v50, 4  ;;  %371 = vst.msk [vmem:[#allocation2 + $0x4c] sm:$0xc] %vm370_vm9, %v356_v50  ;;  %vm256_vm9 = vmor %vm255_vm5, %vm254_vm2 }
  0x92   :  { %348 = vst [vmem:[#allocation2 + $0x44] sm:$0x33] %v343_v51  ;;  %v358_v54 = vrot.slane %v354_v52, 4  ;;  %vm278_vm2 = vmor %vm217_vm12, %vm277_vm11  ;;  %vm8860_vm12 = vcmask 7168   ;;  %vm259_vm11 = vcmask 797698  }
  0x94   :  { %v360_v55 = vsel %vm209_vm3, %v357_v48, %v358_v54  ;;  %v363_v56 = vsel %vm209_vm3, %v358_v54, %v359_v53  ;;  %v6712_v60 = vpop.permute.xlu1 %201 }
  0x95   :  { %v405_v57 = vld [vmem:[#allocation2 + $0x50] sm:$0x33]  ;;  %v362_v58 = vsel %vm361_vm10, %v352_v45, %v360_v55  ;;  %v364_v59 = vsel %vm361_vm10, %v354_v52, %v363_v56  ;;  %v200_v61 = vpop.permute.xlu0 %199  ;;  %v406_v62 = vld [vmem:[#allocation2 + $0x58] sm:$0x33]  ;;  %v206_v63 = vrot.slane %v6712_v60, 4  ;;  %v5682_v55 = vcombine.low %v6693_v25, %v6693_v25 }
  0x96   :  { %368 = vst [vmem:[#allocation2 + $0x3c] sm:$0xcc] %v362_v58  ;;  %369 = vst [vmem:[#allocation2 + $0x44] sm:$0xcc] %v364_v59  ;;  %v205_v0 = vrot.slane %v200_v61, 4  ;;  %v5679_v1 = vcombine.high %v405_v57, %v405_v57  ;;  %v5681_v2 = vcombine.high %v406_v62, %v406_v62  ;;  %v5678_v5 = vcombine.low %v405_v57, %v405_v57 }
  0x97   :  { %v5680_v6 = vcombine.low %v406_v62, %v406_v62  ;;  %v408_v56 = vld [vmem:[%s5633_s21] sm:$0xf]  ;;  %v8818_v57 = vmov 0.0   ;;  %v498_v58 = vsel %vm484_vm14, %v5682_v55, 0  ;;  %v6791_v62 = vsub.s32 1, %v6654_v4  ;;  %s5639_s21 = sld [smem:[%s8812_s0 + %s6582_s17]]  }
  0x98   :  { %v208_v7 = vsel %vm207_vm13, %v205_v0, %v200_v61  ;;  %v210_v8 = vsel %vm209_vm3, %v205_v0, %v206_v63  ;;  %5683 = vmatprep.subr.msk.bf16.mxu0 %vm484_vm14, %v5679_v1  ;;  %5685 = vmatprep.subr.msk.bf16.mxu1 %vm484_vm14, %v5681_v2  ;;  %v241_v10 = vpop.permute.xlu1 %240  ;;  %v486_v11 = vsel %vm484_vm14, %v5678_v5, 0  ;;  %v6727_v14 = vld [vmem:[#allocation2 + $0x38] ss:$20 sps:$4 sm:$0xff]   ;;  %v6788_v61 = vsub.s32 0, %v6654_v4  ;;  %v627_v0 = vld [vmem:[%s5628_s24] sm:$0x1f] }
  0x99   :  { %v211_v9 = vsel %vm207_vm13, %v210_v8, %v6712_v60  ;;  %219 = vst.msk [vmem:[#allocation2] sm:$0x33] %vm218_vm15, %v208_v7  ;;  %v492_v12 = vsel %vm484_vm14, %v5680_v6, 0  ;;  %v239_v13 = vpop.permute.xlu0 %238  ;;  %v245_v15 = vrot.slane %v241_v10, 4  ;;  %511 = vmatpush1.bf16.msra.mxu0 %v486_v11  ;;  %vm269_vm15 = vcmask 138240   ;;  %8863 = vst [vmem:[#allocation4_spill] sm:$0xff] %v6791_v62 }
  0x9a   :  { %220 = vst [vmem:[#allocation2 + $0x8] sm:$0x33] %v211_v9  ;;  %552 = vmatpush1.bf16.msra.mxu1 %v492_v12  ;;  %v244_v16 = vrot.slane %v239_v13, 4  ;;  %672 = vst.msk [vmem:[#allocation2 + $0x38] sm:$0xf] %vm8817_vm0, %v8820_v3  ;;  %v639_v60 = vsub.s32 2, %v6654_v4  ;;  %v632_v11 = vrot.slane %v627_v0, %v6788_v61  ;;  %v636_v12 = vrot.slane %v627_v0, %v6791_v62 }
  0x9b   :  { %675 = vst.msk [vmem:[#allocation2 + $0x4c] sm:$0xf] %vm8817_vm0, %v8820_v3  ;;  %8862 = vst [vmem:[#allocation3_spill] sm:$0xff] %v6788_v61  ;;  %v643_v1 = vsub.s32 3, %v6654_v4  ;;  %vm8814_vm14 = vcmask 408580   ;;  %s6585_s24 = smov 118  }
  0x9c   :  { %v247_v17 = vsel %vm246_vm8, %v244_v16, %v239_v13  ;;  %v248_v18 = vsel %vm209_vm3, %v244_v16, %v245_v15  ;;  %v264_v21 = vpop.permute.xlu1 %263  ;;  %v640_v7 = vrot.slane %v627_v0, %v639_v60  ;;  %v7292_v62 = vld [vmem:[%s6906_s2 + $0x1a4] ss:$8 sps:$4 sm:$0xff]  }
  0x9d   :  { %v249_v20 = vsel %vm246_vm8, %v248_v18, %v241_v10  ;;  %257 = vst.msk [vmem:[#allocation2] sm:$0xcc] %vm256_vm9, %v247_v17  ;;  %v262_v22 = vpop.permute.xlu0 %261  ;;  %v402_v23 = vld [vmem:[#allocation2 + $0x3c] sm:$0xff]  ;;  %v268_v26 = vrot.slane %v264_v21, 4  ;;  %v6287_v28 = vld [vmem:[#allocation2 + $0x34] ss:$20 sps:$4 sm:$0xff]   ;;  %vm299_vm9 = vmor %vm255_vm5, %vm298_vm4  ;;  %v644_v16 = vrot.slane %v627_v0, %v643_v1 }
  0x9e   :  { %v6285_v24 = vld [vmem:[#allocation2 + $0x2c] ss:$20 sps:$4 sm:$0xff]   ;;  %258 = vst [vmem:[#allocation2 + $0x8] sm:$0xcc] %v249_v20  ;;  %v267_v27 = vrot.slane %v262_v22, 4  ;;  %v5673_v29 = vcombine.low %v399_v19, %v402_v23  ;;  %553 = vmatprep.subr.bf16.mxu1 %v6287_v28  ;;  %vm480_vm4 = vcmask 293888   ;;  %vm6837_vm5 = vmor %vm8814_vm14, %vm209_vm3 }
  0x9f   :  { %670 = vst [vmem:[#allocation2 + $0x28] sm:$0xff] %v8820_v3  ;;  %673 = vst [vmem:[#allocation2 + $0x3c] sm:$0xff] %v8820_v3  ;;  %v6289_v30 = vld [vmem:[#allocation2 + $0x30] ss:$20 sps:$4 sm:$0xff]   ;;  %512 = vmatprep.subr.bf16.mxu0 %v6285_v24  ;;  %vm869_vm14 = vcmask 642048  }
  0xa0   :  { %v270_v31 = vsel %vm269_vm15, %v267_v27, %v262_v22  ;;  %v271_v32 = vsel %vm209_vm3, %v267_v27, %v268_v26  ;;  %513 = vmatpush1.bf16.msra.mxu0 %v5673_v29  ;;  %v285_v34 = vpop.permute.xlu1 %284  ;;  %554 = vmatpush1.bf16.msra.mxu1 %v6289_v30  ;;  %v647_v29 = vsub.s32 4, %v6654_v4  ;;  %2560 = vst.msk [vmem:[#allocation2 + $0xb4] sm:$0xff] %vm6837_vm5, %v8820_v3  ;;  %2561 = vst.msk [vmem:[#allocation2 + $0xc8] sm:$0xff] %vm6837_vm5, %v8820_v3  ;;  %v7296_v61 = vld [vmem:[%s6906_s2 + $0x84] ss:$8 sps:$4 sm:$0xff]  }
  0xa1   :  { %v272_v33 = vsel %vm269_vm15, %v271_v32, %v264_v21  ;;  %279 = vst.msk [vmem:[#allocation2 + $0x14] sm:$0x33] %vm278_vm2, %v270_v31  ;;  %v283_v35 = vpop.permute.xlu0 %282  ;;  %v289_v36 = vrot.slane %v285_v34, 4  ;;  %vm720_vm2 = vcmask 1047556   ;;  %8886 = vst [vmem:[#allocation18_spill] sm:$0xff] %v7292_v62 }
  0xa2   :  { %280 = vst [vmem:[#allocation2 + $0x1c] sm:$0x33] %v272_v33  ;;  %v288_v37 = vrot.slane %v283_v35, 4  ;;  %v648_v33 = vrot.slane %v627_v0, %v647_v29  ;;  %2562 = vst.msk [vmem:[#allocation2 + $0xdc] sm:$0xff] %vm6837_vm5, %v8820_v3 }
  0xa3   :  { %2563 = vst.msk [vmem:[#allocation2 + $0xf0] sm:$0xff] %vm6837_vm5, %v8820_v3  ;;  %2564 = vst.msk [vmem:[#allocation2 + $0x104] sm:$0xff] %vm6837_vm5, %v8820_v3 }
  0xa4   :  { %v291_v38 = vsel %vm8860_vm12, %v288_v37, %v283_v35  ;;  %v292_v39 = vsel %vm209_vm3, %v288_v37, %v289_v36  ;;  %v243_v41 = vpop.permute.xlu1 %242  ;;  %v393_v49 = vld [vmem:[#allocation2] sm:$0xff]  ;;  %2565 = vst.msk [vmem:[#allocation2 + $0x118] sm:$0xff] %vm6837_vm5, %v8820_v3  ;;  %2566 = vst.msk [vmem:[#allocation2 + $0x12c] sm:$0xff] %vm6837_vm5, %v8820_v3 }
  0xa5   :  { %v293_v40 = vsel %vm8860_vm12, %v292_v39, %v285_v34  ;;  %300 = vst.msk [vmem:[#allocation2 + $0x14] sm:$0xcc] %vm299_vm9, %v291_v38  ;;  %v204_v42 = vpop.permute.xlu0 %203  ;;  %v250_v43 = vsel %vm246_vm8, %v245_v15, %v243_v41  ;;  %v8864_v39 = vmov 0  ;;  %vm760_vm9 = vcmask 1043592   ;;  %8887 = vst [vmem:[#allocation19_spill] sm:$0xff] %v7296_v61 }
  0xa6   :  { %301 = vst [vmem:[#allocation2 + $0x1c] sm:$0xcc] %v293_v40  ;;  %v212_v44 = vsel %vm207_vm13, %v206_v63, %v204_v42  ;;  %260 = vst.msk [vmem:[#allocation2 + $0x10] sm:$0xc] %vm259_vm11, %v250_v43  ;;  %v8865_v39 = vsel %vm6837_vm5, 4294967295, %v8864_v39  ;;  %v899_v40 = vld [vmem:[%s5636_s28] sm:$0xff] }
  0xa7   :  { %221 = vst.msk [vmem:[#allocation2 + $0x10] sm:$0x3] %vm173_vm1, %v212_v44  ;;  %8866 = vst [vmem:[#allocation5_spill] sm:$0xff] %v8865_v39  ;;  %v7299_v39 = vld [vmem:[%s6906_s2 + $0x80] ss:$8 sps:$4 sm:$0xff]   ;;  %s6591_s28 = smov 14  }
  0xa8   :  { %v287_v45 = vpop.permute.xlu1 %286  ;;  %2567 = vst.msk [vmem:[#allocation2 + $0x140] sm:$0xff] %vm6837_vm5, %v8820_v3  ;;  %2568 = vst.msk [vmem:[#allocation2 + $0x154] sm:$0xff] %vm6837_vm5, %v8820_v3 }
  0xa9   :  { %v266_v46 = vpop.permute.xlu0 %265  ;;  %v294_v47 = vsel %vm8860_vm12, %v289_v36, %v287_v45  ;;  %8888 = vst [vmem:[#allocation20_spill] sm:$0xff] %v7299_v39 }
  0xaa   :  { %v273_v48 = vsel %vm269_vm15, %v268_v26, %v266_v46  ;;  %302 = vst.msk [vmem:[#allocation2 + $0x24] sm:$0xc] %vm259_vm11, %v294_v47  ;;  %vm761_vm11 = vmor %vm720_vm2, %vm760_vm9 }
  0xab   :  { %281 = vst.msk [vmem:[#allocation2 + $0x24] sm:$0x3] %vm173_vm1, %v273_v48  ;;  %vm8815_vm1 = vmmov 0  }
  0xac   :  { %v396_v50 = vld [vmem:[#allocation2 + $0x14] sm:$0xff] }
  0xad   :  { %v6290_v51 = vld [vmem:[#allocation2 + $0x4] ss:$20 sps:$4 sm:$0xff]   ;;  %v5668_v52 = vcombine.low %v393_v49, %v396_v50  ;;  %v6292_v53 = vld [vmem:[#allocation2 + $0xc] ss:$20 sps:$4 sm:$0xff]   ;;  %v6294_v54 = vld [vmem:[#allocation2 + $0x8] ss:$20 sps:$4 sm:$0xff]  }
  0xae   :  { %664 = vst [vmem:[#allocation2] sm:$0xff] %v8820_v3  ;;  %667 = vst [vmem:[#allocation2 + $0x14] sm:$0xff] %v8820_v3  ;;  %514 = vmatprep.subr.bf16.mxu0 %v6290_v51  ;;  %555 = vmatprep.subr.bf16.mxu1 %v6292_v53 }
  0xaf   :  { %515 = vmatpush1.bf16.msra.mxu0 %v5668_v52  ;;  %556 = vmatpush1.bf16.msra.mxu1 %v6294_v54 }
  0xb0   :  { %6166 = vmatprep.subr.bf16.mxu0 %v8818_v57 }
  0xb2   :  { %5684 = vmatmul.mubr.msk.bf16.vlgmr.msra.gmra.mxu0 %vm480_vm4, %v408_v56  ;;  %v6296_v59 = vld [vmem:[#allocation2 + $0x10] ss:$20 sps:$4 sm:$0xff]   ;;  %5686 = vmatmul.mubr.msk.bf16.vlgmr.msra.gmra.mxu1 %vm480_vm4, %v408_v56 }
  0xb3   :  { %6167 = vmatpush3.bf16.msra.mxu0 %v498_v58  ;;  %666 = vst.msk [vmem:[#allocation2 + $0x10] sm:$0xf] %vm8817_vm0, %v8820_v3  ;;  %669 = vst.msk [vmem:[#allocation2 + $0x24] sm:$0xf] %vm8817_vm0, %v8820_v3  ;;  %6172 = vmatprep.mubr.msk.bf16.mxu0 %vm8815_vm1, %v8818_v57  ;;  %vm780_vm1 = vcmask 1043464  }
  0xb4   :  { %6168 = vmatprep.subr.bf16.mxu0 %v8818_v57  ;;  %1074 = vmatprep.mubr.bf16.mxu1 %v8820_v3 }
  0xb6   :  { %v413_v25 = vpop.permute.xlu0 %412 }
  0xb7   :  { %6169 = vmatpush3.bf16.msra.mxu0 %v6727_v14 }
  0xb8   :  { %6170 = vmatprep.subr.bf16.mxu0 %v8818_v57 }
  0xbb   :  { %6171 = vmatpush3.bf16.msra.mxu0 %v6296_v59 }
  0xbe   :  { %6173 = vmatmul.mubr.msk.bf16.vlgmr.msra.gmra.mxu0 %vm480_vm4, %v408_v56  ;;  %vm719_vm4 = vcmask 1043608  }
  0xbf   :  { %1115 = vmatprep.mubr.bf16.mxu0 %v8820_v3  ;;  %vm721_vm9 = vmor %vm720_vm2, %vm719_vm4 }
  0xc0   :  { %vm781_vm4 = vmor %vm720_vm2, %vm780_vm1 }
 0x172   :  { %v534_v63 = vpop.f32.mrf.mxu0  ;;  %v575_v2 = vpop.f32.mrf.mxu1 }
 0x173   :  { %v535_v5 = vadd.f32 %v534_v63, %v413_v25  ;;  %v576_v6 = vadd.f32 %v575_v2, %v413_v25 }
 0x174   :  { %v536_v8 = vpop.f32.mrf.mxu0  ;;  %v577_v13 = vpop.f32.mrf.mxu1 }
 0x175   :  { %v537_v9 = vadd.f32 %v536_v8, %v413_v25  ;;  %v622_v10 = vmax.f32 %v535_v5, 0.0  ;;  %v624_v14 = vmax.f32 %v576_v6, 0.0  ;;  %v578_v15 = vadd.f32 %v577_v13, %v413_v25 }
 0x176   :  { %v538_v17 = vpop.f32.mrf.mxu0  ;;  %v579_v19 = vpop.f32.mrf.mxu1 }
 0x177   :  { %v623_v18 = vmax.f32 %v537_v9, 0.0  ;;  %v6796_v20 = vmul.f32 %v640_v7, %v624_v14  ;;  %v625_v21 = vmax.f32 %v578_v15, 0.0  ;;  %v6798_v23 = vmul.f32 %v632_v11, %v622_v10 }
 0x178   :  { %v539_v22 = vpop.f32.mrf.mxu0  ;;  %v580_v26 = vpop.f32.mrf.mxu1 }
 0x179   :  { %v6800_v24 = vmul.f32 %v636_v12, %v623_v18  ;;  %v6802_v27 = vmul.f32 %v644_v16, %v625_v21 }
 0x17b   :  { %v6806_v28 = vpack.c.bf16 %v6800_v24, %v6798_v23  ;;  %v6811_v30 = vpack.c.bf16 %v6802_v27, %v6796_v20 }
 0x17d   :  { %788 = vst [vmem:[#allocation2 + $0x50] sm:$0xff] %v6806_v28  ;;  %811 = vrot.lane.b32.xlu0 %v6806_v28, %s6568_s8  ;;  %851 = vrot.lane.b32.xlu1 %v6806_v28, %s6566_s6  ;;  %789 = vst [vmem:[#allocation2 + $0x58] sm:$0xff] %v6811_v30 }
 0x17e   :  { %v616_v31 = vpop.f32.mrf.mxu0  ;;  %2057 = vst.msk [vmem:[#allocation2 + $0x50] sm:$0xff] %vm6837_vm5, %v8820_v3 }
 0x17f   :  { %v617_v32 = vadd.f32 %v616_v31, %v413_v25 }
 0x180   :  { %v6174_v34 = vpop.f32.mrf.mxu0 }
 0x181   :  { %v626_v35 = vmax.f32 %v617_v32, 0.0  ;;  %831 = vrot.lane.b32.xlu0 %v6806_v28, %s6569_s9  ;;  %853 = vrot.lane.b32.xlu1 %v6811_v30, %s6566_s6 }
 0x182   :  { %v619_v4 = vpop.f32.mrf.mxu0 }
 0x183   :  { %v658_v36 = vmul.f32 %v648_v33, %v626_v35 }
 0x184   :  { %v6175_v37 = vpop.f32.mrf.mxu0 }
 0x185   :  { %v6823_v38 = vpack.c.bf16 %v658_v36, %v658_v36  ;;  %791 = vrot.lane.b32.xlu0 %v6806_v28, %s6567_s7  ;;  %813 = vrot.lane.b32.xlu1 %v6811_v30, %s6568_s8 }
 0x187   :  { %790 = vst.msk [vmem:[#allocation2 + $0x60] sm:$0xf] %vm8817_vm0, %v6823_v38  ;;  %vm849_vm0 = vcmask 650240  }
 0x189   :  { %745 = vrot.lane.b32.xlu0 %v6806_v28, %s6572_s12  ;;  %833 = vrot.lane.b32.xlu1 %v6811_v30, %s6569_s9 }
 0x18d   :  { %704 = vrot.lane.b32.xlu0 %v6806_v28, %s6570_s10  ;;  %793 = vrot.lane.b32.xlu1 %v6811_v30, %s6567_s7 }
 0x191   :  { %855 = vrot.lane.b32.xlu0 %v6823_v38, %s6566_s6  ;;  %765 = vrot.lane.b32.xlu1 %v6806_v28, %s6573_s13  ;;  %s6996_s6 = sld [smem:[%s8812_s0 + %s6580_s3]]  }
 0x192   :  { %s5637_s3 = sld [smem:[%s8812_s0 + %s6587_s30]]  }
 0x195   :  { %835 = vrot.lane.b32.xlu0 %v6823_v38, %s6569_s9  ;;  %725 = vrot.lane.b32.xlu1 %v6806_v28, %s6571_s11  ;;  %s6589_s9 = smov 36  }
 0x196   :  { %s5663_s17 = sld [smem:[%s8812_s0 + %s6589_s9]]  }
 0x197   :  { %s5646_s9 = sld [smem:[%s8812_s0 + %s6570_s10]]  }
 0x199   :  { %747 = vrot.lane.b32.xlu0 %v6811_v30, %s6572_s12  ;;  %815 = vrot.lane.b32.xlu1 %v6823_v38, %s6568_s8  ;;  %s6581_s8 = smov 13  }
 0x19a   :  { %s5640_s16 = sld [smem:[%s8812_s0 + %s6581_s8]]  }
 0x19b   :  { %s7612_s8 = sld [smem:[%s8812_s0 + %s6588_s4]]   ;;  %s6605_s4 = smov 27  }
 0x19c   :  { %s5654_s15 = sld [smem:[%s8812_s0 + %s6605_s4]]  }
 0x19d   :  { %706 = vrot.lane.b32.xlu0 %v6811_v30, %s6570_s10  ;;  %795 = vrot.lane.b32.xlu1 %v6823_v38, %s6567_s7 }
 0x1a1   :  { %749 = vrot.lane.b32.xlu0 %v6823_v38, %s6572_s12  ;;  %767 = vrot.lane.b32.xlu1 %v6811_v30, %s6573_s13 }
 0x1a5   :  { %708 = vrot.lane.b32.xlu0 %v6823_v38, %s6570_s10  ;;  %727 = vrot.lane.b32.xlu1 %v6811_v30, %s6571_s11  ;;  %s6593_s10 = smov 21  }
 0x1a9   :  { %902 = vperm.xlu0 %6278, %v899_v40   ;;  %769 = vrot.lane.b32.xlu1 %v6823_v38, %s6573_s13 }
 0x1ad   :  { %729 = vrot.lane.b32.xlu1 %v6823_v38, %s6571_s11  ;;  %s6597_s11 = smov 122  }
 0x1ef   :  { %v812_v41 = vpop.permute.xlu0 %811  ;;  %v852_v42 = vpop.permute.xlu1 %851 }
 0x1f0   :  { %v857_v45 = vrot.slane %v852_v42, 4  ;;  %v817_v51 = vrot.slane %v812_v41, 4 }
 0x1f3   :  { %v832_v43 = vpop.permute.xlu0 %831  ;;  %v6912_v44 = vpop.permute.xlu1 %853 }
 0x1f4   :  { %v858_v46 = vrot.slane %v6912_v44, 4  ;;  %v837_v60 = vrot.slane %v832_v43, 4 }
 0x1f6   :  { %v860_v47 = vsel %vm209_vm3, %v857_v45, %v858_v46 }
 0x1f7   :  { %v861_v48 = vsel %vm382_vm7, %v852_v42, %v860_v47  ;;  %v792_v49 = vpop.permute.xlu0 %791  ;;  %v6917_v50 = vpop.permute.xlu1 %813 }
 0x1f8   :  { %867 = vst [vmem:[#allocation2 + $0xa0] sm:$0xff] %v861_v48  ;;  %v818_v52 = vrot.slane %v6917_v50, 4  ;;  %v5712_v53 = vcombine.high %v861_v48, %v861_v48  ;;  %v5711_v54 = vcombine.low %v861_v48, %v861_v48  ;;  %v797_v5 = vrot.slane %v792_v49, 4 }
 0x1f9   :  { %2061 = vst.msk [vmem:[#allocation2 + $0xa0] sm:$0xff] %vm6837_vm5, %v8820_v3 }
 0x1fa   :  { %v820_v55 = vsel %vm209_vm3, %v817_v51, %v818_v52  ;;  %5716 = vmatprep.subr.msk.bf16.mxu1 %vm209_vm3, %v5712_v53  ;;  %v1028_v56 = vsel %vm209_vm3, %v5711_v54, 0 }
 0x1fb   :  { %v821_v58 = vsel %vm340_vm6, %v812_v41, %v820_v55  ;;  %v6929_v59 = vpop.permute.xlu0 %745  ;;  %v6931_v25 = vpop.permute.xlu1 %833  ;;  %1049 = vmatpush1.bf16.msra.mxu1 %v1028_v56 }
 0x1fc   :  { %827 = vst [vmem:[#allocation2 + $0x78] sm:$0xff] %v821_v58  ;;  %v751_v63 = vrot.slane %v6929_v59, 4  ;;  %v838_v0 = vrot.slane %v6931_v25, 4 }
 0x1fd   :  { %2059 = vst.msk [vmem:[#allocation2 + $0x78] sm:$0xff] %vm6837_vm5, %v8820_v3 }
 0x1fe   :  { %v753_v1 = vsel %vm269_vm15, %v751_v63, %v6929_v59  ;;  %v840_v2 = vsel %vm209_vm3, %v837_v60, %v838_v0 }
 0x1ff   :  { %762 = vst.msk [vmem:[#allocation2 + $0x28] sm:$0xff] %vm761_vm11, %v753_v1  ;;  %v841_v6 = vsel %vm361_vm10, %v832_v43, %v840_v2  ;;  %v6945_v7 = vpop.permute.xlu0 %704  ;;  %v6947_v8 = vpop.permute.xlu1 %793  ;;  %vm8867_vm11 = vcmask 1039360  }
 0x200   :  { %847 = vst [vmem:[#allocation2 + $0x8c] sm:$0xff] %v841_v6  ;;  %v710_v9 = vrot.slane %v6945_v7, 4  ;;  %v798_v10 = vrot.slane %v6947_v8, 4  ;;  %v5707_v11 = vcombine.high %v821_v58, %v841_v6  ;;  %v5706_v12 = vcombine.low %v821_v58, %v841_v6 }
 0x201   :  { %2060 = vst.msk [vmem:[#allocation2 + $0x8c] sm:$0xff] %vm6837_vm5, %v8820_v3 }
 0x202   :  { %v712_v13 = vsel %vm207_vm13, %v710_v9, %v6945_v7  ;;  %v800_v14 = vsel %vm209_vm3, %v797_v5, %v798_v10  ;;  %1050 = vmatprep.subr.bf16.mxu1 %v5707_v11 }
 0x203   :  { %722 = vst.msk [vmem:[#allocation2] sm:$0xff] %vm721_vm9, %v712_v13  ;;  %v801_v15 = vsel %vm8867_vm11, %v792_v49, %v800_v14  ;;  %v856_v16 = vpop.permute.xlu0 %855  ;;  %v6963_v17 = vpop.permute.xlu1 %765  ;;  %1051 = vmatpush1.bf16.msra.mxu1 %v5706_v12  ;;  %vm740_vm9 = vcmask 1043600   ;;  %vm829_vm11 = vcmask 658432  }
 0x204   :  { %807 = vst [vmem:[#allocation2 + $0x64] sm:$0xff] %v801_v15  ;;  %v859_v18 = vrot.slane %v856_v16, 4  ;;  %870 = vst.msk [vmem:[#allocation2 + $0xb0] sm:$0xf] %vm869_vm14, %v856_v16  ;;  %v771_v19 = vrot.slane %v6963_v17, 4  ;;  %v5702_v21 = vcombine.high %v6806_v28, %v801_v15  ;;  %v5701_v22 = vcombine.low %v6806_v28, %v801_v15 }
 0x205   :  { %2058 = vst.msk [vmem:[#allocation2 + $0x64] sm:$0xff] %vm6837_vm5, %v8820_v3  ;;  %vm741_vm14 = vmor %vm720_vm2, %vm740_vm9  ;;  %v7037_v15 = vld [vmem:[%s6996_s6] sm:$0xf]  ;;  %vm8871_vm2 = vmmov 0   ;;  %vm8854_vm9 = vcmask 64512   ;;  %s6598_s6 = smov 123  }
 0x206   :  { %v862_v26 = vsel %vm209_vm3, %v858_v46, %v859_v18  ;;  %v773_v29 = vsel %vm8860_vm12, %v771_v19, %v6963_v17  ;;  %1052 = vmatprep.subr.bf16.mxu1 %v5702_v21  ;;  %v877_v48 = vld [vmem:[#allocation2 + $0x28] sm:$0xff] }
 0x207   :  { %v863_v31 = vsel %vm382_vm7, %v6912_v44, %v862_v26  ;;  %782 = vst.msk [vmem:[#allocation2 + $0x3c] sm:$0xff] %vm781_vm4, %v773_v29  ;;  %v836_v32 = vpop.permute.xlu0 %835  ;;  %v6980_v28 = vpop.permute.xlu1 %725  ;;  %1053 = vmatpush1.bf16.msra.mxu1 %v5701_v22  ;;  %vm8869_vm7 = vcmask 797696  }
 0x208   :  { %v839_v33 = vrot.slane %v836_v32, 4  ;;  %850 = vst.msk [vmem:[#allocation2 + $0x9c] sm:$0xf] %vm849_vm0, %v836_v32  ;;  %v731_v34 = vrot.slane %v6980_v28, 4  ;;  %v5714_v35 = vcombine.high %v863_v31, %v863_v31  ;;  %v5713_v4 = vcombine.low %v863_v31, %v863_v31  ;;  %vm8873_vm4 = vmmov %vm8869_vm7 }
 0x209   :  { %vm809_vm0 = vcmask 789504  }
 0x20a   :  { %v842_v36 = vsel %vm209_vm3, %v838_v0, %v839_v33  ;;  %v733_v37 = vsel %vm246_vm8, %v731_v34, %v6980_v28  ;;  %5718 = vmatprep.subr.msk.bf16.mxu0 %vm209_vm3, %v5714_v35  ;;  %v1034_v40 = vsel %vm209_vm3, %v5713_v4, 0  ;;  %v871_v0 = vld [vmem:[#allocation2] sm:$0xff] }
 0x20b   :  { %v843_v41 = vsel %vm361_vm10, %v6931_v25, %v842_v36  ;;  %742 = vst.msk [vmem:[#allocation2 + $0x14] sm:$0xff] %vm741_vm14, %v733_v37  ;;  %v748_v42 = vpop.permute.xlu0 %747  ;;  %v816_v43 = vpop.permute.xlu1 %815  ;;  %1090 = vmatpush1.bf16.msra.mxu0 %v1034_v40  ;;  %vm8858_vm10 = vcmask 588800   ;;  %v7060_v40 = vld [vmem:[%s6906_s2 + $0x74] ss:$8 sps:$4 sm:$0xff]   ;;  %vm1636_vm14 = vcmask 801792  }
 0x20c   :  { %v752_v44 = vrot.slane %v748_v42, 4  ;;  %v819_v45 = vrot.slane %v816_v43, 4  ;;  %830 = vst.msk [vmem:[#allocation2 + $0x88] sm:$0xf] %vm829_vm11, %v816_v43  ;;  %v7070_v43 = vld [vmem:[%s6906_s2 + $0x64] ss:$8 sps:$4 sm:$0xff]  }
 0x20d   :  { %vm2117_vm11 = vcmask 334852  }
 0x20e   :  { %v754_v46 = vsel %vm209_vm3, %v751_v63, %v752_v44  ;;  %v822_v47 = vsel %vm209_vm3, %v818_v52, %v819_v45  ;;  %v880_v49 = vld [vmem:[#allocation2 + $0x3c] sm:$0xff] }
 0x20f   :  { %v6297_v51 = vld [vmem:[#allocation2 + $0x2c] ss:$20 sps:$4 sm:$0xff]   ;;  %v7005_v53 = vsel %vm269_vm15, %v754_v46, %v748_v42  ;;  %v823_v54 = vsel %vm340_vm6, %v6917_v50, %v822_v47  ;;  %v707_v55 = vpop.permute.xlu0 %706  ;;  %v796_v56 = vpop.permute.xlu1 %795  ;;  %v5696_v52 = vcombine.low %v877_v48, %v880_v49  ;;  %vm8868_vm6 = vcmask 1039360   ;;  %v7082_v46 = vld [vmem:[%s6906_s2 + $0x54] ss:$8 sps:$4 sm:$0xff]  }
 0x210   :  { %2055 = vst.msk [vmem:[#allocation2 + $0x28] sm:$0xff] %vm6837_vm5, %v8820_v3  ;;  %2056 = vst.msk [vmem:[#allocation2 + $0x3c] sm:$0xff] %vm6837_vm5, %v8820_v3  ;;  %v711_v58 = vrot.slane %v707_v55, 4  ;;  %v799_v59 = vrot.slane %v796_v56, 4  ;;  %1054 = vmatprep.subr.bf16.mxu1 %v6297_v51  ;;  %v5708_v25 = vcombine.low %v823_v54, %v843_v41  ;;  %v5709_v50 = vcombine.high %v823_v54, %v843_v41  ;;  %v7065_v41 = vld [vmem:[%s6906_s2 + $0x70] ss:$8 sps:$4 sm:$0xff]  }
 0x211   :  { %763 = vst [vmem:[#allocation2 + $0x30] sm:$0xff] %v7005_v53  ;;  %810 = vst.msk [vmem:[#allocation2 + $0x74] sm:$0xf] %vm809_vm0, %v796_v56  ;;  %1055 = vmatpush1.bf16.msra.mxu1 %v5696_v52  ;;  %v7086_v47 = vld [vmem:[%s6906_s2 + $0x174] ss:$8 sps:$4 sm:$0xff]   ;;  %vm2135_vm0 = vcmask 318468  }
 0x212   :  { %v713_v60 = vsel %vm209_vm3, %v710_v9, %v711_v58  ;;  %v802_v63 = vsel %vm209_vm3, %v798_v10, %v799_v59  ;;  %v874_v1 = vld [vmem:[#allocation2 + $0x14] sm:$0xff]  ;;  %1091 = vmatprep.subr.bf16.mxu0 %v5709_v50  ;;  %v6301_v9 = vld [vmem:[#allocation2 + $0xb0] ss:$0 sps:$4 sm:$0xff]   ;;  %v7094_v51 = vld [vmem:[%s6906_s2 + $0x44] ss:$8 sps:$4 sm:$0xff]  }
 0x213   :  { %v6299_v2 = vld [vmem:[#allocation2 + $0x4] ss:$20 sps:$4 sm:$0xff]   ;;  %v714_v5 = vsel %vm207_vm13, %v713_v60, %v707_v55  ;;  %v803_v6 = vsel %vm8868_vm6, %v6947_v8, %v802_v63  ;;  %v750_v11 = vpop.permute.xlu0 %749  ;;  %v768_v12 = vpop.permute.xlu1 %767  ;;  %v5691_v7 = vcombine.low %v871_v0, %v874_v1  ;;  %1092 = vmatpush1.bf16.msra.mxu0 %v5708_v25  ;;  %v1040_v26 = vsel %vm209_vm3, %v6301_v9, 0  ;;  %v6302_v35 = vld [vmem:[#allocation2 + $0x88] ss:$20 sps:$4 sm:$0xff]  }
 0x214   :  { %2053 = vst.msk [vmem:[#allocation2] sm:$0xff] %vm6837_vm5, %v8820_v3  ;;  %2054 = vst.msk [vmem:[#allocation2 + $0x14] sm:$0xff] %vm6837_vm5, %v8820_v3  ;;  %v756_v10 = vsel %vm269_vm15, %v752_v44, %v750_v11  ;;  %v772_v13 = vrot.slane %v768_v12, 4  ;;  %1056 = vmatprep.subr.bf16.mxu1 %v6299_v2  ;;  %v5703_v8 = vcombine.low %v6811_v30, %v803_v6  ;;  %v7078_v44 = vld [vmem:[%s6906_s2 + $0x60] ss:$8 sps:$4 sm:$0xff]   ;;  %vm8856_vm6 = vcmask 973824  }
 0x215   :  { %723 = vst [vmem:[#allocation2 + $0x8] sm:$0xff] %v714_v5  ;;  %v5704_v14 = vcombine.high %v6811_v30, %v803_v6  ;;  %764 = vst.msk [vmem:[#allocation2 + $0x38] sm:$0xf] %vm8869_vm7, %v756_v10  ;;  %1057 = vmatpush1.bf16.msra.mxu1 %v5691_v7  ;;  %v7090_v48 = vld [vmem:[%s6906_s2 + $0x50] ss:$8 sps:$4 sm:$0xff]  }
 0x216   :  { %v774_v16 = vsel %vm209_vm3, %v771_v19, %v772_v13  ;;  %6176 = vmatprep.subr.bf16.mxu1 %v8818_v57  ;;  %vm8870_vm15 = vmmov %vm8869_vm7  ;;  %v7101_v54 = vld [vmem:[%s6906_s2 + $0x164] ss:$8 sps:$4 sm:$0xff]   ;;  %v7105_v55 = vld [vmem:[%s6906_s2 + $0x40] ss:$8 sps:$4 sm:$0xff]  }
 0x217   :  { %1093 = vmatprep.subr.bf16.mxu0 %v5704_v14  ;;  %v775_v18 = vsel %vm8860_vm12, %v774_v16, %v768_v12  ;;  %v709_v21 = vpop.permute.xlu0 %708  ;;  %v728_v22 = vpop.permute.xlu1 %727  ;;  %v7109_v56 = vld [vmem:[%s6906_s2 + $0x34] ss:$8 sps:$4 sm:$0xff]   ;;  %v7115_v52 = vld [vmem:[%s6906_s2 + $0x160] ss:$8 sps:$4 sm:$0xff]   ;;  %v7123_v59 = vld [vmem:[%s6906_s2 + $0x30] ss:$8 sps:$4 sm:$0xff]  }
 0x218   :  { %1094 = vmatpush1.bf16.msra.mxu0 %v5703_v8  ;;  %783 = vst [vmem:[#allocation2 + $0x44] sm:$0xff] %v775_v18  ;;  %v715_v30 = vsel %vm207_vm13, %v711_v58, %v709_v21  ;;  %v732_v29 = vrot.slane %v728_v22, 4  ;;  %5717 = vmatmul.mubr.msk.bf16.vlgmr.msra.gmra.mxu1 %vm8858_vm10, %v7037_v15  ;;  %v5698_v17 = vcombine.low %v7005_v53, %v775_v18  ;;  %vm8872_vm13 = vmmov %vm8869_vm7  ;;  %v7119_v58 = vld [vmem:[%s6906_s2 + $0x154] ss:$8 sps:$4 sm:$0xff]   ;;  %v7127_v25 = vld [vmem:[%s6906_s2 + $0x24] ss:$8 sps:$4 sm:$0xff]  }
 0x219   :  { %v5699_v19 = vcombine.high %v7005_v53, %v775_v18  ;;  %724 = vst.msk [vmem:[#allocation2 + $0x10] sm:$0xf] %vm8870_vm15, %v715_v30  ;;  %6177 = vmatpush3.bf16.msra.mxu1 %v1040_v26  ;;  %6186 = vmatprep.mubr.msk.bf16.mxu1 %vm8871_vm2, %v8818_v57  ;;  %v7097_v53 = vld [vmem:[%s6906_s2 + $0x170] ss:$8 sps:$4 sm:$0xff]   ;;  %v7135_v60 = vld [vmem:[%s6906_s2 + $0x144] ss:$8 sps:$4 sm:$0xff]   ;;  %vm7509_vm7 = vmor %vm2117_vm11, %vm209_vm3 }
 0x21a   :  { %v734_v31 = vsel %vm209_vm3, %v731_v34, %v732_v29  ;;  %6178 = vmatprep.subr.bf16.mxu1 %v8818_v57  ;;  %v6303_v34 = vld [vmem:[#allocation2 + $0x60] ss:$20 sps:$4 sm:$0xff]   ;;  %v7131_v50 = vld [vmem:[%s6906_s2 + $0x150] ss:$8 sps:$4 sm:$0xff]   ;;  %v7159_v6 = vld [vmem:[%s6906_s2 + $0x4] ss:$8 sps:$4 sm:$0xff]  }
 0x21b   :  { %1095 = vmatprep.subr.bf16.mxu0 %v5699_v19  ;;  %v735_v32 = vsel %vm246_vm8, %v734_v31, %v728_v22  ;;  %v770_v33 = vpop.permute.xlu1 %769  ;;  %v7139_v63 = vld [vmem:[%s6906_s2 + $0x20] ss:$8 sps:$4 sm:$0xff]   ;;  %v7143_v0 = vld [vmem:[%s6906_s2 + $0x14] ss:$8 sps:$4 sm:$0xff]   ;;  %v7163_v11 = vld [vmem:[%s6906_s2 + $0x130] ss:$8 sps:$4 sm:$0xff]  }
 0x21c   :  { %1096 = vmatpush1.bf16.msra.mxu0 %v5698_v17  ;;  %743 = vst [vmem:[#allocation2 + $0x1c] sm:$0xff] %v735_v32  ;;  %v776_v4 = vsel %vm8860_vm12, %v772_v13, %v770_v33  ;;  %v5693_v36 = vcombine.low %v714_v5, %v735_v32  ;;  %v5694_v37 = vcombine.high %v714_v5, %v735_v32  ;;  %v7147_v1 = vld [vmem:[%s6906_s2 + $0x140] ss:$8 sps:$4 sm:$0xff]   ;;  %v7151_v2 = vld [vmem:[%s6906_s2 + $0x134] ss:$8 sps:$4 sm:$0xff]   ;;  %vm8855_vm15 = vcmask 957440  }
 0x21d   :  { %784 = vst.msk [vmem:[#allocation2 + $0x4c] sm:$0xf] %vm8872_vm13, %v776_v4  ;;  %6179 = vmatpush3.bf16.msra.mxu1 %v6302_v35  ;;  %v7155_v5 = vld [vmem:[%s6906_s2 + $0x10] ss:$8 sps:$4 sm:$0xff]   ;;  %v7167_v12 = vld [vmem:[%s6906_s2 + $0x124] ss:$8 sps:$4 sm:$0xff]  }
 0x21e   :  { %6180 = vmatprep.subr.bf16.mxu1 %v8818_v57  ;;  %1097 = vmatprep.subr.bf16.mxu0 %v5694_v37  ;;  %v7171_v7 = vld [vmem:[%s6906_s2] ss:$8 sps:$4 sm:$0xff]   ;;  %v7175_v9 = vld [vmem:[%s6906_s2 + $0xf4] ss:$8 sps:$4 sm:$0xff]   ;;  %v7187_v8 = vld [vmem:[%s6906_s2 + $0xf0] ss:$8 sps:$4 sm:$0xff]  }
 0x21f   :  { %v730_v28 = vpop.permute.xlu1 %729  ;;  %v7179_v10 = vld [vmem:[%s6906_s2 + $0x120] ss:$8 sps:$4 sm:$0xff]   ;;  %v7183_v13 = vld [vmem:[%s6906_s2 + $0x114] ss:$8 sps:$4 sm:$0xff]   ;;  %v7191_v14 = vld [vmem:[%s6906_s2 + $0xe4] ss:$8 sps:$4 sm:$0xff]  }
 0x220   :  { %1098 = vmatpush1.bf16.msra.mxu0 %v5693_v36  ;;  %v736_v42 = vsel %vm246_vm8, %v732_v29, %v730_v28  ;;  %v7199_v16 = vld [vmem:[%s6906_s2 + $0x104] ss:$8 sps:$4 sm:$0xff]   ;;  %v7203_v18 = vld [vmem:[%s6906_s2 + $0xe0] ss:$8 sps:$4 sm:$0xff]   ;;  %v7207_v21 = vld [vmem:[%s6906_s2 + $0xd4] ss:$8 sps:$4 sm:$0xff]  }
 0x221   :  { %1647 = vmatprep.subr.bf16.mxu0 %v7060_v40  ;;  %744 = vst.msk [vmem:[#allocation2 + $0x24] sm:$0xf] %vm8873_vm4, %v736_v42  ;;  %6181 = vmatpush3.bf16.msra.mxu1 %v6303_v34  ;;  %v7211_v22 = vld [vmem:[%s6906_s2 + $0x100] ss:$8 sps:$4 sm:$0xff]   ;;  %v7215_v26 = vld [vmem:[%s6906_s2 + $0x1f4] ss:$8 sps:$4 sm:$0xff]  }
 0x222   :  { %6182 = vmatprep.subr.bf16.mxu1 %v8818_v57  ;;  %v7219_v30 = vld [vmem:[%s6906_s2 + $0xd0] ss:$8 sps:$4 sm:$0xff]   ;;  %v7223_v29 = vld [vmem:[%s6906_s2 + $0xc4] ss:$8 sps:$4 sm:$0xff]   ;;  %v7235_v31 = vld [vmem:[%s6906_s2 + $0xc0] ss:$8 sps:$4 sm:$0xff]  }
 0x223   :  { %5719 = vmatmul.mubr.msk.bf16.vlgmr.msra.gmra.mxu0 %vm8858_vm10, %v7037_v15  ;;  %v7227_v17 = vld [vmem:[%s6906_s2 + $0x1f0] ss:$8 sps:$4 sm:$0xff]   ;;  %v7231_v19 = vld [vmem:[%s6906_s2 + $0x1e4] ss:$8 sps:$4 sm:$0xff]   ;;  %8874 = vst [vmem:[#allocation6_spill] sm:$0xff] %v7235_v31  ;;  %vm8853_vm8 = vcmask 1040384  }
 0x224   :  { %1648 = vmatpush1.bf16.msra.mxu0 %v7065_v41  ;;  %v6304_v45 = vld [vmem:[#allocation2 + $0x38] ss:$20 sps:$4 sm:$0xff]   ;;  %v7239_v32 = vld [vmem:[%s6906_s2 + $0xb4] ss:$8 sps:$4 sm:$0xff]   ;;  %v7243_v33 = vld [vmem:[%s6906_s2 + $0x1e0] ss:$8 sps:$4 sm:$0xff]  }
 0x225   :  { %1649 = vmatprep.subr.bf16.mxu0 %v7070_v43  ;;  %6183 = vmatpush3.bf16.msra.mxu1 %v6304_v45  ;;  %8875 = vst [vmem:[#allocation7_spill] sm:$0xff] %v7239_v32  ;;  %v7247_v35 = vld [vmem:[%s6906_s2 + $0x1d4] ss:$8 sps:$4 sm:$0xff]   ;;  %v7251_v4 = vld [vmem:[%s6906_s2 + $0xb0] ss:$8 sps:$4 sm:$0xff]   ;;  %vm2108_vm13 = vcmask 400388  }
 0x226   :  { %6184 = vmatprep.subr.bf16.mxu1 %v8818_v57  ;;  %8876 = vst [vmem:[#allocation8_spill] sm:$0xff] %v7251_v4  ;;  %v7255_v36 = vld [vmem:[%s6906_s2 + $0xa4] ss:$8 sps:$4 sm:$0xff]   ;;  %v7259_v37 = vld [vmem:[%s6906_s2 + $0x1d0] ss:$8 sps:$4 sm:$0xff]   ;;  %vm2126_vm4 = vcmask 326660  }
 0x227   :  { %8877 = vst [vmem:[#allocation9_spill] sm:$0xff] %v7255_v36  ;;  %8878 = vst [vmem:[#allocation10_spill] sm:$0xff] %v7259_v37  ;;  %v7263_v28 = vld [vmem:[%s6906_s2 + $0x1c4] ss:$8 sps:$4 sm:$0xff]   ;;  %v7267_v34 = vld [vmem:[%s6906_s2 + $0xa0] ss:$8 sps:$4 sm:$0xff]  }
 0x228   :  { %1650 = vmatpush1.bf16.msra.mxu0 %v7078_v44  ;;  %v6305_v49 = vld [vmem:[#allocation2 + $0x10] ss:$20 sps:$4 sm:$0xff]   ;;  %8879 = vst [vmem:[#allocation11_spill] sm:$0xff] %v7263_v28  ;;  %8880 = vst [vmem:[#allocation12_spill] sm:$0xff] %v7267_v34  ;;  %v7272_v42 = vld [vmem:[%s6906_s2 + $0x1c0] ss:$8 sps:$4 sm:$0xff]  }
 0x229   :  { %1651 = vmatprep.subr.bf16.mxu0 %v7082_v46  ;;  %6185 = vmatpush3.bf16.msra.mxu1 %v6305_v49  ;;  %8881 = vst [vmem:[#allocation13_spill] sm:$0xff] %v7272_v42  ;;  %v7276_v45 = vld [vmem:[%s6906_s2 + $0x1b4] ss:$8 sps:$4 sm:$0xff]   ;;  %v7283_v57 = vld [vmem:[%s6906_s2 + $0x90] ss:$8 sps:$4 sm:$0xff]   ;;  %vm8857_vm11 = vcmask 965632  }
 0x22a   :  { %1688 = vmatprep.subr.bf16.mxu1 %v7086_v47  ;;  %8882 = vst [vmem:[#allocation14_spill] sm:$0xff] %v7276_v45  ;;  %v7280_v49 = vld [vmem:[%s6906_s2 + $0x94] ss:$8 sps:$4 sm:$0xff]   ;;  %8884 = vst [vmem:[#allocation16_spill] sm:$0xff] %v7283_v57  ;;  %v7287_v3 = vld [vmem:[%s6906_s2 + $0x1b0] ss:$8 sps:$4 sm:$0xff]  }
 0x22b   :  { %8883 = vst [vmem:[#allocation15_spill] sm:$0xff] %v7280_v49  ;;  %8885 = vst [vmem:[#allocation17_spill] sm:$0xff] %v7287_v3 }
 0x22c   :  { %1652 = vmatpush1.bf16.msra.mxu0 %v7090_v48  ;;  %6187 = vmatmul.mubr.msk.bf16.vlgmr.msra.gmra.mxu1 %vm8858_vm10, %v7037_v15  ;;  %v7195_v15 = vld [vmem:[%s6906_s2 + $0x110] ss:$8 sps:$4 sm:$0xff]  }
 0x22d   :  { %1653 = vmatprep.subr.bf16.mxu0 %v7094_v51  ;;  %1689 = vmatpush1.bf16.msra.mxu1 %v7097_v53 }
 0x22e   :  { %1690 = vmatprep.subr.bf16.mxu1 %v7101_v54 }
 0x230   :  { %1654 = vmatpush1.bf16.msra.mxu0 %v7105_v55 }
 0x231   :  { %1655 = vmatprep.subr.bf16.mxu0 %v7109_v56  ;;  %1691 = vmatpush1.bf16.msra.mxu1 %v7115_v52 }
 0x232   :  { %1692 = vmatprep.subr.bf16.mxu1 %v7119_v58 }
 0x234   :  { %1656 = vmatpush1.bf16.msra.mxu0 %v7123_v59 }
 0x235   :  { %1657 = vmatprep.subr.bf16.mxu0 %v7127_v25  ;;  %1693 = vmatpush1.bf16.msra.mxu1 %v7131_v50 }
 0x236   :  { %1694 = vmatprep.subr.bf16.mxu1 %v7135_v60 }
 0x238   :  { %1658 = vmatpush1.bf16.msra.mxu0 %v7139_v63 }
 0x239   :  { %1659 = vmatprep.subr.bf16.mxu0 %v7143_v0  ;;  %1695 = vmatpush1.bf16.msra.mxu1 %v7147_v1 }
 0x23a   :  { %1696 = vmatprep.subr.bf16.mxu1 %v7151_v2 }
 0x23c   :  { %1660 = vmatpush1.bf16.msra.mxu0 %v7155_v5 }
 0x23d   :  { %1661 = vmatprep.subr.bf16.mxu0 %v7159_v6  ;;  %1697 = vmatpush1.bf16.msra.mxu1 %v7163_v11 }
 0x23e   :  { %1698 = vmatprep.subr.bf16.mxu1 %v7167_v12 }
 0x240   :  { %1662 = vmatpush1.bf16.msra.mxu0 %v7171_v7 }
 0x241   :  { %1663 = vmatprep.subr.bf16.mxu0 %v7175_v9  ;;  %1699 = vmatpush1.bf16.msra.mxu1 %v7179_v10 }
 0x242   :  { %1700 = vmatprep.subr.bf16.mxu1 %v7183_v13 }
 0x244   :  { %1664 = vmatpush2.bf16.msra.mxu0 %v7187_v8 }
 0x245   :  { %1665 = vmatprep.subr.bf16.mxu0 %v7191_v14  ;;  %1701 = vmatpush1.bf16.msra.mxu1 %v7195_v15 }
 0x246   :  { %1702 = vmatprep.subr.bf16.mxu1 %v7199_v16 }
 0x248   :  { %1666 = vmatpush2.bf16.msra.mxu0 %v7203_v18 }
 0x249   :  { %1667 = vmatprep.subr.bf16.mxu0 %v7207_v21  ;;  %1703 = vmatpush1.bf16.msra.mxu1 %v7211_v22 }
 0x24a   :  { %1704 = vmatprep.subr.bf16.mxu1 %v7215_v26 }
 0x24c   :  { %1668 = vmatpush2.bf16.msra.mxu0 %v7219_v30 }
 0x24d   :  { %1669 = vmatprep.subr.bf16.mxu0 %v7223_v29  ;;  %1705 = vmatpush2.bf16.msra.mxu1 %v7227_v17 }
 0x24e   :  { %1706 = vmatprep.subr.bf16.mxu1 %v7231_v19 }
 0x250   :  { %1670 = vmatpush2.bf16.msra.mxu0 %v7235_v31  ;;  %v7340_v31 = vld [vmem:[%s6906_s2 + $0x254] ss:$8 sps:$4 sm:$0xff]  }
 0x251   :  { %1671 = vmatprep.subr.bf16.mxu0 %v7239_v32  ;;  %1707 = vmatpush2.bf16.msra.mxu1 %v7243_v33  ;;  %8895 = vst [vmem:[#allocation27_spill] sm:$0xff] %v7340_v31 }
 0x252   :  { %1708 = vmatprep.subr.bf16.mxu1 %v7247_v35 }
 0x254   :  { %1672 = vmatpush2.bf16.msra.mxu0 %v7251_v4 }
 0x255   :  { %1673 = vmatprep.subr.bf16.mxu0 %v7255_v36  ;;  %1709 = vmatpush2.bf16.msra.mxu1 %v7259_v37 }
 0x256   :  { %1710 = vmatprep.subr.bf16.mxu1 %v7263_v28 }
 0x258   :  { %1674 = vmatpush2.bf16.msra.mxu0 %v7267_v34  ;;  %v7303_v34 = vld [vmem:[%s6906_s2 + $0x1a0] ss:$8 sps:$4 sm:$0xff]  }
 0x259   :  { %1711 = vmatpush2.bf16.msra.mxu1 %v7272_v42  ;;  %1675 = vmatprep.subr.bf16.mxu0 %v7280_v49  ;;  %8889 = vst [vmem:[#allocation21_spill] sm:$0xff] %v7303_v34  ;;  %v7308_v49 = vld [vmem:[%s6906_s2 + $0x194] ss:$8 sps:$4 sm:$0xff]   ;;  %v7316_v42 = vld [vmem:[%s6906_s2 + $0x190] ss:$8 sps:$4 sm:$0xff]  }
 0x25a   :  { %1712 = vmatprep.subr.bf16.mxu1 %v7276_v45  ;;  %8890 = vst [vmem:[#allocation22_spill] sm:$0xff] %v7308_v49  ;;  %v1250_v45 = vld [vmem:[%s6906_s2 + $0x260] sm:$0x11]  ;;  %8892 = vst [vmem:[#allocation24_spill] sm:$0xff] %v7316_v42 }
 0x25c   :  { %1676 = vmatpush2.bf16.msra.mxu0 %v7283_v57  ;;  %v7312_v57 = vcombine.high %v1250_v45, %v1250_v45 }
 0x25d   :  { %1713 = vmatpush2.bf16.msra.mxu1 %v7287_v3  ;;  %1677 = vmatprep.subr.bf16.mxu0 %v7296_v61  ;;  %v7322_v61 = vld [vmem:[%s6906_s2 + $0x184] ss:$8 sps:$4 sm:$0xff]  }
 0x25e   :  { %1714 = vmatprep.subr.bf16.mxu1 %v7292_v62  ;;  %8891 = vst [vmem:[#allocation23_spill] sm:$0xff] %v7312_v57  ;;  %8893 = vst [vmem:[#allocation25_spill] sm:$0xff] %v7322_v61  ;;  %v7326_v62 = vld [vmem:[%s6906_s2 + $0x180] ss:$8 sps:$4 sm:$0xff]  }
 0x25f   :  { %8894 = vst [vmem:[#allocation26_spill] sm:$0xff] %v7326_v62 }
 0x260   :  { %1678 = vmatpush2.bf16.msra.mxu0 %v7299_v39  ;;  %v660_v39 = vpack.c.bf16 %v6800_v24, %v6800_v24 }
 0x261   :  { %1715 = vmatpush2.bf16.msra.mxu1 %v7303_v34  ;;  %5799 = vmatprep.subr.msk.bf16.mxu0 %vm8853_vm8, %v7312_v57  ;;  %v1773_v57 = vld [vmem:[%s5640_s16] sm:$0xff]  ;;  %s6606_s16 = smov 26  }
 0x262   :  { %1716 = vmatprep.subr.bf16.mxu1 %v7308_v49  ;;  %1776 = vperm.xlu1 %6279, %v1773_v57   ;;  %s8264_s20 = sld [smem:[%s8812_s0 + %s6606_s16]]  }
 0x265   :  { %1717 = vmatpush2.bf16.msra.mxu1 %v7316_v42  ;;  %v903_v42 = vpop.permute.xlu0 %902 }
 0x266   :  { %1718 = vmatprep.subr.bf16.mxu1 %v7322_v61 }
 0x269   :  { %1719 = vmatpush2.bf16.msra.mxu1 %v7326_v62  ;;  %v5797_v62 = vcombine.low %v1250_v45, %v1250_v45  ;;  %v8896_v45 = vmov 0  }
 0x26a   :  { %5801 = vmatprep.subr.msk.bf16.mxu1 %vm209_vm3, %v660_v39 }
 0x26b   :  { %v7337_v32 = vsel %vm8853_vm8, %v5797_v62, 0 }
 0x2d8   :  { %v1076_v49 = vpop.f32.mrf.mxu1 }
 0x2d9   :  { %v1077_v34 = vadd.f32 %v1076_v49, %v903_v42 }
 0x2da   :  { %v1078_v61 = vpop.f32.mrf.mxu1 }
 0x2db   :  { %v1079_v3 = vadd.f32 %v1078_v61, %v903_v42  ;;  %v1164_v36 = vmax.f32 %v1077_v34, 0.0  ;;  %v7344_v61 = vld [vmem:[%s6906_s2 + $0x250] ss:$8 sps:$4 sm:$0xff]  }
 0x2dc   :  { %v1080_v24 = vpop.f32.mrf.mxu1 }
 0x2dd   :  { %v1165_v4 = vmax.f32 %v1079_v3, 0.0  ;;  %v1169_v37 = vpack.c.bf16 %v1164_v36, %v1164_v36  ;;  %v7349_v3 = vld [vmem:[%s6906_s2 + $0x244] ss:$8 sps:$4 sm:$0xff]   ;;  %v7357_v24 = vld [vmem:[%s6906_s2 + $0x234] ss:$8 sps:$4 sm:$0xff]  }
 0x2de   :  { %v1081_v39 = vpop.f32.mrf.mxu1 }
 0x2df   :  { %v1170_v28 = vpack.c.bf16 %v1165_v4, %v1165_v4 }
 0x2e1   :  { %1679 = vmatprep.mubr.bf16.mxu0 %v1170_v28 }
 0x2e2   :  { %1680 = vmatmul.mubr.bf16.vlgmr.msra.gmra.mxu0 %v1169_v37  ;;  %v7353_v37 = vld [vmem:[%s6906_s2 + $0x240] ss:$8 sps:$4 sm:$0xff]  }
 0x2e3   :  { %v1117_v57 = vpop.f32.mrf.mxu0  ;;  %1732 = vmatpush1.bf16.msra.mxu0 %v7337_v32  ;;  %1761 = vmatprep.mubr.bf16.mxu0 %v8896_v45 }
 0x2e4   :  { %v1118_v34 = vadd.f32 %v1117_v57, %v903_v42  ;;  %1733 = vmatprep.subr.bf16.mxu0 %v7340_v31  ;;  %v659_v57 = vpack.c.bf16 %v6798_v23, %v6798_v23  ;;  %v7372_v23 = vld [vmem:[%s6906_s2 + $0x224] ss:$8 sps:$4 sm:$0xff]  }
 0x2e5   :  { %v1119_v62 = vpop.f32.mrf.mxu0  ;;  %8898 = vst [vmem:[#allocation29_spill] sm:$0xff] %v7372_v23 }
 0x2e6   :  { %v1120_v4 = vadd.f32 %v1119_v62, %v903_v42  ;;  %v1166_v36 = vmax.f32 %v1118_v34, 0.0  ;;  %v7366_v62 = vld [vmem:[%s6906_s2 + $0x230] ss:$8 sps:$4 sm:$0xff]  }
 0x2e7   :  { %v1121_v49 = vpop.f32.mrf.mxu0  ;;  %1734 = vmatpush1.bf16.msra.mxu0 %v7344_v61  ;;  %8897 = vst [vmem:[#allocation28_spill] sm:$0xff] %v7366_v62 }
 0x2e8   :  { %v1167_v28 = vmax.f32 %v1120_v4, 0.0  ;;  %1735 = vmatprep.subr.bf16.mxu0 %v7349_v3  ;;  %v1171_v34 = vpack.c.bf16 %v1166_v36, %v1166_v36  ;;  %v662_v4 = vpack.c.bf16 %v6802_v27, %v6802_v27  ;;  %v1784_v49 = vsel %vm209_vm3, %v659_v57, 0 }
 0x2e9   :  { %v1122_v39 = vpop.f32.mrf.mxu0  ;;  %v661_v36 = vpack.c.bf16 %v6796_v20, %v6796_v20 }
 0x2ea   :  { %v1172_v31 = vpack.c.bf16 %v1167_v28, %v1167_v28  ;;  %v7385_v39 = vld [vmem:[%s6906_s2 + $0x214] ss:$8 sps:$4 sm:$0xff]  }
 0x2eb   :  { %1736 = vmatpush1.bf16.msra.mxu0 %v7353_v37  ;;  %v1790_v20 = vsel %vm209_vm3, %v661_v36, 0 }
 0x2ec   :  { %1720 = vmatprep.mubr.bf16.mxu1 %v1172_v31  ;;  %1737 = vmatprep.subr.bf16.mxu0 %v7357_v24  ;;  %v1158_v28 = vpop.f32.mrf.mxu1  ;;  %v7379_v31 = vld [vmem:[%s6906_s2 + $0x220] ss:$8 sps:$4 sm:$0xff]  }
 0x2ed   :  { %1721 = vmatmul.mubr.bf16.vlgmr.msra.gmra.mxu1 %v1171_v34  ;;  %8899 = vst [vmem:[#allocation30_spill] sm:$0xff] %v7379_v31  ;;  %v1772_v34 = vld [vmem:[%s5639_s21] sm:$0xf]  ;;  %s6607_s21 = smov 30  }
 0x2ee   :  { %1813 = vmatpush1.bf16.msra.mxu1 %v1784_v49  ;;  %1830 = vmatprep.mubr.bf16.mxu1 %v8896_v45  ;;  %v6188_v27 = vpop.f32.mrf.mxu1  ;;  %v7389_v49 = vld [vmem:[%s6906_s2 + $0x210] ss:$8 sps:$4 sm:$0xff]  }
 0x2ef   :  { %5803 = vmatprep.subr.msk.bf16.mxu1 %vm209_vm3, %v662_v4  ;;  %1738 = vmatpush1.bf16.msra.mxu0 %v7366_v62  ;;  %v1159_v62 = vadd.f32 %v1158_v28, %v903_v42  ;;  %v7393_v27 = vld [vmem:[%s6906_s2 + $0x204] ss:$8 sps:$4 sm:$0xff]   ;;  %v1796_v28 = vsel %vm209_vm3, %v6823_v38, 0 }
 0x2f0   :  { %1739 = vmatprep.subr.bf16.mxu0 %v7372_v23  ;;  %v1161_v57 = vpop.f32.mrf.mxu1  ;;  %v8901_v38 = vld [vmem:[#allocation6_spill] sm:$0xff] }
 0x2f1   :  { %v8900_v57 = vmov 0.0   ;;  %v1168_v23 = vmax.f32 %v1159_v62, 0.0 }
 0x2f2   :  { %v6189_v4 = vpop.f32.mrf.mxu1 }
 0x2f3   :  { %1740 = vmatpush1.bf16.msra.mxu0 %v7379_v31  ;;  %v7401_v31 = vld [vmem:[%s6906_s2 + $0x200] ss:$8 sps:$4 sm:$0xff]   ;;  %v1173_v42 = vpack.c.bf16 %v1168_v23, %v1168_v23  ;;  %s7645_s2 = sld [smem:[%s8812_s0 + %s6591_s28]]  }
 0x2f4   :  { %1741 = vmatprep.subr.bf16.mxu0 %v7385_v39 }
 0x2f5   :  { %5802 = vmatmul.mubr.msk.bf16.vlgmr.msra.gmra.mxu1 %vm8854_vm9, %v1772_v34 }
 0x2f6   :  { %1854 = vmatpush1.bf16.msra.mxu1 %v1790_v20  ;;  %1871 = vmatprep.mubr.bf16.mxu1 %v8896_v45 }
 0x2f7   :  { %6190 = vmatprep.subr.bf16.mxu1 %v8900_v57  ;;  %1742 = vmatpush1.bf16.msra.mxu0 %v7389_v49 }
 0x2f8   :  { %1743 = vmatprep.subr.bf16.mxu0 %v7393_v27 }
 0x2fb   :  { %1744 = vmatpush1.bf16.msra.mxu0 %v7401_v31 }
 0x2fc   :  { %1928 = vmatprep.subr.bf16.mxu0 %v7060_v40  ;;  %v8902_v40 = vld [vmem:[#allocation7_spill] sm:$0xff] }
 0x2fd   :  { %5804 = vmatmul.mubr.msk.bf16.vlgmr.msra.gmra.mxu1 %vm8854_vm9, %v1772_v34 }
 0x2fe   :  { %6191 = vmatpush3.bf16.msra.mxu1 %v1796_v28  ;;  %6192 = vmatprep.mubr.msk.bf16.mxu1 %vm8871_vm2, %v8900_v57  ;;  %vm7514_vm2 = vmor %vm2135_vm0, %vm209_vm3 }
 0x2ff   :  { %5800 = vmatmul.mubr.msk.bf16.vlgmr.msra.gmra.mxu0 %vm1636_vm14, %v1173_v42  ;;  %1969 = vmatprep.subr.bf16.mxu1 %v7086_v47  ;;  %v8907_v47 = vld [vmem:[#allocation13_spill] sm:$0xff]  ;;  %vm7530_vm0 = vmor %vm2126_vm4, %vm209_vm3  ;;  %vm8859_vm4 = vcmask 72704  }
 0x300   :  { %1929 = vmatpush1.bf16.msra.mxu0 %v7065_v41  ;;  %v8903_v41 = vld [vmem:[#allocation10_spill] sm:$0xff] }
 0x301   :  { %1930 = vmatprep.subr.bf16.mxu0 %v7070_v43  ;;  %v8904_v43 = vld [vmem:[#allocation11_spill] sm:$0xff] }
 0x304   :  { %1931 = vmatpush1.bf16.msra.mxu0 %v7078_v44  ;;  %v8905_v44 = vld [vmem:[#allocation8_spill] sm:$0xff] }
 0x305   :  { %6193 = vmatmul.mubr.msk.bf16.vlgmr.msra.gmra.mxu1 %vm8854_vm9, %v1772_v34  ;;  %1932 = vmatprep.subr.bf16.mxu0 %v7082_v46  ;;  %v8906_v46 = vld [vmem:[#allocation9_spill] sm:$0xff]  ;;  %vm8935_vm9 = vcmask 1039360  }
 0x306   :  { %1970 = vmatpush1.bf16.msra.mxu1 %v7097_v53  ;;  %v8910_v53 = vld [vmem:[#allocation15_spill] sm:$0xff] }
 0x307   :  { %1971 = vmatprep.subr.bf16.mxu1 %v7101_v54  ;;  %v8911_v54 = vld [vmem:[#allocation17_spill] sm:$0xff] }
 0x308   :  { %1933 = vmatpush1.bf16.msra.mxu0 %v7090_v48  ;;  %v8908_v48 = vld [vmem:[#allocation14_spill] sm:$0xff] }
 0x309   :  { %1934 = vmatprep.subr.bf16.mxu0 %v7094_v51  ;;  %v8909_v51 = vld [vmem:[#allocation12_spill] sm:$0xff] }
 0x30a   :  { %1972 = vmatpush1.bf16.msra.mxu1 %v7115_v52  ;;  %v8914_v52 = vld [vmem:[#allocation19_spill] sm:$0xff] }
 0x30b   :  { %1973 = vmatprep.subr.bf16.mxu1 %v7119_v58  ;;  %v8915_v58 = vld [vmem:[#allocation21_spill] sm:$0xff] }
 0x30c   :  { %1935 = vmatpush1.bf16.msra.mxu0 %v7105_v55  ;;  %v8912_v55 = vld [vmem:[#allocation18_spill] sm:$0xff] }
 0x30d   :  { %1936 = vmatprep.subr.bf16.mxu0 %v7109_v56  ;;  %v8913_v56 = vld [vmem:[#allocation16_spill] sm:$0xff] }
 0x30e   :  { %1974 = vmatpush1.bf16.msra.mxu1 %v7131_v50  ;;  %v8918_v50 = vld [vmem:[#allocation23_spill] sm:$0xff] }
 0x30f   :  { %1975 = vmatprep.subr.bf16.mxu1 %v7135_v60  ;;  %v8919_v60 = vld [vmem:[#allocation24_spill] sm:$0xff] }
 0x310   :  { %1937 = vmatpush1.bf16.msra.mxu0 %v7123_v59  ;;  %v8916_v59 = vld [vmem:[#allocation22_spill] sm:$0xff] }
 0x311   :  { %1938 = vmatprep.subr.bf16.mxu0 %v7127_v25  ;;  %v8917_v25 = vld [vmem:[#allocation20_spill] sm:$0xff] }
 0x312   :  { %1976 = vmatpush1.bf16.msra.mxu1 %v7147_v1 }
 0x313   :  { %1977 = vmatprep.subr.bf16.mxu1 %v7151_v2 }
 0x314   :  { %1939 = vmatpush1.bf16.msra.mxu0 %v7139_v63  ;;  %v8920_v63 = vld [vmem:[#allocation25_spill] sm:$0xff] }
 0x315   :  { %1940 = vmatprep.subr.bf16.mxu0 %v7143_v0  ;;  %v8921_v0 = vld [vmem:[#allocation26_spill] sm:$0xff] }
 0x316   :  { %1978 = vmatpush1.bf16.msra.mxu1 %v7163_v11 }
 0x317   :  { %1979 = vmatprep.subr.bf16.mxu1 %v7167_v12 }
 0x318   :  { %1941 = vmatpush1.bf16.msra.mxu0 %v7155_v5 }
 0x319   :  { %1942 = vmatprep.subr.bf16.mxu0 %v7159_v6 }
 0x31a   :  { %1980 = vmatpush1.bf16.msra.mxu1 %v7179_v10  ;;  %v1777_v10 = vpop.permute.xlu1 %1776 }
 0x31b   :  { %1981 = vmatprep.subr.bf16.mxu1 %v7183_v13 }
 0x31c   :  { %1943 = vmatpush1.bf16.msra.mxu0 %v7171_v7 }
 0x31d   :  { %1944 = vmatprep.subr.bf16.mxu0 %v7175_v9 }
 0x31e   :  { %1982 = vmatpush1.bf16.msra.mxu1 %v7195_v15 }
 0x31f   :  { %1983 = vmatprep.subr.bf16.mxu1 %v7199_v16 }
 0x320   :  { %1945 = vmatpush2.bf16.msra.mxu0 %v7187_v8 }
 0x321   :  { %1946 = vmatprep.subr.bf16.mxu0 %v7191_v14 }
 0x322   :  { %1984 = vmatpush1.bf16.msra.mxu1 %v7211_v22 }
 0x323   :  { %1985 = vmatprep.subr.bf16.mxu1 %v7215_v26 }
 0x324   :  { %1947 = vmatpush2.bf16.msra.mxu0 %v7203_v18 }
 0x325   :  { %1948 = vmatprep.subr.bf16.mxu0 %v7207_v21 }
 0x326   :  { %1986 = vmatpush2.bf16.msra.mxu1 %v7227_v17  ;;  %v8922_v17 = vld [vmem:[#allocation27_spill] sm:$0xff] }
 0x327   :  { %1987 = vmatprep.subr.bf16.mxu1 %v7231_v19 }
 0x328   :  { %1949 = vmatpush2.bf16.msra.mxu0 %v7219_v30 }
 0x329   :  { %1950 = vmatprep.subr.bf16.mxu0 %v7223_v29 }
 0x32a   :  { %1988 = vmatpush2.bf16.msra.mxu1 %v7243_v33 }
 0x32b   :  { %1989 = vmatprep.subr.bf16.mxu1 %v7247_v35 }
 0x32c   :  { %1951 = vmatpush2.bf16.msra.mxu0 %v8901_v38 }
 0x32d   :  { %1952 = vmatprep.subr.bf16.mxu0 %v8902_v40 }
 0x32e   :  { %1990 = vmatpush2.bf16.msra.mxu1 %v8903_v41 }
 0x32f   :  { %1991 = vmatprep.subr.bf16.mxu1 %v8904_v43  ;;  %v8924_v43 = vld [vmem:[#allocation28_spill] sm:$0xff] }
 0x330   :  { %1953 = vmatpush2.bf16.msra.mxu0 %v8905_v44  ;;  %v8925_v44 = vld [vmem:[#allocation29_spill] sm:$0xff] }
 0x331   :  { %1954 = vmatprep.subr.bf16.mxu0 %v8906_v46 }
 0x332   :  { %1992 = vmatpush2.bf16.msra.mxu1 %v8907_v47  ;;  %v2148_v47 = vld [vmem:[%s5638_s29] sm:$0xff] }
 0x333   :  { %1993 = vmatprep.subr.bf16.mxu1 %v8908_v48 }
 0x334   :  { %1955 = vmatpush2.bf16.msra.mxu0 %v8909_v51 }
 0x335   :  { %1956 = vmatprep.subr.bf16.mxu0 %v8910_v53 }
 0x336   :  { %1994 = vmatpush2.bf16.msra.mxu1 %v8911_v54 }
 0x337   :  { %1995 = vmatprep.subr.bf16.mxu1 %v8912_v55 }
 0x338   :  { %1957 = vmatpush2.bf16.msra.mxu0 %v8913_v56 }
 0x339   :  { %1958 = vmatprep.subr.bf16.mxu0 %v8914_v52 }
 0x33a   :  { %1996 = vmatpush2.bf16.msra.mxu1 %v8915_v58 }
 0x33b   :  { %1997 = vmatprep.subr.bf16.mxu1 %v8916_v59 }
 0x33c   :  { %1959 = vmatpush2.bf16.msra.mxu0 %v8917_v25 }
 0x33d   :  { %5806 = vmatprep.subr.msk.bf16.mxu0 %vm8853_vm8, %v8918_v50  ;;  %vm2091_vm8 = vcmask 1043528  }
 0x33e   :  { %1998 = vmatpush2.bf16.msra.mxu1 %v8919_v60 }
 0x33f   :  { %1999 = vmatprep.subr.bf16.mxu1 %v8920_v63 }
 0x342   :  { %2000 = vmatpush2.bf16.msra.mxu1 %v8921_v0 }
 0x3a2   :  { %v1681_v1 = vpop.f32.mrf.mxu0 }
 0x3a4   :  { %v1683_v2 = vpop.f32.mrf.mxu0 }
 0x3a6   :  { %v1685_v5 = vpop.f32.mrf.mxu0 }
 0x3a8   :  { %v1686_v6 = vpop.f32.mrf.mxu0 }
 0x3ad   :  { %v1722_v11 = vpop.f32.mrf.mxu1 }
 0x3ae   :  { %v1723_v33 = vadd.f32 %v1722_v11, %v1681_v1 }
 0x3af   :  { %v1724_v12 = vpop.f32.mrf.mxu1 }
 0x3b0   :  { %v1725_v35 = vadd.f32 %v1724_v12, %v1683_v2 }
 0x3b1   :  { %v1726_v7 = vpop.f32.mrf.mxu1 }
 0x3b3   :  { %v1727_v9 = vpop.f32.mrf.mxu1 }
 0x3b5   :  { %v1832_v13 = vpop.f32.mrf.mxu1 }
 0x3b6   :  { %v1833_v8 = vadd.f32 %v1832_v13, %v1777_v10 }
 0x3b7   :  { %v1834_v14 = vpop.f32.mrf.mxu1 }
 0x3b8   :  { %v1835_v15 = vadd.f32 %v1834_v14, %v1777_v10  ;;  %v1920_v16 = vpack.c.bf16 %v1833_v8, %v1833_v8 }
 0x3b9   :  { %v1836_v18 = vpop.f32.mrf.mxu1 }
 0x3ba   :  { %v1921_v21 = vpack.c.bf16 %v1835_v15, %v1835_v15 }
 0x3bb   :  { %v1837_v22 = vpop.f32.mrf.mxu1 }
 0x3bc   :  { %1960 = vmatprep.mubr.bf16.mxu0 %v1921_v21 }
 0x3bd   :  { %1961 = vmatmul.mubr.bf16.vlgmr.msra.gmra.mxu0 %v1920_v16  ;;  %v1873_v26 = vpop.f32.mrf.mxu1 }
 0x3be   :  { %2013 = vmatpush1.bf16.msra.mxu0 %v7337_v32  ;;  %v1874_v30 = vadd.f32 %v1873_v26, %v1777_v10  ;;  %2042 = vmatprep.mubr.bf16.mxu0 %v8896_v45 }
 0x3bf   :  { %v1763_v29 = vpop.f32.mrf.mxu0  ;;  %2014 = vmatprep.subr.bf16.mxu0 %v8922_v17  ;;  %v1875_v19 = vpop.f32.mrf.mxu1 }
 0x3c0   :  { %v1876_v62 = vadd.f32 %v1875_v19, %v1777_v10  ;;  %v1922_v36 = vpack.c.bf16 %v1874_v30, %v1874_v30  ;;  %v1764_v4 = vadd.f32 %v1763_v29, %v1723_v33 }
 0x3c1   :  { %v1765_v23 = vpop.f32.mrf.mxu0  ;;  %v1877_v34 = vpop.f32.mrf.mxu1 }
 0x3c2   :  { %v1766_v20 = vadd.f32 %v1765_v23, %v1725_v35  ;;  %2015 = vmatpush1.bf16.msra.mxu0 %v7344_v61  ;;  %v1923_v57 = vpack.c.bf16 %v1876_v62, %v1876_v62 }
 0x3c3   :  { %v1767_v42 = vpop.f32.mrf.mxu0  ;;  %2016 = vmatprep.subr.bf16.mxu0 %v7349_v3  ;;  %v1878_v32 = vpop.f32.mrf.mxu1 }
 0x3c4   :  { %v6033_v28 = vpack.c.bf16 %v1766_v20, %v1764_v4  ;;  %2001 = vmatprep.mubr.bf16.mxu1 %v1923_v57 }
 0x3c5   :  { %v1768_v38 = vpop.f32.mrf.mxu0  ;;  %v1914_v40 = vpop.f32.mrf.mxu1  ;;  %2002 = vmatmul.mubr.bf16.vlgmr.msra.gmra.mxu1 %v1922_v36 }
 0x3c6   :  { %2102 = vst.msk [vmem:[#allocation2 + $0x50] sm:$0xff] %vm6837_vm5, %v6033_v28  ;;  %2111 = vrot.lane.b32.xlu1 %v6033_v28, %s6583_s22  ;;  %2129 = vrot.lane.b32.xlu0 %v6033_v28, %s6584_s23  ;;  %v1915_v46 = vadd.f32 %v1914_v40, %v1777_v10  ;;  %v2147_v40 = vld [vmem:[%s5637_s3] sm:$0xf]  ;;  %s5664_s3 = sld [smem:[%s8812_s0 + %s6604_s1]]  }
 0x3c7   :  { %2017 = vmatpush1.bf16.msra.mxu0 %v7353_v37  ;;  %v6194_v61 = vpop.f32.mrf.mxu1  ;;  %2240 = vmatprep.mubr.bf16.mxu1 %v8896_v45 }
 0x3c8   :  { %2018 = vmatprep.subr.bf16.mxu0 %v7357_v24  ;;  %v8926_v24 = vld [vmem:[#allocation30_spill] sm:$0xff]  ;;  %v1924_v48 = vpack.c.bf16 %v1915_v46, %v1915_v46 }
 0x3c9   :  { %v1917_v3 = vpop.f32.mrf.mxu1 }
 0x3ca   :  { %2103 = vrot.lane.b32.xlu1 %v6033_v28, %s6567_s7  ;;  %2120 = vrot.lane.b32.xlu0 %v6033_v28, %s6585_s24 }
 0x3cb   :  { %2019 = vmatpush1.bf16.msra.mxu0 %v8924_v43  ;;  %v6195_v37 = vpop.f32.mrf.mxu1 }
 0x3cc   :  { %2020 = vmatprep.subr.bf16.mxu0 %v8925_v44 }
 0x3ce   :  { %2094 = vrot.lane.b32.xlu1 %v6033_v28, %s6573_s13  ;;  %2085 = vrot.lane.b32.xlu0 %v6033_v28, %s6578_s25 }
 0x3cf   :  { %2021 = vmatpush1.bf16.msra.mxu0 %v8926_v24 }
 0x3d0   :  { %2022 = vmatprep.subr.bf16.mxu0 %v7385_v39 }
 0x3d2   :  { %2076 = vrot.lane.b32.xlu1 %v6033_v28, %s6587_s30  ;;  %2067 = vrot.lane.b32.xlu0 %v6033_v28, %s6586_s26 }
 0x3d3   :  { %2023 = vmatpush1.bf16.msra.mxu0 %v7389_v49 }
 0x3d4   :  { %2024 = vmatprep.subr.bf16.mxu0 %v7393_v27 }
 0x3d6   :  { %2151 = vperm.xlu0 %6278, %v2148_v47  }
 0x3d7   :  { %2025 = vmatpush1.bf16.msra.mxu0 %v7401_v31 }
 0x3da   :  { %5807 = vmatmul.mubr.msk.bf16.vlgmr.msra.gmra.mxu0 %vm1636_vm14, %v1924_v48  ;;  %vm7525_vm14 = vmor %vm2108_vm13, %vm209_vm3  ;;  %vm8936_vm13 = vcmask 408580  }
 0x438   :  { %v2112_v51 = vpop.permute.xlu1 %2111  ;;  %v2130_v53 = vpop.permute.xlu0 %2129 }
 0x439   :  { %v2113_v49 = vrot.slane %v2112_v51, 4  ;;  %v2131_v31 = vrot.slane %v2130_v53, 4 }
 0x43b   :  { %v2115_v54 = vsel %vm8856_vm6, %v2112_v51, %v2113_v49  ;;  %v2133_v55 = vsel %vm8855_vm15, %v2130_v53, %v2131_v31  ;;  %vm7538_vm15 = vmor %vm8936_vm13, %vm780_vm1  ;;  %vm2082_vm1 = vcmask 1043536  }
 0x43c   :  { %2119 = vst.msk [vmem:[#allocation2 + $0x78] sm:$0xff] %vm7509_vm7, %v2115_v54  ;;  %v2104_v52 = vpop.permute.xlu1 %2103  ;;  %v2121_v58 = vpop.permute.xlu0 %2120  ;;  %vm8939_vm6 = vmmov %vm8936_vm13  ;;  %vm2073_vm13 = vcmask 1043544  }
 0x43d   :  { %2137 = vst.msk [vmem:[#allocation2 + $0xa0] sm:$0xff] %vm7514_vm2, %v2133_v55  ;;  %v2105_v59 = vrot.slane %v2104_v52, 4  ;;  %v2122_v50 = vrot.slane %v2121_v58, 4  ;;  %vm8942_vm10 = vmmov %vm8939_vm6 }
 0x43f   :  { %v2106_v60 = vsel %vm8935_vm9, %v2104_v52, %v2105_v59  ;;  %v2124_v63 = vsel %vm8857_vm11, %v2121_v58, %v2122_v50  ;;  %vm7547_vm9 = vmor %vm8939_vm6, %vm2091_vm8  ;;  %vm2079_vm11 = vcmask 80896   ;;  %vm2070_vm6 = vcmask 89088   ;;  %v2253_v50 = vld [vmem:[%s7612_s8] sm:$0x3] }
 0x440   :  { %2110 = vst.msk [vmem:[#allocation2 + $0x64] sm:$0xff] %vm7525_vm14, %v2106_v60  ;;  %v2095_v1 = vpop.permute.xlu1 %2094  ;;  %v2086_v2 = vpop.permute.xlu0 %2085  ;;  %vm7558_vm8 = vmor %vm8942_vm10, %vm2082_vm1  ;;  %vm8951_vm1 = vcmask 973824  }
 0x441   :  { %2128 = vst.msk [vmem:[#allocation2 + $0x8c] sm:$0xff] %vm7530_vm0, %v2124_v63  ;;  %v2096_v5 = vrot.slane %v2095_v1, 4  ;;  %v2087_v11 = vrot.slane %v2086_v2, 4 }
 0x443   :  { %v2097_v12 = vsel %vm8860_vm12, %v2096_v5, %v2095_v1  ;;  %v2089_v7 = vsel %vm8859_vm4, %v2087_v11, %v2086_v2  ;;  %vm8945_vm4 = vmmov %vm8942_vm10  ;;  %v2144_v29 = vld [vmem:[#allocation2 + $0x78] sm:$0xff]  ;;  %vm8948_vm10 = vcmask 588800   ;;  %v8949_v2 = vld [vmem:[#allocation3_spill] sm:$0xff] }
 0x444   :  { %v2146_v9 = vld [vmem:[#allocation2 + $0xa0] sm:$0xff]  ;;  %2100 = vst.msk [vmem:[#allocation2 + $0x3c] sm:$0xff] %vm7538_vm15, %v2097_v12  ;;  %v2077_v13 = vpop.permute.xlu1 %2076  ;;  %v2068_v8 = vpop.permute.xlu0 %2067  ;;  %vm7567_vm12 = vmor %vm8945_vm4, %vm2073_vm13  ;;  %v2258_v5 = vrot.slane %v2253_v50, %v8949_v2  ;;  %vm8861_vm4 = vcmask 408576   ;;  %vm8952_vm13 = vcmask 957440  }
 0x445   :  { %2093 = vst.msk [vmem:[#allocation2 + $0x28] sm:$0xff] %vm7547_vm9, %v2089_v7  ;;  %v5818_v14 = vcombine.high %v2146_v9, %v2146_v9  ;;  %v5817_v15 = vcombine.low %v2146_v9, %v2146_v9  ;;  %v2078_v16 = vrot.slane %v2077_v13, 4  ;;  %v2069_v21 = vrot.slane %v2068_v8, 4 }
 0x446   :  { %2277 = vst.msk [vmem:[#allocation2 + $0xa0] sm:$0xff] %vm6837_vm5, %v8896_v45 }
 0x447   :  { %5819 = vmatprep.subr.msk.bf16.mxu1 %vm209_vm3, %v5818_v14  ;;  %v2203_v22 = vsel %vm209_vm3, %v5817_v15, 0  ;;  %v2080_v26 = vsel %vm2079_vm11, %v2078_v16, %v2077_v13  ;;  %v2071_v30 = vsel %vm2070_vm6, %v2069_v21, %v2068_v8  ;;  %v6425_v35 = vld [vmem:[#allocation2 + $0x54] ss:$20 sps:$4 sm:$0xff]   ;;  %v8950_v13 = vld [vmem:[#allocation4_spill] sm:$0xff] }
 0x448   :  { %2215 = vmatpush1.bf16.msra.mxu1 %v2203_v22  ;;  %v2145_v17 = vld [vmem:[#allocation2 + $0x8c] sm:$0xff]  ;;  %2084 = vst.msk [vmem:[#allocation2 + $0x14] sm:$0xff] %vm7558_vm8, %v2080_v26  ;;  %v2262_v8 = vrot.slane %v2253_v50, %v8950_v13 }
 0x449   :  { %v6423_v19 = vld [vmem:[#allocation2 + $0x7c] ss:$20 sps:$4 sm:$0xff]   ;;  %2075 = vst.msk [vmem:[#allocation2] sm:$0xff] %vm7567_vm12, %v2071_v30  ;;  %v5815_v33 = vcombine.low %v2144_v29, %v2145_v17  ;;  %v2345_v26 = vld [vmem:[%s5642_s27 + $0x8] sm:$0xff]  ;;  %v2344_v30 = vld [vmem:[%s5642_s27] sm:$0xff]  ;;  %s7758_s27 = sld [smem:[%s8812_s0 + %s6592_s19]]   ;;  %s6600_s19 = smov 23  }
 0x44a   :  { %2275 = vst.msk [vmem:[#allocation2 + $0x78] sm:$0xff] %vm6837_vm5, %v8896_v45  ;;  %2276 = vst.msk [vmem:[#allocation2 + $0x8c] sm:$0xff] %vm6837_vm5, %v8896_v45  ;;  %2216 = vmatprep.subr.bf16.mxu1 %v6423_v19 }
 0x44b   :  { %2273 = vst.msk [vmem:[#allocation2 + $0x50] sm:$0xff] %vm6837_vm5, %v8896_v45  ;;  %2274 = vst.msk [vmem:[#allocation2 + $0x64] sm:$0xff] %vm6837_vm5, %v8896_v45 }
 0x44c   :  { %2217 = vmatpush1.bf16.msra.mxu1 %v5815_v33  ;;  %v6427_v23 = vld [vmem:[#allocation2 + $0x2c] ss:$20 sps:$4 sm:$0xff]  }
 0x44d   :  { %2218 = vmatprep.subr.bf16.mxu1 %v6425_v35  ;;  %2271 = vst.msk [vmem:[#allocation2 + $0x28] sm:$0xff] %vm6837_vm5, %v8896_v45  ;;  %2272 = vst.msk [vmem:[#allocation2 + $0x3c] sm:$0xff] %vm6837_vm5, %v8896_v45 }
 0x450   :  { %v6429_v57 = vld [vmem:[#allocation2 + $0x4] ss:$20 sps:$4 sm:$0xff]  }
 0x451   :  { %2269 = vst.msk [vmem:[#allocation2] sm:$0xff] %vm6837_vm5, %v8896_v45  ;;  %2270 = vst.msk [vmem:[#allocation2 + $0x14] sm:$0xff] %vm6837_vm5, %v8896_v45  ;;  %v2152_v58 = vpop.permute.xlu0 %2151 }
 0x452   :  { %v2143_v62 = vld [vmem:[#allocation2 + $0x64] sm:$0xff]  ;;  %v2142_v36 = vld [vmem:[#allocation2 + $0x50] sm:$0xff] }
 0x453   :  { %v5813_v34 = vcombine.low %v2142_v36, %v2143_v62 }
 0x454   :  { %v2140_v4 = vld [vmem:[#allocation2 + $0x28] sm:$0xff]  ;;  %v2141_v20 = vld [vmem:[#allocation2 + $0x3c] sm:$0xff] }
 0x455   :  { %2219 = vmatpush1.bf16.msra.mxu1 %v5813_v34  ;;  %v5811_v42 = vcombine.low %v2140_v4, %v2141_v20 }
 0x456   :  { %2220 = vmatprep.subr.bf16.mxu1 %v6427_v23 }
 0x458   :  { %v2138_v32 = vld [vmem:[#allocation2] sm:$0xff]  ;;  %v2139_v28 = vld [vmem:[#allocation2 + $0x14] sm:$0xff] }
 0x459   :  { %2221 = vmatpush1.bf16.msra.mxu1 %v5811_v42  ;;  %v5809_v38 = vcombine.low %v2138_v32, %v2139_v28 }
 0x45a   :  { %2222 = vmatprep.subr.bf16.mxu1 %v6429_v57 }
 0x45d   :  { %2223 = vmatpush1.bf16.msra.mxu1 %v5809_v38 }
 0x460   :  { %5820 = vmatmul.mubr.msk.bf16.vlgmr.msra.gmra.mxu1 %vm8948_vm10, %v2147_v40  ;;  %vm8953_vm10 = vcmask 1039360  }
 0x461   :  { %2447 = vmatprep.mubr.bf16.mxu1 %v8896_v45 }
 0x47d   :  { %v1962_v61 = vpop.f32.mrf.mxu0 }
 0x47f   :  { %v1964_v3 = vpop.f32.mrf.mxu0 }
 0x481   :  { %v1966_v43 = vpop.f32.mrf.mxu0 }
 0x483   :  { %v1967_v37 = vpop.f32.mrf.mxu0 }
 0x485   :  { %v2003_v44 = vpop.f32.mrf.mxu1 }
 0x486   :  { %v2004_v24 = vadd.f32 %v2003_v44, %v1962_v61 }
 0x487   :  { %v2005_v46 = vpop.f32.mrf.mxu1 }
 0x488   :  { %v2006_v47 = vadd.f32 %v2005_v46, %v1964_v3 }
 0x489   :  { %v2007_v48 = vpop.f32.mrf.mxu1 }
 0x48b   :  { %v2008_v51 = vpop.f32.mrf.mxu1 }
 0x49a   :  { %v2044_v53 = vpop.f32.mrf.mxu0 }
 0x49b   :  { %v2045_v49 = vadd.f32 %v2044_v53, %v2004_v24 }
 0x49c   :  { %v2046_v31 = vpop.f32.mrf.mxu0 }
 0x49d   :  { %v2047_v54 = vadd.f32 %v2046_v31, %v2006_v47 }
 0x49e   :  { %v2048_v55 = vpop.f32.mrf.mxu0 }
 0x4a0   :  { %v2049_v52 = vpop.f32.mrf.mxu0 }
 0x520   :  { %v2242_v59 = vpop.f32.mrf.mxu1 }
 0x521   :  { %v2243_v60 = vadd.f32 %v2242_v59, %v2152_v58 }
 0x522   :  { %v2244_v63 = vpop.f32.mrf.mxu1 }
 0x523   :  { %v2249_v1 = vadd.f32 %v2243_v60, %v2045_v49  ;;  %v2245_v11 = vadd.f32 %v2244_v63, %v2152_v58 }
 0x524   :  { %v2246_v12 = vpop.f32.mrf.mxu1 }
 0x525   :  { %v2251_v7 = vmax.f32 %v2249_v1, 0.0  ;;  %v2250_v9 = vadd.f32 %v2245_v11, %v2047_v54 }
 0x526   :  { %v2247_v14 = vpop.f32.mrf.mxu1 }
 0x527   :  { %v7620_v15 = vmul.f32 %v2258_v5, %v2251_v7  ;;  %v2252_v16 = vmax.f32 %v2250_v9, 0.0  ;;  %v6439_v14 = vld [vmem:[%s7645_s2] sm:$0xff]  }
 0x529   :  { %5607 = vst [vmem:[%s5663_s17] sm:$0xff] %v7620_v15  ;;  %v7623_v21 = vmul.f32 %v2262_v8, %v2252_v16  ;;  %v2267_v16 = vpack.c.bf16 %v7620_v15, %v7620_v15 }
 0x52b   :  { %v6034_v22 = vpack.c.bf16 %v7623_v21, %v7620_v15  ;;  %5608 = vst.msk [vmem:[%s5663_s17 + $0x8] sm:$0xff] %vm8861_vm4, %v7623_v21  ;;  %vm8954_vm4 = vcmask 965632   ;;  %v2268_v8 = vpack.c.bf16 %v7623_v21, %v7623_v21  ;;  %v2462_v21 = vld [vmem:[%s7612_s8] sm:$0x3]  ;;  %s5644_s17 = sld [smem:[%s8812_s0 + %s6572_s12]]   ;;  %s6602_s12 = smov 22  }
 0x52c   :  { %v2467_v15 = vrot.slane %v2462_v21, %v8949_v2 }
 0x52d   :  { %2308 = vst.msk [vmem:[#allocation2 + $0x50] sm:$0xff] %vm6837_vm5, %v6034_v22  ;;  %2315 = vrot.lane.b32.xlu0 %v6034_v22, %s6583_s22  ;;  %2327 = vrot.lane.b32.xlu1 %v6034_v22, %s6584_s23 }
 0x531   :  { %2309 = vrot.lane.b32.xlu0 %v6034_v22, %s6567_s7  ;;  %2321 = vrot.lane.b32.xlu1 %v6034_v22, %s6585_s24 }
 0x535   :  { %2301 = vrot.lane.b32.xlu0 %v6034_v22, %s6573_s13  ;;  %2295 = vrot.lane.b32.xlu1 %v6034_v22, %s6578_s25 }
 0x539   :  { %2289 = vrot.lane.b32.xlu0 %v6034_v22, %s6587_s30  ;;  %2283 = vrot.lane.b32.xlu1 %v6034_v22, %s6586_s26  ;;  %v2503_v22 = vsel %vm209_vm3, %v2267_v16, 0 }
 0x53d   :  { %2353 = vperm.xlu0 %6278, %v2345_v26   ;;  %2348 = vperm.xlu1 %6279, %v2344_v30   ;;  %v6440_v26 = vld [vmem:[%s7651_s5] sm:$0xff]  }
 0x59f   :  { %v2316_v29 = vpop.permute.xlu0 %2315  ;;  %v2328_v17 = vpop.permute.xlu1 %2327 }
 0x5a0   :  { %v2317_v19 = vrot.slane %v2316_v29, 4  ;;  %v2329_v33 = vrot.slane %v2328_v17, 4 }
 0x5a2   :  { %v2318_v35 = vsel %vm8951_vm1, %v2316_v29, %v2317_v19  ;;  %v2330_v62 = vsel %vm8952_vm13, %v2328_v17, %v2329_v33  ;;  %vm8955_vm1 = vcmask 7168   ;;  %vm8956_vm13 = vcmask 72704  }
 0x5a3   :  { %2320 = vst.msk [vmem:[#allocation2 + $0x78] sm:$0xff] %vm7509_vm7, %v2318_v35  ;;  %v2310_v23 = vpop.permute.xlu0 %2309  ;;  %v2322_v36 = vpop.permute.xlu1 %2321 }
 0x5a4   :  { %2332 = vst.msk [vmem:[#allocation2 + $0xa0] sm:$0xff] %vm7514_vm2, %v2330_v62  ;;  %v2311_v34 = vrot.slane %v2310_v23, 4  ;;  %v2323_v4 = vrot.slane %v2322_v36, 4  ;;  %v2471_v62 = vrot.slane %v2462_v21, %v8950_v13 }
 0x5a6   :  { %v2312_v20 = vsel %vm8953_vm10, %v2310_v23, %v2311_v34  ;;  %v2324_v57 = vsel %vm8954_vm4, %v2322_v36, %v2323_v4  ;;  %vm8957_vm4 = vcmask 588800   ;;  %vm8958_vm10 = vcmask 64512  }
 0x5a7   :  { %2314 = vst.msk [vmem:[#allocation2 + $0x64] sm:$0xff] %vm7525_vm14, %v2312_v20  ;;  %v2302_v42 = vpop.permute.xlu0 %2301  ;;  %v2296_v32 = vpop.permute.xlu1 %2295 }
 0x5a8   :  { %2326 = vst.msk [vmem:[#allocation2 + $0x8c] sm:$0xff] %vm7530_vm0, %v2324_v57  ;;  %v2303_v28 = vrot.slane %v2302_v42, 4  ;;  %v2297_v38 = vrot.slane %v2296_v32, 4 }
 0x5aa   :  { %v2304_v61 = vsel %vm8955_vm1, %v2303_v28, %v2302_v42  ;;  %v2298_v3 = vsel %vm8956_vm13, %v2297_v38, %v2296_v32  ;;  %v2339_v49 = vld [vmem:[#allocation2 + $0x78] sm:$0xff]  ;;  %vm8959_vm1 = vcmask 965632  }
 0x5ab   :  { %v2341_v40 = vld [vmem:[#allocation2 + $0xa0] sm:$0xff]  ;;  %2306 = vst.msk [vmem:[#allocation2 + $0x3c] sm:$0xff] %vm7538_vm15, %v2304_v61  ;;  %v2290_v43 = vpop.permute.xlu0 %2289  ;;  %v2284_v37 = vpop.permute.xlu1 %2283  ;;  %vm8960_vm13 = vmmov %vm8959_vm1 }
 0x5ac   :  { %2559 = vst.msk [vmem:[#allocation2 + $0xa0] sm:$0xff] %vm6837_vm5, %v8896_v45  ;;  %v5832_v44 = vcombine.high %v2341_v40, %v2341_v40  ;;  %v5831_v24 = vcombine.low %v2341_v40, %v2341_v40  ;;  %v2291_v46 = vrot.slane %v2290_v43, 4  ;;  %v2285_v47 = vrot.slane %v2284_v37, 4 }
 0x5ad   :  { %2300 = vst.msk [vmem:[#allocation2 + $0x28] sm:$0xff] %vm7547_vm9, %v2298_v3 }
 0x5ae   :  { %5833 = vmatprep.subr.msk.bf16.mxu1 %vm209_vm3, %v5832_v44  ;;  %v2410_v48 = vsel %vm209_vm3, %v5831_v24, 0  ;;  %v2292_v51 = vsel %vm2079_vm11, %v2291_v46, %v2290_v43  ;;  %v2286_v53 = vsel %vm2070_vm6, %v2285_v47, %v2284_v37  ;;  %v6433_v52 = vld [vmem:[#allocation2 + $0x54] ss:$20 sps:$4 sm:$0xff]   ;;  %v2482_v44 = vld [vmem:[%s5646_s9] sm:$0xff] }
 0x5af   :  { %2422 = vmatpush1.bf16.msra.mxu1 %v2410_v48  ;;  %v2340_v31 = vld [vmem:[#allocation2 + $0x8c] sm:$0xff]  ;;  %2294 = vst.msk [vmem:[#allocation2 + $0x14] sm:$0xff] %vm7558_vm8, %v2292_v51  ;;  %v2697_v46 = vld [vmem:[%s5644_s17] sm:$0xff] }
 0x5b0   :  { %v6431_v54 = vld [vmem:[#allocation2 + $0x7c] ss:$20 sps:$4 sm:$0xff]   ;;  %2288 = vst.msk [vmem:[#allocation2] sm:$0xff] %vm7567_vm12, %v2286_v53  ;;  %v5829_v55 = vcombine.low %v2339_v49, %v2340_v31  ;;  %v2483_v24 = vld [vmem:[%s5646_s9 + $0x8] sm:$0xff]  ;;  %s6599_s9 = smov 25  }
 0x5b1   :  { %2557 = vst.msk [vmem:[#allocation2 + $0x78] sm:$0xff] %vm6837_vm5, %v8896_v45  ;;  %2558 = vst.msk [vmem:[#allocation2 + $0x8c] sm:$0xff] %vm6837_vm5, %v8896_v45  ;;  %2423 = vmatprep.subr.bf16.mxu1 %v6431_v54  ;;  %v2698_v47 = vld [vmem:[%s5644_s17 + $0x8] sm:$0xff]  ;;  %s5652_s17 = sld [smem:[%s8812_s0 + %s6599_s9]]  }
 0x5b2   :  { %2555 = vst.msk [vmem:[#allocation2 + $0x50] sm:$0xff] %vm6837_vm5, %v8896_v45  ;;  %2556 = vst.msk [vmem:[#allocation2 + $0x64] sm:$0xff] %vm6837_vm5, %v8896_v45  ;;  %v6459_v48 = vld [vmem:[%s7758_s27 + $0x4] ss:$8 sps:$4 sm:$0xff]  }
 0x5b3   :  { %2424 = vmatpush1.bf16.msra.mxu1 %v5829_v55 }
 0x5b4   :  { %v6435_v59 = vld [vmem:[#allocation2 + $0x2c] ss:$20 sps:$4 sm:$0xff]   ;;  %2425 = vmatprep.subr.bf16.mxu1 %v6433_v52 }
 0x5b5   :  { %2553 = vst.msk [vmem:[#allocation2 + $0x28] sm:$0xff] %vm6837_vm5, %v8896_v45  ;;  %2554 = vst.msk [vmem:[#allocation2 + $0x3c] sm:$0xff] %vm6837_vm5, %v8896_v45 }
 0x5b7   :  { %v6437_v5 = vld [vmem:[#allocation2 + $0x4] ss:$20 sps:$4 sm:$0xff]  }
 0x5b8   :  { %2551 = vst.msk [vmem:[#allocation2] sm:$0xff] %vm6837_vm5, %v8896_v45  ;;  %2552 = vst.msk [vmem:[#allocation2 + $0x14] sm:$0xff] %vm6837_vm5, %v8896_v45  ;;  %v2349_v30 = vpop.permute.xlu1 %2348  ;;  %v2354_v23 = vpop.permute.xlu0 %2353 }
 0x5b9   :  { %v2338_v58 = vld [vmem:[#allocation2 + $0x64] sm:$0xff]  ;;  %v2337_v50 = vld [vmem:[#allocation2 + $0x50] sm:$0xff] }
 0x5ba   :  { %v5827_v60 = vcombine.low %v2337_v50, %v2338_v58 }
 0x5bc   :  { %v2335_v63 = vld [vmem:[#allocation2 + $0x28] sm:$0xff]  ;;  %v2336_v1 = vld [vmem:[#allocation2 + $0x3c] sm:$0xff]  ;;  %2426 = vmatpush1.bf16.msra.mxu1 %v5827_v60 }
 0x5bd   :  { %2427 = vmatprep.subr.bf16.mxu1 %v6435_v59  ;;  %v5825_v11 = vcombine.low %v2335_v63, %v2336_v1 }
 0x5bf   :  { %v2333_v12 = vld [vmem:[#allocation2] sm:$0xff]  ;;  %v2334_v7 = vld [vmem:[#allocation2 + $0x14] sm:$0xff] }
 0x5c0   :  { %2428 = vmatpush1.bf16.msra.mxu1 %v5825_v11  ;;  %v5823_v9 = vcombine.low %v2333_v12, %v2334_v7 }
 0x5c1   :  { %2429 = vmatprep.subr.bf16.mxu1 %v6437_v5 }
 0x5c4   :  { %2430 = vmatpush1.bf16.msra.mxu1 %v5823_v9 }
 0x5c5   :  { %5836 = vmatprep.subr.msk.bf16.mxu1 %vm209_vm3, %v2268_v8  ;;  %vm2808_vm3 = vcmask 130048  }
 0x5c6   :  { %5860 = vmatprep.mubr.msk.bf16.mxu0 %vm2808_vm3, %v6459_v48 }
 0x5c7   :  { %5834 = vmatmul.mubr.msk.bf16.vlgmr.msra.gmra.mxu1 %vm8957_vm4, %v6439_v14  ;;  %vm8961_vm4 = vcmask 973824  }
 0x5c8   :  { %2523 = vmatpush1.bf16.msra.mxu1 %v2503_v22  ;;  %2540 = vmatprep.mubr.bf16.mxu1 %v8896_v45 }
 0x5cf   :  { %5837 = vmatmul.mubr.msk.bf16.vlgmr.msra.gmra.mxu1 %vm8958_vm10, %v6440_v26  ;;  %vm8962_vm10 = vmmov %vm8961_vm4 }
 0x687   :  { %v2449_v29 = vpop.f32.mrf.mxu1 }
 0x688   :  { %v2450_v17 = vadd.f32 %v2449_v29, %v2349_v30 }
 0x689   :  { %v2451_v19 = vpop.f32.mrf.mxu1 }
 0x68a   :  { %v2458_v33 = vmax.f32 %v2450_v17, 0.0  ;;  %v2452_v35 = vadd.f32 %v2451_v19, %v2349_v30 }
 0x68b   :  { %v2453_v36 = vpop.f32.mrf.mxu1 }
 0x68c   :  { %v2459_v34 = vmax.f32 %v2452_v35, 0.0  ;;  %v2454_v4 = vadd.f32 %v2453_v36, %v2354_v23  ;;  %v2474_v57 = vmul.f32 %v2467_v15, %v2458_v33 }
 0x68d   :  { %v2455_v20 = vpop.f32.mrf.mxu1 }
 0x68e   :  { %v2475_v42 = vmul.f32 %v2471_v62, %v2459_v34  ;;  %v2460_v32 = vmax.f32 %v2454_v4, 0.0  ;;  %v2456_v28 = vadd.f32 %v2455_v20, %v2354_v23 }
 0x690   :  { %v6035_v38 = vpack.c.bf16 %v2475_v42, %v2474_v57  ;;  %v2461_v40 = vmax.f32 %v2456_v28, 0.0  ;;  %v2476_v61 = vmul.f32 %v2467_v15, %v2460_v32 }
 0x692   :  { %2627 = vst.msk [vmem:[#allocation2 + $0xa0] sm:$0xff] %vm6837_vm5, %v6035_v38  ;;  %v2477_v3 = vmul.f32 %v2471_v62, %v2461_v40  ;;  %2653 = vrot.lane.b32.xlu1 %v6035_v38, %s6585_s24 }
 0x694   :  { %v6036_v43 = vpack.c.bf16 %v2477_v3, %v2476_v61 }
 0x696   :  { %2628 = vst.msk [vmem:[#allocation2 + $0xb4] sm:$0xff] %vm6837_vm5, %v6036_v43  ;;  %2655 = vrot.lane.b32.xlu0 %v6036_v43, %s6585_s24  ;;  %2641 = vrot.lane.b32.xlu1 %v6035_v38, %s6583_s22 }
 0x69a   :  { %2643 = vrot.lane.b32.xlu0 %v6036_v43, %s6583_s22  ;;  %2629 = vrot.lane.b32.xlu1 %v6035_v38, %s6567_s7 }
 0x69d   :  { %v7729_v37 = vld [vmem:[#allocation2 + $0xa4] ss:$20 sps:$4 sm:$0xff]  }
 0x69e   :  { %2631 = vrot.lane.b32.xlu0 %v6036_v43, %s6567_s7  ;;  %2613 = vrot.lane.b32.xlu1 %v6035_v38, %s6573_s13  ;;  %2889 = vst.msk [vmem:[#allocation2 + $0xa0] sm:$0xff] %vm6837_vm5, %v8896_v45  ;;  %2890 = vst.msk [vmem:[#allocation2 + $0xb4] sm:$0xff] %vm6837_vm5, %v8896_v45 }
 0x6a2   :  { %2615 = vrot.lane.b32.xlu0 %v6036_v43, %s6573_s13  ;;  %2601 = vrot.lane.b32.xlu1 %v6035_v38, %s6578_s25 }
 0x6a6   :  { %2603 = vrot.lane.b32.xlu0 %v6036_v43, %s6578_s25  ;;  %2589 = vrot.lane.b32.xlu1 %v6035_v38, %s6587_s30 }
 0x6aa   :  { %2591 = vrot.lane.b32.xlu0 %v6036_v43, %s6587_s30  ;;  %2577 = vrot.lane.b32.xlu1 %v6035_v38, %s6586_s26 }
 0x6ae   :  { %2579 = vrot.lane.b32.xlu0 %v6036_v43, %s6586_s26  ;;  %2665 = vrot.lane.b32.xlu1 %v6035_v38, %s6584_s23 }
 0x6b2   :  { %2667 = vrot.lane.b32.xlu0 %v6036_v43, %s6584_s23  ;;  %2486 = vperm.xlu1 %6279, %v2482_v44  }
 0x6b6   :  { %2491 = vperm.xlu0 %6278, %v2483_v24   ;;  %2701 = vperm.xlu1 %6279, %v2697_v46  }
 0x6ba   :  { %2706 = vperm.xlu0 %6278, %v2698_v47   ;;  %v2686_v47 = vld [vmem:[#allocation2 + $0xb4] sm:$0xff] }
 0x704   :  { %v2654_v51 = vpop.permute.xlu1 %2653 }
 0x705   :  { %v2657_v53 = vrot.slane %v2654_v51, 4 }
 0x707   :  { %v2659_v49 = vsel %vm8959_vm1, %v2654_v51, %v2657_v53  ;;  %vm8963_vm1 = vcmask 1039360   ;;  %v2685_v53 = vld [vmem:[#allocation2 + $0xa0] sm:$0xff] }
 0x708   :  { %2663 = vst.msk [vmem:[#allocation2 + $0x118] sm:$0xff] %vm7530_vm0, %v2659_v49  ;;  %v2656_v31 = vpop.permute.xlu0 %2655  ;;  %v2642_v54 = vpop.permute.xlu1 %2641 }
 0x709   :  { %v2658_v55 = vrot.slane %v2656_v31, 4  ;;  %v2645_v52 = vrot.slane %v2642_v54, 4 }
 0x70b   :  { %v2660_v58 = vsel %vm8960_vm13, %v2656_v31, %v2658_v55  ;;  %v2647_v59 = vsel %vm8961_vm4, %v2642_v54, %v2645_v52  ;;  %vm8964_vm13 = vmmov %vm8963_vm1  ;;  %vm8965_vm4 = vcmask 7168   ;;  %v5850_v55 = vcombine.low %v2685_v53, %v2686_v47 }
 0x70c   :  { %2664 = vst.msk [vmem:[#allocation2 + $0x12c] sm:$0xff] %vm7530_vm0, %v2660_v58  ;;  %v2644_v50 = vpop.permute.xlu0 %2643  ;;  %v2630_v60 = vpop.permute.xlu1 %2629 }
 0x70d   :  { %2651 = vst.msk [vmem:[#allocation2 + $0xf0] sm:$0xff] %vm7509_vm7, %v2647_v59  ;;  %v2646_v63 = vrot.slane %v2644_v50, 4  ;;  %v2633_v1 = vrot.slane %v2630_v60, 4 }
 0x70f   :  { %v2648_v5 = vsel %vm8962_vm10, %v2644_v50, %v2646_v63  ;;  %v2635_v11 = vsel %vm8963_vm1, %v2630_v60, %v2633_v1  ;;  %v2691_v22 = vld [vmem:[#allocation2 + $0x118] sm:$0xff]  ;;  %vm8966_vm10 = vmmov %vm8965_vm4  ;;  %vm8967_vm1 = vcmask 72704  }
 0x710   :  { %2652 = vst.msk [vmem:[#allocation2 + $0x104] sm:$0xff] %vm7509_vm7, %v2648_v5  ;;  %v2632_v12 = vpop.permute.xlu0 %2631  ;;  %v2614_v7 = vpop.permute.xlu1 %2613 }
 0x711   :  { %2639 = vst.msk [vmem:[#allocation2 + $0xc8] sm:$0xff] %vm7525_vm14, %v2635_v11  ;;  %v2634_v9 = vrot.slane %v2632_v12, 4  ;;  %v2617_v8 = vrot.slane %v2614_v7, 4 }
 0x713   :  { %v2636_v14 = vsel %vm8964_vm13, %v2632_v12, %v2634_v9  ;;  %v2619_v16 = vsel %vm8965_vm4, %v2617_v8, %v2614_v7  ;;  %v2692_v26 = vld [vmem:[#allocation2 + $0x12c] sm:$0xff]  ;;  %vm8968_vm13 = vmmov %vm8967_vm1  ;;  %vm8969_vm4 = vcmask 957440  }
 0x714   :  { %v6441_v30 = vld [vmem:[#allocation2 + $0x11c] ss:$20 sps:$4 sm:$0xff]   ;;  %2640 = vst.msk [vmem:[#allocation2 + $0xdc] sm:$0xff] %vm7525_vm14, %v2636_v14  ;;  %v2616_v29 = vpop.permute.xlu0 %2615  ;;  %v2602_v21 = vpop.permute.xlu1 %2601  ;;  %v5856_v17 = vcombine.low %v2691_v22, %v2692_v26 }
 0x715   :  { %2623 = vst.msk [vmem:[#allocation2 + $0x78] sm:$0xff] %vm7538_vm15, %v2619_v16  ;;  %v2618_v19 = vrot.slane %v2616_v29, 4  ;;  %v2605_v33 = vrot.slane %v2602_v21, 4  ;;  %2812 = vmatprep.subr.bf16.mxu0 %v6441_v30  ;;  %v2689_v62 = vld [vmem:[#allocation2 + $0xf0] sm:$0xff] }
 0x716   :  { %2895 = vst.msk [vmem:[#allocation2 + $0x118] sm:$0xff] %vm6837_vm5, %v8896_v45  ;;  %2896 = vst.msk [vmem:[#allocation2 + $0x12c] sm:$0xff] %vm6837_vm5, %v8896_v45  ;;  %2813 = vmatpush1.bf16.msra.mxu0 %v5856_v17 }
 0x717   :  { %v2620_v15 = vsel %vm8966_vm10, %v2618_v19, %v2616_v29  ;;  %v2607_v35 = vsel %vm8967_vm1, %v2605_v33, %v2602_v21  ;;  %v2690_v23 = vld [vmem:[#allocation2 + $0x104] sm:$0xff]  ;;  %vm8970_vm10 = vmmov %vm8969_vm4  ;;  %vm8972_vm1 = vcmask 965632  }
 0x718   :  { %v6443_v36 = vld [vmem:[#allocation2 + $0xf4] ss:$20 sps:$4 sm:$0xff]   ;;  %2624 = vst.msk [vmem:[#allocation2 + $0x8c] sm:$0xff] %vm7538_vm15, %v2620_v15  ;;  %v2604_v34 = vpop.permute.xlu0 %2603  ;;  %v2590_v4 = vpop.permute.xlu1 %2589  ;;  %v5854_v20 = vcombine.low %v2689_v62, %v2690_v23 }
 0x719   :  { %2611 = vst.msk [vmem:[#allocation2 + $0x50] sm:$0xff] %vm7547_vm9, %v2607_v35  ;;  %v2606_v57 = vrot.slane %v2604_v34, 4  ;;  %v2593_v42 = vrot.slane %v2590_v4, 4  ;;  %2814 = vmatprep.subr.bf16.mxu0 %v6443_v36  ;;  %v2687_v38 = vld [vmem:[#allocation2 + $0xc8] sm:$0xff]  ;;  %v2542_v23 = vpop.f32.mrf.mxu1 }
 0x71a   :  { %2893 = vst.msk [vmem:[#allocation2 + $0xf0] sm:$0xff] %vm6837_vm5, %v8896_v45  ;;  %2894 = vst.msk [vmem:[#allocation2 + $0x104] sm:$0xff] %vm6837_vm5, %v8896_v45  ;;  %2815 = vmatpush1.bf16.msra.mxu0 %v5854_v20  ;;  %v6461_v62 = vld [vmem:[%s7758_s27] ss:$8 sps:$4 sm:$0xff]   ;;  %s5650_s27 = sld [smem:[%s8812_s0 + %s6600_s19]]  }
 0x71b   :  { %v2608_v32 = vsel %vm8968_vm13, %v2606_v57, %v2604_v34  ;;  %v2595_v28 = vsel %vm2079_vm11, %v2593_v42, %v2590_v4  ;;  %v2688_v40 = vld [vmem:[#allocation2 + $0xdc] sm:$0xff]  ;;  %v2544_v34 = vpop.f32.mrf.mxu1  ;;  %vm8973_vm13 = vmmov %vm8972_vm1 }
 0x71c   :  { %v6445_v61 = vld [vmem:[#allocation2 + $0xcc] ss:$20 sps:$4 sm:$0xff]   ;;  %2612 = vst.msk [vmem:[#allocation2 + $0x64] sm:$0xff] %vm7547_vm9, %v2608_v32  ;;  %v2592_v3 = vpop.permute.xlu0 %2591  ;;  %v2578_v43 = vpop.permute.xlu1 %2577  ;;  %v5852_v44 = vcombine.low %v2687_v38, %v2688_v40 }
 0x71d   :  { %2599 = vst.msk [vmem:[#allocation2 + $0x28] sm:$0xff] %vm7558_vm8, %v2595_v28  ;;  %v2594_v24 = vrot.slane %v2592_v3, 4  ;;  %v2581_v46 = vrot.slane %v2578_v43, 4  ;;  %2816 = vmatprep.subr.bf16.mxu0 %v6445_v61  ;;  %v2546_v20 = vpop.f32.mrf.mxu1  ;;  %v2863_v38 = vld [vmem:[%s7612_s8] sm:$0x3]  ;;  %s5648_s8 = sld [smem:[%s8812_s0 + %s6593_s10]]   ;;  %s6601_s10 = smov 121  }
 0x71e   :  { %2891 = vst.msk [vmem:[#allocation2 + $0xc8] sm:$0xff] %vm6837_vm5, %v8896_v45  ;;  %2892 = vst.msk [vmem:[#allocation2 + $0xdc] sm:$0xff] %vm6837_vm5, %v8896_v45  ;;  %2817 = vmatpush1.bf16.msra.mxu0 %v5852_v44  ;;  %v2868_v47 = vrot.slane %v2863_v38, %v8949_v2 }
 0x71f   :  { %v2596_v48 = vsel %vm2079_vm11, %v2594_v24, %v2592_v3  ;;  %v2583_v51 = vsel %vm2070_vm6, %v2581_v46, %v2578_v43  ;;  %2818 = vmatprep.subr.bf16.mxu0 %v7729_v37  ;;  %v6449_v49 = vld [vmem:[#allocation2 + $0x7c] ss:$20 sps:$4 sm:$0xff]   ;;  %v2548_v3 = vpop.f32.mrf.mxu1 }
 0x720   :  { %2600 = vst.msk [vmem:[#allocation2 + $0x3c] sm:$0xff] %vm7558_vm8, %v2596_v48  ;;  %v2580_v31 = vpop.permute.xlu0 %2579  ;;  %v2666_v54 = vpop.permute.xlu1 %2665 }
 0x721   :  { %2587 = vst.msk [vmem:[#allocation2] sm:$0xff] %vm7567_vm12, %v2583_v51  ;;  %v2582_v52 = vrot.slane %v2580_v31, 4  ;;  %v2669_v37 = vrot.slane %v2666_v54, 4 }
 0x722   :  { %2887 = vst.msk [vmem:[#allocation2 + $0x78] sm:$0xff] %vm6837_vm5, %v8896_v45  ;;  %2888 = vst.msk [vmem:[#allocation2 + $0x8c] sm:$0xff] %vm6837_vm5, %v8896_v45  ;;  %2819 = vmatpush1.bf16.msra.mxu0 %v5850_v55 }
 0x723   :  { %v2584_v59 = vsel %vm2070_vm6, %v2582_v52, %v2580_v31  ;;  %v2671_v50 = vsel %vm8969_vm4, %v2666_v54, %v2669_v37  ;;  %2820 = vmatprep.subr.bf16.mxu0 %v6449_v49  ;;  %v6451_v63 = vld [vmem:[#allocation2 + $0x54] ss:$20 sps:$4 sm:$0xff]   ;;  %v2872_v49 = vrot.slane %v2863_v38, %v8950_v13  ;;  %v3027_v41 = vld [vmem:[%s5648_s8] sm:$0xff]  ;;  %vm8974_vm4 = vcmask 973824  }
 0x724   :  { %2588 = vst.msk [vmem:[#allocation2 + $0x14] sm:$0xff] %vm7567_vm12, %v2584_v59  ;;  %v2668_v1 = vpop.permute.xlu0 %2667 }
 0x725   :  { %2675 = vst.msk [vmem:[#allocation2 + $0x140] sm:$0xff] %vm7514_vm2, %v2671_v50  ;;  %v2670_v11 = vrot.slane %v2668_v1, 4 }
 0x726   :  { %2885 = vst.msk [vmem:[#allocation2 + $0x50] sm:$0xff] %vm6837_vm5, %v8896_v45  ;;  %2886 = vst.msk [vmem:[#allocation2 + $0x64] sm:$0xff] %vm6837_vm5, %v8896_v45 }
 0x727   :  { %v2672_v7 = vsel %vm8970_vm10, %v2668_v1, %v2670_v11  ;;  %v6453_v8 = vld [vmem:[#allocation2 + $0x2c] ss:$20 sps:$4 sm:$0xff]   ;;  %vm8975_vm10 = vmmov %vm8974_vm4 }
 0x728   :  { %2676 = vst.msk [vmem:[#allocation2 + $0x154] sm:$0xff] %vm7514_vm2, %v2672_v7 }
 0x729   :  { %v2684_v58 = vld [vmem:[#allocation2 + $0x8c] sm:$0xff]  ;;  %v2683_v60 = vld [vmem:[#allocation2 + $0x78] sm:$0xff]  ;;  %2883 = vst.msk [vmem:[#allocation2 + $0x28] sm:$0xff] %vm6837_vm5, %v8896_v45  ;;  %2884 = vst.msk [vmem:[#allocation2 + $0x3c] sm:$0xff] %vm6837_vm5, %v8896_v45 }
 0x72a   :  { %v5848_v5 = vcombine.low %v2683_v60, %v2684_v58 }
 0x72b   :  { %v6455_v26 = vld [vmem:[#allocation2 + $0x4] ss:$20 sps:$4 sm:$0xff]  }
 0x72c   :  { %2821 = vmatpush1.bf16.msra.mxu0 %v5848_v5  ;;  %2881 = vst.msk [vmem:[#allocation2] sm:$0xff] %vm6837_vm5, %v8896_v45  ;;  %2882 = vst.msk [vmem:[#allocation2 + $0x14] sm:$0xff] %vm6837_vm5, %v8896_v45 }
 0x72d   :  { %v2682_v12 = vld [vmem:[#allocation2 + $0x64] sm:$0xff]  ;;  %v2681_v9 = vld [vmem:[#allocation2 + $0x50] sm:$0xff]  ;;  %2822 = vmatprep.subr.bf16.mxu0 %v6451_v63  ;;  %v2487_v36 = vpop.permute.xlu1 %2486 }
 0x72e   :  { %v5846_v14 = vcombine.low %v2681_v9, %v2682_v12  ;;  %v2543_v32 = vadd.f32 %v2542_v23, %v2487_v36  ;;  %v2545_v61 = vadd.f32 %v2544_v34, %v2487_v36  ;;  %v3028_v9 = vld [vmem:[%s5648_s8 + $0x8] sm:$0xff]  ;;  %s6608_s8 = smov 28  }
 0x72f   :  { %v6457_v17 = vld [vmem:[#allocation2 + $0x144] ss:$20 sps:$4 sm:$0xff]   ;;  %s8390_s28 = sld [smem:[%s8812_s0 + %s6608_s8]]  }
 0x730   :  { %v2680_v16 = vld [vmem:[#allocation2 + $0x3c] sm:$0xff]  ;;  %2823 = vmatpush1.bf16.msra.mxu0 %v5846_v14  ;;  %v2679_v22 = vld [vmem:[#allocation2 + $0x28] sm:$0xff]  ;;  %2897 = vst.msk [vmem:[#allocation2 + $0x140] sm:$0xff] %vm6837_vm5, %v8896_v45  ;;  %2898 = vst.msk [vmem:[#allocation2 + $0x154] sm:$0xff] %vm6837_vm5, %v8896_v45 }
 0x731   :  { %2824 = vmatprep.subr.bf16.mxu0 %v6453_v8  ;;  %v5844_v30 = vcombine.low %v2679_v22, %v2680_v16  ;;  %v2492_v4 = vpop.permute.xlu0 %2491  ;;  %v2702_v57 = vpop.permute.xlu1 %2701 }
 0x732   :  { %v2547_v24 = vadd.f32 %v2546_v20, %v2492_v4  ;;  %v2549_v55 = vadd.f32 %v2548_v3, %v2492_v4 }
 0x733   :  { %v2678_v29 = vld [vmem:[#allocation2 + $0x14] sm:$0xff]  ;;  %v2677_v21 = vld [vmem:[#allocation2] sm:$0xff] }
 0x734   :  { %2825 = vmatpush1.bf16.msra.mxu0 %v5844_v30  ;;  %v5842_v19 = vcombine.low %v2677_v21, %v2678_v29 }
 0x735   :  { %2826 = vmatprep.subr.bf16.mxu0 %v6455_v26  ;;  %v2707_v46 = vpop.permute.xlu0 %2706 }
 0x737   :  { %v2694_v33 = vld [vmem:[#allocation2 + $0x154] sm:$0xff]  ;;  %v2693_v15 = vld [vmem:[#allocation2 + $0x140] sm:$0xff] }
 0x738   :  { %2827 = vmatpush1.bf16.msra.mxu0 %v5842_v19  ;;  %v5858_v35 = vcombine.low %v2693_v15, %v2694_v33 }
 0x739   :  { %2842 = vmatprep.subr.bf16.mxu0 %v6457_v17 }
 0x73c   :  { %2843 = vmatpush2.bf16.msra.mxu0 %v5858_v35 }
 0x73d   :  { %3289 = vmatprep.subr.bf16.mxu0 %v8896_v45 }
 0x73f   :  { %2845 = vmatmul.mubr.bf16.vlgmr.msra.gmra.mxu0 %v6461_v62 }
 0x7ff   :  { %v2846_v42 = vpop.f32.mrf.mxu0 }
 0x800   :  { %v2847_v28 = vadd.f32 %v2846_v42, %v2702_v57 }
 0x801   :  { %v2848_v40 = vpop.f32.mrf.mxu0 }
 0x802   :  { %v2855_v43 = vadd.f32 %v2847_v28, %v2543_v32  ;;  %v2849_v44 = vadd.f32 %v2848_v40, %v2702_v57 }
 0x803   :  { %v2850_v48 = vpop.f32.mrf.mxu0 }
 0x804   :  { %v2859_v51 = vmax.f32 %v2855_v43, 0.0  ;;  %v2856_v53 = vadd.f32 %v2849_v44, %v2545_v61  ;;  %v2851_v31 = vadd.f32 %v2850_v48, %v2707_v46 }
 0x805   :  { %v2852_v54 = vpop.f32.mrf.mxu0 }
 0x806   :  { %v2860_v52 = vmax.f32 %v2856_v53, 0.0  ;;  %v2857_v37 = vadd.f32 %v2851_v31, %v2547_v24  ;;  %v2853_v58 = vadd.f32 %v2852_v54, %v2707_v46  ;;  %v7865_v59 = vmul.f32 %v2868_v47, %v2859_v51 }
 0x808   :  { %v7867_v50 = vmul.f32 %v2872_v49, %v2860_v52  ;;  %v2861_v60 = vmax.f32 %v2857_v37, 0.0  ;;  %v2858_v63 = vadd.f32 %v2853_v58, %v2549_v55 }
 0x80a   :  { %v6037_v2 = vpack.c.bf16 %v7867_v50, %v7865_v59  ;;  %v7871_v1 = vmul.f32 %v2868_v47, %v2861_v60  ;;  %v2862_v5 = vmax.f32 %v2858_v63, 0.0 }
 0x80c   :  { %2957 = vst.msk [vmem:[#allocation2 + $0xa0] sm:$0xff] %vm6837_vm5, %v6037_v2  ;;  %v2879_v13 = vpack.c.bf16 %v7871_v1, %v7865_v59  ;;  %v7877_v11 = vmul.f32 %v2872_v49, %v2862_v5  ;;  %2983 = vrot.lane.b32.xlu1 %v6037_v2, %s6585_s24 }
 0x80e   :  { %v6038_v12 = vpack.c.bf16 %v7877_v11, %v7871_v1  ;;  %v2880_v7 = vpack.c.bf16 %v7877_v11, %v7867_v50 }
 0x810   :  { %2958 = vst.msk [vmem:[#allocation2 + $0xb4] sm:$0xff] %vm6837_vm5, %v6038_v12  ;;  %2985 = vrot.lane.b32.xlu0 %v6038_v12, %s6585_s24  ;;  %2971 = vrot.lane.b32.xlu1 %v6037_v2, %s6583_s22  ;;  %vm8971_vm5 = vcmask 1040384   ;;  %s5657_s24 = sld [smem:[%s8812_s0 + %s6607_s21]]  }
 0x814   :  { %2973 = vrot.lane.b32.xlu0 %v6038_v12, %s6583_s22  ;;  %2959 = vrot.lane.b32.xlu1 %v6037_v2, %s6567_s7  ;;  %s6603_s22 = smov 3  }
 0x818   :  { %2961 = vrot.lane.b32.xlu0 %v6038_v12, %s6567_s7  ;;  %2943 = vrot.lane.b32.xlu1 %v6037_v2, %s6573_s13 }
 0x81c   :  { %2945 = vrot.lane.b32.xlu0 %v6038_v12, %s6573_s13  ;;  %2931 = vrot.lane.b32.xlu1 %v6037_v2, %s6578_s25 }
 0x820   :  { %2933 = vrot.lane.b32.xlu0 %v6038_v12, %s6578_s25  ;;  %2919 = vrot.lane.b32.xlu1 %v6037_v2, %s6587_s30  ;;  %s6594_s25 = smov 20  }
 0x821   :  { %s7907_s29 = sld [smem:[%s8812_s0 + %s6594_s25]]  }
 0x822   :  { %s8156_s25 = sld [smem:[%s8812_s0 + %s6602_s12]]  }
 0x824   :  { %2921 = vrot.lane.b32.xlu0 %v6038_v12, %s6587_s30  ;;  %2907 = vrot.lane.b32.xlu1 %v6037_v2, %s6586_s26  ;;  %s6595_s30 = smov 5  }
 0x825   :  { %s7915_s2 = sld [smem:[%s8812_s0 + %s6595_s30]]  }
 0x827   :  { %v6465_v8 = vld [vmem:[%s7907_s29 + $0x4] ss:$8 sps:$4 sm:$0xff]  }
 0x828   :  { %2909 = vrot.lane.b32.xlu0 %v6038_v12, %s6586_s26  ;;  %2995 = vrot.lane.b32.xlu1 %v6037_v2, %s6584_s23  ;;  %s8223_s26 = sld [smem:[%s8812_s0 + %s6603_s22]]  }
 0x829   :  { %5883 = vmatprep.mubr.msk.bf16.mxu1 %vm2808_vm3, %v6465_v8 }
 0x82b   :  { %v7918_v14 = vld [vmem:[%s7915_s2 + $0x38] sm:$0xff]   ;;  %v7922_v16 = vld [vmem:[%s7915_s2 + $0x30] sm:$0xff]   ;;  %v7927_v22 = vld [vmem:[%s7915_s2 + $0x28] sm:$0xff]  }
 0x82c   :  { %2997 = vrot.lane.b32.xlu0 %v6038_v12, %s6584_s23  ;;  %3031 = vperm.xlu1 %6279, %v3027_v41   ;;  %v7932_v26 = vld [vmem:[%s7915_s2 + $0x20] sm:$0xff]   ;;  %v7937_v30 = vld [vmem:[%s7915_s2 + $0x18] sm:$0xff]   ;;  %v7942_v29 = vld [vmem:[%s7915_s2 + $0x10] sm:$0xff]   ;;  %s6596_s23 = smov 24  }
 0x82d   :  { %3290 = vmatpush1.bf16.msra.mxu0 %v7918_v14  ;;  %v7947_v21 = vld [vmem:[%s7915_s2 + $0x8] sm:$0xff]   ;;  %v7952_v17 = vld [vmem:[%s7915_s2] sm:$0xff]   ;;  %v6476_v19 = vld [vmem:[%s7915_s2 + $0x58] ss:$0 sps:$4 sm:$0x11]   ;;  %s5651_s5 = sld [smem:[%s8812_s0 + %s6596_s23]]  }
 0x82e   :  { %3291 = vmatprep.subr.bf16.mxu0 %v8896_v45  ;;  %v7959_v33 = vsel %vm8971_vm5, %v6476_v19, 0  ;;  %vm8976_vm5 = vcmask 1039360  }
 0x830   :  { %3036 = vperm.xlu0 %6278, %v3028_v9  }
 0x831   :  { %3292 = vmatpush1.bf16.msra.mxu0 %v7922_v16 }
 0x832   :  { %3293 = vmatprep.subr.bf16.mxu0 %v8896_v45 }
 0x833   :  { %v6480_v59 = vld [vmem:[%s5651_s5] sm:$0xff]  }
 0x835   :  { %3294 = vmatpush1.bf16.msra.mxu0 %v7927_v22 }
 0x836   :  { %3295 = vmatprep.subr.bf16.mxu0 %v8896_v45 }
 0x839   :  { %3296 = vmatpush1.bf16.msra.mxu0 %v7932_v26 }
 0x83a   :  { %3297 = vmatprep.subr.bf16.mxu0 %v8896_v45 }
 0x83d   :  { %3298 = vmatpush1.bf16.msra.mxu0 %v7937_v30 }
 0x83e   :  { %3299 = vmatprep.subr.bf16.mxu0 %v8896_v45 }
 0x841   :  { %3300 = vmatpush1.bf16.msra.mxu0 %v7942_v29 }
 0x842   :  { %3301 = vmatprep.subr.bf16.mxu0 %v8896_v45 }
 0x845   :  { %3302 = vmatpush1.bf16.msra.mxu0 %v7947_v21 }
 0x846   :  { %3303 = vmatprep.subr.bf16.mxu0 %v8896_v45 }
 0x849   :  { %3304 = vmatpush1.bf16.msra.mxu0 %v7952_v17 }
 0x84a   :  { %3313 = vmatprep.subr.bf16.mxu0 %v8896_v45 }
 0x84d   :  { %3314 = vmatpush2.bf16.msra.mxu0 %v7959_v33 }
 0x84e   :  { %3315 = vmatprep.subr.bf16.mxu0 %v8896_v45 }
 0x87e   :  { %v2984_v15 = vpop.permute.xlu1 %2983 }
 0x87f   :  { %v2987_v35 = vrot.slane %v2984_v15, 4 }
 0x881   :  { %v2989_v62 = vsel %vm8972_vm1, %v2984_v15, %v2987_v35  ;;  %vm8978_vm1 = vcmask 7168  }
 0x882   :  { %2993 = vst.msk [vmem:[#allocation2 + $0x118] sm:$0xff] %vm7530_vm0, %v2989_v62  ;;  %v2986_v23 = vpop.permute.xlu0 %2985  ;;  %v2972_v36 = vpop.permute.xlu1 %2971 }
 0x883   :  { %v2988_v34 = vrot.slane %v2986_v23, 4  ;;  %v2975_v4 = vrot.slane %v2972_v36, 4 }
 0x885   :  { %v2990_v20 = vsel %vm8973_vm13, %v2986_v23, %v2988_v34  ;;  %v2977_v57 = vsel %vm8974_vm4, %v2972_v36, %v2975_v4  ;;  %vm8980_vm13 = vcmask 72704   ;;  %v6462_v34 = vld [vmem:[#allocation2 + $0xa4] ss:$20 sps:$4 sm:$0xff]   ;;  %vm3499_vm4 = vcmask 470024  }
 0x886   :  { %2994 = vst.msk [vmem:[#allocation2 + $0x12c] sm:$0xff] %vm7530_vm0, %v2990_v20  ;;  %v2974_v42 = vpop.permute.xlu0 %2973  ;;  %v2960_v32 = vpop.permute.xlu1 %2959  ;;  %vm8977_vm0 = vmmov %vm8976_vm5 }
 0x887   :  { %2981 = vst.msk [vmem:[#allocation2 + $0xf0] sm:$0xff] %vm7509_vm7, %v2977_v57  ;;  %v2976_v28 = vrot.slane %v2974_v42, 4  ;;  %v2963_v38 = vrot.slane %v2960_v32, 4 }
 0x889   :  { %v2978_v40 = vsel %vm8975_vm10, %v2974_v42, %v2976_v28  ;;  %v2965_v61 = vsel %vm8976_vm5, %v2960_v32, %v2963_v38  ;;  %v3021_v24 = vld [vmem:[#allocation2 + $0x118] sm:$0xff]  ;;  %vm3490_vm10 = vcmask 470056   ;;  %vm3481_vm5 = vcmask 470064  }
 0x88a   :  { %2982 = vst.msk [vmem:[#allocation2 + $0x104] sm:$0xff] %vm7509_vm7, %v2978_v40  ;;  %v2962_v3 = vpop.permute.xlu0 %2961  ;;  %v2944_v25 = vpop.permute.xlu1 %2943  ;;  %vm8979_vm7 = vmmov %vm8978_vm1  ;;  %v6464_v40 = vld [vmem:[#allocation2 + $0xa0] ss:$20 sps:$4 sm:$0xff]  }
 0x88b   :  { %2969 = vst.msk [vmem:[#allocation2 + $0xc8] sm:$0xff] %vm7525_vm14, %v2965_v61  ;;  %v2964_v43 = vrot.slane %v2962_v3, 4  ;;  %v2947_v44 = vrot.slane %v2944_v25, 4 }
 0x88d   :  { %v3022_v46 = vld [vmem:[#allocation2 + $0x12c] sm:$0xff]  ;;  %v2966_v47 = vsel %vm8977_vm0, %v2962_v3, %v2964_v43  ;;  %v2949_v48 = vsel %vm8978_vm1, %v2947_v44, %v2944_v25  ;;  %vm3472_vm0 = vcmask 470072   ;;  %vm3539_vm1 = vcmask 412672  }
 0x88e   :  { %2970 = vst.msk [vmem:[#allocation2 + $0xdc] sm:$0xff] %vm7525_vm14, %v2966_v47  ;;  %v2946_v39 = vpop.permute.xlu0 %2945  ;;  %v2932_v51 = vpop.permute.xlu1 %2931  ;;  %v5880_v53 = vcombine.high %v3021_v24, %v3022_v46  ;;  %v5879_v49 = vcombine.low %v3021_v24, %v3022_v46  ;;  %v3019_v55 = vld [vmem:[#allocation2 + $0xf0] sm:$0xff]  ;;  %vm8981_vm14 = vmmov %vm8980_vm13 }
 0x88f   :  { %2953 = vst.msk [vmem:[#allocation2 + $0x78] sm:$0xff] %vm7538_vm15, %v2949_v48  ;;  %v2948_v31 = vrot.slane %v2946_v39, 4  ;;  %v2935_v54 = vrot.slane %v2932_v51, 4 }
 0x890   :  { %3141 = vmatprep.subr.bf16.mxu1 %v5880_v53 }
 0x891   :  { %v3020_v52 = vld [vmem:[#allocation2 + $0x104] sm:$0xff]  ;;  %v2950_v37 = vsel %vm8979_vm7, %v2948_v31, %v2946_v39  ;;  %v2937_v58 = vsel %vm8980_vm13, %v2935_v54, %v2932_v51  ;;  %3142 = vmatpush1.bf16.msra.mxu1 %v5879_v49  ;;  %vm5609_vm13 = vcmask 474112  }
 0x892   :  { %2954 = vst.msk [vmem:[#allocation2 + $0x8c] sm:$0xff] %vm7538_vm15, %v2950_v37  ;;  %v2934_v56 = vpop.permute.xlu0 %2933  ;;  %v2920_v60 = vpop.permute.xlu1 %2919  ;;  %v5878_v63 = vcombine.high %v3019_v55, %v3020_v52  ;;  %v5877_v2 = vcombine.low %v3019_v55, %v3020_v52  ;;  %v3017_v41 = vld [vmem:[#allocation2 + $0xc8] sm:$0xff]  ;;  %vm8982_vm15 = vcmask 957440  }
 0x893   :  { %2941 = vst.msk [vmem:[#allocation2 + $0x50] sm:$0xff] %vm7547_vm9, %v2937_v58  ;;  %v2936_v5 = vrot.slane %v2934_v56, 4  ;;  %v2923_v12 = vrot.slane %v2920_v60, 4 }
 0x894   :  { %3143 = vmatprep.subr.bf16.mxu1 %v5878_v63  ;;  %v6477_v63 = vld [vmem:[%s7915_s2 + $0x50] sm:$0xff]  }
 0x895   :  { %v3018_v9 = vld [vmem:[#allocation2 + $0xdc] sm:$0xff]  ;;  %v2938_v8 = vsel %vm8981_vm14, %v2936_v5, %v2934_v56  ;;  %v2925_v19 = vsel %vm2079_vm11, %v2923_v12, %v2920_v60  ;;  %3144 = vmatpush1.bf16.msra.mxu1 %v5877_v2  ;;  %3316 = vmatpush2.bf16.msra.mxu0 %v6477_v63  ;;  %v6478_v2 = vld [vmem:[%s7915_s2 + $0x48] sm:$0xff]  }
 0x896   :  { %2942 = vst.msk [vmem:[#allocation2 + $0x64] sm:$0xff] %vm7547_vm9, %v2938_v8  ;;  %v2922_v0 = vpop.permute.xlu0 %2921  ;;  %v2908_v15 = vpop.permute.xlu1 %2907  ;;  %v5876_v35 = vcombine.high %v3017_v41, %v3018_v9  ;;  %v5875_v62 = vcombine.low %v3017_v41, %v3018_v9  ;;  %v3013_v32 = vld [vmem:[#allocation2 + $0x78] sm:$0xff]  ;;  %v6467_v60 = vld [vmem:[%s7907_s29] ss:$8 sps:$4 sm:$0xff]   ;;  %3317 = vmatprep.subr.bf16.mxu0 %v8896_v45  ;;  %vm3530_vm9 = vcmask 420864   ;;  %s6609_s29 = smov 29  }
 0x897   :  { %2929 = vst.msk [vmem:[#allocation2 + $0x28] sm:$0xff] %vm7558_vm8, %v2925_v19  ;;  %v2924_v23 = vrot.slane %v2922_v0, 4  ;;  %v2911_v36 = vrot.slane %v2908_v15, 4  ;;  %v6479_v5 = vld [vmem:[%s7915_s2 + $0x40] sm:$0xff]   ;;  %s5656_s23 = sld [smem:[%s8812_s0 + %s6609_s29]]  }
 0x898   :  { %3145 = vmatprep.subr.bf16.mxu1 %v5876_v35 }
 0x899   :  { %v3014_v4 = vld [vmem:[#allocation2 + $0x8c] sm:$0xff]  ;;  %v2926_v20 = vsel %vm2079_vm11, %v2924_v23, %v2922_v0  ;;  %v2913_v57 = vsel %vm2070_vm6, %v2911_v36, %v2908_v15  ;;  %3146 = vmatpush1.bf16.msra.mxu1 %v5875_v62  ;;  %vm8983_vm11 = vmmov %vm8982_vm15  ;;  %3318 = vmatpush2.bf16.msra.mxu0 %v6478_v2  ;;  %v3333_v23 = vld [vmem:[%s5652_s17] sm:$0xff] }
 0x89a   :  { %2930 = vst.msk [vmem:[#allocation2 + $0x3c] sm:$0xff] %vm7558_vm8, %v2926_v20  ;;  %v2910_v6 = vpop.permute.xlu0 %2909  ;;  %v2996_v42 = vpop.permute.xlu1 %2995  ;;  %3147 = vmatprep.subr.bf16.mxu1 %v6462_v34  ;;  %v5872_v61 = vcombine.high %v3013_v32, %v3014_v4  ;;  %v3011_v44 = vld [vmem:[#allocation2 + $0x50] sm:$0xff]  ;;  %v5871_v46 = vcombine.low %v3013_v32, %v3014_v4  ;;  %3319 = vmatprep.subr.bf16.mxu0 %v8896_v45  ;;  %v3562_v36 = vld [vmem:[%s5650_s27] sm:$0xff]  ;;  %v3334_v34 = vld [vmem:[%s5652_s17 + $0x8] sm:$0xff]  ;;  %vm3521_vm8 = vcmask 429056  }
 0x89b   :  { %2917 = vst.msk [vmem:[#allocation2] sm:$0xff] %vm7567_vm12, %v2913_v57  ;;  %v2912_v28 = vrot.slane %v2910_v6, 4  ;;  %v2999_v38 = vrot.slane %v2996_v42, 4  ;;  %v6482_v4 = vld [vmem:[%s8156_s25 + $0x4] ss:$8 sps:$4 sm:$0xff]  }
 0x89c   :  { %v3563_v20 = vld [vmem:[%s5650_s27 + $0x8] sm:$0xff] }
 0x89d   :  { %v3012_v3 = vld [vmem:[#allocation2 + $0x64] sm:$0xff]  ;;  %v2914_v25 = vsel %vm2070_vm6, %v2912_v28, %v2910_v6  ;;  %v3001_v43 = vsel %vm8982_vm15, %v2996_v42, %v2999_v38  ;;  %3148 = vmatpush1.bf16.msra.mxu1 %v6464_v40  ;;  %3320 = vmatpush2.bf16.msra.mxu0 %v6479_v5  ;;  %vm3512_vm6 = vcmask 461824  }
 0x89e   :  { %2918 = vst.msk [vmem:[#allocation2 + $0x14] sm:$0xff] %vm7567_vm12, %v2914_v25  ;;  %v2998_v10 = vpop.permute.xlu0 %2997  ;;  %3149 = vmatprep.subr.bf16.mxu1 %v5872_v61  ;;  %v5870_v47 = vcombine.high %v3011_v44, %v3012_v3  ;;  %v3009_v51 = vld [vmem:[#allocation2 + $0x28] sm:$0xff]  ;;  %v5869_v18 = vcombine.low %v3011_v44, %v3012_v3  ;;  %3640 = vmatprep.subr.bf16.mxu0 %v8896_v45  ;;  %vm8984_vm12 = vcmask 408576  }
 0x89f   :  { %3005 = vst.msk [vmem:[#allocation2 + $0x140] sm:$0xff] %vm7514_vm2, %v3001_v43  ;;  %v3000_v24 = vrot.slane %v2998_v10, 4  ;;  %vm8985_vm7 = vmmov %vm8984_vm12 }
 0x8a1   :  { %v3010_v48 = vld [vmem:[#allocation2 + $0x3c] sm:$0xff]  ;;  %v3002_v39 = vsel %vm8983_vm11, %v2998_v10, %v3000_v24  ;;  %3150 = vmatpush1.bf16.msra.mxu1 %v5871_v46 }
 0x8a2   :  { %3006 = vst.msk [vmem:[#allocation2 + $0x154] sm:$0xff] %vm7514_vm2, %v3002_v39  ;;  %3151 = vmatprep.subr.bf16.mxu1 %v5870_v47  ;;  %v5868_v53 = vcombine.high %v3009_v51, %v3010_v48  ;;  %v3007_v31 = vld [vmem:[#allocation2] sm:$0xff]  ;;  %v5867_v54 = vcombine.low %v3009_v51, %v3010_v48  ;;  %vm3442_vm2 = vcmask 470016  }
 0x8a3   :  { %3451 = vst.msk [vmem:[#allocation2 + $0xa0] sm:$0xf] %vm3442_vm2, %v8896_v45  ;;  %3443 = vst.msk [vmem:[#allocation2] sm:$0xf] %vm3442_vm2, %v8896_v45 }
 0x8a4   :  { %3445 = vst.msk [vmem:[#allocation2 + $0x28] sm:$0xf] %vm3442_vm2, %v8896_v45  ;;  %3446 = vst.msk [vmem:[#allocation2 + $0x3c] sm:$0xf] %vm3442_vm2, %v8896_v45 }
 0x8a5   :  { %v3008_v49 = vld [vmem:[#allocation2 + $0x14] sm:$0xff]  ;;  %3152 = vmatpush1.bf16.msra.mxu1 %v5869_v18  ;;  %3447 = vst.msk [vmem:[#allocation2 + $0x50] sm:$0xf] %vm3442_vm2, %v8896_v45  ;;  %3448 = vst.msk [vmem:[#allocation2 + $0x64] sm:$0xf] %vm3442_vm2, %v8896_v45 }
 0x8a6   :  { %3153 = vmatprep.subr.bf16.mxu1 %v5868_v53  ;;  %v5866_v55 = vcombine.high %v3007_v31, %v3008_v49  ;;  %v3023_v37 = vld [vmem:[#allocation2 + $0x140] sm:$0xff]  ;;  %v5865_v58 = vcombine.low %v3007_v31, %v3008_v49  ;;  %3444 = vst.msk [vmem:[#allocation2 + $0x14] sm:$0xf] %vm3442_vm2, %v8896_v45  ;;  %3449 = vst.msk [vmem:[#allocation2 + $0x78] sm:$0xf] %vm3442_vm2, %v8896_v45 }
 0x8a7   :  { %3450 = vst.msk [vmem:[#allocation2 + $0x8c] sm:$0xf] %vm3442_vm2, %v8896_v45  ;;  %3452 = vst.msk [vmem:[#allocation2 + $0xb4] sm:$0xf] %vm3442_vm2, %v8896_v45 }
 0x8a8   :  { %3453 = vst.msk [vmem:[#allocation2 + $0xc8] sm:$0xf] %vm3442_vm2, %v8896_v45  ;;  %3454 = vst.msk [vmem:[#allocation2 + $0xdc] sm:$0xf] %vm3442_vm2, %v8896_v45 }
 0x8a9   :  { %v3024_v52 = vld [vmem:[#allocation2 + $0x154] sm:$0xff]  ;;  %3154 = vmatpush1.bf16.msra.mxu1 %v5867_v54  ;;  %3455 = vst.msk [vmem:[#allocation2 + $0xf0] sm:$0xf] %vm3442_vm2, %v8896_v45  ;;  %3456 = vst.msk [vmem:[#allocation2 + $0x104] sm:$0xf] %vm3442_vm2, %v8896_v45 }
 0x8aa   :  { %3155 = vmatprep.subr.bf16.mxu1 %v5866_v55  ;;  %v5882_v27 = vcombine.high %v3023_v37, %v3024_v52  ;;  %v5881_v56 = vcombine.low %v3023_v37, %v3024_v52  ;;  %3457 = vst.msk [vmem:[#allocation2 + $0x118] sm:$0xf] %vm3442_vm2, %v8896_v45  ;;  %3458 = vst.msk [vmem:[#allocation2 + $0x12c] sm:$0xf] %vm3442_vm2, %v8896_v45 }
 0x8ab   :  { %v3037_v11 = vpop.permute.xlu0 %3036  ;;  %3459 = vst.msk [vmem:[#allocation2 + $0x140] sm:$0xf] %vm3442_vm2, %v8896_v45  ;;  %3460 = vst.msk [vmem:[#allocation2 + $0x154] sm:$0xf] %vm3442_vm2, %v8896_v45 }
 0x8ac   :  { %4087 = vst.msk [vmem:[#allocation2 + $0x168] sm:$0xf] %vm3442_vm2, %v8896_v45  ;;  %4088 = vst.msk [vmem:[#allocation2 + $0x17c] sm:$0xf] %vm3442_vm2, %v8896_v45 }
 0x8ad   :  { %3156 = vmatpush1.bf16.msra.mxu1 %v5865_v58  ;;  %4089 = vst.msk [vmem:[#allocation2 + $0x190] sm:$0xf] %vm3442_vm2, %v8896_v45  ;;  %4090 = vst.msk [vmem:[#allocation2 + $0x1a4] sm:$0xf] %vm3442_vm2, %v8896_v45 }
 0x8ae   :  { %3171 = vmatprep.subr.bf16.mxu1 %v5882_v27  ;;  %4091 = vst.msk [vmem:[#allocation2 + $0x1b8] sm:$0xf] %vm3442_vm2, %v8896_v45  ;;  %4092 = vst.msk [vmem:[#allocation2 + $0x1cc] sm:$0xf] %vm3442_vm2, %v8896_v45 }
 0x8af   :  { %4093 = vst.msk [vmem:[#allocation2 + $0x1e0] sm:$0xf] %vm3442_vm2, %v8896_v45  ;;  %4094 = vst.msk [vmem:[#allocation2 + $0x1f4] sm:$0xf] %vm3442_vm2, %v8896_v45 }
 0x8b0   :  { %4095 = vst.msk [vmem:[#allocation2 + $0x208] sm:$0xf] %vm3442_vm2, %v8896_v45  ;;  %4096 = vst.msk [vmem:[#allocation2 + $0x21c] sm:$0xf] %vm3442_vm2, %v8896_v45 }
 0x8b1   :  { %3172 = vmatpush2.bf16.msra.mxu1 %v5881_v56  ;;  %4097 = vst.msk [vmem:[#allocation2 + $0x230] sm:$0xf] %vm3442_vm2, %v8896_v45  ;;  %4098 = vst.msk [vmem:[#allocation2 + $0x244] sm:$0xf] %vm3442_vm2, %v8896_v45 }
 0x8b2   :  { %3367 = vmatprep.subr.bf16.mxu1 %v2880_v7  ;;  %4099 = vst.msk [vmem:[#allocation2 + $0x258] sm:$0xf] %vm3442_vm2, %v8896_v45  ;;  %4100 = vst.msk [vmem:[#allocation2 + $0x26c] sm:$0xf] %vm3442_vm2, %v8896_v45 }
 0x8b3   :  { %4101 = vst.msk [vmem:[#allocation2 + $0x280] sm:$0xf] %vm3442_vm2, %v8896_v45  ;;  %4102 = vst.msk [vmem:[#allocation2 + $0x294] sm:$0xf] %vm3442_vm2, %v8896_v45 }
 0x8b4   :  { %3174 = vmatmul.mubr.bf16.vlgmr.msra.gmra.mxu1 %v6467_v60  ;;  %4103 = vst.msk [vmem:[#allocation2 + $0x2a8] sm:$0xf] %vm3442_vm2, %v8896_v45  ;;  %4104 = vst.msk [vmem:[#allocation2 + $0x2bc] sm:$0xf] %vm3442_vm2, %v8896_v45 }
 0x8b5   :  { %3368 = vmatpush1.bf16.msra.mxu1 %v2879_v13  ;;  %3385 = vmatprep.mubr.bf16.mxu1 %v8896_v45  ;;  %v3032_v13 = vpop.permute.xlu1 %3031 }
 0x8b6   :  { %3401 = vmatprep.subr.bf16.mxu1 %v8896_v45 }
 0x8bc   :  { %5898 = vmatmul.mubr.msk.bf16.vlgmr.msra.gmra.mxu1 %vm2808_vm3, %v6480_v59 }
 0x8bd   :  { %3402 = vmatpush1.bf16.msra.mxu1 %v7918_v14 }
 0x8be   :  { %3403 = vmatprep.subr.bf16.mxu1 %v8896_v45 }
 0x8c1   :  { %3404 = vmatpush1.bf16.msra.mxu1 %v7922_v16 }
 0x8c2   :  { %3405 = vmatprep.subr.bf16.mxu1 %v8896_v45 }
 0x8c5   :  { %3406 = vmatpush1.bf16.msra.mxu1 %v7927_v22 }
 0x8c6   :  { %3407 = vmatprep.subr.bf16.mxu1 %v8896_v45 }
 0x8c9   :  { %3408 = vmatpush1.bf16.msra.mxu1 %v7932_v26 }
 0x8ca   :  { %3409 = vmatprep.subr.bf16.mxu1 %v8896_v45 }
 0x8cd   :  { %3410 = vmatpush1.bf16.msra.mxu1 %v7937_v30 }
 0x8ce   :  { %3411 = vmatprep.subr.bf16.mxu1 %v8896_v45 }
 0x8d1   :  { %3412 = vmatpush1.bf16.msra.mxu1 %v7942_v29 }
 0x8d2   :  { %3413 = vmatprep.subr.bf16.mxu1 %v8896_v45 }
 0x8d5   :  { %3414 = vmatpush1.bf16.msra.mxu1 %v7947_v21 }
 0x8d6   :  { %3415 = vmatprep.subr.bf16.mxu1 %v8896_v45 }
 0x8d9   :  { %3416 = vmatpush1.bf16.msra.mxu1 %v7952_v17 }
 0x8da   :  { %3425 = vmatprep.subr.bf16.mxu1 %v8896_v45 }
 0x8dd   :  { %3426 = vmatpush2.bf16.msra.mxu1 %v7959_v33 }
 0x8de   :  { %3427 = vmatprep.subr.bf16.mxu1 %v8896_v45 }
 0x8e1   :  { %3428 = vmatpush2.bf16.msra.mxu1 %v6477_v63 }
 0x8e2   :  { %3429 = vmatprep.subr.bf16.mxu1 %v8896_v45 }
 0x8e5   :  { %3430 = vmatpush2.bf16.msra.mxu1 %v6478_v2 }
 0x8e6   :  { %3431 = vmatprep.subr.bf16.mxu1 %v8896_v45 }
 0x8e9   :  { %3432 = vmatpush2.bf16.msra.mxu1 %v6479_v5 }
 0x8ea   :  { %3910 = vmatprep.subr.bf16.mxu1 %v8896_v45 }
 0x974   :  { %v3175_v50 = vpop.f32.mrf.mxu1 }
 0x975   :  { %v3176_v22 = vadd.f32 %v3175_v50, %v3032_v13 }
 0x976   :  { %v3177_v1 = vpop.f32.mrf.mxu1 }
 0x977   :  { %v3178_v14 = vadd.f32 %v3177_v1, %v3032_v13  ;;  %v3184_v33 = vmax.f32 %v3176_v22, 0.0 }
 0x978   :  { %v3179_v7 = vpop.f32.mrf.mxu1 }
 0x979   :  { %v3180_v16 = vadd.f32 %v3179_v7, %v3037_v11  ;;  %v3185_v21 = vmax.f32 %v3178_v14, 0.0 }
 0x97a   :  { %v3181_v26 = vpop.f32.mrf.mxu1 }
 0x97b   :  { %v3182_v30 = vadd.f32 %v3181_v26, %v3037_v11  ;;  %v3186_v29 = vmax.f32 %v3180_v16, 0.0 }
 0x97c   :  { %v3387_v5 = vpop.f32.mrf.mxu1 }
 0x97d   :  { %v3187_v17 = vmax.f32 %v3182_v30, 0.0  ;;  %v3188_v41 = vpack.c.bf16 %v3186_v29, %v3184_v33 }
 0x97e   :  { %v3389_v13 = vpop.f32.mrf.mxu1 }
 0x97f   :  { %v3189_v12 = vpack.c.bf16 %v3187_v17, %v3185_v21 }
 0x980   :  { %v3391_v14 = vpop.f32.mrf.mxu1 }
 0x981   :  { %5896 = vmatprep.mubr.msk.bf16.mxu0 %vm8984_vm12, %v3189_v12 }
 0x982   :  { %3322 = vmatmul.mubr.bf16.vlgmr.msra.gmra.mxu0 %v3188_v41  ;;  %v3393_v26 = vpop.f32.mrf.mxu1  ;;  %v6484_v41 = vld [vmem:[%s8156_s25] ss:$8 sps:$4 sm:$0xff]  }
 0x983   :  { %5913 = vmatprep.mubr.msk.bf16.mxu0 %vm2808_vm3, %v6482_v4  ;;  %v8229_v4 = vld [vmem:[%s8223_s26] ss:$0 sm:$0xff] }
 0xa42   :  { %v3323_v9 = vpop.f32.mrf.mxu0 }
 0xa43   :  { %v6039_v8 = vpack.c.bf16 %v3323_v9, %v3323_v9 }
 0xa44   :  { %v3325_v19 = vpop.f32.mrf.mxu0 }
 0xa45   :  { %3504 = vst.msk [vmem:[#allocation2 + $0xa0] sm:$0xf] %vm3442_vm2, %v6039_v8  ;;  %3524 = vrot.lane.b32.xlu1 %v6039_v8, %s6597_s11 }
 0xa46   :  { %v3326_v0 = vpop.f32.mrf.mxu0 }
 0xa47   :  { %v6040_v15 = vpack.c.bf16 %v3326_v0, %v3326_v0 }
 0xa48   :  { %v3328_v35 = vpop.f32.mrf.mxu0 }
 0xa49   :  { %3505 = vst.msk [vmem:[#allocation2 + $0xb4] sm:$0xf] %vm3442_vm2, %v6040_v15  ;;  %3515 = vrot.lane.b32.xlu1 %v6039_v8, %s6598_s6  ;;  %3526 = vrot.lane.b32.xlu0 %v6040_v15, %s6597_s11 }
 0xa4d   :  { %3506 = vrot.lane.b32.xlu1 %v6039_v8, %s6567_s7  ;;  %3517 = vrot.lane.b32.xlu0 %v6040_v15, %s6598_s6 }
 0xa50   :  { %v8131_v62 = vld [vmem:[#allocation2 + $0xa0] ss:$20 sps:$4 sm:$0xff]  }
 0xa51   :  { %3493 = vrot.lane.b32.xlu1 %v6039_v8, %s6573_s13  ;;  %3508 = vrot.lane.b32.xlu0 %v6040_v15, %s6567_s7  ;;  %3703 = vst.msk [vmem:[#allocation2 + $0xa0] sm:$0xf] %vm3442_vm2, %v8896_v45  ;;  %3704 = vst.msk [vmem:[#allocation2 + $0xb4] sm:$0xf] %vm3442_vm2, %v8896_v45 }
 0xa55   :  { %3484 = vrot.lane.b32.xlu1 %v6039_v8, %s6595_s30  ;;  %3495 = vrot.lane.b32.xlu0 %v6040_v15, %s6573_s13 }
 0xa59   :  { %3475 = vrot.lane.b32.xlu1 %v6039_v8, %s6575_s18  ;;  %3486 = vrot.lane.b32.xlu0 %v6040_v15, %s6595_s30 }
 0xa5d   :  { %3466 = vrot.lane.b32.xlu1 %v6039_v8, %s6574_s14  ;;  %3477 = vrot.lane.b32.xlu0 %v6040_v15, %s6575_s18 }
 0xa61   :  { %3533 = vrot.lane.b32.xlu1 %v6039_v8, %s6601_s10  ;;  %3468 = vrot.lane.b32.xlu0 %v6040_v15, %s6574_s14 }
 0xa65   :  { %3337 = vperm.xlu1 %6279, %v3333_v23   ;;  %3535 = vrot.lane.b32.xlu0 %v6040_v15, %s6601_s10 }
 0xa69   :  { %3566 = vperm.xlu1 %6279, %v3562_v36   ;;  %3342 = vperm.xlu0 %6278, %v3334_v34  }
 0xa6d   :  { %3571 = vperm.xlu0 %6278, %v3563_v20  }
 0xab7   :  { %v3525_v57 = vpop.permute.xlu1 %3524 }
 0xab8   :  { %3531 = vst.msk [vmem:[#allocation2 + $0x118] sm:$0xf] %vm3530_vm9, %v3525_v57 }
 0xabb   :  { %v3516_v6 = vpop.permute.xlu1 %3515  ;;  %v3527_v42 = vpop.permute.xlu0 %3526 }
 0xabc   :  { %3522 = vst.msk [vmem:[#allocation2 + $0xf0] sm:$0xf] %vm3521_vm8, %v3516_v6 }
 0xabd   :  { %3532 = vst.msk [vmem:[#allocation2 + $0x12c] sm:$0xf] %vm3530_vm9, %v3527_v42 }
 0xabf   :  { %v3556_v32 = vld [vmem:[#allocation2 + $0x118] sm:$0xf]  ;;  %v3507_v28 = vpop.permute.xlu1 %3506  ;;  %v3518_v38 = vpop.permute.xlu0 %3517 }
 0xac0   :  { %3709 = vst.msk [vmem:[#allocation2 + $0x118] sm:$0xf] %vm3442_vm2, %v8896_v45 }
 0xac1   :  { %3513 = vst.msk [vmem:[#allocation2 + $0xc8] sm:$0xf] %vm3512_vm6, %v3507_v28 }
 0xac2   :  { %3523 = vst.msk [vmem:[#allocation2 + $0x104] sm:$0xf] %vm3521_vm8, %v3518_v38 }
 0xac3   :  { %v3554_v40 = vld [vmem:[#allocation2 + $0xf0] sm:$0xf]  ;;  %v3494_v3 = vpop.permute.xlu1 %3493  ;;  %v3509_v25 = vpop.permute.xlu0 %3508 }
 0xac4   :  { %v3557_v61 = vld [vmem:[#allocation2 + $0x12c] sm:$0xf]  ;;  %3707 = vst.msk [vmem:[#allocation2 + $0xf0] sm:$0xf] %vm3442_vm2, %v8896_v45 }
 0xac5   :  { %3710 = vst.msk [vmem:[#allocation2 + $0x12c] sm:$0xf] %vm3442_vm2, %v8896_v45  ;;  %v5911_v43 = vcombine.low %v3556_v32, %v3557_v61 }
 0xac6   :  { %3500 = vst.msk [vmem:[#allocation2 + $0x78] sm:$0xf] %vm3499_vm4, %v3494_v3 }
 0xac7   :  { %3514 = vst.msk [vmem:[#allocation2 + $0xdc] sm:$0xf] %vm3512_vm6, %v3509_v25  ;;  %3641 = vmatpush1.bf16.msra.mxu0 %v5911_v43  ;;  %v3485_v24 = vpop.permute.xlu1 %3484  ;;  %v3496_v46 = vpop.permute.xlu0 %3495 }
 0xac8   :  { %v3552_v10 = vld [vmem:[#allocation2 + $0xc8] sm:$0xf]  ;;  %3642 = vmatprep.subr.bf16.mxu0 %v8896_v45  ;;  %3491 = vst.msk [vmem:[#allocation2 + $0x50] sm:$0xf] %vm3490_vm10, %v3485_v24  ;;  %v3810_v24 = vld [vmem:[%s5654_s15 + $0x10] sm:$0xff] }
 0xac9   :  { %v3555_v44 = vld [vmem:[#allocation2 + $0x104] sm:$0xf]  ;;  %3705 = vst.msk [vmem:[#allocation2 + $0xc8] sm:$0xf] %vm3442_vm2, %v8896_v45 }
 0xaca   :  { %3708 = vst.msk [vmem:[#allocation2 + $0x104] sm:$0xf] %vm3442_vm2, %v8896_v45  ;;  %v5910_v47 = vcombine.low %v3554_v40, %v3555_v44 }
 0xacb   :  { %3501 = vst.msk [vmem:[#allocation2 + $0x8c] sm:$0xf] %vm3499_vm4, %v3496_v46  ;;  %v3476_v51 = vpop.permute.xlu1 %3475  ;;  %v3487_v18 = vpop.permute.xlu0 %3486  ;;  %v3808_v46 = vld [vmem:[%s5654_s15] sm:$0xff] }
 0xacc   :  { %3643 = vmatpush1.bf16.msra.mxu0 %v5910_v47  ;;  %3482 = vst.msk [vmem:[#allocation2 + $0x28] sm:$0xf] %vm3481_vm5, %v3476_v51  ;;  %v3811_v47 = vld [vmem:[%s5654_s15 + $0x18] sm:$0xff] }
 0xacd   :  { %v3548_v48 = vld [vmem:[#allocation2 + $0x78] sm:$0xf]  ;;  %3644 = vmatprep.subr.bf16.mxu0 %v8896_v45  ;;  %3492 = vst.msk [vmem:[#allocation2 + $0x64] sm:$0xf] %vm3490_vm10, %v3487_v18 }
 0xace   :  { %v3553_v39 = vld [vmem:[#allocation2 + $0xdc] sm:$0xf]  ;;  %3701 = vst.msk [vmem:[#allocation2 + $0x78] sm:$0xf] %vm3442_vm2, %v8896_v45 }
 0xacf   :  { %3706 = vst.msk [vmem:[#allocation2 + $0xdc] sm:$0xf] %vm3442_vm2, %v8896_v45  ;;  %v5909_v53 = vcombine.low %v3552_v10, %v3553_v39  ;;  %v3546_v49 = vld [vmem:[#allocation2 + $0x50] sm:$0xf]  ;;  %v3467_v54 = vpop.permute.xlu1 %3466  ;;  %v3478_v55 = vpop.permute.xlu0 %3477  ;;  %v3809_v39 = vld [vmem:[%s5654_s15 + $0x8] sm:$0xff]  ;;  %s6611_s15 = smov 32  }
 0xad0   :  { %3699 = vst.msk [vmem:[#allocation2 + $0x50] sm:$0xf] %vm3442_vm2, %v8896_v45  ;;  %s8580_s19 = sld [smem:[%s8812_s0 + %s6611_s15]]  }
 0xad1   :  { %3645 = vmatpush1.bf16.msra.mxu0 %v5909_v53  ;;  %3473 = vst.msk [vmem:[#allocation2] sm:$0xf] %vm3472_vm0, %v3467_v54 }
 0xad2   :  { %v3549_v31 = vld [vmem:[#allocation2 + $0x8c] sm:$0xf]  ;;  %3646 = vmatprep.subr.bf16.mxu0 %v8896_v45  ;;  %3483 = vst.msk [vmem:[#allocation2 + $0x3c] sm:$0xf] %vm3481_vm5, %v3478_v55 }
 0xad3   :  { %3702 = vst.msk [vmem:[#allocation2 + $0x8c] sm:$0xf] %vm3442_vm2, %v8896_v45  ;;  %v3544_v52 = vld [vmem:[#allocation2 + $0x28] sm:$0xf]  ;;  %v3534_v58 = vpop.permute.xlu1 %3533  ;;  %v3469_v27 = vpop.permute.xlu0 %3468  ;;  %v5907_v56 = vcombine.low %v3548_v48, %v3549_v31  ;;  %v6486_v48 = vld [vmem:[%s8264_s20 + $0x4] ss:$8 sps:$4 sm:$0xff]  }
 0xad4   :  { %v3547_v37 = vld [vmem:[#allocation2 + $0x64] sm:$0xf]  ;;  %3697 = vst.msk [vmem:[#allocation2 + $0x28] sm:$0xf] %vm3442_vm2, %v8896_v45 }
 0xad5   :  { %3647 = vmatpush1.bf16.msra.mxu0 %v8131_v62  ;;  %3700 = vst.msk [vmem:[#allocation2 + $0x64] sm:$0xf] %vm3442_vm2, %v8896_v45  ;;  %v5906_v59 = vcombine.low %v3546_v49, %v3547_v37 }
 0xad6   :  { %3648 = vmatprep.subr.bf16.mxu0 %v8896_v45  ;;  %3540 = vst.msk [vmem:[#allocation2 + $0x140] sm:$0xf] %vm3539_vm1, %v3534_v58 }
 0xad7   :  { %3474 = vst.msk [vmem:[#allocation2 + $0x14] sm:$0xf] %vm3472_vm0, %v3469_v27  ;;  %v3536_v2 = vpop.permute.xlu0 %3535 }
 0xad8   :  { %v3542_v60 = vld [vmem:[#allocation2] sm:$0xf]  ;;  %3541 = vst.msk [vmem:[#allocation2 + $0x154] sm:$0xf] %vm3539_vm1, %v3536_v2 }
 0xad9   :  { %3649 = vmatpush1.bf16.msra.mxu0 %v5907_v56  ;;  %v3545_v63 = vld [vmem:[#allocation2 + $0x3c] sm:$0xf]  ;;  %3695 = vst.msk [vmem:[#allocation2] sm:$0xf] %vm3442_vm2, %v8896_v45 }
 0xada   :  { %3650 = vmatprep.subr.bf16.mxu0 %v8896_v45  ;;  %3698 = vst.msk [vmem:[#allocation2 + $0x3c] sm:$0xf] %vm3442_vm2, %v8896_v45  ;;  %v5905_v11 = vcombine.low %v3544_v52, %v3545_v63 }
 0xadd   :  { %3651 = vmatpush1.bf16.msra.mxu0 %v5906_v59  ;;  %v3558_v50 = vld [vmem:[#allocation2 + $0x140] sm:$0xf] }
 0xade   :  { %v3543_v1 = vld [vmem:[#allocation2 + $0x14] sm:$0xf]  ;;  %3652 = vmatprep.subr.bf16.mxu0 %v8896_v45  ;;  %3711 = vst.msk [vmem:[#allocation2 + $0x140] sm:$0xf] %vm3442_vm2, %v8896_v45 }
 0xadf   :  { %3696 = vst.msk [vmem:[#allocation2 + $0x14] sm:$0xf] %vm3442_vm2, %v8896_v45  ;;  %v3559_v7 = vld [vmem:[#allocation2 + $0x154] sm:$0xf]  ;;  %v5904_v16 = vcombine.low %v3542_v60, %v3543_v1 }
 0xae0   :  { %3712 = vst.msk [vmem:[#allocation2 + $0x154] sm:$0xf] %vm3442_vm2, %v8896_v45  ;;  %v3338_v22 = vpop.permute.xlu1 %3337  ;;  %v5912_v29 = vcombine.low %v3558_v50, %v3559_v7 }
 0xae1   :  { %3653 = vmatpush1.bf16.msra.mxu0 %v5905_v11  ;;  %v3388_v21 = vadd.f32 %v3387_v5, %v3338_v22  ;;  %v3390_v17 = vadd.f32 %v3389_v13, %v3338_v22 }
 0xae2   :  { %3654 = vmatprep.subr.bf16.mxu0 %v8896_v45 }
 0xae4   :  { %v3343_v30 = vpop.permute.xlu0 %3342  ;;  %v3567_v19 = vpop.permute.xlu1 %3566 }
 0xae5   :  { %3655 = vmatpush1.bf16.msra.mxu0 %v5904_v16  ;;  %v3392_v33 = vadd.f32 %v3391_v14, %v3343_v30  ;;  %v3394_v12 = vadd.f32 %v3393_v26, %v3343_v30 }
 0xae6   :  { %3670 = vmatprep.subr.bf16.mxu0 %v8896_v45 }
 0xae7   :  { %v3396_v9 = vpack.c.bf16 %v3392_v33, %v3388_v21  ;;  %v3397_v8 = vpack.c.bf16 %v3394_v12, %v3390_v17 }
 0xae8   :  { %v3572_v34 = vpop.permute.xlu0 %3571 }
 0xae9   :  { %3671 = vmatpush2.bf16.msra.mxu0 %v5912_v29  ;;  %5899 = vmatprep.mubr.msk.bf16.mxu1 %vm8985_vm7, %v3397_v8 }
 0xaea   :  { %3434 = vmatmul.mubr.bf16.vlgmr.msra.gmra.mxu1 %v3396_v9 }
 0xaeb   :  { %5930 = vmatprep.mubr.msk.bf16.mxu1 %vm2808_vm3, %v6486_v48 }
 0xaec   :  { %3673 = vmatmul.mubr.bf16.vlgmr.msra.gmra.mxu0 %v6484_v41 }
 0xbaa   :  { %v3435_v35 = vpop.f32.mrf.mxu1 }
 0xbac   :  { %v3674_v0 = vpop.f32.mrf.mxu0  ;;  %v3437_v36 = vpop.f32.mrf.mxu1 }
 0xbad   :  { %v3675_v15 = vadd.f32 %v3674_v0, %v3567_v19  ;;  %v6489_v36 = vld [vmem:[%s8264_s20 + $0x14] ss:$8 sps:$4 sm:$0xff]  }
 0xbae   :  { %v3676_v62 = vpop.f32.mrf.mxu0  ;;  %v3438_v42 = vpop.f32.mrf.mxu1 }
 0xbaf   :  { %v3681_v23 = vadd.f32 %v3675_v15, %v3435_v35 }
 0xbb0   :  { %v3677_v20 = vpop.f32.mrf.mxu0  ;;  %v3440_v40 = vpop.f32.mrf.mxu1 }
 0xbb1   :  { %v3683_v57 = vmax.f32 %v3681_v23, 0.0  ;;  %v3678_v6 = vadd.f32 %v3677_v20, %v3572_v34  ;;  %v6488_v23 = vld [vmem:[%s8264_s20] ss:$8 sps:$4 sm:$0xff]   ;;  %v6491_v34 = vld [vmem:[%s8264_s20 + $0x10] ss:$8 sps:$4 sm:$0xff]   ;;  %s6612_s20 = smov 33  }
 0xbb2   :  { %v3679_v32 = vpop.f32.mrf.mxu0  ;;  %v6492_v20 = vld [vmem:[%s5657_s24] sm:$0xff]   ;;  %s5660_s12 = sld [smem:[%s8812_s0 + %s6612_s20]]  }
 0xbb3   :  { %v3692_v28 = vmul.f32 %v8229_v4, %v3683_v57  ;;  %v3682_v38 = vadd.f32 %v3678_v6, %v3438_v42  ;;  %v6493_v57 = vld [vmem:[%s5657_s24 + $0x8] sm:$0xff]   ;;  %6198 = vmatprep.mubr.msk.bf16.mxu0 %vm2808_vm3, %v6492_v20 }
 0xbb5   :  { %v6041_v61 = vpack.c.bf16 %v3692_v28, %v3692_v28  ;;  %5610 = vst.msk [vmem:[%s5664_s3] sm:$0xff] %vm5609_vm13, %v3692_v28  ;;  %v3684_v3 = vmax.f32 %v3682_v38, 0.0 }
 0xbb7   :  { %3752 = vst.msk [vmem:[#allocation2 + $0xa0] sm:$0xf] %vm3442_vm2, %v6041_v61  ;;  %v3693_v25 = vmul.f32 %v8229_v4, %v3684_v3  ;;  %3770 = vrot.lane.b32.xlu1 %v6041_v61, %s6597_s11 }
 0xbb9   :  { %v6042_v43 = vpack.c.bf16 %v3693_v25, %v3693_v25  ;;  %5611 = vst.msk [vmem:[%s5664_s3 + $0x8] sm:$0xff] %vm5609_vm13, %v3693_v25  ;;  %v3694_v10 = vpack.c.bf16 %v3693_v25, %v3692_v28  ;;  %s6610_s3 = smov 31  }
 0xbba   :  { %s5658_s9 = sld [smem:[%s8812_s0 + %s6610_s3]]  }
 0xbbb   :  { %3753 = vst.msk [vmem:[#allocation2 + $0xb4] sm:$0xf] %vm3442_vm2, %v6042_v43  ;;  %3762 = vrot.lane.b32.xlu1 %v6041_v61, %s6598_s6  ;;  %3772 = vrot.lane.b32.xlu0 %v6042_v43, %s6597_s11 }
 0xbbc   :  { %6196 = vmatprep.subr.bf16.mxu0 %v3694_v10 }
 0xbbd   :  { %6197 = vmatpush3.bf16.msra.mxu0 %v3694_v10 }
 0xbbf   :  { %3754 = vrot.lane.b32.xlu1 %v6041_v61, %s6567_s7  ;;  %3764 = vrot.lane.b32.xlu0 %v6042_v43, %s6598_s6 }
 0xbc0   :  { %6199 = vmatmul.mubr.msk.bf16.vlgmr.msra.gmra.mxu0 %vm2808_vm3, %v6493_v57 }
 0xbc2   :  { %v8242_v44 = vld [vmem:[#allocation2 + $0xa0] ss:$20 sps:$4 sm:$0xff]  }
 0xbc3   :  { %3742 = vrot.lane.b32.xlu1 %v6041_v61, %s6573_s13  ;;  %3756 = vrot.lane.b32.xlu0 %v6042_v43, %s6567_s7  ;;  %4077 = vst.msk [vmem:[#allocation2 + $0xa0] sm:$0xf] %vm3442_vm2, %v8896_v45  ;;  %4078 = vst.msk [vmem:[#allocation2 + $0xb4] sm:$0xf] %vm3442_vm2, %v8896_v45 }
 0xbc7   :  { %3734 = vrot.lane.b32.xlu1 %v6041_v61, %s6595_s30  ;;  %3744 = vrot.lane.b32.xlu0 %v6042_v43, %s6573_s13 }
 0xbcb   :  { %3726 = vrot.lane.b32.xlu1 %v6041_v61, %s6575_s18  ;;  %3736 = vrot.lane.b32.xlu0 %v6042_v43, %s6595_s30 }
 0xbcf   :  { %3718 = vrot.lane.b32.xlu1 %v6041_v61, %s6574_s14  ;;  %3728 = vrot.lane.b32.xlu0 %v6042_v43, %s6575_s18 }
 0xbd3   :  { %3778 = vrot.lane.b32.xlu1 %v6041_v61, %s6601_s10  ;;  %3720 = vrot.lane.b32.xlu0 %v6042_v43, %s6574_s14 }
 0xbd7   :  { %3824 = vperm.xlu1 %6279, %v3810_v24   ;;  %3780 = vrot.lane.b32.xlu0 %v6042_v43, %s6601_s10 }
 0xbdb   :  { %3814 = vperm.xlu1 %6279, %v3808_v46   ;;  %3829 = vperm.xlu0 %6278, %v3811_v47  }
 0xbdf   :  { %3819 = vperm.xlu0 %6278, %v3809_v39  }
 0xc29   :  { %v3771_v51 = vpop.permute.xlu1 %3770 }
 0xc2a   :  { %3776 = vst.msk [vmem:[#allocation2 + $0x118] sm:$0xf] %vm3530_vm9, %v3771_v51 }
 0xc2d   :  { %v3763_v18 = vpop.permute.xlu1 %3762  ;;  %v3773_v53 = vpop.permute.xlu0 %3772 }
 0xc2e   :  { %3768 = vst.msk [vmem:[#allocation2 + $0xf0] sm:$0xf] %vm3521_vm8, %v3763_v18 }
 0xc2f   :  { %3777 = vst.msk [vmem:[#allocation2 + $0x12c] sm:$0xf] %vm3530_vm9, %v3773_v53 }
 0xc31   :  { %v3800_v49 = vld [vmem:[#allocation2 + $0x118] sm:$0xf]  ;;  %v3755_v31 = vpop.permute.xlu1 %3754  ;;  %v3765_v54 = vpop.permute.xlu0 %3764 }
 0xc32   :  { %4083 = vst.msk [vmem:[#allocation2 + $0x118] sm:$0xf] %vm3442_vm2, %v8896_v45 }
 0xc33   :  { %3760 = vst.msk [vmem:[#allocation2 + $0xc8] sm:$0xf] %vm3512_vm6, %v3755_v31 }
 0xc34   :  { %3769 = vst.msk [vmem:[#allocation2 + $0x104] sm:$0xf] %vm3521_vm8, %v3765_v54 }
 0xc35   :  { %v3798_v55 = vld [vmem:[#allocation2 + $0xf0] sm:$0xf]  ;;  %v3743_v37 = vpop.permute.xlu1 %3742  ;;  %v3757_v58 = vpop.permute.xlu0 %3756 }
 0xc36   :  { %v3801_v52 = vld [vmem:[#allocation2 + $0x12c] sm:$0xf]  ;;  %4081 = vst.msk [vmem:[#allocation2 + $0xf0] sm:$0xf] %vm3442_vm2, %v8896_v45 }
 0xc37   :  { %4084 = vst.msk [vmem:[#allocation2 + $0x12c] sm:$0xf] %vm3442_vm2, %v8896_v45  ;;  %v5928_v27 = vcombine.low %v3800_v49, %v3801_v52 }
 0xc38   :  { %3748 = vst.msk [vmem:[#allocation2 + $0x78] sm:$0xf] %vm3499_vm4, %v3743_v37 }
 0xc39   :  { %3761 = vst.msk [vmem:[#allocation2 + $0xdc] sm:$0xf] %vm3512_vm6, %v3757_v58  ;;  %3911 = vmatpush1.bf16.msra.mxu1 %v5928_v27  ;;  %v3735_v63 = vpop.permute.xlu1 %3734  ;;  %v3745_v2 = vpop.permute.xlu0 %3744 }
 0xc3a   :  { %v3796_v56 = vld [vmem:[#allocation2 + $0xc8] sm:$0xf]  ;;  %3912 = vmatprep.subr.bf16.mxu1 %v8896_v45  ;;  %3740 = vst.msk [vmem:[#allocation2 + $0x50] sm:$0xf] %vm3490_vm10, %v3735_v63  ;;  %v6506_v63 = vld [vmem:[%s8390_s28 + $0x4] ss:$12 sps:$4 sm:$0xff]  }
 0xc3b   :  { %v3799_v60 = vld [vmem:[#allocation2 + $0x104] sm:$0xf]  ;;  %4079 = vst.msk [vmem:[#allocation2 + $0xc8] sm:$0xf] %vm3442_vm2, %v8896_v45  ;;  %4496 = vmatprep.mubr.bf16.mxu0 %v6506_v63 }
 0xc3c   :  { %4082 = vst.msk [vmem:[#allocation2 + $0x104] sm:$0xf] %vm3442_vm2, %v8896_v45  ;;  %v5927_v5 = vcombine.low %v3798_v55, %v3799_v60 }
 0xc3d   :  { %3749 = vst.msk [vmem:[#allocation2 + $0x8c] sm:$0xf] %vm3499_vm4, %v3745_v2  ;;  %v3727_v1 = vpop.permute.xlu1 %3726  ;;  %v3737_v13 = vpop.permute.xlu0 %3736  ;;  %v4297_v2 = vld [vmem:[%s5656_s23 + $0x10] sm:$0xff] }
 0xc3e   :  { %3913 = vmatpush1.bf16.msra.mxu1 %v5927_v5  ;;  %3732 = vst.msk [vmem:[#allocation2 + $0x28] sm:$0xf] %vm3481_vm5, %v3727_v1  ;;  %v6510_v5 = vld [vmem:[%s8390_s28 + $0x8] ss:$12 sps:$4 sm:$0xff]   ;;  %v3983_v1 = vld [vmem:[%s5658_s9 + $0x18] sm:$0xff] }
 0xc3f   :  { %v3792_v59 = vld [vmem:[#allocation2 + $0x78] sm:$0xf]  ;;  %3914 = vmatprep.subr.bf16.mxu1 %v8896_v45  ;;  %3741 = vst.msk [vmem:[#allocation2 + $0x64] sm:$0xf] %vm3490_vm10, %v3737_v13  ;;  %v4295_v13 = vld [vmem:[%s5656_s23] sm:$0xff] }
 0xc40   :  { %v3797_v50 = vld [vmem:[#allocation2 + $0xdc] sm:$0xf]  ;;  %4075 = vst.msk [vmem:[#allocation2 + $0x78] sm:$0xf] %vm3442_vm2, %v8896_v45 }
 0xc41   :  { %4080 = vst.msk [vmem:[#allocation2 + $0xdc] sm:$0xf] %vm3442_vm2, %v8896_v45  ;;  %v5926_v11 = vcombine.low %v3796_v56, %v3797_v50  ;;  %v3719_v14 = vpop.permute.xlu1 %3718  ;;  %v3729_v16 = vpop.permute.xlu0 %3728  ;;  %v3790_v22 = vld [vmem:[#allocation2 + $0x50] sm:$0xf] }
 0xc42   :  { %3724 = vst.msk [vmem:[#allocation2] sm:$0xf] %vm3472_vm0, %v3719_v14  ;;  %v3982_v50 = vld [vmem:[%s5658_s9 + $0x10] sm:$0xff]  ;;  %v3981_v14 = vld [vmem:[%s5658_s9 + $0x8] sm:$0xff] }
 0xc43   :  { %3915 = vmatpush1.bf16.msra.mxu1 %v5926_v11  ;;  %3733 = vst.msk [vmem:[#allocation2 + $0x3c] sm:$0xf] %vm3481_vm5, %v3729_v16  ;;  %v4296_v11 = vld [vmem:[%s5656_s23 + $0x8] sm:$0xff] }
 0xc44   :  { %v3793_v7 = vld [vmem:[#allocation2 + $0x8c] sm:$0xf]  ;;  %3916 = vmatprep.subr.bf16.mxu1 %v8896_v45  ;;  %4073 = vst.msk [vmem:[#allocation2 + $0x50] sm:$0xf] %vm3442_vm2, %v8896_v45 }
 0xc45   :  { %4076 = vst.msk [vmem:[#allocation2 + $0x8c] sm:$0xf] %vm3442_vm2, %v8896_v45  ;;  %v3788_v26 = vld [vmem:[#allocation2 + $0x28] sm:$0xf]  ;;  %v3779_v29 = vpop.permute.xlu1 %3778  ;;  %v3721_v21 = vpop.permute.xlu0 %3720  ;;  %v5924_v17 = vcombine.low %v3792_v59, %v3793_v7  ;;  %v4298_v59 = vld [vmem:[%s5656_s23 + $0x18] sm:$0xff]  ;;  %v3980_v7 = vld [vmem:[%s5658_s9] sm:$0xff] }
 0xc46   :  { %v3791_v30 = vld [vmem:[#allocation2 + $0x64] sm:$0xf]  ;;  %4071 = vst.msk [vmem:[#allocation2 + $0x28] sm:$0xf] %vm3442_vm2, %v8896_v45 }
 0xc47   :  { %3917 = vmatpush1.bf16.msra.mxu1 %v8242_v44  ;;  %4074 = vst.msk [vmem:[#allocation2 + $0x64] sm:$0xf] %vm3442_vm2, %v8896_v45  ;;  %v5923_v9 = vcombine.low %v3790_v22, %v3791_v30 }
 0xc48   :  { %3918 = vmatprep.subr.bf16.mxu1 %v8896_v45  ;;  %3784 = vst.msk [vmem:[#allocation2 + $0x140] sm:$0xf] %vm3539_vm1, %v3779_v29 }
 0xc49   :  { %3725 = vst.msk [vmem:[#allocation2 + $0x14] sm:$0xf] %vm3472_vm0, %v3721_v21  ;;  %v3786_v33 = vld [vmem:[#allocation2] sm:$0xf]  ;;  %v3781_v41 = vpop.permute.xlu0 %3780 }
 0xc4a   :  { %v3789_v12 = vld [vmem:[#allocation2 + $0x3c] sm:$0xf]  ;;  %4069 = vst.msk [vmem:[#allocation2] sm:$0xf] %vm3442_vm2, %v8896_v45 }
 0xc4b   :  { %3919 = vmatpush1.bf16.msra.mxu1 %v5924_v17  ;;  %4072 = vst.msk [vmem:[#allocation2 + $0x3c] sm:$0xf] %vm3442_vm2, %v8896_v45  ;;  %v5922_v0 = vcombine.low %v3788_v26, %v3789_v12 }
 0xc4c   :  { %3920 = vmatprep.subr.bf16.mxu1 %v8896_v45  ;;  %3785 = vst.msk [vmem:[#allocation2 + $0x154] sm:$0xf] %vm3539_vm1, %v3781_v41 }
 0xc4f   :  { %3921 = vmatpush1.bf16.msra.mxu1 %v5923_v9  ;;  %v3802_v8 = vld [vmem:[#allocation2 + $0x140] sm:$0xf] }
 0xc50   :  { %v3787_v19 = vld [vmem:[#allocation2 + $0x14] sm:$0xf]  ;;  %3922 = vmatprep.subr.bf16.mxu1 %v8896_v45  ;;  %4085 = vst.msk [vmem:[#allocation2 + $0x140] sm:$0xf] %vm3442_vm2, %v8896_v45 }
 0xc51   :  { %4070 = vst.msk [vmem:[#allocation2 + $0x14] sm:$0xf] %vm3442_vm2, %v8896_v45  ;;  %v5921_v35 = vcombine.low %v3786_v33, %v3787_v19 }
 0xc52   :  { %v3825_v6 = vpop.permute.xlu1 %3824 }
 0xc53   :  { %3923 = vmatpush1.bf16.msra.mxu1 %v5922_v0  ;;  %v3803_v15 = vld [vmem:[#allocation2 + $0x154] sm:$0xf] }
 0xc54   :  { %3924 = vmatprep.subr.bf16.mxu1 %v8896_v45  ;;  %4086 = vst.msk [vmem:[#allocation2 + $0x154] sm:$0xf] %vm3442_vm2, %v8896_v45  ;;  %v5929_v62 = vcombine.low %v3802_v8, %v3803_v15 }
 0xc56   :  { %v3830_v42 = vpop.permute.xlu0 %3829  ;;  %v3815_v32 = vpop.permute.xlu1 %3814 }
 0xc57   :  { %3925 = vmatpush1.bf16.msra.mxu1 %v5921_v35 }
 0xc58   :  { %3940 = vmatprep.subr.bf16.mxu1 %v8896_v45 }
 0xc5a   :  { %v3820_v3 = vpop.permute.xlu0 %3819 }
 0xc5b   :  { %3941 = vmatpush2.bf16.msra.mxu1 %v5929_v62 }
 0xc5e   :  { %3943 = vmatmul.mubr.bf16.vlgmr.msra.gmra.mxu1 %v6488_v23 }
 0xc5f   :  { %5931 = vmatprep.mubr.msk.bf16.mxu1 %vm2808_vm3, %v6489_v36  ;;  %vm4457_vm3 = vcmask 261120  }
 0xc66   :  { %3951 = vmatmul.mubr.bf16.gmra.mxu1 %v6491_v34 }
 0xc67   :  { %6206 = vmatprep.mubr.msk.bf16.mxu1 %vm4457_vm3, %v6510_v5 }
 0xd1e   :  { %v3944_v28 = vpop.f32.mrf.mxu1 }
 0xd1f   :  { %v3945_v38 = vadd.f32 %v3944_v28, %v3815_v32 }
 0xd20   :  { %v3946_v40 = vpop.f32.mrf.mxu1 }
 0xd21   :  { %v3959_v61 = vmax.f32 %v3945_v38, 0.0 }
 0xd22   :  { %v3947_v25 = vpop.f32.mrf.mxu1 }
 0xd23   :  { %v3970_v43 = vmul.f32 %v8229_v4, %v3959_v61  ;;  %v3948_v10 = vadd.f32 %v3947_v25, %v3820_v3 }
 0xd24   :  { %v3949_v44 = vpop.f32.mrf.mxu1 }
 0xd25   :  { %v8336_v24 = vpack.c.bf16 %v3970_v43, %v3970_v43  ;;  %v3960_v46 = vmax.f32 %v3948_v10, 0.0 }
 0xd26   :  { %v3952_v47 = vpop.f32.mrf.mxu1 }
 0xd27   :  { %4183 = vst.msk [vmem:[#allocation2 + $0x140] sm:$0xf] %vm3442_vm2, %v8336_v24  ;;  %v3971_v48 = vmul.f32 %v8229_v4, %v3960_v46  ;;  %v3953_v39 = vadd.f32 %v3952_v47, %v3825_v6  ;;  %4219 = vrot.lane.b32.xlu1 %v8336_v24, %s6597_s11 }
 0xd28   :  { %v3954_v51 = vpop.f32.mrf.mxu1 }
 0xd29   :  { %v6044_v18 = vpack.c.bf16 %v3971_v48, %v3971_v48  ;;  %v3961_v53 = vmax.f32 %v3953_v39, 0.0 }
 0xd2a   :  { %v3955_v49 = vpop.f32.mrf.mxu1 }
 0xd2b   :  { %4184 = vst.msk [vmem:[#allocation2 + $0x154] sm:$0xf] %vm3442_vm2, %v6044_v18  ;;  %v3972_v31 = vmul.f32 %v8229_v4, %v3961_v53  ;;  %v3956_v54 = vadd.f32 %v3955_v49, %v3830_v42  ;;  %4221 = vrot.lane.b32.xlu0 %v6044_v18, %s6597_s11  ;;  %4163 = vrot.lane.b32.xlu1 %v8336_v24, %s6573_s13 }
 0xd2c   :  { %v3957_v55 = vpop.f32.mrf.mxu1 }
 0xd2d   :  { %v6045_v52 = vpack.c.bf16 %v3972_v31, %v3972_v31  ;;  %v3962_v37 = vmax.f32 %v3956_v54, 0.0 }
 0xd2f   :  { %4185 = vst.msk [vmem:[#allocation2 + $0x168] sm:$0xf] %vm3442_vm2, %v6045_v52  ;;  %v3973_v58 = vmul.f32 %v8229_v4, %v3962_v37  ;;  %4165 = vrot.lane.b32.xlu0 %v6044_v18, %s6573_s13  ;;  %4203 = vrot.lane.b32.xlu1 %v8336_v24, %s6598_s6 }
 0xd31   :  { %v6046_v27 = vpack.c.bf16 %v3973_v58, %v3973_v58 }
 0xd32   :  { %v8353_v56 = vld [vmem:[#allocation2 + $0x140] ss:$20 sps:$4 sm:$0xff]  }
 0xd33   :  { %4186 = vst.msk [vmem:[#allocation2 + $0x17c] sm:$0xf] %vm3442_vm2, %v6046_v27  ;;  %4205 = vrot.lane.b32.xlu0 %v6044_v18, %s6598_s6  ;;  %4147 = vrot.lane.b32.xlu1 %v8336_v24, %s6595_s30  ;;  %4599 = vst.msk [vmem:[#allocation2 + $0x140] sm:$0xf] %vm3442_vm2, %v8896_v45 }
 0xd34   :  { %4600 = vst.msk [vmem:[#allocation2 + $0x154] sm:$0xf] %vm3442_vm2, %v8896_v45 }
 0xd37   :  { %4149 = vrot.lane.b32.xlu0 %v6044_v18, %s6595_s30  ;;  %4187 = vrot.lane.b32.xlu1 %v8336_v24, %s6567_s7 }
 0xd3a   :  { %v8366_v60 = vld [vmem:[#allocation2 + $0x168] ss:$20 sps:$4 sm:$0xff]  }
 0xd3b   :  { %4189 = vrot.lane.b32.xlu0 %v6044_v18, %s6567_s7  ;;  %4223 = vrot.lane.b32.xlu1 %v6045_v52, %s6597_s11  ;;  %4601 = vst.msk [vmem:[#allocation2 + $0x168] sm:$0xf] %vm3442_vm2, %v8896_v45  ;;  %4602 = vst.msk [vmem:[#allocation2 + $0x17c] sm:$0xf] %vm3442_vm2, %v8896_v45 }
 0xd3f   :  { %4225 = vrot.lane.b32.xlu0 %v6046_v27, %s6597_s11  ;;  %4167 = vrot.lane.b32.xlu1 %v6045_v52, %s6573_s13 }
 0xd43   :  { %4169 = vrot.lane.b32.xlu0 %v6046_v27, %s6573_s13  ;;  %4207 = vrot.lane.b32.xlu1 %v6045_v52, %s6598_s6 }
 0xd47   :  { %4209 = vrot.lane.b32.xlu0 %v6046_v27, %s6598_s6  ;;  %4151 = vrot.lane.b32.xlu1 %v6045_v52, %s6595_s30 }
 0xd4b   :  { %4153 = vrot.lane.b32.xlu0 %v6046_v27, %s6595_s30  ;;  %4191 = vrot.lane.b32.xlu1 %v6045_v52, %s6567_s7 }
 0xd4f   :  { %4193 = vrot.lane.b32.xlu0 %v6046_v27, %s6567_s7  ;;  %4135 = vrot.lane.b32.xlu1 %v6045_v52, %s6575_s18 }
 0xd53   :  { %4137 = vrot.lane.b32.xlu0 %v6046_v27, %s6575_s18  ;;  %4131 = vrot.lane.b32.xlu1 %v8336_v24, %s6575_s18 }
 0xd57   :  { %4133 = vrot.lane.b32.xlu0 %v6044_v18, %s6575_s18  ;;  %4119 = vrot.lane.b32.xlu1 %v6045_v52, %s6574_s14 }
 0xd5b   :  { %4121 = vrot.lane.b32.xlu0 %v6046_v27, %s6574_s14  ;;  %4115 = vrot.lane.b32.xlu1 %v8336_v24, %s6574_s14 }
 0xd5f   :  { %4117 = vrot.lane.b32.xlu0 %v6044_v18, %s6574_s14  ;;  %4239 = vrot.lane.b32.xlu1 %v6045_v52, %s6601_s10 }
 0xd63   :  { %4241 = vrot.lane.b32.xlu0 %v6046_v27, %s6601_s10  ;;  %4235 = vrot.lane.b32.xlu1 %v8336_v24, %s6601_s10 }
 0xd67   :  { %4237 = vrot.lane.b32.xlu0 %v6044_v18, %s6601_s10  ;;  %4311 = vperm.xlu1 %6279, %v4297_v2  }
 0xd6b   :  { %4316 = vperm.xlu0 %6278, %v4298_v59   ;;  %3996 = vperm.xlu1 %6279, %v3982_v50  }
 0xd6f   :  { %4001 = vperm.xlu0 %6278, %v3983_v1   ;;  %4301 = vperm.xlu1 %6279, %v4295_v13  }
 0xd73   :  { %4306 = vperm.xlu0 %6278, %v4296_v11   ;;  %3986 = vperm.xlu1 %6279, %v3980_v7   ;;  %v6504_v7 = vld [vmem:[%s8390_s28] ss:$12 sps:$4 sm:$0xff]  }
 0xd77   :  { %3991 = vperm.xlu0 %6278, %v3981_v14   ;;  %v6507_v14 = vld [vmem:[%s8390_s28 + $0x1c] ss:$12 sps:$4 sm:$0xff]  }
 0xd99   :  { %v4220_v16 = vpop.permute.xlu1 %4219 }
 0xd9a   :  { %4231 = vst.msk [vmem:[#allocation2 + $0x230] sm:$0xf] %vm3530_vm9, %v4220_v16 }
 0xd9d   :  { %v4222_v22 = vpop.permute.xlu0 %4221  ;;  %v4164_v26 = vpop.permute.xlu1 %4163 }
 0xd9e   :  { %4232 = vst.msk [vmem:[#allocation2 + $0x244] sm:$0xf] %vm3530_vm9, %v4222_v22 }
 0xd9f   :  { %4175 = vst.msk [vmem:[#allocation2 + $0xf0] sm:$0xf] %vm3499_vm4, %v4164_v26 }
 0xda1   :  { %v8415_v30 = vld [vmem:[#allocation2 + $0x230] sm:$0xf]  ;;  %v4166_v29 = vpop.permute.xlu0 %4165  ;;  %v4204_v21 = vpop.permute.xlu1 %4203 }
 0xda2   :  { %4611 = vst.msk [vmem:[#allocation2 + $0x230] sm:$0xf] %vm3442_vm2, %v8896_v45 }
 0xda3   :  { %4176 = vst.msk [vmem:[#allocation2 + $0x104] sm:$0xf] %vm3499_vm4, %v4166_v29  ;;  %v6509_v29 = vld [vmem:[%s8390_s28 + $0x18] ss:$12 sps:$4 sm:$0xff]  }
 0xda4   :  { %4215 = vst.msk [vmem:[#allocation2 + $0x1e0] sm:$0xf] %vm3521_vm8, %v4204_v21  ;;  %v6511_v21 = vld [vmem:[%s8390_s28 + $0x20] ss:$12 sps:$4 sm:$0xff]  }
 0xda5   :  { %v4280_v17 = vld [vmem:[#allocation2 + $0x244] sm:$0xf]  ;;  %v4206_v33 = vpop.permute.xlu0 %4205  ;;  %v4148_v12 = vpop.permute.xlu1 %4147 }
 0xda6   :  { %4612 = vst.msk [vmem:[#allocation2 + $0x244] sm:$0xf] %vm3442_vm2, %v8896_v45  ;;  %v5961_v10 = vcombine.low %v8415_v30, %v4280_v17  ;;  %v6200_v17 = vpop.f32.mrf.mxu0 }
 0xda7   :  { %4216 = vst.msk [vmem:[#allocation2 + $0x1f4] sm:$0xf] %vm3521_vm8, %v4206_v33 }
 0xda8   :  { %4159 = vst.msk [vmem:[#allocation2 + $0xa0] sm:$0xf] %vm3490_vm10, %v4148_v12  ;;  %v4054_v12 = vpop.f32.mrf.mxu0 }
 0xda9   :  { %v4150_v9 = vpop.permute.xlu0 %4149  ;;  %v4188_v8 = vpop.permute.xlu1 %4187 }
 0xdaa   :  { %v6495_v19 = vld [vmem:[#allocation2 + $0xf0] ss:$20 sps:$4 sm:$0xff]   ;;  %4160 = vst.msk [vmem:[#allocation2 + $0xb4] sm:$0xf] %vm3490_vm10, %v4150_v9  ;;  %v6201_v9 = vpop.f32.mrf.mxu0 }
 0xdab   :  { %v8425_v41 = vld [vmem:[#allocation2 + $0x1e0] sm:$0xf]  ;;  %4199 = vst.msk [vmem:[#allocation2 + $0x190] sm:$0xf] %vm3512_vm6, %v4188_v8 }
 0xdac   :  { %4607 = vst.msk [vmem:[#allocation2 + $0x1e0] sm:$0xf] %vm3442_vm2, %v8896_v45  ;;  %4595 = vst.msk [vmem:[#allocation2 + $0xf0] sm:$0xf] %vm3442_vm2, %v8896_v45 }
 0xdad   :  { %4596 = vst.msk [vmem:[#allocation2 + $0x104] sm:$0xf] %vm3442_vm2, %v8896_v45  ;;  %v4190_v15 = vpop.permute.xlu0 %4189  ;;  %v4224_v35 = vpop.permute.xlu1 %4223 }
 0xdae   :  { %v8435_v0 = vld [vmem:[#allocation2 + $0x1f4] sm:$0xf]  ;;  %4200 = vst.msk [vmem:[#allocation2 + $0x1a4] sm:$0xf] %vm3512_vm6, %v4190_v15 }
 0xdaf   :  { %4608 = vst.msk [vmem:[#allocation2 + $0x1f4] sm:$0xf] %vm3442_vm2, %v8896_v45  ;;  %v5959_v53 = vcombine.low %v8425_v41, %v8435_v0 }
 0xdb0   :  { %4233 = vst.msk [vmem:[#allocation2 + $0x258] sm:$0xf] %vm3530_vm9, %v4224_v35 }
 0xdb1   :  { %v4226_v23 = vpop.permute.xlu0 %4225  ;;  %v4168_v36 = vpop.permute.xlu1 %4167  ;;  %v6497_v34 = vld [vmem:[#allocation2 + $0xa0] ss:$20 sps:$4 sm:$0xff]  }
 0xdb2   :  { %v8441_v62 = vld [vmem:[#allocation2 + $0x190] sm:$0xf]  ;;  %4234 = vst.msk [vmem:[#allocation2 + $0x26c] sm:$0xf] %vm3530_vm9, %v4226_v23 }
 0xdb3   :  { %4603 = vst.msk [vmem:[#allocation2 + $0x190] sm:$0xf] %vm3442_vm2, %v8896_v45  ;;  %4591 = vst.msk [vmem:[#allocation2 + $0xa0] sm:$0xf] %vm3442_vm2, %v8896_v45 }
 0xdb4   :  { %4177 = vst.msk [vmem:[#allocation2 + $0x118] sm:$0xf] %vm3499_vm4, %v4168_v36 }
 0xdb5   :  { %4592 = vst.msk [vmem:[#allocation2 + $0xb4] sm:$0xf] %vm3442_vm2, %v8896_v45  ;;  %v8451_v20 = vld [vmem:[#allocation2 + $0x1a4] sm:$0xf]  ;;  %v4170_v6 = vpop.permute.xlu0 %4169  ;;  %v4208_v42 = vpop.permute.xlu1 %4207 }
 0xdb6   :  { %4604 = vst.msk [vmem:[#allocation2 + $0x1a4] sm:$0xf] %vm3442_vm2, %v8896_v45  ;;  %v5957_v27 = vcombine.low %v8441_v62, %v8451_v20 }
 0xdb7   :  { %v4281_v57 = vld [vmem:[#allocation2 + $0x258] sm:$0xf]  ;;  %4178 = vst.msk [vmem:[#allocation2 + $0x12c] sm:$0xf] %vm3499_vm4, %v4170_v6 }
 0xdb8   :  { %4613 = vst.msk [vmem:[#allocation2 + $0x258] sm:$0xf] %vm3442_vm2, %v8896_v45 }
 0xdb9   :  { %4217 = vst.msk [vmem:[#allocation2 + $0x208] sm:$0xf] %vm3521_vm8, %v4208_v42  ;;  %v4282_v32 = vld [vmem:[#allocation2 + $0x26c] sm:$0xf]  ;;  %v4210_v28 = vpop.permute.xlu0 %4209  ;;  %v4152_v38 = vpop.permute.xlu1 %4151 }
 0xdba   :  { %4614 = vst.msk [vmem:[#allocation2 + $0x26c] sm:$0xf] %vm3442_vm2, %v8896_v45  ;;  %v5962_v40 = vcombine.low %v4281_v57, %v4282_v32 }
 0xdbb   :  { %4218 = vst.msk [vmem:[#allocation2 + $0x21c] sm:$0xf] %vm3521_vm8, %v4210_v28 }
 0xdbc   :  { %4161 = vst.msk [vmem:[#allocation2 + $0xc8] sm:$0xf] %vm3490_vm10, %v4152_v38  ;;  %6070 = vmatprep.subr.bf16.mxu0 %v5962_v40 }
 0xdbd   :  { %v4154_v3 = vpop.permute.xlu0 %4153  ;;  %v4192_v25 = vpop.permute.xlu1 %4191 }
 0xdbe   :  { %v6494_v43 = vld [vmem:[#allocation2 + $0x118] ss:$20 sps:$4 sm:$0xff]   ;;  %4162 = vst.msk [vmem:[#allocation2 + $0xdc] sm:$0xf] %vm3490_vm10, %v4154_v3 }
 0xdbf   :  { %4201 = vst.msk [vmem:[#allocation2 + $0x1b8] sm:$0xf] %vm3512_vm6, %v4192_v25  ;;  %6071 = vmatpush3.bf16.msra.mxu0 %v6494_v43 }
 0xdc0   :  { %v4277_v61 = vld [vmem:[#allocation2 + $0x208] sm:$0xf]  ;;  %4597 = vst.msk [vmem:[#allocation2 + $0x118] sm:$0xf] %vm3442_vm2, %v8896_v45  ;;  %4598 = vst.msk [vmem:[#allocation2 + $0x12c] sm:$0xf] %vm3442_vm2, %v8896_v45  ;;  %6072 = vmatprep.subr.bf16.mxu0 %v5961_v10 }
 0xdc1   :  { %4609 = vst.msk [vmem:[#allocation2 + $0x208] sm:$0xf] %vm3442_vm2, %v8896_v45  ;;  %v4194_v24 = vpop.permute.xlu0 %4193  ;;  %v4136_v46 = vpop.permute.xlu1 %4135 }
 0xdc2   :  { %v4278_v44 = vld [vmem:[#allocation2 + $0x21c] sm:$0xf]  ;;  %4202 = vst.msk [vmem:[#allocation2 + $0x1cc] sm:$0xf] %vm3512_vm6, %v4194_v24 }
 0xdc3   :  { %4610 = vst.msk [vmem:[#allocation2 + $0x21c] sm:$0xf] %vm3442_vm2, %v8896_v45  ;;  %v5960_v47 = vcombine.low %v4277_v61, %v4278_v44  ;;  %6073 = vmatpush3.bf16.msra.mxu0 %v6495_v19  ;;  %v4057_v19 = vpop.f32.mrf.mxu0 }
 0xdc4   :  { %4145 = vst.msk [vmem:[#allocation2 + $0x78] sm:$0xf] %vm3481_vm5, %v4136_v46 }
 0xdc5   :  { %6074 = vmatprep.subr.bf16.mxu0 %v5960_v47  ;;  %v4138_v39 = vpop.permute.xlu0 %4137  ;;  %v4132_v51 = vpop.permute.xlu1 %4131  ;;  %v6496_v18 = vld [vmem:[#allocation2 + $0xc8] ss:$20 sps:$4 sm:$0xff]  }
 0xdc6   :  { %v4273_v48 = vld [vmem:[#allocation2 + $0x1b8] sm:$0xf]  ;;  %4146 = vst.msk [vmem:[#allocation2 + $0x8c] sm:$0xf] %vm3481_vm5, %v4138_v39  ;;  %4143 = vst.msk [vmem:[#allocation2 + $0x50] sm:$0xf] %vm3481_vm5, %v4132_v51 }
 0xdc7   :  { %4605 = vst.msk [vmem:[#allocation2 + $0x1b8] sm:$0xf] %vm3442_vm2, %v8896_v45  ;;  %4593 = vst.msk [vmem:[#allocation2 + $0xc8] sm:$0xf] %vm3442_vm2, %v8896_v45  ;;  %6075 = vmatpush3.bf16.msra.mxu0 %v6496_v18 }
 0xdc8   :  { %4594 = vst.msk [vmem:[#allocation2 + $0xdc] sm:$0xf] %vm3442_vm2, %v8896_v45  ;;  %6076 = vmatprep.subr.bf16.mxu0 %v5959_v53 }
 0xdc9   :  { %v4274_v49 = vld [vmem:[#allocation2 + $0x1cc] sm:$0xf]  ;;  %v4134_v31 = vpop.permute.xlu0 %4133  ;;  %v4120_v54 = vpop.permute.xlu1 %4119 }
 0xdca   :  { %4606 = vst.msk [vmem:[#allocation2 + $0x1cc] sm:$0xf] %vm3442_vm2, %v8896_v45  ;;  %v5958_v55 = vcombine.low %v4273_v48, %v4274_v49 }
 0xdcb   :  { %4144 = vst.msk [vmem:[#allocation2 + $0x64] sm:$0xf] %vm3481_vm5, %v4134_v31  ;;  %6077 = vmatpush3.bf16.msra.mxu0 %v6497_v34 }
 0xdcc   :  { %4129 = vst.msk [vmem:[#allocation2 + $0x28] sm:$0xf] %vm3472_vm0, %v4120_v54  ;;  %6078 = vmatprep.subr.bf16.mxu0 %v5958_v55 }
 0xdcd   :  { %v4122_v52 = vpop.permute.xlu0 %4121  ;;  %v4116_v37 = vpop.permute.xlu1 %4115  ;;  %v6498_v58 = vld [vmem:[#allocation2 + $0x78] ss:$20 sps:$4 sm:$0xff]  }
 0xdce   :  { %4130 = vst.msk [vmem:[#allocation2 + $0x3c] sm:$0xf] %vm3472_vm0, %v4122_v52  ;;  %4127 = vst.msk [vmem:[#allocation2] sm:$0xf] %vm3472_vm0, %v4116_v37 }
 0xdcf   :  { %4589 = vst.msk [vmem:[#allocation2 + $0x78] sm:$0xf] %vm3442_vm2, %v8896_v45  ;;  %4590 = vst.msk [vmem:[#allocation2 + $0x8c] sm:$0xf] %vm3442_vm2, %v8896_v45  ;;  %6079 = vmatpush3.bf16.msra.mxu0 %v6498_v58 }
 0xdd0   :  { %6080 = vmatprep.subr.bf16.mxu0 %v5957_v27 }
 0xdd1   :  { %v4118_v63 = vpop.permute.xlu0 %4117  ;;  %v4240_v2 = vpop.permute.xlu1 %4239 }
 0xdd2   :  { %v6499_v5 = vld [vmem:[#allocation2 + $0x50] ss:$20 sps:$4 sm:$0xff]   ;;  %4128 = vst.msk [vmem:[#allocation2 + $0x14] sm:$0xf] %vm3472_vm0, %v4118_v63 }
 0xdd3   :  { %4249 = vst.msk [vmem:[#allocation2 + $0x2a8] sm:$0xf] %vm3539_vm1, %v4240_v2  ;;  %6081 = vmatpush3.bf16.msra.mxu0 %v6499_v5 }
 0xdd4   :  { %4587 = vst.msk [vmem:[#allocation2 + $0x50] sm:$0xf] %vm3442_vm2, %v8896_v45  ;;  %4588 = vst.msk [vmem:[#allocation2 + $0x64] sm:$0xf] %vm3442_vm2, %v8896_v45  ;;  %6082 = vmatprep.subr.bf16.mxu0 %v8366_v60 }
 0xdd5   :  { %v4242_v59 = vpop.permute.xlu0 %4241  ;;  %v4236_v50 = vpop.permute.xlu1 %4235  ;;  %v6501_v1 = vld [vmem:[#allocation2 + $0x28] ss:$20 sps:$4 sm:$0xff]  }
 0xdd6   :  { %4250 = vst.msk [vmem:[#allocation2 + $0x2bc] sm:$0xf] %vm3539_vm1, %v4242_v59  ;;  %4247 = vst.msk [vmem:[#allocation2 + $0x280] sm:$0xf] %vm3539_vm1, %v4236_v50 }
 0xdd7   :  { %4585 = vst.msk [vmem:[#allocation2 + $0x28] sm:$0xf] %vm3442_vm2, %v8896_v45  ;;  %4586 = vst.msk [vmem:[#allocation2 + $0x3c] sm:$0xf] %vm3442_vm2, %v8896_v45  ;;  %6083 = vmatpush3.bf16.msra.mxu0 %v6501_v1 }
 0xdd8   :  { %6084 = vmatprep.subr.bf16.mxu0 %v8353_v56 }
 0xdd9   :  { %v4238_v60 = vpop.permute.xlu0 %4237  ;;  %v6503_v11 = vld [vmem:[#allocation2] ss:$20 sps:$4 sm:$0xff]  }
 0xdda   :  { %v4285_v13 = vld [vmem:[#allocation2 + $0x2a8] sm:$0xf]  ;;  %4248 = vst.msk [vmem:[#allocation2 + $0x294] sm:$0xf] %vm3539_vm1, %v4238_v60 }
 0xddb   :  { %4617 = vst.msk [vmem:[#allocation2 + $0x2a8] sm:$0xf] %vm3442_vm2, %v8896_v45  ;;  %4583 = vst.msk [vmem:[#allocation2] sm:$0xf] %vm3442_vm2, %v8896_v45  ;;  %6085 = vmatpush3.bf16.msra.mxu0 %v6503_v11 }
 0xddc   :  { %4584 = vst.msk [vmem:[#allocation2 + $0x14] sm:$0xf] %vm3442_vm2, %v8896_v45 }
 0xddd   :  { %v4286_v56 = vld [vmem:[#allocation2 + $0x2bc] sm:$0xf]  ;;  %v4283_v16 = vld [vmem:[#allocation2 + $0x280] sm:$0xf] }
 0xdde   :  { %4618 = vst.msk [vmem:[#allocation2 + $0x2bc] sm:$0xf] %vm3442_vm2, %v8896_v45  ;;  %4615 = vst.msk [vmem:[#allocation2 + $0x280] sm:$0xf] %vm3442_vm2, %v8896_v45  ;;  %4497 = vmatmul.mubr.bf16.vlgmr.msra.gmra.mxu0 %v6504_v7  ;;  %v5964_v22 = vcombine.low %v4285_v13, %v4286_v56 }
 0xddf   :  { %4504 = vmatprep.mubr.bf16.mxu0 %v6507_v14 }
 0xde0   :  { %6202 = vmatprep.subr.bf16.mxu1 %v5964_v22 }
 0xde1   :  { %v4284_v26 = vld [vmem:[#allocation2 + $0x294] sm:$0xf]  ;;  %6203 = vmatpush3.bf16.msra.mxu1 %v5964_v22 }
 0xde2   :  { %4616 = vst.msk [vmem:[#allocation2 + $0x294] sm:$0xf] %vm3442_vm2, %v8896_v45  ;;  %v5963_v30 = vcombine.low %v4283_v16, %v4284_v26  ;;  %v4312_v33 = vpop.permute.xlu1 %4311 }
 0xde4   :  { %6204 = vmatprep.subr.bf16.mxu1 %v5963_v30 }
 0xde5   :  { %6205 = vmatpush3.bf16.msra.mxu1 %v5963_v30  ;;  %v6530_v30 = vld [vmem:[%s8580_s19 + $0x4] ss:$12 sps:$4 sm:$0xff]  }
 0xde6   :  { %4505 = vmatmul.mubr.bf16.gmra.mxu0 %v6509_v29  ;;  %v4317_v41 = vpop.permute.xlu0 %4316  ;;  %v3997_v8 = vpop.permute.xlu1 %3996  ;;  %v4811_v29 = vld [vmem:[%s5660_s12 + $0x10] sm:$0xff] }
 0xde7   :  { %v4063_v24 = vadd.f32 %v6200_v17, %v3997_v8  ;;  %v4812_v17 = vld [vmem:[%s5660_s12 + $0x18] sm:$0xff] }
 0xde8   :  { %6207 = vmatmul.mubr.msk.bf16.vlgmr.msra.gmra.mxu1 %vm4457_vm3, %v6511_v21  ;;  %v6536_v21 = vld [vmem:[%s8580_s19 + $0x8] ss:$12 sps:$4 sm:$0xff]  }
 0xde9   :  { %5009 = vmatprep.mubr.bf16.mxu1 %v6530_v30  ;;  %6214 = vmatprep.mubr.msk.bf16.mxu0 %vm4457_vm3, %v6536_v21 }
 0xdea   :  { %v4002_v15 = vpop.permute.xlu0 %4001  ;;  %v4302_v62 = vpop.permute.xlu1 %4301 }
 0xdeb   :  { %v4066_v37 = vadd.f32 %v6201_v9, %v4002_v15 }
 0xdee   :  { %v4307_v34 = vpop.permute.xlu0 %4306  ;;  %v3987_v6 = vpop.permute.xlu1 %3986 }
 0xdef   :  { %v4055_v25 = vadd.f32 %v4054_v12, %v3987_v6  ;;  %v4810_v12 = vld [vmem:[%s5660_s12 + $0x8] sm:$0xff] }
 0xdf2   :  { %v3992_v43 = vpop.permute.xlu0 %3991 }
 0xdf3   :  { %v4058_v53 = vadd.f32 %v4057_v19, %v3992_v43 }
 0xe9e   :  { %v6086_v0 = vpop.f32.mrf.mxu0 }
 0xea0   :  { %v6087_v35 = vpop.f32.mrf.mxu0 }
 0xea1   :  { %v6088_v20 = vadd.f32 %v6087_v35, %v6086_v0 }
 0xea2   :  { %v6089_v23 = vpop.f32.mrf.mxu0 }
 0xea3   :  { %v4499_v40 = vadd.f32 %v6088_v20, %v4302_v62 }
 0xea4   :  { %v6090_v36 = vpop.f32.mrf.mxu0 }
 0xea5   :  { %v6091_v28 = vadd.f32 %v6090_v36, %v6089_v23 }
 0xea6   :  { %v6092_v57 = vpop.f32.mrf.mxu0 }
 0xea7   :  { %v4502_v18 = vadd.f32 %v6091_v28, %v4307_v34 }
 0xea8   :  { %v6208_v42 = vpop.f32.mrf.mxu1  ;;  %v6093_v32 = vpop.f32.mrf.mxu0 }
 0xea9   :  { %v6094_v38 = vadd.f32 %v6093_v32, %v6092_v57 }
 0xeaa   :  { %v4547_v61 = vpop.f32.mrf.mxu1  ;;  %v6095_v3 = vpop.f32.mrf.mxu0 }
 0xeab   :  { %v4507_v10 = vadd.f32 %v6094_v38, %v4312_v33  ;;  %v4548_v44 = vadd.f32 %v4547_v61, %v4499_v40  ;;  %v4809_v33 = vld [vmem:[%s5660_s12] sm:$0xff] }
 0xeac   :  { %v6209_v46 = vpop.f32.mrf.mxu1  ;;  %v6096_v47 = vpop.f32.mrf.mxu0 }
 0xead   :  { %v4556_v48 = vadd.f32 %v6208_v42, %v4507_v10  ;;  %v4562_v39 = vadd.f32 %v4548_v44, %v4055_v25  ;;  %v6097_v51 = vadd.f32 %v6096_v47, %v6095_v3 }
 0xeae   :  { %v4550_v49 = vpop.f32.mrf.mxu1 }
 0xeaf   :  { %v4564_v31 = vadd.f32 %v4556_v48, %v4063_v24  ;;  %v4566_v54 = vmax.f32 %v4562_v39, 0.0  ;;  %v4510_v55 = vadd.f32 %v6097_v51, %v4317_v41  ;;  %v4551_v52 = vadd.f32 %v4550_v49, %v4502_v18 }
 0xeb1   :  { %v4568_v58 = vmax.f32 %v4564_v31, 0.0  ;;  %v4577_v27 = vmul.f32 %v8229_v4, %v4566_v54  ;;  %v4559_v63 = vadd.f32 %v6209_v46, %v4510_v55  ;;  %v4563_v2 = vadd.f32 %v4551_v52, %v4058_v53 }
 0xeb3   :  { %v4579_v5 = vmul.f32 %v8229_v4, %v4568_v58  ;;  %v6047_v59 = vpack.c.bf16 %v4577_v27, %v4577_v27  ;;  %v4565_v50 = vadd.f32 %v4559_v63, %v4066_v37  ;;  %v4567_v1 = vmax.f32 %v4563_v2, 0.0 }
 0xeb5   :  { %v6049_v13 = vpack.c.bf16 %v4579_v5, %v4579_v5  ;;  %4697 = vst.msk [vmem:[#allocation2 + $0x140] sm:$0xf] %vm3442_vm2, %v6047_v59  ;;  %v4569_v60 = vmax.f32 %v4565_v50, 0.0  ;;  %v4578_v11 = vmul.f32 %v8229_v4, %v4567_v1  ;;  %4733 = vrot.lane.b32.xlu1 %v6047_v59, %s6597_s11  ;;  %v6528_v1 = vld [vmem:[%s8580_s19] ss:$12 sps:$4 sm:$0xff]  }
 0xeb7   :  { %4699 = vst.msk [vmem:[#allocation2 + $0x168] sm:$0xf] %vm3442_vm2, %v6049_v13  ;;  %v4580_v7 = vmul.f32 %v8229_v4, %v4569_v60  ;;  %v6048_v14 = vpack.c.bf16 %v4578_v11, %v4578_v11  ;;  %v8537_v56 = vpack.c.bf16 %v4578_v11, %v4577_v27 }
 0xeb9   :  { %v6050_v16 = vpack.c.bf16 %v4580_v7, %v4580_v7  ;;  %4698 = vst.msk [vmem:[#allocation2 + $0x154] sm:$0xf] %vm3442_vm2, %v6048_v14  ;;  %4735 = vrot.lane.b32.xlu0 %v6048_v14, %s6597_s11  ;;  %4677 = vrot.lane.b32.xlu1 %v6047_v59, %s6573_s13  ;;  %v8542_v22 = vpack.c.bf16 %v4580_v7, %v4579_v5  ;;  %v6535_v7 = vld [vmem:[%s8580_s19 + $0x18] ss:$12 sps:$4 sm:$0xff]  }
 0xebb   :  { %4700 = vst.msk [vmem:[#allocation2 + $0x17c] sm:$0xf] %vm3442_vm2, %v6050_v16 }
 0xebd   :  { %4679 = vrot.lane.b32.xlu0 %v6048_v14, %s6573_s13  ;;  %4717 = vrot.lane.b32.xlu1 %v6047_v59, %s6598_s6 }
 0xec0   :  { %v8547_v26 = vld [vmem:[#allocation2 + $0x140] ss:$20 sps:$4 sm:$0xff]  }
 0xec1   :  { %4719 = vrot.lane.b32.xlu0 %v6048_v14, %s6598_s6  ;;  %4661 = vrot.lane.b32.xlu1 %v6047_v59, %s6595_s30  ;;  %5112 = vst.msk [vmem:[#allocation2 + $0x140] sm:$0xf] %vm3442_vm2, %v8896_v45  ;;  %5113 = vst.msk [vmem:[#allocation2 + $0x154] sm:$0xf] %vm3442_vm2, %v8896_v45 }
 0xec2   :  { %v8555_v4 = vld [vmem:[#allocation2 + $0x168] ss:$20 sps:$4 sm:$0xff]  }
 0xec3   :  { %5114 = vst.msk [vmem:[#allocation2 + $0x168] sm:$0xf] %vm3442_vm2, %v8896_v45  ;;  %5115 = vst.msk [vmem:[#allocation2 + $0x17c] sm:$0xf] %vm3442_vm2, %v8896_v45 }
 0xec5   :  { %4663 = vrot.lane.b32.xlu0 %v6048_v14, %s6595_s30  ;;  %4701 = vrot.lane.b32.xlu1 %v6047_v59, %s6567_s7 }
 0xec9   :  { %4703 = vrot.lane.b32.xlu0 %v6048_v14, %s6567_s7  ;;  %4737 = vrot.lane.b32.xlu1 %v6049_v13, %s6597_s11 }
 0xecd   :  { %4739 = vrot.lane.b32.xlu0 %v6050_v16, %s6597_s11  ;;  %4681 = vrot.lane.b32.xlu1 %v6049_v13, %s6573_s13 }
 0xed1   :  { %4683 = vrot.lane.b32.xlu0 %v6050_v16, %s6573_s13  ;;  %4721 = vrot.lane.b32.xlu1 %v6049_v13, %s6598_s6 }
 0xed5   :  { %4723 = vrot.lane.b32.xlu0 %v6050_v16, %s6598_s6  ;;  %4665 = vrot.lane.b32.xlu1 %v6049_v13, %s6595_s30 }
 0xed9   :  { %4667 = vrot.lane.b32.xlu0 %v6050_v16, %s6595_s30  ;;  %4705 = vrot.lane.b32.xlu1 %v6049_v13, %s6567_s7 }
 0xedd   :  { %4707 = vrot.lane.b32.xlu0 %v6050_v16, %s6567_s7  ;;  %4649 = vrot.lane.b32.xlu1 %v6049_v13, %s6575_s18 }
 0xee1   :  { %4651 = vrot.lane.b32.xlu0 %v6050_v16, %s6575_s18  ;;  %4645 = vrot.lane.b32.xlu1 %v6047_v59, %s6575_s18 }
 0xee5   :  { %4647 = vrot.lane.b32.xlu0 %v6048_v14, %s6575_s18  ;;  %4633 = vrot.lane.b32.xlu1 %v6049_v13, %s6574_s14 }
 0xee9   :  { %4635 = vrot.lane.b32.xlu0 %v6050_v16, %s6574_s14  ;;  %4629 = vrot.lane.b32.xlu1 %v6047_v59, %s6574_s14 }
 0xeed   :  { %4631 = vrot.lane.b32.xlu0 %v6048_v14, %s6574_s14  ;;  %4753 = vrot.lane.b32.xlu1 %v6049_v13, %s6601_s10  ;;  %v6533_v13 = vld [vmem:[%s8580_s19 + $0x1c] ss:$12 sps:$4 sm:$0xff]  }
 0xef1   :  { %4755 = vrot.lane.b32.xlu0 %v6050_v16, %s6601_s10  ;;  %4749 = vrot.lane.b32.xlu1 %v6047_v59, %s6601_s10 }
 0xef5   :  { %4751 = vrot.lane.b32.xlu0 %v6048_v14, %s6601_s10  ;;  %4825 = vperm.xlu1 %6279, %v4811_v29   ;;  %v6537_v14 = vld [vmem:[%s8580_s19 + $0x20] ss:$12 sps:$4 sm:$0xff]  }
 0xef9   :  { %4830 = vperm.xlu0 %6278, %v4812_v17   ;;  %4815 = vperm.xlu1 %6279, %v4809_v33  }
 0xefd   :  { %4820 = vperm.xlu0 %6278, %v4810_v12  }
 0xf27   :  { %v4734_v41 = vpop.permute.xlu1 %4733 }
 0xf28   :  { %4745 = vst.msk [vmem:[#allocation2 + $0x230] sm:$0xf] %vm3530_vm9, %v4734_v41 }
 0xf2b   :  { %v4736_v9 = vpop.permute.xlu0 %4735  ;;  %v4678_v8 = vpop.permute.xlu1 %4677 }
 0xf2c   :  { %4746 = vst.msk [vmem:[#allocation2 + $0x244] sm:$0xf] %vm3530_vm9, %v4736_v9 }
 0xf2d   :  { %4689 = vst.msk [vmem:[#allocation2 + $0xf0] sm:$0xf] %vm3499_vm4, %v4678_v8 }
 0xf2f   :  { %v4680_v19 = vpop.permute.xlu0 %4679  ;;  %v4718_v0 = vpop.permute.xlu1 %4717 }
 0xf30   :  { %4690 = vst.msk [vmem:[#allocation2 + $0x104] sm:$0xf] %vm3499_vm4, %v4680_v19 }
 0xf31   :  { %4729 = vst.msk [vmem:[#allocation2 + $0x1e0] sm:$0xf] %vm3521_vm8, %v4718_v0 }
 0xf33   :  { %v4720_v15 = vpop.permute.xlu0 %4719  ;;  %v4662_v35 = vpop.permute.xlu1 %4661  ;;  %v6514_v62 = vld [vmem:[#allocation2 + $0x230] ss:$20 sps:$4 sm:$0xff]  }
 0xf34   :  { %4730 = vst.msk [vmem:[#allocation2 + $0x1f4] sm:$0xf] %vm3521_vm8, %v4720_v15 }
 0xf35   :  { %4673 = vst.msk [vmem:[#allocation2 + $0xa0] sm:$0xf] %vm3490_vm10, %v4662_v35 }
 0xf36   :  { %5124 = vst.msk [vmem:[#allocation2 + $0x230] sm:$0xf] %vm3442_vm2, %v8896_v45  ;;  %5125 = vst.msk [vmem:[#allocation2 + $0x244] sm:$0xf] %vm3442_vm2, %v8896_v45 }
 0xf37   :  { %v4664_v23 = vpop.permute.xlu0 %4663  ;;  %v4702_v36 = vpop.permute.xlu1 %4701  ;;  %v6515_v34 = vld [vmem:[#allocation2 + $0xf0] ss:$20 sps:$4 sm:$0xff]  }
 0xf38   :  { %4674 = vst.msk [vmem:[#allocation2 + $0xb4] sm:$0xf] %vm3490_vm10, %v4664_v23 }
 0xf39   :  { %4713 = vst.msk [vmem:[#allocation2 + $0x190] sm:$0xf] %vm3512_vm6, %v4702_v36  ;;  %v8701_v36 = vld [vmem:[%s8223_s26] ss:$0 sm:$0xff] }
 0xf3a   :  { %5108 = vst.msk [vmem:[#allocation2 + $0xf0] sm:$0xf] %vm3442_vm2, %v8896_v45  ;;  %5109 = vst.msk [vmem:[#allocation2 + $0x104] sm:$0xf] %vm3442_vm2, %v8896_v45 }
 0xf3b   :  { %v4704_v20 = vpop.permute.xlu0 %4703  ;;  %v4738_v57 = vpop.permute.xlu1 %4737  ;;  %v6518_v6 = vld [vmem:[#allocation2 + $0x1e0] ss:$20 sps:$4 sm:$0xff]  }
 0xf3c   :  { %4714 = vst.msk [vmem:[#allocation2 + $0x1a4] sm:$0xf] %vm3512_vm6, %v4704_v20 }
 0xf3d   :  { %4747 = vst.msk [vmem:[#allocation2 + $0x258] sm:$0xf] %vm3530_vm9, %v4738_v57 }
 0xf3e   :  { %5120 = vst.msk [vmem:[#allocation2 + $0x1e0] sm:$0xf] %vm3442_vm2, %v8896_v45  ;;  %5121 = vst.msk [vmem:[#allocation2 + $0x1f4] sm:$0xf] %vm3442_vm2, %v8896_v45 }
 0xf3f   :  { %v4740_v42 = vpop.permute.xlu0 %4739  ;;  %v4682_v32 = vpop.permute.xlu1 %4681  ;;  %v6519_v28 = vld [vmem:[#allocation2 + $0xa0] ss:$20 sps:$4 sm:$0xff]  }
 0xf40   :  { %4748 = vst.msk [vmem:[#allocation2 + $0x26c] sm:$0xf] %vm3530_vm9, %v4740_v42 }
 0xf41   :  { %4691 = vst.msk [vmem:[#allocation2 + $0x118] sm:$0xf] %vm3499_vm4, %v4682_v32 }
 0xf42   :  { %5104 = vst.msk [vmem:[#allocation2 + $0xa0] sm:$0xf] %vm3442_vm2, %v8896_v45  ;;  %5105 = vst.msk [vmem:[#allocation2 + $0xb4] sm:$0xf] %vm3442_vm2, %v8896_v45 }
 0xf43   :  { %v4684_v38 = vpop.permute.xlu0 %4683  ;;  %v4722_v40 = vpop.permute.xlu1 %4721  ;;  %v6522_v61 = vld [vmem:[#allocation2 + $0x190] ss:$20 sps:$4 sm:$0xff]  }
 0xf44   :  { %4692 = vst.msk [vmem:[#allocation2 + $0x12c] sm:$0xf] %vm3499_vm4, %v4684_v38 }
 0xf45   :  { %4731 = vst.msk [vmem:[#allocation2 + $0x208] sm:$0xf] %vm3521_vm8, %v4722_v40 }
 0xf46   :  { %5116 = vst.msk [vmem:[#allocation2 + $0x190] sm:$0xf] %vm3442_vm2, %v8896_v45  ;;  %5117 = vst.msk [vmem:[#allocation2 + $0x1a4] sm:$0xf] %vm3442_vm2, %v8896_v45 }
 0xf47   :  { %v4724_v3 = vpop.permute.xlu0 %4723  ;;  %v4666_v25 = vpop.permute.xlu1 %4665  ;;  %v6512_v43 = vld [vmem:[#allocation2 + $0x258] ss:$20 sps:$4 sm:$0xff]  }
 0xf48   :  { %4732 = vst.msk [vmem:[#allocation2 + $0x21c] sm:$0xf] %vm3521_vm8, %v4724_v3  ;;  %6102 = vmatprep.subr.bf16.mxu1 %v6512_v43 }
 0xf49   :  { %4675 = vst.msk [vmem:[#allocation2 + $0xc8] sm:$0xf] %vm3490_vm10, %v4666_v25 }
 0xf4a   :  { %5126 = vst.msk [vmem:[#allocation2 + $0x258] sm:$0xf] %vm3442_vm2, %v8896_v45  ;;  %5127 = vst.msk [vmem:[#allocation2 + $0x26c] sm:$0xf] %vm3442_vm2, %v8896_v45 }
 0xf4b   :  { %v4668_v10 = vpop.permute.xlu0 %4667  ;;  %v4706_v44 = vpop.permute.xlu1 %4705  ;;  %v6513_v24 = vld [vmem:[#allocation2 + $0x118] ss:$20 sps:$4 sm:$0xff]  }
 0xf4c   :  { %4676 = vst.msk [vmem:[#allocation2 + $0xdc] sm:$0xf] %vm3490_vm10, %v4668_v10  ;;  %6103 = vmatpush3.bf16.msra.mxu1 %v6513_v24 }
 0xf4d   :  { %4715 = vst.msk [vmem:[#allocation2 + $0x1b8] sm:$0xf] %vm3512_vm6, %v4706_v44  ;;  %6104 = vmatprep.subr.bf16.mxu1 %v6514_v62 }
 0xf4e   :  { %5110 = vst.msk [vmem:[#allocation2 + $0x118] sm:$0xf] %vm3442_vm2, %v8896_v45  ;;  %5111 = vst.msk [vmem:[#allocation2 + $0x12c] sm:$0xf] %vm3442_vm2, %v8896_v45 }
 0xf4f   :  { %v4708_v46 = vpop.permute.xlu0 %4707  ;;  %v4650_v47 = vpop.permute.xlu1 %4649  ;;  %v6516_v48 = vld [vmem:[#allocation2 + $0x208] ss:$20 sps:$4 sm:$0xff]  }
 0xf50   :  { %4716 = vst.msk [vmem:[#allocation2 + $0x1cc] sm:$0xf] %vm3512_vm6, %v4708_v46  ;;  %6105 = vmatpush3.bf16.msra.mxu1 %v6515_v34 }
 0xf51   :  { %4659 = vst.msk [vmem:[#allocation2 + $0x78] sm:$0xf] %vm3481_vm5, %v4650_v47  ;;  %6106 = vmatprep.subr.bf16.mxu1 %v6516_v48 }
 0xf52   :  { %5122 = vst.msk [vmem:[#allocation2 + $0x208] sm:$0xf] %vm3442_vm2, %v8896_v45  ;;  %5123 = vst.msk [vmem:[#allocation2 + $0x21c] sm:$0xf] %vm3442_vm2, %v8896_v45 }
 0xf53   :  { %v4652_v39 = vpop.permute.xlu0 %4651  ;;  %v4646_v51 = vpop.permute.xlu1 %4645  ;;  %v6517_v18 = vld [vmem:[#allocation2 + $0xc8] ss:$20 sps:$4 sm:$0xff]  }
 0xf54   :  { %4660 = vst.msk [vmem:[#allocation2 + $0x8c] sm:$0xf] %vm3481_vm5, %v4652_v39  ;;  %4657 = vst.msk [vmem:[#allocation2 + $0x50] sm:$0xf] %vm3481_vm5, %v4646_v51  ;;  %6107 = vmatpush3.bf16.msra.mxu1 %v6517_v18 }
 0xf55   :  { %5106 = vst.msk [vmem:[#allocation2 + $0xc8] sm:$0xf] %vm3442_vm2, %v8896_v45  ;;  %5107 = vst.msk [vmem:[#allocation2 + $0xdc] sm:$0xf] %vm3442_vm2, %v8896_v45  ;;  %6108 = vmatprep.subr.bf16.mxu1 %v6518_v6 }
 0xf57   :  { %v4648_v53 = vpop.permute.xlu0 %4647  ;;  %v4634_v49 = vpop.permute.xlu1 %4633  ;;  %v6520_v31 = vld [vmem:[#allocation2 + $0x1b8] ss:$20 sps:$4 sm:$0xff]  }
 0xf58   :  { %4658 = vst.msk [vmem:[#allocation2 + $0x64] sm:$0xf] %vm3481_vm5, %v4648_v53  ;;  %6109 = vmatpush3.bf16.msra.mxu1 %v6519_v28 }
 0xf59   :  { %4643 = vst.msk [vmem:[#allocation2 + $0x28] sm:$0xf] %vm3472_vm0, %v4634_v49  ;;  %6110 = vmatprep.subr.bf16.mxu1 %v6520_v31 }
 0xf5a   :  { %5118 = vst.msk [vmem:[#allocation2 + $0x1b8] sm:$0xf] %vm3442_vm2, %v8896_v45  ;;  %5119 = vst.msk [vmem:[#allocation2 + $0x1cc] sm:$0xf] %vm3442_vm2, %v8896_v45 }
 0xf5b   :  { %v4636_v54 = vpop.permute.xlu0 %4635  ;;  %v4630_v55 = vpop.permute.xlu1 %4629  ;;  %v6521_v52 = vld [vmem:[#allocation2 + $0x78] ss:$20 sps:$4 sm:$0xff]  }
 0xf5c   :  { %4644 = vst.msk [vmem:[#allocation2 + $0x3c] sm:$0xf] %vm3472_vm0, %v4636_v54  ;;  %4641 = vst.msk [vmem:[#allocation2] sm:$0xf] %vm3472_vm0, %v4630_v55  ;;  %6111 = vmatpush3.bf16.msra.mxu1 %v6521_v52 }
 0xf5d   :  { %5102 = vst.msk [vmem:[#allocation2 + $0x78] sm:$0xf] %vm3442_vm2, %v8896_v45  ;;  %5103 = vst.msk [vmem:[#allocation2 + $0x8c] sm:$0xf] %vm3442_vm2, %v8896_v45  ;;  %6112 = vmatprep.subr.bf16.mxu1 %v6522_v61 }
 0xf5f   :  { %v4632_v37 = vpop.permute.xlu0 %4631  ;;  %v4754_v58 = vpop.permute.xlu1 %4753  ;;  %v6523_v27 = vld [vmem:[#allocation2 + $0x50] ss:$20 sps:$4 sm:$0xff]  }
 0xf60   :  { %4642 = vst.msk [vmem:[#allocation2 + $0x14] sm:$0xf] %vm3472_vm0, %v4632_v37  ;;  %6113 = vmatpush3.bf16.msra.mxu1 %v6523_v27 }
 0xf61   :  { %4763 = vst.msk [vmem:[#allocation2 + $0x2a8] sm:$0xf] %vm3539_vm1, %v4754_v58  ;;  %6114 = vmatprep.subr.bf16.mxu1 %v8555_v4 }
 0xf62   :  { %5100 = vst.msk [vmem:[#allocation2 + $0x50] sm:$0xf] %vm3442_vm2, %v8896_v45  ;;  %5101 = vst.msk [vmem:[#allocation2 + $0x64] sm:$0xf] %vm3442_vm2, %v8896_v45 }
 0xf63   :  { %v4756_v63 = vpop.permute.xlu0 %4755  ;;  %v4750_v2 = vpop.permute.xlu1 %4749  ;;  %v6525_v5 = vld [vmem:[#allocation2 + $0x28] ss:$20 sps:$4 sm:$0xff]  }
 0xf64   :  { %4764 = vst.msk [vmem:[#allocation2 + $0x2bc] sm:$0xf] %vm3539_vm1, %v4756_v63  ;;  %4761 = vst.msk [vmem:[#allocation2 + $0x280] sm:$0xf] %vm3539_vm1, %v4750_v2  ;;  %6115 = vmatpush3.bf16.msra.mxu1 %v6525_v5 }
 0xf65   :  { %5098 = vst.msk [vmem:[#allocation2 + $0x28] sm:$0xf] %vm3442_vm2, %v8896_v45  ;;  %5099 = vst.msk [vmem:[#allocation2 + $0x3c] sm:$0xf] %vm3442_vm2, %v8896_v45  ;;  %6116 = vmatprep.subr.bf16.mxu1 %v8547_v26 }
 0xf67   :  { %v4752_v59 = vpop.permute.xlu0 %4751  ;;  %v6527_v50 = vld [vmem:[#allocation2] ss:$20 sps:$4 sm:$0xff]  }
 0xf68   :  { %4762 = vst.msk [vmem:[#allocation2 + $0x294] sm:$0xf] %vm3539_vm1, %v4752_v59  ;;  %6117 = vmatpush3.bf16.msra.mxu1 %v6527_v50 }
 0xf69   :  { %5096 = vst.msk [vmem:[#allocation2] sm:$0xf] %vm3442_vm2, %v8896_v45  ;;  %5097 = vst.msk [vmem:[#allocation2 + $0x14] sm:$0xf] %vm3442_vm2, %v8896_v45 }
 0xf6b   :  { %v6531_v60 = vld [vmem:[#allocation2 + $0x2a8] ss:$20 sps:$4 sm:$0xff]   ;;  %5010 = vmatmul.mubr.bf16.vlgmr.msra.gmra.mxu1 %v6528_v1 }
 0xf6c   :  { %5130 = vst.msk [vmem:[#allocation2 + $0x2a8] sm:$0xf] %vm3442_vm2, %v8896_v45  ;;  %5131 = vst.msk [vmem:[#allocation2 + $0x2bc] sm:$0xf] %vm3442_vm2, %v8896_v45  ;;  %6210 = vmatprep.subr.bf16.mxu0 %v6531_v60  ;;  %5017 = vmatprep.mubr.bf16.mxu1 %v6533_v13 }
 0xf6d   :  { %6211 = vmatpush3.bf16.msra.mxu0 %v6531_v60 }
 0xf6f   :  { %v6532_v11 = vld [vmem:[#allocation2 + $0x280] ss:$20 sps:$4 sm:$0xff]  }
 0xf70   :  { %5128 = vst.msk [vmem:[#allocation2 + $0x280] sm:$0xf] %vm3442_vm2, %v8896_v45  ;;  %5129 = vst.msk [vmem:[#allocation2 + $0x294] sm:$0xf] %vm3442_vm2, %v8896_v45  ;;  %6212 = vmatprep.subr.bf16.mxu0 %v6532_v11  ;;  %v4826_v4 = vpop.permute.xlu1 %4825 }
 0xf71   :  { %6213 = vmatpush3.bf16.msra.mxu0 %v6532_v11 }
 0xf73   :  { %5018 = vmatmul.mubr.bf16.gmra.mxu1 %v6535_v7 }
 0xf74   :  { %6215 = vmatmul.mubr.msk.bf16.vlgmr.msra.gmra.mxu0 %vm4457_vm3, %v6537_v14  ;;  %v4831_v17 = vpop.permute.xlu0 %4830  ;;  %v4816_v12 = vpop.permute.xlu1 %4815 }
 0xf78   :  { %v4821_v62 = vpop.permute.xlu0 %4820 }
0x102b   :  { %v6118_v16 = vpop.f32.mrf.mxu1 }
0x102d   :  { %v6119_v26 = vpop.f32.mrf.mxu1 }
0x102e   :  { %v6120_v29 = vadd.f32 %v6119_v26, %v6118_v16 }
0x102f   :  { %v6121_v30 = vpop.f32.mrf.mxu1 }
0x1030   :  { %v5012_v8 = vadd.f32 %v6120_v29, %v4816_v12 }
0x1031   :  { %v6122_v21 = vpop.f32.mrf.mxu1 }
0x1032   :  { %v6123_v9 = vadd.f32 %v6122_v21, %v6121_v30 }
0x1033   :  { %v6124_v33 = vpop.f32.mrf.mxu1 }
0x1034   :  { %v6216_v41 = vpop.f32.mrf.mxu0  ;;  %v5015_v6 = vadd.f32 %v6123_v9, %v4821_v62 }
0x1035   :  { %v6125_v45 = vpop.f32.mrf.mxu1 }
0x1036   :  { %v6126_v19 = vadd.f32 %v6125_v45, %v6124_v33  ;;  %v5060_v0 = vpop.f32.mrf.mxu0 }
0x1037   :  { %v5061_v15 = vadd.f32 %v5060_v0, %v5012_v8  ;;  %v6127_v35 = vpop.f32.mrf.mxu1 }
0x1038   :  { %v5020_v23 = vadd.f32 %v6126_v19, %v4826_v4  ;;  %v6217_v34 = vpop.f32.mrf.mxu0 }
0x1039   :  { %v5075_v20 = vmax.f32 %v5061_v15, 0.0  ;;  %v6128_v57 = vpop.f32.mrf.mxu1 }
0x103a   :  { %v5069_v42 = vadd.f32 %v6216_v41, %v5020_v23  ;;  %v6129_v32 = vadd.f32 %v6128_v57, %v6127_v35  ;;  %v5063_v28 = vpop.f32.mrf.mxu0 }
0x103b   :  { %v5086_v38 = vmul.f32 %v8701_v36, %v5075_v20  ;;  %v5064_v40 = vadd.f32 %v5063_v28, %v5015_v6 }
0x103c   :  { %v5077_v61 = vmax.f32 %v5069_v42, 0.0  ;;  %v5023_v3 = vadd.f32 %v6129_v32, %v4831_v17 }
0x103d   :  { %v6051_v25 = vpack.c.bf16 %v5086_v38, %v5086_v38  ;;  %v5076_v43 = vmax.f32 %v5064_v40, 0.0 }
0x103e   :  { %v5088_v10 = vmul.f32 %v8701_v36, %v5077_v61  ;;  %v5072_v44 = vadd.f32 %v6217_v34, %v5023_v3 }
0x103f   :  { %5210 = vst.msk [vmem:[#allocation2 + $0x140] sm:$0xf] %vm3442_vm2, %v6051_v25  ;;  %v5087_v24 = vmul.f32 %v8701_v36, %v5076_v43  ;;  %5246 = vrot.lane.b32.xlu1 %v6051_v25, %s6597_s11 }
0x1040   :  { %v6053_v46 = vpack.c.bf16 %v5088_v10, %v5088_v10  ;;  %v5078_v47 = vmax.f32 %v5072_v44, 0.0 }
0x1041   :  { %v6052_v48 = vpack.c.bf16 %v5087_v24, %v5087_v24 }
0x1042   :  { %5212 = vst.msk [vmem:[#allocation2 + $0x168] sm:$0xf] %vm3442_vm2, %v6053_v46  ;;  %v5089_v39 = vmul.f32 %v8701_v36, %v5078_v47 }
0x1043   :  { %5211 = vst.msk [vmem:[#allocation2 + $0x154] sm:$0xf] %vm3442_vm2, %v6052_v48  ;;  %5248 = vrot.lane.b32.xlu0 %v6052_v48, %s6597_s11  ;;  %5190 = vrot.lane.b32.xlu1 %v6051_v25, %s6573_s13 }
0x1044   :  { %v6054_v51 = vpack.c.bf16 %v5089_v39, %v5089_v39 }
0x1046   :  { %5213 = vst.msk [vmem:[#allocation2 + $0x17c] sm:$0xf] %vm3442_vm2, %v6054_v51 }
0x1047   :  { %5192 = vrot.lane.b32.xlu0 %v6052_v48, %s6573_s13  ;;  %5230 = vrot.lane.b32.xlu1 %v6051_v25, %s6598_s6 }
0x104b   :  { %5232 = vrot.lane.b32.xlu0 %v6052_v48, %s6598_s6  ;;  %5174 = vrot.lane.b32.xlu1 %v6051_v25, %s6595_s30 }
0x104d   :  { %v6550_v38 = vld [vmem:[#allocation2 + $0x168] ss:$20 sps:$4 sm:$0xff]  }
0x104f   :  { %5176 = vrot.lane.b32.xlu0 %v6052_v48, %s6595_s30  ;;  %5214 = vrot.lane.b32.xlu1 %v6051_v25, %s6567_s7 }
0x1053   :  { %5216 = vrot.lane.b32.xlu0 %v6052_v48, %s6567_s7  ;;  %5250 = vrot.lane.b32.xlu1 %v6053_v46, %s6597_s11 }
0x1057   :  { %5252 = vrot.lane.b32.xlu0 %v6054_v51, %s6597_s11  ;;  %5194 = vrot.lane.b32.xlu1 %v6053_v46, %s6573_s13  ;;  %s6613_s11 = smov 34  }
0x1058   :  { %s8737_s24 = sld [smem:[%s8812_s0 + %s6613_s11]]  }
0x105b   :  { %5196 = vrot.lane.b32.xlu0 %v6054_v51, %s6573_s13  ;;  %5234 = vrot.lane.b32.xlu1 %v6053_v46, %s6598_s6 }
0x105e   :  { %v6556_v18 = vld [vmem:[%s8737_s24 + $0x4] ss:$12 sps:$4 sm:$0xff]   ;;  %v6562_v49 = vld [vmem:[%s8737_s24 + $0x8] ss:$12 sps:$4 sm:$0xff]   ;;  %v6554_v44 = vld [vmem:[%s8737_s24] ss:$12 sps:$4 sm:$0xff]  }
0x105f   :  { %5236 = vrot.lane.b32.xlu0 %v6054_v51, %s6598_s6  ;;  %5178 = vrot.lane.b32.xlu1 %v6053_v46, %s6595_s30  ;;  %v6559_v24 = vld [vmem:[%s8737_s24 + $0x1c] ss:$12 sps:$4 sm:$0xff]   ;;  %v6563_v39 = vld [vmem:[%s8737_s24 + $0x20] ss:$12 sps:$4 sm:$0xff]  }
0x1060   :  { %5522 = vmatprep.mubr.bf16.mxu0 %v6556_v18  ;;  %6222 = vmatprep.mubr.msk.bf16.mxu1 %vm4457_vm3, %v6562_v49 }
0x1063   :  { %5180 = vrot.lane.b32.xlu0 %v6054_v51, %s6595_s30  ;;  %5218 = vrot.lane.b32.xlu1 %v6053_v46, %s6567_s7 }
0x1067   :  { %5220 = vrot.lane.b32.xlu0 %v6054_v51, %s6567_s7  ;;  %5162 = vrot.lane.b32.xlu1 %v6053_v46, %s6575_s18  ;;  %s6614_s7 = smov 35  }
0x1068   :  { %s5662_s8 = sld [smem:[%s8812_s0 + %s6614_s7]]  }
0x106b   :  { %5164 = vrot.lane.b32.xlu0 %v6054_v51, %s6575_s18  ;;  %5158 = vrot.lane.b32.xlu1 %v6051_v25, %s6575_s18 }
0x106e   :  { %v5322_v53 = vld [vmem:[%s5662_s8] sm:$0xff]  ;;  %v5323_v31 = vld [vmem:[%s5662_s8 + $0x8] sm:$0xff]  ;;  %v5324_v54 = vld [vmem:[%s5662_s8 + $0x10] sm:$0xff] }
0x106f   :  { %5160 = vrot.lane.b32.xlu0 %v6052_v48, %s6575_s18  ;;  %5146 = vrot.lane.b32.xlu1 %v6053_v46, %s6574_s14  ;;  %v5325_v55 = vld [vmem:[%s5662_s8 + $0x18] sm:$0xff] }
0x1073   :  { %5148 = vrot.lane.b32.xlu0 %v6054_v51, %s6574_s14  ;;  %5142 = vrot.lane.b32.xlu1 %v6051_v25, %s6574_s14 }
0x1077   :  { %5144 = vrot.lane.b32.xlu0 %v6052_v48, %s6574_s14  ;;  %5266 = vrot.lane.b32.xlu1 %v6053_v46, %s6601_s10  ;;  %s6615_s14 = smov 38  }
0x1078   :  { %s8794_s25 = sld [smem:[%s8812_s0 + %s6615_s14]]  }
0x107b   :  { %5268 = vrot.lane.b32.xlu0 %v6054_v51, %s6601_s10  ;;  %5262 = vrot.lane.b32.xlu1 %v6051_v25, %s6601_s10  ;;  %v6552_v25 = vld [vmem:[#allocation2 + $0x140] ss:$20 sps:$4 sm:$0xff]  }
0x107f   :  { %5264 = vrot.lane.b32.xlu0 %v6052_v48, %s6601_s10  ;;  %5328 = vperm.xlu1 %6279, %v5322_v53   ;;  %v6561_v48 = vld [vmem:[%s8737_s24 + $0x18] ss:$12 sps:$4 sm:$0xff]  }
0x1083   :  { %5333 = vperm.xlu0 %6278, %v5323_v31   ;;  %5338 = vperm.xlu1 %6279, %v5324_v54  }
0x1087   :  { %5343 = vperm.xlu0 %6278, %v5325_v55  }
0x10b1   :  { %v5247_v52 = vpop.permute.xlu1 %5246 }
0x10b2   :  { %5258 = vst.msk [vmem:[#allocation2 + $0x230] sm:$0xf] %vm3530_vm9, %v5247_v52 }
0x10b5   :  { %v5249_v37 = vpop.permute.xlu0 %5248  ;;  %v5191_v58 = vpop.permute.xlu1 %5190 }
0x10b6   :  { %5259 = vst.msk [vmem:[#allocation2 + $0x244] sm:$0xf] %vm3530_vm9, %v5249_v37 }
0x10b7   :  { %5202 = vst.msk [vmem:[#allocation2 + $0xf0] sm:$0xf] %vm3499_vm4, %v5191_v58 }
0x10b9   :  { %v5193_v27 = vpop.permute.xlu0 %5192  ;;  %v5231_v63 = vpop.permute.xlu1 %5230 }
0x10ba   :  { %5203 = vst.msk [vmem:[#allocation2 + $0x104] sm:$0xf] %vm3499_vm4, %v5193_v27 }
0x10bb   :  { %5242 = vst.msk [vmem:[#allocation2 + $0x1e0] sm:$0xf] %vm3521_vm8, %v5231_v63 }
0x10bd   :  { %v5233_v2 = vpop.permute.xlu0 %5232  ;;  %v5175_v5 = vpop.permute.xlu1 %5174  ;;  %v6540_v17 = vld [vmem:[#allocation2 + $0x230] ss:$20 sps:$4 sm:$0xff]  }
0x10be   :  { %5243 = vst.msk [vmem:[#allocation2 + $0x1f4] sm:$0xf] %vm3521_vm8, %v5233_v2 }
0x10bf   :  { %5186 = vst.msk [vmem:[#allocation2 + $0xa0] sm:$0xf] %vm3490_vm10, %v5175_v5 }
0x10c1   :  { %v5177_v59 = vpop.permute.xlu0 %5176  ;;  %v5215_v50 = vpop.permute.xlu1 %5214  ;;  %v6541_v33 = vld [vmem:[#allocation2 + $0xf0] ss:$20 sps:$4 sm:$0xff]  }
0x10c2   :  { %5187 = vst.msk [vmem:[#allocation2 + $0xb4] sm:$0xf] %vm3490_vm10, %v5177_v59 }
0x10c3   :  { %5226 = vst.msk [vmem:[#allocation2 + $0x190] sm:$0xf] %vm3512_vm6, %v5215_v50  ;;  %v5092_v50 = vunpack.c.l.bf16 %v8537_v56 }
0x10c5   :  { %v5217_v1 = vpop.permute.xlu0 %5216  ;;  %v5251_v13 = vpop.permute.xlu1 %5250  ;;  %v6544_v0 = vld [vmem:[#allocation2 + $0x1e0] ss:$20 sps:$4 sm:$0xff]  }
0x10c6   :  { %5227 = vst.msk [vmem:[#allocation2 + $0x1a4] sm:$0xf] %vm3512_vm6, %v5217_v1 }
0x10c7   :  { %5260 = vst.msk [vmem:[#allocation2 + $0x258] sm:$0xf] %vm3530_vm9, %v5251_v13 }
0x10c9   :  { %v5253_v60 = vpop.permute.xlu0 %5252  ;;  %v5195_v11 = vpop.permute.xlu1 %5194  ;;  %v6545_v15 = vld [vmem:[#allocation2 + $0xa0] ss:$20 sps:$4 sm:$0xff]  }
0x10ca   :  { %5261 = vst.msk [vmem:[#allocation2 + $0x26c] sm:$0xf] %vm3530_vm9, %v5253_v60 }
0x10cb   :  { %5204 = vst.msk [vmem:[#allocation2 + $0x118] sm:$0xf] %vm3499_vm4, %v5195_v11 }
0x10cd   :  { %v5197_v7 = vpop.permute.xlu0 %5196  ;;  %v5235_v14 = vpop.permute.xlu1 %5234  ;;  %v6548_v6 = vld [vmem:[#allocation2 + $0x190] ss:$20 sps:$4 sm:$0xff]  }
0x10ce   :  { %5205 = vst.msk [vmem:[#allocation2 + $0x12c] sm:$0xf] %vm3499_vm4, %v5197_v7 }
0x10cf   :  { %5244 = vst.msk [vmem:[#allocation2 + $0x208] sm:$0xf] %vm3521_vm8, %v5235_v14 }
0x10d1   :  { %v5237_v16 = vpop.permute.xlu0 %5236  ;;  %v5179_v26 = vpop.permute.xlu1 %5178  ;;  %v6538_v4 = vld [vmem:[#allocation2 + $0x258] ss:$20 sps:$4 sm:$0xff]  }
0x10d2   :  { %5245 = vst.msk [vmem:[#allocation2 + $0x21c] sm:$0xf] %vm3521_vm8, %v5237_v16  ;;  %6134 = vmatprep.subr.bf16.mxu0 %v6538_v4 }
0x10d3   :  { %5188 = vst.msk [vmem:[#allocation2 + $0xc8] sm:$0xf] %vm3490_vm10, %v5179_v26  ;;  %v5094_v26 = vunpack.c.l.bf16 %v8542_v22 }
0x10d5   :  { %v5181_v30 = vpop.permute.xlu0 %5180  ;;  %v5219_v29 = vpop.permute.xlu1 %5218  ;;  %v6539_v21 = vld [vmem:[#allocation2 + $0x118] ss:$20 sps:$4 sm:$0xff]  }
0x10d6   :  { %5189 = vst.msk [vmem:[#allocation2 + $0xdc] sm:$0xf] %vm3490_vm10, %v5181_v30  ;;  %6135 = vmatpush3.bf16.msra.mxu0 %v6539_v21 }
0x10d7   :  { %5228 = vst.msk [vmem:[#allocation2 + $0x1b8] sm:$0xf] %vm3512_vm6, %v5219_v29  ;;  %6136 = vmatprep.subr.bf16.mxu0 %v6540_v17 }
0x10d9   :  { %v5221_v12 = vpop.permute.xlu0 %5220  ;;  %v5163_v41 = vpop.permute.xlu1 %5162  ;;  %v6542_v9 = vld [vmem:[#allocation2 + $0x208] ss:$20 sps:$4 sm:$0xff]  }
0x10da   :  { %5229 = vst.msk [vmem:[#allocation2 + $0x1cc] sm:$0xf] %vm3512_vm6, %v5221_v12  ;;  %6137 = vmatpush3.bf16.msra.mxu0 %v6541_v33  ;;  %v5093_v33 = vunpack.c.h.bf16 %v8537_v56 }
0x10db   :  { %5172 = vst.msk [vmem:[#allocation2 + $0x78] sm:$0xf] %vm3481_vm5, %v5163_v41  ;;  %6138 = vmatprep.subr.bf16.mxu0 %v6542_v9 }
0x10dd   :  { %v5165_v45 = vpop.permute.xlu0 %5164  ;;  %v5159_v8 = vpop.permute.xlu1 %5158  ;;  %v6543_v19 = vld [vmem:[#allocation2 + $0xc8] ss:$20 sps:$4 sm:$0xff]  }
0x10de   :  { %5173 = vst.msk [vmem:[#allocation2 + $0x8c] sm:$0xf] %vm3481_vm5, %v5165_v45  ;;  %5170 = vst.msk [vmem:[#allocation2 + $0x50] sm:$0xf] %vm3481_vm5, %v5159_v8  ;;  %6139 = vmatpush3.bf16.msra.mxu0 %v6543_v19 }
0x10df   :  { %6140 = vmatprep.subr.bf16.mxu0 %v6544_v0  ;;  %v5095_v0 = vunpack.c.h.bf16 %v8542_v22 }
0x10e1   :  { %v5161_v35 = vpop.permute.xlu0 %5160  ;;  %v5147_v62 = vpop.permute.xlu1 %5146  ;;  %v6546_v23 = vld [vmem:[#allocation2 + $0x1b8] ss:$20 sps:$4 sm:$0xff]  }
0x10e2   :  { %5171 = vst.msk [vmem:[#allocation2 + $0x64] sm:$0xf] %vm3481_vm5, %v5161_v35  ;;  %6141 = vmatpush3.bf16.msra.mxu0 %v6545_v15 }
0x10e3   :  { %5156 = vst.msk [vmem:[#allocation2 + $0x28] sm:$0xf] %vm3472_vm0, %v5147_v62  ;;  %6142 = vmatprep.subr.bf16.mxu0 %v6546_v23 }
0x10e5   :  { %v5149_v34 = vpop.permute.xlu0 %5148  ;;  %v5143_v20 = vpop.permute.xlu1 %5142  ;;  %v6547_v57 = vld [vmem:[#allocation2 + $0x78] ss:$20 sps:$4 sm:$0xff]  }
0x10e6   :  { %5157 = vst.msk [vmem:[#allocation2 + $0x3c] sm:$0xf] %vm3472_vm0, %v5149_v34  ;;  %5154 = vst.msk [vmem:[#allocation2] sm:$0xf] %vm3472_vm0, %v5143_v20  ;;  %6143 = vmatpush3.bf16.msra.mxu0 %v6547_v57 }
0x10e7   :  { %6144 = vmatprep.subr.bf16.mxu0 %v6548_v6 }
0x10e9   :  { %v5145_v42 = vpop.permute.xlu0 %5144  ;;  %v5267_v32 = vpop.permute.xlu1 %5266  ;;  %v6549_v28 = vld [vmem:[#allocation2 + $0x50] ss:$20 sps:$4 sm:$0xff]  }
0x10ea   :  { %5155 = vst.msk [vmem:[#allocation2 + $0x14] sm:$0xf] %vm3472_vm0, %v5145_v42  ;;  %6145 = vmatpush3.bf16.msra.mxu0 %v6549_v28 }
0x10eb   :  { %5276 = vst.msk [vmem:[#allocation2 + $0x2a8] sm:$0xf] %vm3539_vm1, %v5267_v32  ;;  %6146 = vmatprep.subr.bf16.mxu0 %v6550_v38 }
0x10ed   :  { %v5269_v40 = vpop.permute.xlu0 %5268  ;;  %v5263_v61 = vpop.permute.xlu1 %5262  ;;  %v6551_v3 = vld [vmem:[#allocation2 + $0x28] ss:$20 sps:$4 sm:$0xff]  }
0x10ee   :  { %5277 = vst.msk [vmem:[#allocation2 + $0x2bc] sm:$0xf] %vm3539_vm1, %v5269_v40  ;;  %5274 = vst.msk [vmem:[#allocation2 + $0x280] sm:$0xf] %vm3539_vm1, %v5263_v61  ;;  %6147 = vmatpush3.bf16.msra.mxu0 %v6551_v3 }
0x10ef   :  { %6148 = vmatprep.subr.bf16.mxu0 %v6552_v25 }
0x10f1   :  { %v5265_v43 = vpop.permute.xlu0 %5264  ;;  %v6553_v10 = vld [vmem:[#allocation2] ss:$20 sps:$4 sm:$0xff]  }
0x10f2   :  { %5275 = vst.msk [vmem:[#allocation2 + $0x294] sm:$0xf] %vm3539_vm1, %v5265_v43  ;;  %6149 = vmatpush3.bf16.msra.mxu0 %v6553_v10 }
0x10f5   :  { %v6557_v46 = vld [vmem:[#allocation2 + $0x2a8] ss:$20 sps:$4 sm:$0xff]   ;;  %5523 = vmatmul.mubr.bf16.vlgmr.msra.gmra.mxu0 %v6554_v44 }
0x10f6   :  { %6218 = vmatprep.subr.bf16.mxu1 %v6557_v46  ;;  %5530 = vmatprep.mubr.bf16.mxu0 %v6559_v24 }
0x10f7   :  { %6219 = vmatpush3.bf16.msra.mxu1 %v6557_v46 }
0x10f9   :  { %v6558_v47 = vld [vmem:[#allocation2 + $0x280] ss:$20 sps:$4 sm:$0xff]  }
0x10fa   :  { %6220 = vmatprep.subr.bf16.mxu1 %v6558_v47  ;;  %v5329_v49 = vpop.permute.xlu1 %5328 }
0x10fb   :  { %6221 = vmatpush3.bf16.msra.mxu1 %v6558_v47 }
0x10fd   :  { %5531 = vmatmul.mubr.bf16.gmra.mxu0 %v6561_v48 }
0x10fe   :  { %6223 = vmatmul.mubr.msk.bf16.vlgmr.msra.gmra.mxu1 %vm4457_vm3, %v6563_v39  ;;  %v5334_v37 = vpop.permute.xlu0 %5333  ;;  %v5339_v59 = vpop.permute.xlu1 %5338 }
0x1102   :  { %v5344_v21 = vpop.permute.xlu0 %5343 }
0x11b5   :  { %v6150_v51 = vpop.f32.mrf.mxu0 }
0x11b7   :  { %v6151_v18 = vpop.f32.mrf.mxu0 }
0x11b8   :  { %v6152_v31 = vadd.f32 %v6151_v18, %v6150_v51 }
0x11b9   :  { %v6153_v53 = vpop.f32.mrf.mxu0 }
0x11ba   :  { %v5525_v63 = vadd.f32 %v6152_v31, %v5329_v49 }
0x11bb   :  { %v6154_v54 = vpop.f32.mrf.mxu0 }
0x11bc   :  { %v6155_v58 = vadd.f32 %v6154_v54, %v6153_v53 }
0x11bd   :  { %v6156_v55 = vpop.f32.mrf.mxu0 }
0x11be   :  { %v6224_v52 = vpop.f32.mrf.mxu1  ;;  %v5528_v16 = vadd.f32 %v6155_v58, %v5334_v37 }
0x11bf   :  { %v6157_v27 = vpop.f32.mrf.mxu0 }
0x11c0   :  { %v6158_v2 = vadd.f32 %v6157_v27, %v6156_v55  ;;  %v5573_v5 = vpop.f32.mrf.mxu1 }
0x11c1   :  { %v5574_v1 = vadd.f32 %v5573_v5, %v5525_v63  ;;  %v6159_v13 = vpop.f32.mrf.mxu0 }
0x11c2   :  { %v5533_v60 = vadd.f32 %v6158_v2, %v5339_v59  ;;  %v6225_v11 = vpop.f32.mrf.mxu1 }
0x11c3   :  { %v5588_v7 = vadd.f32 %v5574_v1, %v5092_v50  ;;  %v6160_v14 = vpop.f32.mrf.mxu0 }
0x11c4   :  { %v5582_v4 = vadd.f32 %v6224_v52, %v5533_v60  ;;  %v6161_v30 = vadd.f32 %v6160_v14, %v6159_v13  ;;  %v5576_v29 = vpop.f32.mrf.mxu1 }
0x11c5   :  { %v5592_v17 = vmax.f32 %v5588_v7, 0.0  ;;  %v5577_v12 = vadd.f32 %v5576_v29, %v5528_v16 }
0x11c6   :  { %v5590_v41 = vadd.f32 %v5582_v4, %v5094_v26  ;;  %v5536_v9 = vadd.f32 %v6161_v30, %v5344_v21 }
0x11c7   :  { %v5603_v45 = vmul.f32 %v8701_v36, %v5592_v17  ;;  %v5589_v8 = vadd.f32 %v5577_v12, %v5093_v33 }
0x11c8   :  { %v5594_v19 = vmax.f32 %v5590_v41, 0.0  ;;  %v5585_v15 = vadd.f32 %v6225_v11, %v5536_v9 }
0x11c9   :  { %5612 = vst.msk [vmem:[%s8794_s25] sm:$0xff] %vm5609_vm13, %v5603_v45  ;;  %v5593_v35 = vmax.f32 %v5589_v8, 0.0 }
0x11ca   :  { %v5605_v62 = vmul.f32 %v8701_v36, %v5594_v19  ;;  %v5591_v23 = vadd.f32 %v5585_v15, %v5095_v0 }
0x11cb   :  { %v5604_v56 = vmul.f32 %v8701_v36, %v5593_v35 }
0x11cc   :  { %5614 = vst.msk [vmem:[%s8794_s25 + $0x10] sm:$0xff] %vm5609_vm13, %v5605_v62  ;;  %v5595_v34 = vmax.f32 %v5591_v23, 0.0 }
0x11cd   :  { %5613 = vst.msk [vmem:[%s8794_s25 + $0x8] sm:$0xff] %vm5609_vm13, %v5604_v56 }
0x11ce   :  { %v5606_v20 = vmul.f32 %v8701_v36, %v5595_v34 }
0x11d0   :  { %5615 = vst.msk [vmem:[%s8794_s25 + $0x18] sm:$0xff] %vm5609_vm13, %v5606_v20 }

</bundles_post_ra>
